<compile_context>
chip_gen: v7x
topology: tpu7x:2x2x1
jax: 0.10.0
libtpu: 0.0.40
codegen_flags: <defaults>
</compile_context>

<pallas_src>
import numpy as np

import jax
import jax.numpy as jnp
from jax.experimental import pallas as pl
from jax.experimental.pallas import tpu as pltpu

NC = 3           # input channels (nc)
NDF = 8          # base discriminator width (ndf), kept small
BN_EPS = 1e-5
LRELU_SLOPE = 0.2
KSIZE = 4

# (h_in, c_in, h_out, c_out, stride, pad, weight key, bn layer idx or None)
_GEO = [
    (64, NC,      32, NDF,     2, 1, "w1", None),
    (32, NDF,     16, NDF * 2, 2, 1, "w2", 2),
    (16, NDF * 2,  8, NDF * 4, 2, 1, "w3", 3),
    ( 8, NDF * 4,  4, NDF * 8, 2, 1, "w4", 4),
    ( 4, NDF * 8,  1, 1,       1, 0, "w5", None),
]


# ---------------------------------------------------------------------------
# The single fused Pallas kernel.
# Activation layout everywhere: rows = (n, h), lanes = (w, c).
# ---------------------------------------------------------------------------
def _disc_kernel(x_ref,
                 s1_ref, w1_ref,
                 s2_ref, w2_ref, p2_ref, g2_ref, b2_ref,
                 s3_ref, w3_ref, p3_ref, g3_ref, b3_ref,
                 s4_ref, w4_ref, p4_ref, g4_ref, b4_ref,
                 s5_ref, w5_ref,
                 o_ref):
    f32 = jnp.float32

    def conv(x, s_ref, w_ref):
        # y[(n,ho),(wo,co)] = sum_i S_i @ (x @ BW_i)
        y = None
        for i in range(KSIZE):
            t = jnp.dot(x, w_ref[i], preferred_element_type=f32)
            yi = jnp.dot(s_ref[i], t, preferred_element_type=f32)
            y = yi if y is None else y + yi
        return y

    def bn(y, p_ref, g_ref, b_ref):
        # Training-mode BatchNorm2d with one-pass batch statistics.
        ssum = jnp.sum(y, axis=0, keepdims=True)          # [1, Wo*Cout]
        ssq = jnp.sum(y * y, axis=0, keepdims=True)       # [1, Wo*Cout]
        mean = jnp.dot(ssum, p_ref[...], preferred_element_type=f32)
        ex2 = jnp.dot(ssq, p_ref[...], preferred_element_type=f32)
        inv = jax.lax.rsqrt(ex2 - mean * mean + BN_EPS)
        return (y - mean) * (inv * g_ref[...]) + b_ref[...]

    def lrelu(y):
        return jnp.maximum(y, LRELU_SLOPE * y)

    h = lrelu(conv(x_ref[...], s1_ref, w1_ref))                       # 64 -> 32
    h = lrelu(bn(conv(h, s2_ref, w2_ref), p2_ref, g2_ref, b2_ref))    # 32 -> 16
    h = lrelu(bn(conv(h, s3_ref, w3_ref), p3_ref, g3_ref, b3_ref))    # 16 -> 8
    h = lrelu(bn(conv(h, s4_ref, w4_ref), p4_ref, g4_ref, b4_ref))    # 8  -> 4
    o_ref[...] = conv(h, s5_ref, w5_ref)                              # 4  -> 1


# ---------------------------------------------------------------------------
# Host-side (one-time) operand preparation
# ---------------------------------------------------------------------------
def _row_select(batch, h_in, h_out, stride, pad):
    """S[i, n*h_out + r, n*h_in + h] = 1  iff  h == stride*r - pad + i."""
    s = np.zeros((KSIZE, batch * h_out, batch * h_in), np.float32)
    for i in range(KSIZE):
        for n in range(batch):
            for r in range(h_out):
                h = stride * r - pad + i
                if 0 <= h < h_in:
                    s[i, n * h_out + r, n * h_in + h] = 1.0
    return jnp.asarray(s)


def _banded_weight(weight, w_in, stride, pad):
    """weight [Cout, Cin, 4, 4] (PyTorch layout) ->
       BW[i, w*Cin+ci, wo*Cout+co] = weight[co, ci, i, j] with w = stride*wo - pad + j."""
    w = np.asarray(weight, np.float32)
    cout, cin, kh, kw = w.shape
    w_out = (w_in + 2 * pad - kw) // stride + 1
    bw = np.zeros((kh, w_in * cin, w_out * cout), np.float32)
    for i in range(kh):
        for wo in range(w_out):
            for j in range(kw):
                wi = stride * wo - pad + j
                if 0 <= wi < w_in:
                    bw[i, wi * cin:(wi + 1) * cin,
                       wo * cout:(wo + 1) * cout] = w[:, :, i, j].T
    return jnp.asarray(bw)


def _bn_aux(gamma, beta, c_out, w_out, count):
    """Channel-pool matrix (pre-divided by count) + lane-broadcast gamma/beta."""
    k = w_out * c_out
    ch = np.arange(k) % c_out
    p = (ch[:, None] == ch[None, :]).astype(np.float32) / float(count)
    gf = np.tile(np.asarray(gamma, np.float32).reshape(-1), w_out).reshape(1, k)
    bf = np.tile(np.asarray(beta, np.float32).reshape(-1), w_out).reshape(1, k)
    return jnp.asarray(p), jnp.asarray(gf), jnp.asarray(bf)


def prepare_discriminator(params, batch):
    """One-time transform of PyTorch-layout parameters into kernel operands."""
    ops = []
    for (h_in, c_in, h_out, c_out, stride, pad, wkey, bn_idx) in _GEO:
        ops.append(_row_select(batch, h_in, h_out, stride, pad))
        ops.append(_banded_weight(params[wkey], h_in, stride, pad))
        if bn_idx is not None:
            count = batch * h_out * h_out          # N * Ho * Wo (square images)
            p, gf, bf = _bn_aux(params[f"g{bn_idx}"], params[f"b{bn_idx}"],
                                c_out, h_out, count)
            ops.extend([p, gf, bf])
    return ops


def discriminator_forward(ops, x):
    """x: [N, NC, 64, 64] float32 -> [N, 1, 1, 1] (same as the nn.Sequential)."""
    n, c, h, w = x.shape
    # one-time layout change: rows = (n, h), lanes = (w, c)
    x2d = jnp.transpose(x, (0, 2, 3, 1)).reshape(n * h, w * c)
    out = pl.pallas_call(
        _disc_kernel,
        out_shape=jax.ShapeDtypeStruct((n, 1), jnp.float32),
        in_specs=[pl.BlockSpec(memory_space=pltpu.MemorySpace.VMEM)] * (1 + len(ops)),
        out_specs=pl.BlockSpec(memory_space=pltpu.MemorySpace.VMEM),
    )(x2d, *ops)
    return out.reshape(n, 1, 1, 1)


# ---------------------------------------------------------------------------
# Parameter init (deterministic, DCGAN-style N(0, 0.02) conv weights,
# PyTorch-default BN affine: weight=1, bias=0)
# ---------------------------------------------------------------------------
def init_params(key):
    ks = jax.random.split(key, 5)

    def w(k, cout, cin):
        return 0.02 * jax.random.normal(k, (cout, cin, 4, 4), jnp.float32)

    return {
        "w1": w(ks[0], NDF, NC),
        "w2": w(ks[1], NDF * 2, NDF),
        "w3": w(ks[2], NDF * 4, NDF * 2),
        "w4": w(ks[3], NDF * 8, NDF * 4),
        "w5": w(ks[4], 1, NDF * 8),
        "g2": jnp.ones((1, NDF * 2), jnp.float32), "b2": jnp.zeros((1, NDF * 2), jnp.float32),
        "g3": jnp.ones((1, NDF * 4), jnp.float32), "b3": jnp.zeros((1, NDF * 4), jnp.float32),
        "g4": jnp.ones((1, NDF * 8), jnp.float32), "b4": jnp.zeros((1, NDF * 8), jnp.float32),
    }


# ---------------------------------------------------------------------------
# Pure-JAX reference (for correctness check)
# ---------------------------------------------------------------------------
def reference_forward(params, x):
    def conv(x, w, stride, pad):
        return jax.lax.conv_general_dilated(
            x, w, (stride, stride), ((pad, pad), (pad, pad)),
            dimension_numbers=("NCHW", "OIHW", "NCHW"))

    def bn(x, g, b):
        mean = x.mean(axis=(0, 2, 3), keepdims=True)
        var = ((x - mean) ** 2).mean(axis=(0, 2, 3), keepdims=True)
        return ((x - mean) * jax.lax.rsqrt(var + BN_EPS)
                * g.reshape(1, -1, 1, 1) + b.reshape(1, -1, 1, 1))

    def lrelu(x):
        return jnp.where(x >= 0, x, LRELU_SLOPE * x)

    h = lrelu(conv(x, params["w1"], 2, 1))
    h = lrelu(bn(conv(h, params["w2"], 2, 1), params["g2"], params["b2"]))
    h = lrelu(bn(conv(h, params["w3"], 2, 1), params["g3"], params["b3"]))
    h = lrelu(bn(conv(h, params["w4"], 2, 1), params["g4"], params["b4"]))
    h = conv(h, params["w5"], 1, 0)
    return h


if __name__ == "__main__":
    key = jax.random.PRNGKey(0)
    pkey, xkey = jax.random.split(key)
    params = init_params(pkey)
    # Input must be 64x64 spatial so the 4-stage stride-2 stack reaches 4x4
    # before the final 4x4 valid conv -> [N, 1, 1, 1].
    x = jax.random.normal(xkey, (2, NC, 64, 64), jnp.float32)

    ops = prepare_discriminator(params, batch=x.shape[0])
    fwd = jax.jit(discriminator_forward)
    out = jax.block_until_ready(fwd(ops, x))
    assert out.shape == (2, 1, 1, 1), out.shape

    ref = jax.block_until_ready(reference_forward(params, x))
    assert jnp.allclose(out, ref, rtol=1e-2, atol=1e-2), \
        float(jnp.max(jnp.abs(out - ref)))

    print("KERNEL_OK")
</pallas_src>

<mosaic_0001>
module attributes {stable_mosaic.version = 11 : i64} {
  func.func @_disc_kernel(%arg0: memref<128x192xf32, #tpu.memory_space<vmem>>, %arg1: memref<4x64x128xf32, #tpu.memory_space<vmem>>, %arg2: memref<4x192x256xf32, #tpu.memory_space<vmem>>, %arg3: memref<4x32x64xf32, #tpu.memory_space<vmem>>, %arg4: memref<4x256x256xf32, #tpu.memory_space<vmem>>, %arg5: memref<256x256xf32, #tpu.memory_space<vmem>>, %arg6: memref<1x256xf32, #tpu.memory_space<vmem>>, %arg7: memref<1x256xf32, #tpu.memory_space<vmem>>, %arg8: memref<4x16x32xf32, #tpu.memory_space<vmem>>, %arg9: memref<4x256x256xf32, #tpu.memory_space<vmem>>, %arg10: memref<256x256xf32, #tpu.memory_space<vmem>>, %arg11: memref<1x256xf32, #tpu.memory_space<vmem>>, %arg12: memref<1x256xf32, #tpu.memory_space<vmem>>, %arg13: memref<4x8x16xf32, #tpu.memory_space<vmem>>, %arg14: memref<4x256x256xf32, #tpu.memory_space<vmem>>, %arg15: memref<256x256xf32, #tpu.memory_space<vmem>>, %arg16: memref<1x256xf32, #tpu.memory_space<vmem>>, %arg17: memref<1x256xf32, #tpu.memory_space<vmem>>, %arg18: memref<4x2x8xf32, #tpu.memory_space<vmem>>, %arg19: memref<4x256x1xf32, #tpu.memory_space<vmem>>, %arg20: memref<2x1xf32, #tpu.memory_space<vmem>>) attributes {dimension_semantics = [], scalar_prefetch = 0 : i64, scratch_operands = 0 : i64, tpu.core_type = #tpu.core_type<tc>} {
    %c0 = arith.constant 0 : index
    %c0_0 = arith.constant 0 : index
    %0 = vector.load %arg0[%c0, %c0_0] : memref<128x192xf32, #tpu.memory_space<vmem>>, vector<128x192xf32>
    %c0_1 = arith.constant 0 : index
    %c0_2 = arith.constant 0 : index
    %c0_3 = arith.constant 0 : index
    %1 = vector.load %arg2[%c0_1, %c0_2, %c0_3] : memref<4x192x256xf32, #tpu.memory_space<vmem>>, vector<1x192x256xf32>
    %2 = vector.shape_cast %1 : vector<1x192x256xf32> to vector<192x256xf32>
    %cst = arith.constant dense<0.000000e+00> : vector<128x256xf32>
    %3 = tpu.matmul %0, %2, %cst {dimension_numbers = #tpu.dot_dimension_numbers<[1], [0], [0], [1], [0, 0, 1, 1], [], []>} : vector<128x192xf32>, vector<192x256xf32>, vector<128x256xf32> -> vector<128x256xf32>
    %c0_4 = arith.constant 0 : index
    %c0_5 = arith.constant 0 : index
    %c0_6 = arith.constant 0 : index
    %4 = vector.load %arg1[%c0_4, %c0_5, %c0_6] : memref<4x64x128xf32, #tpu.memory_space<vmem>>, vector<1x64x128xf32>
    %5 = vector.shape_cast %4 : vector<1x64x128xf32> to vector<64x128xf32>
    %cst_7 = arith.constant dense<0.000000e+00> : vector<64x256xf32>
    %6 = tpu.matmul %5, %3, %cst_7 {dimension_numbers = #tpu.dot_dimension_numbers<[1], [0], [0], [1], [0, 0, 1, 1], [], []>} : vector<64x128xf32>, vector<128x256xf32>, vector<64x256xf32> -> vector<64x256xf32>
    %c1 = arith.constant 1 : index
    %c0_8 = arith.constant 0 : index
    %c0_9 = arith.constant 0 : index
    %7 = vector.load %arg2[%c1, %c0_8, %c0_9] : memref<4x192x256xf32, #tpu.memory_space<vmem>>, vector<1x192x256xf32>
    %8 = vector.shape_cast %7 : vector<1x192x256xf32> to vector<192x256xf32>
    %cst_10 = arith.constant dense<0.000000e+00> : vector<128x256xf32>
    %9 = tpu.matmul %0, %8, %cst_10 {dimension_numbers = #tpu.dot_dimension_numbers<[1], [0], [0], [1], [0, 0, 1, 1], [], []>} : vector<128x192xf32>, vector<192x256xf32>, vector<128x256xf32> -> vector<128x256xf32>
    %c1_11 = arith.constant 1 : index
    %c0_12 = arith.constant 0 : index
    %c0_13 = arith.constant 0 : index
    %10 = vector.load %arg1[%c1_11, %c0_12, %c0_13] : memref<4x64x128xf32, #tpu.memory_space<vmem>>, vector<1x64x128xf32>
    %11 = vector.shape_cast %10 : vector<1x64x128xf32> to vector<64x128xf32>
    %cst_14 = arith.constant dense<0.000000e+00> : vector<64x256xf32>
    %12 = tpu.matmul %11, %9, %cst_14 {dimension_numbers = #tpu.dot_dimension_numbers<[1], [0], [0], [1], [0, 0, 1, 1], [], []>} : vector<64x128xf32>, vector<128x256xf32>, vector<64x256xf32> -> vector<64x256xf32>
    %13 = arith.addf %6, %12 : vector<64x256xf32>
    %c2 = arith.constant 2 : index
    %c0_15 = arith.constant 0 : index
    %c0_16 = arith.constant 0 : index
    %14 = vector.load %arg2[%c2, %c0_15, %c0_16] : memref<4x192x256xf32, #tpu.memory_space<vmem>>, vector<1x192x256xf32>
    %15 = vector.shape_cast %14 : vector<1x192x256xf32> to vector<192x256xf32>
    %cst_17 = arith.constant dense<0.000000e+00> : vector<128x256xf32>
    %16 = tpu.matmul %0, %15, %cst_17 {dimension_numbers = #tpu.dot_dimension_numbers<[1], [0], [0], [1], [0, 0, 1, 1], [], []>} : vector<128x192xf32>, vector<192x256xf32>, vector<128x256xf32> -> vector<128x256xf32>
    %c2_18 = arith.constant 2 : index
    %c0_19 = arith.constant 0 : index
    %c0_20 = arith.constant 0 : index
    %17 = vector.load %arg1[%c2_18, %c0_19, %c0_20] : memref<4x64x128xf32, #tpu.memory_space<vmem>>, vector<1x64x128xf32>
    %18 = vector.shape_cast %17 : vector<1x64x128xf32> to vector<64x128xf32>
    %cst_21 = arith.constant dense<0.000000e+00> : vector<64x256xf32>
    %19 = tpu.matmul %18, %16, %cst_21 {dimension_numbers = #tpu.dot_dimension_numbers<[1], [0], [0], [1], [0, 0, 1, 1], [], []>} : vector<64x128xf32>, vector<128x256xf32>, vector<64x256xf32> -> vector<64x256xf32>
    %20 = arith.addf %13, %19 : vector<64x256xf32>
    %c3 = arith.constant 3 : index
    %c0_22 = arith.constant 0 : index
    %c0_23 = arith.constant 0 : index
    %21 = vector.load %arg2[%c3, %c0_22, %c0_23] : memref<4x192x256xf32, #tpu.memory_space<vmem>>, vector<1x192x256xf32>
    %22 = vector.shape_cast %21 : vector<1x192x256xf32> to vector<192x256xf32>
    %cst_24 = arith.constant dense<0.000000e+00> : vector<128x256xf32>
    %23 = tpu.matmul %0, %22, %cst_24 {dimension_numbers = #tpu.dot_dimension_numbers<[1], [0], [0], [1], [0, 0, 1, 1], [], []>} : vector<128x192xf32>, vector<192x256xf32>, vector<128x256xf32> -> vector<128x256xf32>
    %c3_25 = arith.constant 3 : index
    %c0_26 = arith.constant 0 : index
    %c0_27 = arith.constant 0 : index
    %24 = vector.load %arg1[%c3_25, %c0_26, %c0_27] : memref<4x64x128xf32, #tpu.memory_space<vmem>>, vector<1x64x128xf32>
    %25 = vector.shape_cast %24 : vector<1x64x128xf32> to vector<64x128xf32>
    %cst_28 = arith.constant dense<0.000000e+00> : vector<64x256xf32>
    %26 = tpu.matmul %25, %23, %cst_28 {dimension_numbers = #tpu.dot_dimension_numbers<[1], [0], [0], [1], [0, 0, 1, 1], [], []>} : vector<64x128xf32>, vector<128x256xf32>, vector<64x256xf32> -> vector<64x256xf32>
    %27 = arith.addf %20, %26 : vector<64x256xf32>
    %cst_29 = arith.constant 2.000000e-01 : f32
    %28 = vector.broadcast %cst_29 : f32 to vector<64x256xf32>
    %29 = arith.mulf %28, %27 : vector<64x256xf32>
    %30 = arith.maximumf %27, %29 : vector<64x256xf32>
    %c0_30 = arith.constant 0 : index
    %c0_31 = arith.constant 0 : index
    %c0_32 = arith.constant 0 : index
    %31 = vector.load %arg4[%c0_30, %c0_31, %c0_32] : memref<4x256x256xf32, #tpu.memory_space<vmem>>, vector<1x256x256xf32>
    %32 = vector.shape_cast %31 : vector<1x256x256xf32> to vector<256x256xf32>
    %cst_33 = arith.constant dense<0.000000e+00> : vector<64x256xf32>
    %33 = tpu.matmul %30, %32, %cst_33 {dimension_numbers = #tpu.dot_dimension_numbers<[1], [0], [0], [1], [0, 0, 1, 1], [], []>} : vector<64x256xf32>, vector<256x256xf32>, vector<64x256xf32> -> vector<64x256xf32>
    %c0_34 = arith.constant 0 : index
    %c0_35 = arith.constant 0 : index
    %c0_36 = arith.constant 0 : index
    %34 = vector.load %arg3[%c0_34, %c0_35, %c0_36] : memref<4x32x64xf32, #tpu.memory_space<vmem>>, vector<1x32x64xf32>
    %35 = vector.shape_cast %34 : vector<1x32x64xf32> to vector<32x64xf32>
    %cst_37 = arith.constant dense<0.000000e+00> : vector<32x256xf32>
    %36 = tpu.matmul %35, %33, %cst_37 {dimension_numbers = #tpu.dot_dimension_numbers<[1], [0], [0], [1], [0, 0, 1, 1], [], []>} : vector<32x64xf32>, vector<64x256xf32>, vector<32x256xf32> -> vector<32x256xf32>
    %c1_38 = arith.constant 1 : index
    %c0_39 = arith.constant 0 : index
    %c0_40 = arith.constant 0 : index
    %37 = vector.load %arg4[%c1_38, %c0_39, %c0_40] : memref<4x256x256xf32, #tpu.memory_space<vmem>>, vector<1x256x256xf32>
    %38 = vector.shape_cast %37 : vector<1x256x256xf32> to vector<256x256xf32>
    %cst_41 = arith.constant dense<0.000000e+00> : vector<64x256xf32>
    %39 = tpu.matmul %30, %38, %cst_41 {dimension_numbers = #tpu.dot_dimension_numbers<[1], [0], [0], [1], [0, 0, 1, 1], [], []>} : vector<64x256xf32>, vector<256x256xf32>, vector<64x256xf32> -> vector<64x256xf32>
    %c1_42 = arith.constant 1 : index
    %c0_43 = arith.constant 0 : index
    %c0_44 = arith.constant 0 : index
    %40 = vector.load %arg3[%c1_42, %c0_43, %c0_44] : memref<4x32x64xf32, #tpu.memory_space<vmem>>, vector<1x32x64xf32>
    %41 = vector.shape_cast %40 : vector<1x32x64xf32> to vector<32x64xf32>
    %cst_45 = arith.constant dense<0.000000e+00> : vector<32x256xf32>
    %42 = tpu.matmul %41, %39, %cst_45 {dimension_numbers = #tpu.dot_dimension_numbers<[1], [0], [0], [1], [0, 0, 1, 1], [], []>} : vector<32x64xf32>, vector<64x256xf32>, vector<32x256xf32> -> vector<32x256xf32>
    %43 = arith.addf %36, %42 : vector<32x256xf32>
    %c2_46 = arith.constant 2 : index
    %c0_47 = arith.constant 0 : index
    %c0_48 = arith.constant 0 : index
    %44 = vector.load %arg4[%c2_46, %c0_47, %c0_48] : memref<4x256x256xf32, #tpu.memory_space<vmem>>, vector<1x256x256xf32>
    %45 = vector.shape_cast %44 : vector<1x256x256xf32> to vector<256x256xf32>
    %cst_49 = arith.constant dense<0.000000e+00> : vector<64x256xf32>
    %46 = tpu.matmul %30, %45, %cst_49 {dimension_numbers = #tpu.dot_dimension_numbers<[1], [0], [0], [1], [0, 0, 1, 1], [], []>} : vector<64x256xf32>, vector<256x256xf32>, vector<64x256xf32> -> vector<64x256xf32>
    %c2_50 = arith.constant 2 : index
    %c0_51 = arith.constant 0 : index
    %c0_52 = arith.constant 0 : index
    %47 = vector.load %arg3[%c2_50, %c0_51, %c0_52] : memref<4x32x64xf32, #tpu.memory_space<vmem>>, vector<1x32x64xf32>
    %48 = vector.shape_cast %47 : vector<1x32x64xf32> to vector<32x64xf32>
    %cst_53 = arith.constant dense<0.000000e+00> : vector<32x256xf32>
    %49 = tpu.matmul %48, %46, %cst_53 {dimension_numbers = #tpu.dot_dimension_numbers<[1], [0], [0], [1], [0, 0, 1, 1], [], []>} : vector<32x64xf32>, vector<64x256xf32>, vector<32x256xf32> -> vector<32x256xf32>
    %50 = arith.addf %43, %49 : vector<32x256xf32>
    %c3_54 = arith.constant 3 : index
    %c0_55 = arith.constant 0 : index
    %c0_56 = arith.constant 0 : index
    %51 = vector.load %arg4[%c3_54, %c0_55, %c0_56] : memref<4x256x256xf32, #tpu.memory_space<vmem>>, vector<1x256x256xf32>
    %52 = vector.shape_cast %51 : vector<1x256x256xf32> to vector<256x256xf32>
    %cst_57 = arith.constant dense<0.000000e+00> : vector<64x256xf32>
    %53 = tpu.matmul %30, %52, %cst_57 {dimension_numbers = #tpu.dot_dimension_numbers<[1], [0], [0], [1], [0, 0, 1, 1], [], []>} : vector<64x256xf32>, vector<256x256xf32>, vector<64x256xf32> -> vector<64x256xf32>
    %c3_58 = arith.constant 3 : index
    %c0_59 = arith.constant 0 : index
    %c0_60 = arith.constant 0 : index
    %54 = vector.load %arg3[%c3_58, %c0_59, %c0_60] : memref<4x32x64xf32, #tpu.memory_space<vmem>>, vector<1x32x64xf32>
    %55 = vector.shape_cast %54 : vector<1x32x64xf32> to vector<32x64xf32>
    %cst_61 = arith.constant dense<0.000000e+00> : vector<32x256xf32>
    %56 = tpu.matmul %55, %53, %cst_61 {dimension_numbers = #tpu.dot_dimension_numbers<[1], [0], [0], [1], [0, 0, 1, 1], [], []>} : vector<32x64xf32>, vector<64x256xf32>, vector<32x256xf32> -> vector<32x256xf32>
    %57 = arith.addf %50, %56 : vector<32x256xf32>
    %cst_62 = arith.constant dense<0.000000e+00> : vector<256xf32>
    %58 = vector.multi_reduction <add>, %57, %cst_62 [0] : vector<32x256xf32> to vector<256xf32>
    %59 = vector.shape_cast %58 : vector<256xf32> to vector<1x256xf32>
    %60 = arith.mulf %57, %57 : vector<32x256xf32>
    %cst_63 = arith.constant dense<0.000000e+00> : vector<256xf32>
    %61 = vector.multi_reduction <add>, %60, %cst_63 [0] : vector<32x256xf32> to vector<256xf32>
    %62 = vector.shape_cast %61 : vector<256xf32> to vector<1x256xf32>
    %c0_64 = arith.constant 0 : index
    %c0_65 = arith.constant 0 : index
    %63 = vector.load %arg5[%c0_64, %c0_65] : memref<256x256xf32, #tpu.memory_space<vmem>>, vector<256x256xf32>
    %cst_66 = arith.constant dense<0.000000e+00> : vector<1x256xf32>
    %64 = tpu.matmul %59, %63, %cst_66 {dimension_numbers = #tpu.dot_dimension_numbers<[1], [0], [0], [1], [0, 0, 1, 1], [], []>} : vector<1x256xf32>, vector<256x256xf32>, vector<1x256xf32> -> vector<1x256xf32>
    %c0_67 = arith.constant 0 : index
    %c0_68 = arith.constant 0 : index
    %65 = vector.load %arg5[%c0_67, %c0_68] : memref<256x256xf32, #tpu.memory_space<vmem>>, vector<256x256xf32>
    %cst_69 = arith.constant dense<0.000000e+00> : vector<1x256xf32>
    %66 = tpu.matmul %62, %65, %cst_69 {dimension_numbers = #tpu.dot_dimension_numbers<[1], [0], [0], [1], [0, 0, 1, 1], [], []>} : vector<1x256xf32>, vector<256x256xf32>, vector<1x256xf32> -> vector<1x256xf32>
    %67 = arith.mulf %64, %64 : vector<1x256xf32>
    %68 = arith.subf %66, %67 : vector<1x256xf32>
    %cst_70 = arith.constant 9.99999974E-6 : f32
    %69 = vector.broadcast %cst_70 : f32 to vector<1x256xf32>
    %70 = arith.addf %68, %69 : vector<1x256xf32>
    %71 = math.rsqrt %70 : vector<1x256xf32>
    %72 = vector.broadcast %64 : vector<1x256xf32> to vector<32x256xf32>
    %73 = arith.subf %57, %72 : vector<32x256xf32>
    %c0_71 = arith.constant 0 : index
    %c0_72 = arith.constant 0 : index
    %74 = vector.load %arg6[%c0_71, %c0_72] : memref<1x256xf32, #tpu.memory_space<vmem>>, vector<1x256xf32>
    %75 = arith.mulf %71, %74 : vector<1x256xf32>
    %76 = vector.broadcast %75 : vector<1x256xf32> to vector<32x256xf32>
    %77 = arith.mulf %73, %76 : vector<32x256xf32>
    %c0_73 = arith.constant 0 : index
    %c0_74 = arith.constant 0 : index
    %78 = vector.load %arg7[%c0_73, %c0_74] : memref<1x256xf32, #tpu.memory_space<vmem>>, vector<1x256xf32>
    %79 = vector.broadcast %78 : vector<1x256xf32> to vector<32x256xf32>
    %80 = arith.addf %77, %79 : vector<32x256xf32>
    %cst_75 = arith.constant 2.000000e-01 : f32
    %81 = vector.broadcast %cst_75 : f32 to vector<32x256xf32>
    %82 = arith.mulf %81, %80 : vector<32x256xf32>
    %83 = arith.maximumf %80, %82 : vector<32x256xf32>
    %c0_76 = arith.constant 0 : index
    %c0_77 = arith.constant 0 : index
    %c0_78 = arith.constant 0 : index
    %84 = vector.load %arg9[%c0_76, %c0_77, %c0_78] : memref<4x256x256xf32, #tpu.memory_space<vmem>>, vector<1x256x256xf32>
    %85 = vector.shape_cast %84 : vector<1x256x256xf32> to vector<256x256xf32>
    %cst_79 = arith.constant dense<0.000000e+00> : vector<32x256xf32>
    %86 = tpu.matmul %83, %85, %cst_79 {dimension_numbers = #tpu.dot_dimension_numbers<[1], [0], [0], [1], [0, 0, 1, 1], [], []>} : vector<32x256xf32>, vector<256x256xf32>, vector<32x256xf32> -> vector<32x256xf32>
    %c0_80 = arith.constant 0 : index
    %c0_81 = arith.constant 0 : index
    %c0_82 = arith.constant 0 : index
    %87 = vector.load %arg8[%c0_80, %c0_81, %c0_82] : memref<4x16x32xf32, #tpu.memory_space<vmem>>, vector<1x16x32xf32>
    %88 = vector.shape_cast %87 : vector<1x16x32xf32> to vector<16x32xf32>
    %cst_83 = arith.constant dense<0.000000e+00> : vector<16x256xf32>
    %89 = tpu.matmul %88, %86, %cst_83 {dimension_numbers = #tpu.dot_dimension_numbers<[1], [0], [0], [1], [0, 0, 1, 1], [], []>} : vector<16x32xf32>, vector<32x256xf32>, vector<16x256xf32> -> vector<16x256xf32>
    %c1_84 = arith.constant 1 : index
    %c0_85 = arith.constant 0 : index
    %c0_86 = arith.constant 0 : index
    %90 = vector.load %arg9[%c1_84, %c0_85, %c0_86] : memref<4x256x256xf32, #tpu.memory_space<vmem>>, vector<1x256x256xf32>
    %91 = vector.shape_cast %90 : vector<1x256x256xf32> to vector<256x256xf32>
    %cst_87 = arith.constant dense<0.000000e+00> : vector<32x256xf32>
    %92 = tpu.matmul %83, %91, %cst_87 {dimension_numbers = #tpu.dot_dimension_numbers<[1], [0], [0], [1], [0, 0, 1, 1], [], []>} : vector<32x256xf32>, vector<256x256xf32>, vector<32x256xf32> -> vector<32x256xf32>
    %c1_88 = arith.constant 1 : index
    %c0_89 = arith.constant 0 : index
    %c0_90 = arith.constant 0 : index
    %93 = vector.load %arg8[%c1_88, %c0_89, %c0_90] : memref<4x16x32xf32, #tpu.memory_space<vmem>>, vector<1x16x32xf32>
    %94 = vector.shape_cast %93 : vector<1x16x32xf32> to vector<16x32xf32>
    %cst_91 = arith.constant dense<0.000000e+00> : vector<16x256xf32>
    %95 = tpu.matmul %94, %92, %cst_91 {dimension_numbers = #tpu.dot_dimension_numbers<[1], [0], [0], [1], [0, 0, 1, 1], [], []>} : vector<16x32xf32>, vector<32x256xf32>, vector<16x256xf32> -> vector<16x256xf32>
    %96 = arith.addf %89, %95 : vector<16x256xf32>
    %c2_92 = arith.constant 2 : index
    %c0_93 = arith.constant 0 : index
    %c0_94 = arith.constant 0 : index
    %97 = vector.load %arg9[%c2_92, %c0_93, %c0_94] : memref<4x256x256xf32, #tpu.memory_space<vmem>>, vector<1x256x256xf32>
    %98 = vector.shape_cast %97 : vector<1x256x256xf32> to vector<256x256xf32>
    %cst_95 = arith.constant dense<0.000000e+00> : vector<32x256xf32>
    %99 = tpu.matmul %83, %98, %cst_95 {dimension_numbers = #tpu.dot_dimension_numbers<[1], [0], [0], [1], [0, 0, 1, 1], [], []>} : vector<32x256xf32>, vector<256x256xf32>, vector<32x256xf32> -> vector<32x256xf32>
    %c2_96 = arith.constant 2 : index
    %c0_97 = arith.constant 0 : index
    %c0_98 = arith.constant 0 : index
    %100 = vector.load %arg8[%c2_96, %c0_97, %c0_98] : memref<4x16x32xf32, #tpu.memory_space<vmem>>, vector<1x16x32xf32>
    %101 = vector.shape_cast %100 : vector<1x16x32xf32> to vector<16x32xf32>
    %cst_99 = arith.constant dense<0.000000e+00> : vector<16x256xf32>
    %102 = tpu.matmul %101, %99, %cst_99 {dimension_numbers = #tpu.dot_dimension_numbers<[1], [0], [0], [1], [0, 0, 1, 1], [], []>} : vector<16x32xf32>, vector<32x256xf32>, vector<16x256xf32> -> vector<16x256xf32>
    %103 = arith.addf %96, %102 : vector<16x256xf32>
    %c3_100 = arith.constant 3 : index
    %c0_101 = arith.constant 0 : index
    %c0_102 = arith.constant 0 : index
    %104 = vector.load %arg9[%c3_100, %c0_101, %c0_102] : memref<4x256x256xf32, #tpu.memory_space<vmem>>, vector<1x256x256xf32>
    %105 = vector.shape_cast %104 : vector<1x256x256xf32> to vector<256x256xf32>
    %cst_103 = arith.constant dense<0.000000e+00> : vector<32x256xf32>
    %106 = tpu.matmul %83, %105, %cst_103 {dimension_numbers = #tpu.dot_dimension_numbers<[1], [0], [0], [1], [0, 0, 1, 1], [], []>} : vector<32x256xf32>, vector<256x256xf32>, vector<32x256xf32> -> vector<32x256xf32>
    %c3_104 = arith.constant 3 : index
    %c0_105 = arith.constant 0 : index
    %c0_106 = arith.constant 0 : index
    %107 = vector.load %arg8[%c3_104, %c0_105, %c0_106] : memref<4x16x32xf32, #tpu.memory_space<vmem>>, vector<1x16x32xf32>
    %108 = vector.shape_cast %107 : vector<1x16x32xf32> to vector<16x32xf32>
    %cst_107 = arith.constant dense<0.000000e+00> : vector<16x256xf32>
    %109 = tpu.matmul %108, %106, %cst_107 {dimension_numbers = #tpu.dot_dimension_numbers<[1], [0], [0], [1], [0, 0, 1, 1], [], []>} : vector<16x32xf32>, vector<32x256xf32>, vector<16x256xf32> -> vector<16x256xf32>
    %110 = arith.addf %103, %109 : vector<16x256xf32>
    %cst_108 = arith.constant dense<0.000000e+00> : vector<256xf32>
    %111 = vector.multi_reduction <add>, %110, %cst_108 [0] : vector<16x256xf32> to vector<256xf32>
    %112 = vector.shape_cast %111 : vector<256xf32> to vector<1x256xf32>
    %113 = arith.mulf %110, %110 : vector<16x256xf32>
    %cst_109 = arith.constant dense<0.000000e+00> : vector<256xf32>
    %114 = vector.multi_reduction <add>, %113, %cst_109 [0] : vector<16x256xf32> to vector<256xf32>
    %115 = vector.shape_cast %114 : vector<256xf32> to vector<1x256xf32>
    %c0_110 = arith.constant 0 : index
    %c0_111 = arith.constant 0 : index
    %116 = vector.load %arg10[%c0_110, %c0_111] : memref<256x256xf32, #tpu.memory_space<vmem>>, vector<256x256xf32>
    %cst_112 = arith.constant dense<0.000000e+00> : vector<1x256xf32>
    %117 = tpu.matmul %112, %116, %cst_112 {dimension_numbers = #tpu.dot_dimension_numbers<[1], [0], [0], [1], [0, 0, 1, 1], [], []>} : vector<1x256xf32>, vector<256x256xf32>, vector<1x256xf32> -> vector<1x256xf32>
    %c0_113 = arith.constant 0 : index
    %c0_114 = arith.constant 0 : index
    %118 = vector.load %arg10[%c0_113, %c0_114] : memref<256x256xf32, #tpu.memory_space<vmem>>, vector<256x256xf32>
    %cst_115 = arith.constant dense<0.000000e+00> : vector<1x256xf32>
    %119 = tpu.matmul %115, %118, %cst_115 {dimension_numbers = #tpu.dot_dimension_numbers<[1], [0], [0], [1], [0, 0, 1, 1], [], []>} : vector<1x256xf32>, vector<256x256xf32>, vector<1x256xf32> -> vector<1x256xf32>
    %120 = arith.mulf %117, %117 : vector<1x256xf32>
    %121 = arith.subf %119, %120 : vector<1x256xf32>
    %cst_116 = arith.constant 9.99999974E-6 : f32
    %122 = vector.broadcast %cst_116 : f32 to vector<1x256xf32>
    %123 = arith.addf %121, %122 : vector<1x256xf32>
    %124 = math.rsqrt %123 : vector<1x256xf32>
    %125 = vector.broadcast %117 : vector<1x256xf32> to vector<16x256xf32>
    %126 = arith.subf %110, %125 : vector<16x256xf32>
    %c0_117 = arith.constant 0 : index
    %c0_118 = arith.constant 0 : index
    %127 = vector.load %arg11[%c0_117, %c0_118] : memref<1x256xf32, #tpu.memory_space<vmem>>, vector<1x256xf32>
    %128 = arith.mulf %124, %127 : vector<1x256xf32>
    %129 = vector.broadcast %128 : vector<1x256xf32> to vector<16x256xf32>
    %130 = arith.mulf %126, %129 : vector<16x256xf32>
    %c0_119 = arith.constant 0 : index
    %c0_120 = arith.constant 0 : index
    %131 = vector.load %arg12[%c0_119, %c0_120] : memref<1x256xf32, #tpu.memory_space<vmem>>, vector<1x256xf32>
    %132 = vector.broadcast %131 : vector<1x256xf32> to vector<16x256xf32>
    %133 = arith.addf %130, %132 : vector<16x256xf32>
    %cst_121 = arith.constant 2.000000e-01 : f32
    %134 = vector.broadcast %cst_121 : f32 to vector<16x256xf32>
    %135 = arith.mulf %134, %133 : vector<16x256xf32>
    %136 = arith.maximumf %133, %135 : vector<16x256xf32>
    %c0_122 = arith.constant 0 : index
    %c0_123 = arith.constant 0 : index
    %c0_124 = arith.constant 0 : index
    %137 = vector.load %arg14[%c0_122, %c0_123, %c0_124] : memref<4x256x256xf32, #tpu.memory_space<vmem>>, vector<1x256x256xf32>
    %138 = vector.shape_cast %137 : vector<1x256x256xf32> to vector<256x256xf32>
    %cst_125 = arith.constant dense<0.000000e+00> : vector<16x256xf32>
    %139 = tpu.matmul %136, %138, %cst_125 {dimension_numbers = #tpu.dot_dimension_numbers<[1], [0], [0], [1], [0, 0, 1, 1], [], []>} : vector<16x256xf32>, vector<256x256xf32>, vector<16x256xf32> -> vector<16x256xf32>
    %c0_126 = arith.constant 0 : index
    %c0_127 = arith.constant 0 : index
    %c0_128 = arith.constant 0 : index
    %140 = vector.load %arg13[%c0_126, %c0_127, %c0_128] : memref<4x8x16xf32, #tpu.memory_space<vmem>>, vector<1x8x16xf32>
    %141 = vector.shape_cast %140 : vector<1x8x16xf32> to vector<8x16xf32>
    %cst_129 = arith.constant dense<0.000000e+00> : vector<8x256xf32>
    %142 = tpu.matmul %141, %139, %cst_129 {dimension_numbers = #tpu.dot_dimension_numbers<[1], [0], [0], [1], [0, 0, 1, 1], [], []>} : vector<8x16xf32>, vector<16x256xf32>, vector<8x256xf32> -> vector<8x256xf32>
    %c1_130 = arith.constant 1 : index
    %c0_131 = arith.constant 0 : index
    %c0_132 = arith.constant 0 : index
    %143 = vector.load %arg14[%c1_130, %c0_131, %c0_132] : memref<4x256x256xf32, #tpu.memory_space<vmem>>, vector<1x256x256xf32>
    %144 = vector.shape_cast %143 : vector<1x256x256xf32> to vector<256x256xf32>
    %cst_133 = arith.constant dense<0.000000e+00> : vector<16x256xf32>
    %145 = tpu.matmul %136, %144, %cst_133 {dimension_numbers = #tpu.dot_dimension_numbers<[1], [0], [0], [1], [0, 0, 1, 1], [], []>} : vector<16x256xf32>, vector<256x256xf32>, vector<16x256xf32> -> vector<16x256xf32>
    %c1_134 = arith.constant 1 : index
    %c0_135 = arith.constant 0 : index
    %c0_136 = arith.constant 0 : index
    %146 = vector.load %arg13[%c1_134, %c0_135, %c0_136] : memref<4x8x16xf32, #tpu.memory_space<vmem>>, vector<1x8x16xf32>
    %147 = vector.shape_cast %146 : vector<1x8x16xf32> to vector<8x16xf32>
    %cst_137 = arith.constant dense<0.000000e+00> : vector<8x256xf32>
    %148 = tpu.matmul %147, %145, %cst_137 {dimension_numbers = #tpu.dot_dimension_numbers<[1], [0], [0], [1], [0, 0, 1, 1], [], []>} : vector<8x16xf32>, vector<16x256xf32>, vector<8x256xf32> -> vector<8x256xf32>
    %149 = arith.addf %142, %148 : vector<8x256xf32>
    %c2_138 = arith.constant 2 : index
    %c0_139 = arith.constant 0 : index
    %c0_140 = arith.constant 0 : index
    %150 = vector.load %arg14[%c2_138, %c0_139, %c0_140] : memref<4x256x256xf32, #tpu.memory_space<vmem>>, vector<1x256x256xf32>
    %151 = vector.shape_cast %150 : vector<1x256x256xf32> to vector<256x256xf32>
    %cst_141 = arith.constant dense<0.000000e+00> : vector<16x256xf32>
    %152 = tpu.matmul %136, %151, %cst_141 {dimension_numbers = #tpu.dot_dimension_numbers<[1], [0], [0], [1], [0, 0, 1, 1], [], []>} : vector<16x256xf32>, vector<256x256xf32>, vector<16x256xf32> -> vector<16x256xf32>
    %c2_142 = arith.constant 2 : index
    %c0_143 = arith.constant 0 : index
    %c0_144 = arith.constant 0 : index
    %153 = vector.load %arg13[%c2_142, %c0_143, %c0_144] : memref<4x8x16xf32, #tpu.memory_space<vmem>>, vector<1x8x16xf32>
    %154 = vector.shape_cast %153 : vector<1x8x16xf32> to vector<8x16xf32>
    %cst_145 = arith.constant dense<0.000000e+00> : vector<8x256xf32>
    %155 = tpu.matmul %154, %152, %cst_145 {dimension_numbers = #tpu.dot_dimension_numbers<[1], [0], [0], [1], [0, 0, 1, 1], [], []>} : vector<8x16xf32>, vector<16x256xf32>, vector<8x256xf32> -> vector<8x256xf32>
    %156 = arith.addf %149, %155 : vector<8x256xf32>
    %c3_146 = arith.constant 3 : index
    %c0_147 = arith.constant 0 : index
    %c0_148 = arith.constant 0 : index
    %157 = vector.load %arg14[%c3_146, %c0_147, %c0_148] : memref<4x256x256xf32, #tpu.memory_space<vmem>>, vector<1x256x256xf32>
    %158 = vector.shape_cast %157 : vector<1x256x256xf32> to vector<256x256xf32>
    %cst_149 = arith.constant dense<0.000000e+00> : vector<16x256xf32>
    %159 = tpu.matmul %136, %158, %cst_149 {dimension_numbers = #tpu.dot_dimension_numbers<[1], [0], [0], [1], [0, 0, 1, 1], [], []>} : vector<16x256xf32>, vector<256x256xf32>, vector<16x256xf32> -> vector<16x256xf32>
    %c3_150 = arith.constant 3 : index
    %c0_151 = arith.constant 0 : index
    %c0_152 = arith.constant 0 : index
    %160 = vector.load %arg13[%c3_150, %c0_151, %c0_152] : memref<4x8x16xf32, #tpu.memory_space<vmem>>, vector<1x8x16xf32>
    %161 = vector.shape_cast %160 : vector<1x8x16xf32> to vector<8x16xf32>
    %cst_153 = arith.constant dense<0.000000e+00> : vector<8x256xf32>
    %162 = tpu.matmul %161, %159, %cst_153 {dimension_numbers = #tpu.dot_dimension_numbers<[1], [0], [0], [1], [0, 0, 1, 1], [], []>} : vector<8x16xf32>, vector<16x256xf32>, vector<8x256xf32> -> vector<8x256xf32>
    %163 = arith.addf %156, %162 : vector<8x256xf32>
    %cst_154 = arith.constant dense<0.000000e+00> : vector<256xf32>
    %164 = vector.multi_reduction <add>, %163, %cst_154 [0] : vector<8x256xf32> to vector<256xf32>
    %165 = vector.shape_cast %164 : vector<256xf32> to vector<1x256xf32>
    %166 = arith.mulf %163, %163 : vector<8x256xf32>
    %cst_155 = arith.constant dense<0.000000e+00> : vector<256xf32>
    %167 = vector.multi_reduction <add>, %166, %cst_155 [0] : vector<8x256xf32> to vector<256xf32>
    %168 = vector.shape_cast %167 : vector<256xf32> to vector<1x256xf32>
    %c0_156 = arith.constant 0 : index
    %c0_157 = arith.constant 0 : index
    %169 = vector.load %arg15[%c0_156, %c0_157] : memref<256x256xf32, #tpu.memory_space<vmem>>, vector<256x256xf32>
    %cst_158 = arith.constant dense<0.000000e+00> : vector<1x256xf32>
    %170 = tpu.matmul %165, %169, %cst_158 {dimension_numbers = #tpu.dot_dimension_numbers<[1], [0], [0], [1], [0, 0, 1, 1], [], []>} : vector<1x256xf32>, vector<256x256xf32>, vector<1x256xf32> -> vector<1x256xf32>
    %c0_159 = arith.constant 0 : index
    %c0_160 = arith.constant 0 : index
    %171 = vector.load %arg15[%c0_159, %c0_160] : memref<256x256xf32, #tpu.memory_space<vmem>>, vector<256x256xf32>
    %cst_161 = arith.constant dense<0.000000e+00> : vector<1x256xf32>
    %172 = tpu.matmul %168, %171, %cst_161 {dimension_numbers = #tpu.dot_dimension_numbers<[1], [0], [0], [1], [0, 0, 1, 1], [], []>} : vector<1x256xf32>, vector<256x256xf32>, vector<1x256xf32> -> vector<1x256xf32>
    %173 = arith.mulf %170, %170 : vector<1x256xf32>
    %174 = arith.subf %172, %173 : vector<1x256xf32>
    %cst_162 = arith.constant 9.99999974E-6 : f32
    %175 = vector.broadcast %cst_162 : f32 to vector<1x256xf32>
    %176 = arith.addf %174, %175 : vector<1x256xf32>
    %177 = math.rsqrt %176 : vector<1x256xf32>
    %178 = vector.broadcast %170 : vector<1x256xf32> to vector<8x256xf32>
    %179 = arith.subf %163, %178 : vector<8x256xf32>
    %c0_163 = arith.constant 0 : index
    %c0_164 = arith.constant 0 : index
    %180 = vector.load %arg16[%c0_163, %c0_164] : memref<1x256xf32, #tpu.memory_space<vmem>>, vector<1x256xf32>
    %181 = arith.mulf %177, %180 : vector<1x256xf32>
    %182 = vector.broadcast %181 : vector<1x256xf32> to vector<8x256xf32>
    %183 = arith.mulf %179, %182 : vector<8x256xf32>
    %c0_165 = arith.constant 0 : index
    %c0_166 = arith.constant 0 : index
    %184 = vector.load %arg17[%c0_165, %c0_166] : memref<1x256xf32, #tpu.memory_space<vmem>>, vector<1x256xf32>
    %185 = vector.broadcast %184 : vector<1x256xf32> to vector<8x256xf32>
    %186 = arith.addf %183, %185 : vector<8x256xf32>
    %cst_167 = arith.constant 2.000000e-01 : f32
    %187 = vector.broadcast %cst_167 : f32 to vector<8x256xf32>
    %188 = arith.mulf %187, %186 : vector<8x256xf32>
    %189 = arith.maximumf %186, %188 : vector<8x256xf32>
    %c0_168 = arith.constant 0 : index
    %c0_169 = arith.constant 0 : index
    %c0_170 = arith.constant 0 : index
    %190 = vector.load %arg19[%c0_168, %c0_169, %c0_170] : memref<4x256x1xf32, #tpu.memory_space<vmem>>, vector<1x256x1xf32>
    %191 = vector.shape_cast %190 : vector<1x256x1xf32> to vector<256x1xf32>
    %cst_171 = arith.constant dense<0.000000e+00> : vector<8x1xf32>
    %192 = tpu.matmul %189, %191, %cst_171 {dimension_numbers = #tpu.dot_dimension_numbers<[1], [0], [0], [1], [0, 0, 1, 1], [], []>} : vector<8x256xf32>, vector<256x1xf32>, vector<8x1xf32> -> vector<8x1xf32>
    %c0_172 = arith.constant 0 : index
    %c0_173 = arith.constant 0 : index
    %c0_174 = arith.constant 0 : index
    %193 = vector.load %arg18[%c0_172, %c0_173, %c0_174] : memref<4x2x8xf32, #tpu.memory_space<vmem>>, vector<1x2x8xf32>
    %194 = vector.shape_cast %193 : vector<1x2x8xf32> to vector<2x8xf32>
    %cst_175 = arith.constant dense<0.000000e+00> : vector<2x1xf32>
    %195 = tpu.matmul %194, %192, %cst_175 {dimension_numbers = #tpu.dot_dimension_numbers<[1], [0], [0], [1], [0, 0, 1, 1], [], []>} : vector<2x8xf32>, vector<8x1xf32>, vector<2x1xf32> -> vector<2x1xf32>
    %c1_176 = arith.constant 1 : index
    %c0_177 = arith.constant 0 : index
    %c0_178 = arith.constant 0 : index
    %196 = vector.load %arg19[%c1_176, %c0_177, %c0_178] : memref<4x256x1xf32, #tpu.memory_space<vmem>>, vector<1x256x1xf32>
    %197 = vector.shape_cast %196 : vector<1x256x1xf32> to vector<256x1xf32>
    %cst_179 = arith.constant dense<0.000000e+00> : vector<8x1xf32>
    %198 = tpu.matmul %189, %197, %cst_179 {dimension_numbers = #tpu.dot_dimension_numbers<[1], [0], [0], [1], [0, 0, 1, 1], [], []>} : vector<8x256xf32>, vector<256x1xf32>, vector<8x1xf32> -> vector<8x1xf32>
    %c1_180 = arith.constant 1 : index
    %c0_181 = arith.constant 0 : index
    %c0_182 = arith.constant 0 : index
    %199 = vector.load %arg18[%c1_180, %c0_181, %c0_182] : memref<4x2x8xf32, #tpu.memory_space<vmem>>, vector<1x2x8xf32>
    %200 = vector.shape_cast %199 : vector<1x2x8xf32> to vector<2x8xf32>
    %cst_183 = arith.constant dense<0.000000e+00> : vector<2x1xf32>
    %201 = tpu.matmul %200, %198, %cst_183 {dimension_numbers = #tpu.dot_dimension_numbers<[1], [0], [0], [1], [0, 0, 1, 1], [], []>} : vector<2x8xf32>, vector<8x1xf32>, vector<2x1xf32> -> vector<2x1xf32>
    %202 = arith.addf %195, %201 : vector<2x1xf32>
    %c2_184 = arith.constant 2 : index
    %c0_185 = arith.constant 0 : index
    %c0_186 = arith.constant 0 : index
    %203 = vector.load %arg19[%c2_184, %c0_185, %c0_186] : memref<4x256x1xf32, #tpu.memory_space<vmem>>, vector<1x256x1xf32>
    %204 = vector.shape_cast %203 : vector<1x256x1xf32> to vector<256x1xf32>
    %cst_187 = arith.constant dense<0.000000e+00> : vector<8x1xf32>
    %205 = tpu.matmul %189, %204, %cst_187 {dimension_numbers = #tpu.dot_dimension_numbers<[1], [0], [0], [1], [0, 0, 1, 1], [], []>} : vector<8x256xf32>, vector<256x1xf32>, vector<8x1xf32> -> vector<8x1xf32>
    %c2_188 = arith.constant 2 : index
    %c0_189 = arith.constant 0 : index
    %c0_190 = arith.constant 0 : index
    %206 = vector.load %arg18[%c2_188, %c0_189, %c0_190] : memref<4x2x8xf32, #tpu.memory_space<vmem>>, vector<1x2x8xf32>
    %207 = vector.shape_cast %206 : vector<1x2x8xf32> to vector<2x8xf32>
    %cst_191 = arith.constant dense<0.000000e+00> : vector<2x1xf32>
    %208 = tpu.matmul %207, %205, %cst_191 {dimension_numbers = #tpu.dot_dimension_numbers<[1], [0], [0], [1], [0, 0, 1, 1], [], []>} : vector<2x8xf32>, vector<8x1xf32>, vector<2x1xf32> -> vector<2x1xf32>
    %209 = arith.addf %202, %208 : vector<2x1xf32>
    %c3_192 = arith.constant 3 : index
    %c0_193 = arith.constant 0 : index
    %c0_194 = arith.constant 0 : index
    %210 = vector.load %arg19[%c3_192, %c0_193, %c0_194] : memref<4x256x1xf32, #tpu.memory_space<vmem>>, vector<1x256x1xf32>
    %211 = vector.shape_cast %210 : vector<1x256x1xf32> to vector<256x1xf32>
    %cst_195 = arith.constant dense<0.000000e+00> : vector<8x1xf32>
    %212 = tpu.matmul %189, %211, %cst_195 {dimension_numbers = #tpu.dot_dimension_numbers<[1], [0], [0], [1], [0, 0, 1, 1], [], []>} : vector<8x256xf32>, vector<256x1xf32>, vector<8x1xf32> -> vector<8x1xf32>
    %c3_196 = arith.constant 3 : index
    %c0_197 = arith.constant 0 : index
    %c0_198 = arith.constant 0 : index
    %213 = vector.load %arg18[%c3_196, %c0_197, %c0_198] : memref<4x2x8xf32, #tpu.memory_space<vmem>>, vector<1x2x8xf32>
    %214 = vector.shape_cast %213 : vector<1x2x8xf32> to vector<2x8xf32>
    %cst_199 = arith.constant dense<0.000000e+00> : vector<2x1xf32>
    %215 = tpu.matmul %214, %212, %cst_199 {dimension_numbers = #tpu.dot_dimension_numbers<[1], [0], [0], [1], [0, 0, 1, 1], [], []>} : vector<2x8xf32>, vector<8x1xf32>, vector<2x1xf32> -> vector<2x1xf32>
    %216 = arith.addf %209, %215 : vector<2x1xf32>
    %c0_200 = arith.constant 0 : index
    %c0_201 = arith.constant 0 : index
    %217 = vector.load %arg20[%c0_200, %c0_201] : memref<2x1xf32, #tpu.memory_space<vmem>>, vector<2x1xf32>
    tpu.vector_store %arg20[%c0_200, %c0_201], %216 {strides = array<i32>} : memref<2x1xf32, #tpu.memory_space<vmem>>, vector<2x1xf32>,
    return
  }
}

</mosaic_0001>

<bundles_post_ra>
// kernel: discriminator_forward.1
= control target key start
LH: loop header
LB: loop body
LE: loop exit
PB: predicated region body
PF: predicated region fallthrough
CT: control target
= control target key end

     0   :  { %s11933_s0 = inlined_call_operand.vmem [shape: f32[128,192], index: 0, kind: input, shape index: {}]   ;;  %s11934_s1 = inlined_call_operand.vmem [shape: f32[4,64,128], index: 1, kind: input, shape index: {}]   ;;  %s11935_s2 = inlined_call_operand.hbm [shape: f32[4,192,256], index: 2, kind: input, shape index: {}]   ;;  %s11936_s3 = inlined_call_operand.hbm [shape: f32[4,32,64], index: 3, kind: input, shape index: {}]   ;;  %s11937_s4 = inlined_call_operand.vmem [shape: f32[4,256,256], index: 4, kind: input, shape index: {}]   ;;  %s11938_s5 = inlined_call_operand.vmem [shape: f32[256,256], index: 5, kind: input, shape index: {}]   ;;  %s11939_s6 = inlined_call_operand.vmem [shape: f32[1,256], index: 6, kind: input, shape index: {}]   ;;  %s11940_s7 = inlined_call_operand.vmem [shape: f32[1,256], index: 7, kind: input, shape index: {}]   ;;  %s11941_s8 = inlined_call_operand.hbm [shape: f32[4,16,32], index: 8, kind: input, shape index: {}]   ;;  %s11942_s9 = inlined_call_operand.hbm [shape: f32[4,256,256], index: 9, kind: input, shape index: {}]   ;;  %s11943_s10 = inlined_call_operand.hbm [shape: f32[256,256], index: 10, kind: input, shape index: {}]   ;;  %s11944_s11 = inlined_call_operand.hbm [shape: f32[1,256], index: 11, kind: input, shape index: {}]   ;;  %s11945_s12 = inlined_call_operand.hbm [shape: f32[1,256], index: 12, kind: input, shape index: {}]   ;;  %s11946_s13 = inlined_call_operand.vmem [shape: f32[4,8,16], index: 13, kind: input, shape index: {}]   ;;  %s11947_s14 = inlined_call_operand.hbm [shape: f32[4,256,256], index: 14, kind: input, shape index: {}]   ;;  %s11948_s15 = inlined_call_operand.hbm [shape: f32[256,256], index: 15, kind: input, shape index: {}]   ;;  %s11949_s16 = inlined_call_operand.vmem [shape: f32[1,256], index: 16, kind: input, shape index: {}]   ;;  %s11950_s17 = inlined_call_operand.vmem [shape: f32[1,256], index: 17, kind: input, shape index: {}]   ;;  %s11951_s18 = inlined_call_operand.vmem [shape: f32[4,2,8], index: 18, kind: input, shape index: {}]   ;;  %s11952_s19 = inlined_call_operand.vmem [shape: f32[4,256,1], index: 19, kind: input, shape index: {}]   ;;  %s11953_s20 = inlined_call_operand.vmem [shape: f32[2,1], index: 20, kind: output, shape index: {}]  }
   0x1   :  { %11963 = sst [smem:[#allocation22_spill]] %s11933_s0 }
   0x2   :  { %11964 = sst [smem:[#allocation23_spill]] %s11934_s1 }
   0x3   :  { %11965 = sst [smem:[#allocation24_spill]] %s11935_s2 }
   0x4   :  { %11966 = sst [smem:[#allocation25_spill]] %s11936_s3 }
   0x5   :  { %11967 = sst [smem:[#allocation26_spill]] %s11937_s4 }
   0x6   :  { %11968 = sst [smem:[#allocation27_spill]] %s11951_s18 }
   0x7   :  { %11969 = sst [smem:[#allocation28_spill]] %s11953_s20 }
   0x8   :  { %25 = vsyncpa [#allocation3], 0 }
   0x9   :  { %26 = vsyncpa [#allocation5], 0 }
   0xa   :  { %27 = vsyncpa [#allocation8], 0 }
   0xb   :  { %28 = vsyncpa [#allocation11], 0 }
   0xc   :  { %29 = vsyncpa [#allocation14], 0  ;;  %s8934_s1 = smov [#allocation4]   ;;  %s11970_s2 = sld [smem:[#allocation25_spill]] }
   0xd   :  { %s51_s22 = sshll.u32 %s8934_s1, 4  ;;  %s52_s22 = int_to_ptr.vmem [resolvable:$true] %s51_s22 }
  0x12   :  { %s8726_s25 = scalar_lea.hbm %s11970_s2, 2048 }
  0x13   :  { %p8727_p0 = scmp.ne.s32.totalorder %s11970_s2, %s8726_s25  ;;  %p8730_p1 = scmp.lt.u32.totalorder %s8726_s25, %s11970_s2 }
  0x15   :  { %p8732_p2 = pnand %p8730_p1, %p8727_p0 }
  0x17   :  { %8735 = shalt.err (!%p8732_p2)
}
  0x18   :  { %s8736_s4 = scalar_lea.vmem %s52_s22, 2048  ;;  %p8741_p4 = scmp.lt.s32.totalorder %s52_s22, %s52_s22 }
  0x19   :  { %p8737_p3 = scmp.ne.s32.totalorder %s52_s22, %s8736_s4  ;;  %p8742_p5 = scmp.lt.s32.totalorder %s8736_s4, %s8736_s4 }
  0x1b   :  { %p8743_p6 = por %p8742_p5, %p8741_p4 }
  0x1d   :  { %p8744_p7 = pnand %p8743_p6, %p8737_p3 }
  0x1f   :  { %8747 = shalt.err (!%p8744_p7)
}
  0x20   :  { %s8935_s29 = smov 128   ;;  %s8936_s30 = smov 8  }
  0x21   :  { %57 = dma.hbm_to_vmem [thread:$0]  %s11970_s2, 2048, %s52_s22, [#allocation5], %s8935_s29, %s8935_s29, %s8936_s30  }
  0x22   :  { %s8937_s1 = smov [#allocation7]   ;;  %s8938_s24 = smov [#allocation10]  }
  0x23   :  { %s83_s23 = sshll.u32 %s8937_s1, 4  ;;  %s108_s25 = sshll.u32 %s8938_s24, 4  ;;  %s84_s23 = int_to_ptr.vmem [resolvable:$true] %s83_s23  ;;  %s109_s25 = int_to_ptr.vmem [resolvable:$true] %s108_s25 }
  0x24   :  { %s8748_s27 = scalar_lea.hbm %s11942_s9, 32768 }
  0x25   :  { %p8749_p8 = scmp.ne.s32.totalorder %s11942_s9, %s8748_s27  ;;  %p8752_p9 = scmp.lt.u32.totalorder %s8748_s27, %s11942_s9 }
  0x27   :  { %p8754_p10 = pnand %p8752_p9, %p8749_p8 }
  0x29   :  { %8757 = shalt.err (!%p8754_p10)
}
  0x2a   :  { %s8758_s22 = scalar_lea.vmem %s84_s23, 32768  ;;  %p8763_p12 = scmp.lt.s32.totalorder %s84_s23, %s84_s23 }
  0x2b   :  { %p8759_p11 = scmp.ne.s32.totalorder %s84_s23, %s8758_s22  ;;  %p8764_p13 = scmp.lt.s32.totalorder %s8758_s22, %s8758_s22 }
  0x2d   :  { %p8765_p0 = por %p8764_p13, %p8763_p12 }
  0x2f   :  { %p8766_p1 = pnand %p8765_p0, %p8759_p11 }
  0x31   :  { %8769 = shalt.err (!%p8766_p1)
}
  0x32   :  { %s8939_s2 = smov 256   ;;  %s8940_s0 = smov 16  }
  0x33   :  { %89 = dma.hbm_to_vmem [thread:$0]  %s11942_s9, 32768, %s84_s23, [#allocation8], %s8939_s2, %s8939_s2, %s8940_s0  }
  0x34   :  { %s8770_s24 = scalar_lea.hbm %s11944_s11, 32 }
  0x35   :  { %p8771_p2 = scmp.ne.s32.totalorder %s11944_s11, %s8770_s24  ;;  %p8774_p3 = scmp.lt.u32.totalorder %s8770_s24, %s11944_s11 }
  0x37   :  { %p8776_p4 = pnand %p8774_p3, %p8771_p2 }
  0x39   :  { %8779 = shalt.err (!%p8776_p4)
}
  0x3a   :  { %s8780_s4 = scalar_lea.vmem %s109_s25, 32  ;;  %p8785_p6 = scmp.lt.s32.totalorder %s109_s25, %s109_s25 }
  0x3b   :  { %p8781_p5 = scmp.ne.s32.totalorder %s109_s25, %s8780_s4  ;;  %p8786_p7 = scmp.lt.s32.totalorder %s8780_s4, %s8780_s4 }
  0x3d   :  { %p8787_p8 = por %p8786_p7, %p8785_p6 }
  0x3f   :  { %p8788_p9 = pnand %p8787_p8, %p8781_p5 }
  0x41   :  { %8791 = shalt.err (!%p8788_p9)
}
  0x42   :  { %111 = dma.hbm_to_vmem [thread:$0]  %s11944_s11, 32, %s109_s25, [#allocation11]  }
  0x43   :  { %s8941_s22 = smov [#allocation13]   ;;  %s8942_s1 = smov [#allocation2]  }
  0x44   :  { %s129_s21 = sshll.u32 %s8941_s22, 4  ;;  %s39_s18 = sshll.u32 %s8942_s1, 4  ;;  %s130_s21 = int_to_ptr.vmem [resolvable:$true] %s129_s21  ;;  %s40_s18 = int_to_ptr.vmem [resolvable:$true] %s39_s18 }
  0x45   :  { %s8792_s3 = scalar_lea.hbm %s11947_s14, 32768 }
  0x46   :  { %p8793_p10 = scmp.ne.s32.totalorder %s11947_s14, %s8792_s3  ;;  %p8796_p11 = scmp.lt.u32.totalorder %s8792_s3, %s11947_s14 }
  0x48   :  { %p8798_p12 = pnand %p8796_p11, %p8793_p10 }
  0x4a   :  { %8801 = shalt.err (!%p8798_p12)
}
  0x4b   :  { %s8802_s11 = scalar_lea.vmem %s130_s21, 32768  ;;  %p8807_p0 = scmp.lt.s32.totalorder %s130_s21, %s130_s21 }
  0x4c   :  { %p8803_p13 = scmp.ne.s32.totalorder %s130_s21, %s8802_s11  ;;  %p8808_p1 = scmp.lt.s32.totalorder %s8802_s11, %s8802_s11 }
  0x4e   :  { %p8809_p2 = por %p8808_p1, %p8807_p0 }
  0x50   :  { %p8810_p3 = pnand %p8809_p2, %p8803_p13 }
  0x52   :  { %8813 = shalt.err (!%p8810_p3)
}
  0x53   :  { %135 = dma.hbm_to_vmem [thread:$0]  %s11947_s14, 32768, %s130_s21, [#allocation14], %s8939_s2, %s8939_s2, %s8940_s0  }
  0x54   :  { %s11971_s1 = sld [smem:[#allocation24_spill]] }
  0x5a   :  { %s8814_s20 = scalar_lea.hbm %s11971_s1, 24576 }
  0x5b   :  { %p8815_p4 = scmp.ne.s32.totalorder %s11971_s1, %s8814_s20  ;;  %p8818_p5 = scmp.lt.u32.totalorder %s8814_s20, %s11971_s1 }
  0x5d   :  { %p8820_p6 = pnand %p8818_p5, %p8815_p4 }
  0x5f   :  { %8823 = shalt.err (!%p8820_p6)
}
  0x60   :  { %s8824_s28 = scalar_lea.vmem %s40_s18, 24576  ;;  %p8829_p8 = scmp.lt.s32.totalorder %s40_s18, %s40_s18 }
  0x61   :  { %p8825_p7 = scmp.ne.s32.totalorder %s40_s18, %s8824_s28  ;;  %p8830_p9 = scmp.lt.s32.totalorder %s8824_s28, %s8824_s28 }
  0x63   :  { %p8831_p10 = por %p8830_p9, %p8829_p8 }
  0x65   :  { %p8832_p11 = pnand %p8831_p10, %p8825_p7 }
  0x67   :  { %8835 = shalt.err (!%p8832_p11)
}
  0x68   :  { %45 = dma.hbm_to_vmem [thread:$0]  %s11971_s1, 24576, %s40_s18, [#allocation3], %s8939_s2, %s8939_s2, %s8940_s0  }
  0x69   :  { %s8943_s4 = smov [#allocation6]   ;;  %s8944_s25 = smov [#allocation9]  }
  0x6a   :  { %s71_s11 = sshll.u32 %s8943_s4, 4  ;;  %s95_s9 = sshll.u32 %s8944_s25, 4  ;;  %s72_s11 = int_to_ptr.vmem [resolvable:$true] %s71_s11  ;;  %s96_s9 = int_to_ptr.vmem [resolvable:$true] %s95_s9 }
  0x6b   :  { %s8836_s20 = scalar_lea.hbm %s11941_s8, 1024 }
  0x6c   :  { %p8837_p12 = scmp.ne.s32.totalorder %s11941_s8, %s8836_s20  ;;  %p8840_p13 = scmp.lt.u32.totalorder %s8836_s20, %s11941_s8 }
  0x6e   :  { %p8842_p0 = pnand %p8840_p13, %p8837_p12 }
  0x70   :  { %8845 = shalt.err (!%p8842_p0)
}
  0x71   :  { %s8846_s18 = scalar_lea.vmem %s72_s11, 1024  ;;  %p8851_p2 = scmp.lt.s32.totalorder %s72_s11, %s72_s11 }
  0x72   :  { %p8847_p1 = scmp.ne.s32.totalorder %s72_s11, %s8846_s18  ;;  %p8852_p3 = scmp.lt.s32.totalorder %s8846_s18, %s8846_s18 }
  0x74   :  { %p8853_p4 = por %p8852_p3, %p8851_p2 }
  0x76   :  { %p8854_p5 = pnand %p8853_p4, %p8847_p1 }
  0x78   :  { %8857 = shalt.err (!%p8854_p5)
}
  0x79   :  { %77 = dma.hbm_to_vmem [thread:$0]  %s11941_s8, 1024, %s72_s11, [#allocation5], %s8935_s29, %s8935_s29, %s8936_s30  }
  0x7a   :  { %s8858_s4 = scalar_lea.hbm %s11943_s10, 8192 }
  0x7b   :  { %p8859_p6 = scmp.ne.s32.totalorder %s11943_s10, %s8858_s4  ;;  %p8862_p7 = scmp.lt.u32.totalorder %s8858_s4, %s11943_s10 }
  0x7d   :  { %p8864_p8 = pnand %p8862_p7, %p8859_p6 }
  0x7f   :  { %8867 = shalt.err (!%p8864_p8)
}
  0x80   :  { %s8868_s24 = scalar_lea.vmem %s96_s9, 8192  ;;  %p8873_p10 = scmp.lt.s32.totalorder %s96_s9, %s96_s9 }
  0x81   :  { %p8869_p9 = scmp.ne.s32.totalorder %s96_s9, %s8868_s24  ;;  %p8874_p11 = scmp.lt.s32.totalorder %s8868_s24, %s8868_s24 }
  0x83   :  { %p8875_p12 = por %p8874_p11, %p8873_p10 }
  0x85   :  { %p8876_p13 = pnand %p8875_p12, %p8869_p9 }
  0x87   :  { %8879 = shalt.err (!%p8876_p13)
}
  0x88   :  { %101 = dma.hbm_to_vmem [thread:$0]  %s11943_s10, 8192, %s96_s9, [#allocation8], %s8939_s2, %s8939_s2, %s8940_s0  }
  0x89   :  { %s8945_s30 = smov [#allocation12]   ;;  %s8946_s3 = smov [#allocation15]  }
  0x8a   :  { %s118_s11 = sshll.u32 %s8945_s30, 4  ;;  %s141_s26 = sshll.u32 %s8946_s3, 4  ;;  %s119_s11 = int_to_ptr.vmem [resolvable:$true] %s118_s11  ;;  %s142_s26 = int_to_ptr.vmem [resolvable:$true] %s141_s26 }
  0x8b   :  { %s8880_s1 = scalar_lea.hbm %s11945_s12, 32 }
  0x8c   :  { %p8881_p0 = scmp.ne.s32.totalorder %s11945_s12, %s8880_s1  ;;  %p8884_p1 = scmp.lt.u32.totalorder %s8880_s1, %s11945_s12 }
  0x8e   :  { %p8886_p2 = pnand %p8884_p1, %p8881_p0 }
  0x90   :  { %8889 = shalt.err (!%p8886_p2)
}
  0x91   :  { %s8890_s10 = scalar_lea.vmem %s119_s11, 32  ;;  %p8895_p4 = scmp.lt.s32.totalorder %s119_s11, %s119_s11 }
  0x92   :  { %p8891_p3 = scmp.ne.s32.totalorder %s119_s11, %s8890_s10  ;;  %p8896_p5 = scmp.lt.s32.totalorder %s8890_s10, %s8890_s10 }
  0x94   :  { %p8897_p6 = por %p8896_p5, %p8895_p4 }
  0x96   :  { %p8898_p7 = pnand %p8897_p6, %p8891_p3 }
  0x98   :  { %8901 = shalt.err (!%p8898_p7)
}
  0x99   :  { %121 = dma.hbm_to_vmem [thread:$0]  %s11945_s12, 32, %s119_s11, [#allocation11]  }
  0x9a   :  { %s8902_s20 = scalar_lea.hbm %s11948_s15, 8192 }
  0x9b   :  { %p8903_p8 = scmp.ne.s32.totalorder %s11948_s15, %s8902_s20  ;;  %p8906_p9 = scmp.lt.u32.totalorder %s8902_s20, %s11948_s15 }
  0x9d   :  { %p8908_p10 = pnand %p8906_p9, %p8903_p8 }
  0x9f   :  { %8911 = shalt.err (!%p8908_p10)
}
  0xa0   :  { %s8912_s3 = scalar_lea.vmem %s142_s26, 8192  ;;  %p8917_p12 = scmp.lt.s32.totalorder %s142_s26, %s142_s26 }
  0xa1   :  { %p8913_p11 = scmp.ne.s32.totalorder %s142_s26, %s8912_s3  ;;  %p8918_p13 = scmp.lt.s32.totalorder %s8912_s3, %s8912_s3 }
  0xa3   :  { %p8919_p0 = por %p8918_p13, %p8917_p12 }
  0xa5   :  { %p8920_p1 = pnand %p8919_p0, %p8913_p11 }
  0xa7   :  { %8923 = shalt.err (!%p8920_p1)
}
  0xa8   :  { %147 = dma.hbm_to_vmem [thread:$0]  %s11948_s15, 8192, %s142_s26, [#allocation14], %s8939_s2, %s8939_s2, %s8940_s0  }
  0xa9   :  { %8924 = dma.done.wait [#allocation3], 24576  }
  0xaa   :  { %8925 = vsyncadd [#allocation3], 4294942720 }
  0xab   :  { %8926 = dma.done.wait [#allocation5], 3072  }
  0xac   :  { %8927 = vsyncadd [#allocation5], 4294964224 }
  0xad   :  { %8928 = dma.done.wait [#allocation8], 40960  }
  0xae   :  { %8929 = vsyncadd [#allocation8], 4294926336 }
  0xaf   :  { %8930 = dma.done.wait [#allocation11], 64  }
  0xb0   :  { %8931 = vsyncadd [#allocation11], 4294967232 }
  0xb1   :  { %8932 = dma.done.wait [#allocation14], 40960  }
  0xb2   :  { %8933 = vsyncadd [#allocation14], 4294926336  ;;  %v483_v0 = vld [vmem:[#allocation2 + $0x188] sm:$0xff]  ;;  %v485_v1 = vld [vmem:[#allocation2 + $0x198] sm:$0xff]  ;;  %vm263_vm0 = vcmask 523264   ;;  %s11972_s0 = sld [smem:[#allocation22_spill]] }
  0xb3   :  { %v482_v2 = vld [vmem:[#allocation2 + $0x180] sm:$0xff]  ;;  %v6940_v3 = vpack.c.bf16 %v485_v1, %v483_v0  ;;  %v484_v4 = vld [vmem:[#allocation2 + $0x190] sm:$0xff]  ;;  %v487_v5 = vld [vmem:[#allocation2 + $0x1a8] sm:$0xff]  ;;  %s11973_s30 = sld [smem:[#allocation23_spill]]  ;;  %s11974_s23 = sld [smem:[#allocation26_spill]]  ;;  %vm3456_vm1 = vcmask 261120  }
  0xb4   :  { %v489_v6 = vld [vmem:[#allocation2 + $0x1b8] sm:$0xff]  ;;  %v6942_v7 = vpack.c.bf16 %v484_v4, %v482_v2  ;;  %v486_v9 = vld [vmem:[#allocation2 + $0x1a0] sm:$0xff]  ;;  %v488_v10 = vld [vmem:[#allocation2 + $0x1b0] sm:$0xff]  ;;  %vm4705_vm2 = vcmask 130048   ;;  %vm8948_vm3 = vmmov 0   ;;  %vm5794_vm4 = vcmask 64512  }
  0xb5   :  { %v6944_v8 = vpack.c.bf16 %v489_v6, %v487_v5  ;;  %v491_v11 = vld [vmem:[#allocation2 + $0x1c8] sm:$0xff]  ;;  %6941 = vmatprep.subr.bf16.mxu1 %v6940_v3  ;;  %v493_v12 = vld [vmem:[#allocation2 + $0x1d8] sm:$0xff]  ;;  %v6946_v13 = vpack.c.bf16 %v488_v10, %v486_v9  ;;  %v490_v15 = vld [vmem:[#allocation2 + $0x1c0] sm:$0xff]  ;;  %vm6299_vm5 = vcmask 1024   ;;  %s11979_s4 = sld [smem:[#allocation28_spill]] }
  0xb6   :  { %6943 = vmatpush1.bf16.msra.mxu1 %v6942_v7  ;;  %v6948_v14 = vpack.c.bf16 %v493_v12, %v491_v11  ;;  %v492_v16 = vld [vmem:[#allocation2 + $0x1d0] sm:$0xff]  ;;  %v495_v17 = vld [vmem:[#allocation2 + $0x1e8] sm:$0xff]  ;;  %v497_v18 = vld [vmem:[#allocation2 + $0x1f8] sm:$0xff] }
  0xb7   :  { %6945 = vmatprep.subr.bf16.mxu1 %v6944_v8  ;;  %v6950_v19 = vpack.c.bf16 %v492_v16, %v490_v15  ;;  %v6952_v20 = vpack.c.bf16 %v497_v18, %v495_v17  ;;  %v494_v21 = vld [vmem:[#allocation2 + $0x1e0] sm:$0xff]  ;;  %v496_v22 = vld [vmem:[#allocation2 + $0x1f0] sm:$0xff]  ;;  %v499_v23 = vld [vmem:[#allocation2 + $0x208] sm:$0xff] }
  0xb8   :  { %v501_v24 = vld [vmem:[#allocation2 + $0x218] sm:$0xff]  ;;  %v216_v25 = vld [vmem:[#allocation2 + $0x8] sm:$0xff]  ;;  %v6954_v27 = vpack.c.bf16 %v496_v22, %v494_v21  ;;  %v498_v28 = vld [vmem:[#allocation2 + $0x200] sm:$0xff] }
  0xb9   :  { %v218_v26 = vld [vmem:[#allocation2 + $0x18] sm:$0xff]  ;;  %v215_v30 = vld [vmem:[#allocation2] sm:$0xff]  ;;  %v217_v31 = vld [vmem:[#allocation2 + $0x10] sm:$0xff]  ;;  %v6956_v32 = vpack.c.bf16 %v501_v24, %v499_v23 }
  0xba   :  { %6947 = vmatpush1.bf16.msra.mxu1 %v6946_v13  ;;  %v6892_v29 = vpack.c.bf16 %v218_v26, %v216_v25  ;;  %v500_v33 = vld [vmem:[#allocation2 + $0x210] sm:$0xff]  ;;  %v6894_v34 = vpack.c.bf16 %v217_v31, %v215_v30  ;;  %v220_v35 = vld [vmem:[#allocation2 + $0x28] sm:$0xff]  ;;  %v222_v36 = vld [vmem:[#allocation2 + $0x38] sm:$0xff] }
  0xbb   :  { %6949 = vmatprep.subr.bf16.mxu1 %v6948_v14  ;;  %v503_v37 = vld [vmem:[#allocation2 + $0x228] sm:$0xff]  ;;  %v505_v38 = vld [vmem:[#allocation2 + $0x238] sm:$0xff]  ;;  %v6896_v39 = vpack.c.bf16 %v222_v36, %v220_v35  ;;  %v219_v40 = vld [vmem:[#allocation2 + $0x20] sm:$0xff]  ;;  %v6958_v42 = vpack.c.bf16 %v500_v33, %v498_v28 }
  0xbc   :  { %6893 = vmatprep.subr.bf16.mxu0 %v6892_v29  ;;  %v221_v41 = vld [vmem:[#allocation2 + $0x30] sm:$0xff]  ;;  %v502_v43 = vld [vmem:[#allocation2 + $0x220] sm:$0xff]  ;;  %v224_v45 = vld [vmem:[#allocation2 + $0x48] sm:$0xff]  ;;  %v6960_v47 = vpack.c.bf16 %v505_v38, %v503_v37 }
  0xbd   :  { %6895 = vmatpush1.bf16.msra.mxu0 %v6894_v34  ;;  %v6898_v44 = vpack.c.bf16 %v221_v41, %v219_v40  ;;  %v226_v46 = vld [vmem:[#allocation2 + $0x58] sm:$0xff]  ;;  %v504_v48 = vld [vmem:[#allocation2 + $0x230] sm:$0xff]  ;;  %v223_v50 = vld [vmem:[#allocation2 + $0x40] sm:$0xff] }
  0xbe   :  { %6951 = vmatpush1.bf16.msra.mxu1 %v6950_v19  ;;  %6897 = vmatprep.subr.bf16.mxu0 %v6896_v39  ;;  %v6900_v49 = vpack.c.bf16 %v226_v46, %v224_v45  ;;  %v225_v51 = vld [vmem:[#allocation2 + $0x50] sm:$0xff]  ;;  %v507_v52 = vld [vmem:[#allocation2 + $0x248] sm:$0xff]  ;;  %v509_v53 = vld [vmem:[#allocation2 + $0x258] sm:$0xff]  ;;  %v6962_v57 = vpack.c.bf16 %v504_v48, %v502_v43 }
  0xbf   :  { %6953 = vmatprep.subr.bf16.mxu1 %v6952_v20  ;;  %v228_v54 = vld [vmem:[#allocation2 + $0x68] sm:$0xff]  ;;  %v6902_v55 = vpack.c.bf16 %v225_v51, %v223_v50  ;;  %v230_v56 = vld [vmem:[#allocation2 + $0x78] sm:$0xff]  ;;  %v506_v58 = vld [vmem:[#allocation2 + $0x240] sm:$0xff]  ;;  %v6964_v62 = vpack.c.bf16 %v509_v53, %v507_v52 }
  0xc0   :  { %v6904_v59 = vpack.c.bf16 %v230_v56, %v228_v54  ;;  %v227_v60 = vld [vmem:[#allocation2 + $0x60] sm:$0xff]  ;;  %v229_v61 = vld [vmem:[#allocation2 + $0x70] sm:$0xff]  ;;  %v9186_v0 = vld [vmem:[%s11972_s0 + $0x8] sm:$0xff] }
  0xc1   :  { %6899 = vmatpush1.bf16.msra.mxu0 %v6898_v44  ;;  %v508_v63 = vld [vmem:[#allocation2 + $0x250] sm:$0xff]  ;;  %v232_v1 = vld [vmem:[#allocation2 + $0x88] sm:$0xff]  ;;  %v513_v3 = vld [vmem:[#allocation2 + $0x278] sm:$0xff]  ;;  %6326 = vmatprep.mubr.msk.f32.mxu1 %vm263_vm0, %v9186_v0  ;;  %v6906_v5 = vpack.c.bf16 %v229_v61, %v227_v60 }
  0xc2   :  { %6955 = vmatpush1.bf16.msra.mxu1 %v6954_v27  ;;  %6901 = vmatprep.subr.bf16.mxu0 %v6900_v49  ;;  %v511_v2 = vld [vmem:[#allocation2 + $0x268] sm:$0xff]  ;;  %v234_v4 = vld [vmem:[#allocation2 + $0x98] sm:$0xff]  ;;  %v6966_v6 = vpack.c.bf16 %v508_v63, %v506_v58  ;;  %v510_v7 = vld [vmem:[#allocation2 + $0x260] sm:$0xff] }
  0xc3   :  { %6957 = vmatprep.subr.bf16.mxu1 %v6956_v32  ;;  %6310 = vmatprep.mubr.msk.f32.mxu0 %vm263_vm0, %v9186_v0  ;;  %v6908_v8 = vpack.c.bf16 %v234_v4, %v232_v1  ;;  %v231_v9 = vld [vmem:[#allocation2 + $0x80] sm:$0xff]  ;;  %v233_v10 = vld [vmem:[#allocation2 + $0x90] sm:$0xff]  ;;  %v6968_v11 = vpack.c.bf16 %v513_v3, %v511_v2  ;;  %v236_v13 = vld [vmem:[#allocation2 + $0xa8] sm:$0xff] }
  0xc4   :  { %v512_v12 = vld [vmem:[#allocation2 + $0x270] sm:$0xff]  ;;  %v238_v14 = vld [vmem:[#allocation2 + $0xb8] sm:$0xff]  ;;  %v515_v15 = vld [vmem:[#allocation2 + $0x288] sm:$0xff]  ;;  %v6910_v17 = vpack.c.bf16 %v233_v10, %v231_v9 }
  0xc5   :  { %6903 = vmatpush1.bf16.msra.mxu0 %v6902_v55  ;;  %v517_v16 = vld [vmem:[#allocation2 + $0x298] sm:$0xff]  ;;  %v6970_v18 = vpack.c.bf16 %v512_v12, %v510_v7  ;;  %v514_v19 = vld [vmem:[#allocation2 + $0x280] sm:$0xff]  ;;  %v6912_v20 = vpack.c.bf16 %v238_v14, %v236_v13  ;;  %v237_v22 = vld [vmem:[#allocation2 + $0xb0] sm:$0xff] }
  0xc6   :  { %6959 = vmatpush1.bf16.msra.mxu1 %v6958_v42  ;;  %6905 = vmatprep.subr.bf16.mxu0 %v6904_v59  ;;  %v235_v21 = vld [vmem:[#allocation2 + $0xa0] sm:$0xff]  ;;  %v6972_v23 = vpack.c.bf16 %v517_v16, %v515_v15  ;;  %v516_v24 = vld [vmem:[#allocation2 + $0x290] sm:$0xff]  ;;  %v240_v25 = vld [vmem:[#allocation2 + $0xc8] sm:$0xff] }
  0xc7   :  { %6961 = vmatprep.subr.bf16.mxu1 %v6960_v47  ;;  %v242_v26 = vld [vmem:[#allocation2 + $0xd8] sm:$0xff]  ;;  %v519_v27 = vld [vmem:[#allocation2 + $0x2a8] sm:$0xff]  ;;  %v6914_v29 = vpack.c.bf16 %v237_v22, %v235_v21  ;;  %v6974_v30 = vpack.c.bf16 %v516_v24, %v514_v19  ;;  %v518_v31 = vld [vmem:[#allocation2 + $0x2a0] sm:$0xff] }
  0xc8   :  { %v521_v28 = vld [vmem:[#allocation2 + $0x2b8] sm:$0xff]  ;;  %v6916_v32 = vpack.c.bf16 %v242_v26, %v240_v25  ;;  %v239_v33 = vld [vmem:[#allocation2 + $0xc0] sm:$0xff]  ;;  %v241_v34 = vld [vmem:[#allocation2 + $0xd0] sm:$0xff] }
  0xc9   :  { %6907 = vmatpush1.bf16.msra.mxu0 %v6906_v5  ;;  %v6976_v35 = vpack.c.bf16 %v521_v28, %v519_v27  ;;  %v520_v36 = vld [vmem:[#allocation2 + $0x2b0] sm:$0xff]  ;;  %v244_v37 = vld [vmem:[#allocation2 + $0xe8] sm:$0xff]  ;;  %v246_v38 = vld [vmem:[#allocation2 + $0xf8] sm:$0xff]  ;;  %v6918_v41 = vpack.c.bf16 %v241_v34, %v239_v33 }
  0xca   :  { %6963 = vmatpush1.bf16.msra.mxu1 %v6962_v57  ;;  %6909 = vmatprep.subr.bf16.mxu0 %v6908_v8  ;;  %v523_v39 = vld [vmem:[#allocation2 + $0x2c8] sm:$0xff]  ;;  %v525_v40 = vld [vmem:[#allocation2 + $0x2d8] sm:$0xff]  ;;  %v6978_v42 = vpack.c.bf16 %v520_v36, %v518_v31  ;;  %v522_v43 = vld [vmem:[#allocation2 + $0x2c0] sm:$0xff]  ;;  %v6920_v44 = vpack.c.bf16 %v246_v38, %v244_v37 }
  0xcb   :  { %6965 = vmatprep.subr.bf16.mxu1 %v6964_v62  ;;  %v243_v45 = vld [vmem:[#allocation2 + $0xe0] sm:$0xff]  ;;  %v245_v46 = vld [vmem:[#allocation2 + $0xf0] sm:$0xff]  ;;  %v6980_v47 = vpack.c.bf16 %v525_v40, %v523_v39  ;;  %v248_v49 = vld [vmem:[#allocation2 + $0x108] sm:$0xff] }
  0xcc   :  { %v524_v48 = vld [vmem:[#allocation2 + $0x2d0] sm:$0xff]  ;;  %v250_v50 = vld [vmem:[#allocation2 + $0x118] sm:$0xff]  ;;  %v527_v51 = vld [vmem:[#allocation2 + $0x2e8] sm:$0xff]  ;;  %v6922_v53 = vpack.c.bf16 %v245_v46, %v243_v45 }
  0xcd   :  { %6911 = vmatpush1.bf16.msra.mxu0 %v6910_v17  ;;  %v529_v52 = vld [vmem:[#allocation2 + $0x2f8] sm:$0xff]  ;;  %v6982_v54 = vpack.c.bf16 %v524_v48, %v522_v43  ;;  %v526_v55 = vld [vmem:[#allocation2 + $0x2e0] sm:$0xff]  ;;  %v6924_v56 = vpack.c.bf16 %v250_v50, %v248_v49  ;;  %v249_v58 = vld [vmem:[#allocation2 + $0x110] sm:$0xff] }
  0xce   :  { %6967 = vmatpush1.bf16.msra.mxu1 %v6966_v6  ;;  %6913 = vmatprep.subr.bf16.mxu0 %v6912_v20  ;;  %v247_v57 = vld [vmem:[#allocation2 + $0x100] sm:$0xff]  ;;  %v6984_v59 = vpack.c.bf16 %v529_v52, %v527_v51  ;;  %v528_v60 = vld [vmem:[#allocation2 + $0x2f0] sm:$0xff]  ;;  %v252_v61 = vld [vmem:[#allocation2 + $0x128] sm:$0xff] }
  0xcf   :  { %6969 = vmatprep.subr.bf16.mxu1 %v6968_v11  ;;  %v254_v62 = vld [vmem:[#allocation2 + $0x138] sm:$0xff]  ;;  %v928_v63 = vld [vmem:[#allocation2 + $0x308] sm:$0xff]  ;;  %v6926_v2 = vpack.c.bf16 %v249_v58, %v247_v57  ;;  %v6986_v3 = vpack.c.bf16 %v528_v60, %v526_v55  ;;  %v251_v5 = vld [vmem:[#allocation2 + $0x120] sm:$0xff] }
  0xd0   :  { %v930_v1 = vld [vmem:[#allocation2 + $0x318] sm:$0xff]  ;;  %v6928_v4 = vpack.c.bf16 %v254_v62, %v252_v61  ;;  %v253_v6 = vld [vmem:[#allocation2 + $0x130] sm:$0xff]  ;;  %v927_v8 = vld [vmem:[#allocation2 + $0x300] sm:$0xff] }
  0xd1   :  { %6915 = vmatpush1.bf16.msra.mxu0 %v6914_v29  ;;  %v7052_v7 = vpack.c.bf16 %v930_v1, %v928_v63  ;;  %v929_v9 = vld [vmem:[#allocation2 + $0x310] sm:$0xff]  ;;  %v932_v10 = vld [vmem:[#allocation2 + $0x328] sm:$0xff]  ;;  %v934_v11 = vld [vmem:[#allocation2 + $0x338] sm:$0xff]  ;;  %v6930_v15 = vpack.c.bf16 %v253_v6, %v251_v5 }
  0xd2   :  { %6971 = vmatpush1.bf16.msra.mxu1 %v6970_v18  ;;  %6917 = vmatprep.subr.bf16.mxu0 %v6916_v32  ;;  %v256_v12 = vld [vmem:[#allocation2 + $0x148] sm:$0xff]  ;;  %v258_v13 = vld [vmem:[#allocation2 + $0x158] sm:$0xff]  ;;  %v9195_v14 = vld [vmem:[%s11972_s0] sm:$0xff]  ;;  %v7054_v17 = vpack.c.bf16 %v929_v9, %v927_v8  ;;  %v7056_v20 = vpack.c.bf16 %v934_v11, %v932_v10 }
  0xd3   :  { %6973 = vmatprep.subr.bf16.mxu1 %v6972_v23  ;;  %v9200_v16 = vld [vmem:[%s11972_s0 + $0x18] sm:$0xff]  ;;  %v255_v18 = vld [vmem:[#allocation2 + $0x140] sm:$0xff]  ;;  %v257_v19 = vld [vmem:[#allocation2 + $0x150] sm:$0xff]  ;;  %v6932_v24 = vpack.c.bf16 %v258_v13, %v256_v12 }
  0xd4   :  { %v931_v21 = vld [vmem:[#allocation2 + $0x320] sm:$0xff]  ;;  %v933_v22 = vld [vmem:[#allocation2 + $0x330] sm:$0xff]  ;;  %v936_v23 = vld [vmem:[#allocation2 + $0x348] sm:$0xff]  ;;  %v6934_v28 = vpack.c.bf16 %v257_v19, %v255_v18 }
  0xd5   :  { %6919 = vmatpush1.bf16.msra.mxu0 %v6918_v41  ;;  %v938_v25 = vld [vmem:[#allocation2 + $0x358] sm:$0xff]  ;;  %v260_v26 = vld [vmem:[#allocation2 + $0x168] sm:$0xff]  ;;  %v9208_v29 = vld [vmem:[%s11972_s0 + $0x10] sm:$0xff] }
  0xd6   :  { %6975 = vmatpush1.bf16.msra.mxu1 %v6974_v30  ;;  %6921 = vmatprep.subr.bf16.mxu0 %v6920_v44  ;;  %v262_v27 = vld [vmem:[#allocation2 + $0x178] sm:$0xff]  ;;  %v7058_v30 = vpack.c.bf16 %v933_v22, %v931_v21  ;;  %v259_v31 = vld [vmem:[#allocation2 + $0x160] sm:$0xff]  ;;  %v261_v32 = vld [vmem:[#allocation2 + $0x170] sm:$0xff]  ;;  %v7060_v34 = vpack.c.bf16 %v938_v25, %v936_v23 }
  0xd7   :  { %6977 = vmatprep.subr.bf16.mxu1 %v6976_v35  ;;  %v9213_v33 = vld [vmem:[%s11972_s0 + $0x28] sm:$0xff]  ;;  %v935_v35 = vld [vmem:[#allocation2 + $0x340] sm:$0xff]  ;;  %v937_v36 = vld [vmem:[#allocation2 + $0x350] sm:$0xff]  ;;  %v6936_v37 = vpack.c.bf16 %v262_v27, %v260_v26  ;;  %v6938_v40 = vpack.c.bf16 %v261_v32, %v259_v31 }
  0xd8   :  { %v940_v38 = vld [vmem:[#allocation2 + $0x368] sm:$0xff]  ;;  %v942_v39 = vld [vmem:[#allocation2 + $0x378] sm:$0xff]  ;;  %v9221_v41 = vld [vmem:[%s11972_s0 + $0x20] sm:$0xff] }
  0xd9   :  { %6923 = vmatpush1.bf16.msra.mxu0 %v6922_v53  ;;  %v9226_v43 = vld [vmem:[%s11972_s0 + $0x38] sm:$0xff]  ;;  %v7064_v44 = vpack.c.bf16 %v942_v39, %v940_v38  ;;  %v939_v45 = vld [vmem:[#allocation2 + $0x360] sm:$0xff]  ;;  %v941_v46 = vld [vmem:[#allocation2 + $0x370] sm:$0xff] }
  0xda   :  { %6979 = vmatpush1.bf16.msra.mxu1 %v6978_v42  ;;  %6925 = vmatprep.subr.bf16.mxu0 %v6924_v56  ;;  %v7062_v42 = vpack.c.bf16 %v937_v36, %v935_v35  ;;  %v946_v48 = vld [vmem:[#allocation2 + $0x398] sm:$0xff]  ;;  %v9234_v49 = vld [vmem:[%s11972_s0 + $0x30] sm:$0xff]  ;;  %v7066_v50 = vpack.c.bf16 %v941_v46, %v939_v45  ;;  %v9239_v51 = vld [vmem:[%s11972_s0 + $0x48] sm:$0xff] }
  0xdb   :  { %6981 = vmatprep.subr.bf16.mxu1 %v6980_v47  ;;  %v944_v47 = vld [vmem:[#allocation2 + $0x388] sm:$0xff]  ;;  %v943_v53 = vld [vmem:[#allocation2 + $0x380] sm:$0xff]  ;;  %v950_v56 = vld [vmem:[#allocation2 + $0x3b8] sm:$0xff] }
  0xdc   :  { %v7068_v52 = vpack.c.bf16 %v946_v48, %v944_v47  ;;  %v948_v55 = vld [vmem:[#allocation2 + $0x3a8] sm:$0xff]  ;;  %v9250_v57 = vld [vmem:[%s11972_s0 + $0x40] sm:$0xff]  ;;  %v949_v62 = vld [vmem:[#allocation2 + $0x3b0] sm:$0xff] }
  0xdd   :  { %6927 = vmatpush1.bf16.msra.mxu0 %v6926_v2  ;;  %v7072_v60 = vpack.c.bf16 %v950_v56, %v948_v55  ;;  %v947_v61 = vld [vmem:[#allocation2 + $0x3a0] sm:$0xff]  ;;  %v952_v63 = vld [vmem:[#allocation2 + $0x3c8] sm:$0xff]  ;;  %v954_v1 = vld [vmem:[#allocation2 + $0x3d8] sm:$0xff] }
  0xde   :  { %6983 = vmatpush1.bf16.msra.mxu1 %v6982_v54  ;;  %6929 = vmatprep.subr.bf16.mxu0 %v6928_v4  ;;  %v945_v54 = vld [vmem:[#allocation2 + $0x390] sm:$0xff]  ;;  %v9271_v4 = vld [vmem:[%s11972_s0 + $0x68] sm:$0xff]  ;;  %v7076_v5 = vpack.c.bf16 %v954_v1, %v952_v63  ;;  %v951_v6 = vld [vmem:[#allocation2 + $0x3c0] sm:$0xff] }
  0xdf   :  { %6985 = vmatprep.subr.bf16.mxu1 %v6984_v59  ;;  %v7070_v58 = vpack.c.bf16 %v945_v54, %v943_v53  ;;  %v9255_v59 = vld [vmem:[%s11972_s0 + $0x58] sm:$0xff]  ;;  %v9266_v2 = vld [vmem:[%s11972_s0 + $0x50] sm:$0xff]  ;;  %v956_v8 = vld [vmem:[#allocation2 + $0x3e8] sm:$0xff] }
  0xe0   :  { %v958_v9 = vld [vmem:[#allocation2 + $0x3f8] sm:$0xff]  ;;  %v9282_v10 = vld [vmem:[%s11972_s0 + $0x60] sm:$0xff]  ;;  %v960_v18 = vld [vmem:[#allocation2 + $0x408] sm:$0xff] }
  0xe1   :  { %6931 = vmatpush1.bf16.msra.mxu0 %v6930_v15  ;;  %v9287_v12 = vld [vmem:[%s11972_s0 + $0x78] sm:$0xff]  ;;  %v7080_v13 = vpack.c.bf16 %v958_v9, %v956_v8  ;;  %v955_v15 = vld [vmem:[#allocation2 + $0x3e0] sm:$0xff]  ;;  %v9303_v22 = vld [vmem:[%s11972_s0 + $0x88] sm:$0xff] }
  0xe2   :  { %6987 = vmatpush1.bf16.msra.mxu1 %v6986_v3  ;;  %6933 = vmatprep.subr.bf16.mxu0 %v6932_v24  ;;  %v7074_v3 = vpack.c.bf16 %v949_v62, %v947_v61  ;;  %v962_v19 = vld [vmem:[#allocation2 + $0x418] sm:$0xff]  ;;  %v959_v24 = vld [vmem:[#allocation2 + $0x400] sm:$0xff]  ;;  %v961_v25 = vld [vmem:[#allocation2 + $0x410] sm:$0xff] }
  0xe3   :  { %7053 = vmatprep.subr.bf16.mxu1 %v7052_v7  ;;  %v953_v7 = vld [vmem:[#allocation2 + $0x3d0] sm:$0xff]  ;;  %v7084_v23 = vpack.c.bf16 %v962_v19, %v960_v18  ;;  %v964_v26 = vld [vmem:[#allocation2 + $0x428] sm:$0xff]  ;;  %v966_v27 = vld [vmem:[#allocation2 + $0x438] sm:$0xff] }
  0xe4   :  { %v7078_v11 = vpack.c.bf16 %v953_v7, %v951_v6  ;;  %v9319_v31 = vld [vmem:[%s11972_s0 + $0x98] sm:$0xff]  ;;  %v7088_v32 = vpack.c.bf16 %v966_v27, %v964_v26  ;;  %v965_v35 = vld [vmem:[#allocation2 + $0x430] sm:$0xff]  ;;  %v968_v36 = vld [vmem:[#allocation2 + $0x448] sm:$0xff] }
  0xe5   :  { %595 = vmatmul.mubr.f32.vlgmr.msra.gmra.mrb[0].mxu1 %v9195_v14  ;;  %6935 = vmatpush1.bf16.msra.mxu0 %v6934_v28  ;;  %v9314_v28 = vld [vmem:[%s11972_s0 + $0x80] sm:$0xff]  ;;  %v9330_v38 = vld [vmem:[%s11972_s0 + $0x90] sm:$0xff]  ;;  %v972_v46 = vld [vmem:[#allocation2 + $0x468] sm:$0xff] }
  0xe6   :  { %6327 = vmatprep.mubr.msk.f32.mxu1 %vm263_vm0, %v9200_v16  ;;  %7055 = vmatpush1.bf16.msra.mxu1 %v7054_v17  ;;  %v957_v17 = vld [vmem:[#allocation2 + $0x3f0] sm:$0xff]  ;;  %v974_v47 = vld [vmem:[#allocation2 + $0x478] sm:$0xff]  ;;  %v9346_v48 = vld [vmem:[%s11972_s0 + $0xa0] sm:$0xff] }
  0xe7   :  { %7057 = vmatprep.subr.bf16.mxu1 %v7056_v20  ;;  %6937 = vmatprep.subr.bf16.mxu0 %v6936_v37  ;;  %v9298_v20 = vld [vmem:[%s11972_s0 + $0x70] sm:$0xff]  ;;  %v7082_v21 = vpack.c.bf16 %v957_v17, %v955_v15  ;;  %v970_v37 = vld [vmem:[#allocation2 + $0x458] sm:$0xff]  ;;  %v7096_v53 = vpack.c.bf16 %v974_v47, %v972_v46  ;;  %v971_v54 = vld [vmem:[#allocation2 + $0x460] sm:$0xff] }
  0xe8   :  { %v969_v45 = vld [vmem:[#allocation2 + $0x450] sm:$0xff]  ;;  %v1276_v56 = vld [vmem:[#allocation2 + $0x488] sm:$0xff]  ;;  %v9378_v1 = vld [vmem:[%s11972_s0 + $0xc0] sm:$0xff] }
  0xe9   :  { %601 = vmatmul.mubr.f32.gmra.mrb[2].mxu1 %v9208_v29  ;;  %6939 = vmatpush1.bf16.msra.mxu0 %v6938_v40  ;;  %v9335_v40 = vld [vmem:[%s11972_s0 + $0xa8] sm:$0xff]  ;;  %v973_v55 = vld [vmem:[#allocation2 + $0x470] sm:$0xff]  ;;  %v9410_v7 = vld [vmem:[%s11972_s0 + $0xe0] sm:$0xff] }
  0xea   :  { %6328 = vmatprep.mubr.msk.f32.mxu1 %vm263_vm0, %v9213_v33  ;;  %7059 = vmatpush1.bf16.msra.mxu1 %v7058_v30  ;;  %v7086_v30 = vpack.c.bf16 %v961_v25, %v959_v24  ;;  %v7098_v61 = vpack.c.bf16 %v973_v55, %v971_v54  ;;  %v9367_v62 = vld [vmem:[%s11972_s0 + $0xc8] sm:$0xff]  ;;  %v9415_v8 = vld [vmem:[%s11972_s0 + $0xf8] sm:$0xff]  ;;  %v9426_v9 = vld [vmem:[%s11972_s0 + $0xf0] sm:$0xff] }
  0xeb   :  { %7061 = vmatprep.subr.bf16.mxu1 %v7060_v34  ;;  %v963_v34 = vld [vmem:[#allocation2 + $0x420] sm:$0xff]  ;;  %v9399_v6 = vld [vmem:[%s11972_s0 + $0xe8] sm:$0xff]  ;;  %v1282_v17 = vld [vmem:[#allocation2 + $0x4b8] sm:$0xff] }
  0xec   :  { %377 = vmatmul.mubr.f32.vlgmr.msra.gmra.mrb[0].mxu0 %v9195_v14  ;;  %v7090_v39 = vpack.c.bf16 %v965_v35, %v963_v34  ;;  %v1280_v15 = vld [vmem:[#allocation2 + $0x4a8] sm:$0xff]  ;;  %v1286_v25 = vld [vmem:[#allocation2 + $0x4d8] sm:$0xff] }
  0xed   :  { %607 = vmatmul.mubr.f32.gmra.mrb[4].mxu1 %v9221_v41  ;;  %6311 = vmatprep.mubr.msk.f32.mxu0 %vm263_vm0, %v9200_v16  ;;  %v7136_v19 = vpack.c.bf16 %v1282_v17, %v1280_v15  ;;  %v1284_v24 = vld [vmem:[#allocation2 + $0x4c8] sm:$0xff]  ;;  %v1290_v35 = vld [vmem:[#allocation2 + $0x4f8] sm:$0xff] }
  0xee   :  { %6329 = vmatprep.mubr.msk.f32.mxu1 %vm263_vm0, %v9226_v43  ;;  %7063 = vmatpush1.bf16.msra.mxu1 %v7062_v42  ;;  %v7092_v42 = vpack.c.bf16 %v970_v37, %v968_v36  ;;  %v7140_v27 = vpack.c.bf16 %v1286_v25, %v1284_v24  ;;  %v1288_v34 = vld [vmem:[#allocation2 + $0x4e8] sm:$0xff]  ;;  %v1298_v55 = vld [vmem:[#allocation2 + $0x538] sm:$0xff] }
  0xef   :  { %7065 = vmatprep.subr.bf16.mxu1 %v7064_v44  ;;  %v967_v44 = vld [vmem:[#allocation2 + $0x440] sm:$0xff]  ;;  %v7144_v37 = vpack.c.bf16 %v1290_v35, %v1288_v34  ;;  %v1296_v54 = vld [vmem:[#allocation2 + $0x528] sm:$0xff] }
  0xf0   :  { %383 = vmatmul.mubr.f32.gmra.mrb[2].mxu0 %v9208_v29 }
  0xf1   :  { %613 = vmatmul.mubr.f32.gmra.mrb[6].mxu1 %v9234_v49  ;;  %6312 = vmatprep.mubr.msk.f32.mxu0 %vm263_vm0, %v9213_v33 }
  0xf2   :  { %6330 = vmatprep.mubr.msk.f32.mxu1 %vm263_vm0, %v9239_v51  ;;  %7067 = vmatpush1.bf16.msra.mxu1 %v7066_v50  ;;  %v7094_v50 = vpack.c.bf16 %v969_v45, %v967_v44  ;;  %v1292_v44 = vld [vmem:[#allocation2 + $0x508] sm:$0xff]  ;;  %v1294_v45 = vld [vmem:[#allocation2 + $0x518] sm:$0xff] }
  0xf3   :  { %7069 = vmatprep.subr.bf16.mxu1 %v7068_v52  ;;  %v9351_v52 = vld [vmem:[%s11972_s0 + $0xb8] sm:$0xff]  ;;  %v7148_v47 = vpack.c.bf16 %v1294_v45, %v1292_v44 }
  0xf4   :  { %389 = vmatmul.mubr.f32.gmra.mrb[4].mxu0 %v9221_v41 }
  0xf5   :  { %619 = vmatmul.mubr.f32.gmra.mrb[8].mxu1 %v9250_v57  ;;  %6313 = vmatprep.mubr.msk.f32.mxu0 %vm263_vm0, %v9226_v43 }
  0xf6   :  { %6331 = vmatprep.mubr.msk.f32.mxu1 %vm263_vm0, %v9255_v59  ;;  %7071 = vmatpush1.bf16.msra.mxu1 %v7070_v58  ;;  %v1278_v58 = vld [vmem:[#allocation2 + $0x498] sm:$0xff] }
  0xf7   :  { %7073 = vmatprep.subr.bf16.mxu1 %v7072_v60  ;;  %v9362_v60 = vld [vmem:[%s11972_s0 + $0xb0] sm:$0xff]  ;;  %v7132_v63 = vpack.c.bf16 %v1278_v58, %v1276_v56  ;;  %v7152_v58 = vpack.c.bf16 %v1298_v55, %v1296_v54 }
  0xf8   :  { %395 = vmatmul.mubr.f32.gmra.mrb[6].mxu0 %v9234_v49 }
  0xf9   :  { %625 = vmatmul.mubr.f32.gmra.mrb[10].mxu1 %v9266_v2  ;;  %6314 = vmatprep.mubr.msk.f32.mxu0 %vm263_vm0, %v9239_v51 }
  0xfa   :  { %6332 = vmatprep.mubr.msk.f32.mxu1 %vm263_vm0, %v9271_v4  ;;  %7075 = vmatpush1.bf16.msra.mxu1 %v7074_v3  ;;  %v9383_v3 = vld [vmem:[%s11972_s0 + $0xd8] sm:$0xff] }
  0xfb   :  { %7077 = vmatprep.subr.bf16.mxu1 %v7076_v5  ;;  %v9394_v5 = vld [vmem:[%s11972_s0 + $0xd0] sm:$0xff] }
  0xfc   :  { %401 = vmatmul.mubr.f32.gmra.mrb[8].mxu0 %v9250_v57 }
  0xfd   :  { %631 = vmatmul.mubr.f32.gmra.mrb[12].mxu1 %v9282_v10  ;;  %6315 = vmatprep.mubr.msk.f32.mxu0 %vm263_vm0, %v9255_v59 }
  0xfe   :  { %6333 = vmatprep.mubr.msk.f32.mxu1 %vm263_vm0, %v9287_v12  ;;  %7079 = vmatpush1.bf16.msra.mxu1 %v7078_v11  ;;  %v1275_v11 = vld [vmem:[#allocation2 + $0x480] sm:$0xff] }
  0xff   :  { %7081 = vmatprep.subr.bf16.mxu1 %v7080_v13  ;;  %v1277_v13 = vld [vmem:[#allocation2 + $0x490] sm:$0xff] }
 0x100   :  { %407 = vmatmul.mubr.f32.gmra.mrb[10].mxu0 %v9266_v2  ;;  %v7134_v18 = vpack.c.bf16 %v1277_v13, %v1275_v11  ;;  %v1300_v11 = vld [vmem:[#allocation2 + $0x548] sm:$0xff]  ;;  %v1302_v13 = vld [vmem:[#allocation2 + $0x558] sm:$0xff] }
 0x101   :  { %637 = vmatmul.mubr.f32.gmra.mrb[14].mxu1 %v9298_v20  ;;  %6316 = vmatprep.mubr.msk.f32.mxu0 %vm263_vm0, %v9271_v4  ;;  %v7156_v17 = vpack.c.bf16 %v1302_v13, %v1300_v11 }
 0x102   :  { %6334 = vmatprep.mubr.msk.f32.mxu1 %vm263_vm0, %v9303_v22  ;;  %7083 = vmatpush1.bf16.msra.mxu1 %v7082_v21  ;;  %v1279_v21 = vld [vmem:[#allocation2 + $0x4a0] sm:$0xff] }
 0x103   :  { %7085 = vmatprep.subr.bf16.mxu1 %v7084_v23  ;;  %v1281_v23 = vld [vmem:[#allocation2 + $0x4b0] sm:$0xff] }
 0x104   :  { %413 = vmatmul.mubr.f32.gmra.mrb[12].mxu0 %v9282_v10  ;;  %v7138_v26 = vpack.c.bf16 %v1281_v23, %v1279_v21  ;;  %v1304_v21 = vld [vmem:[#allocation2 + $0x568] sm:$0xff]  ;;  %v1306_v23 = vld [vmem:[#allocation2 + $0x578] sm:$0xff] }
 0x105   :  { %643 = vmatmul.mubr.f32.gmra.mrb[16].mxu1 %v9314_v28  ;;  %6317 = vmatprep.mubr.msk.f32.mxu0 %vm263_vm0, %v9287_v12  ;;  %v7160_v25 = vpack.c.bf16 %v1306_v23, %v1304_v21 }
 0x106   :  { %6335 = vmatprep.mubr.msk.f32.mxu1 %vm263_vm0, %v9319_v31  ;;  %7087 = vmatpush1.bf16.msra.mxu1 %v7086_v30  ;;  %v1283_v30 = vld [vmem:[#allocation2 + $0x4c0] sm:$0xff] }
 0x107   :  { %7089 = vmatprep.subr.bf16.mxu1 %v7088_v32  ;;  %v1285_v32 = vld [vmem:[#allocation2 + $0x4d0] sm:$0xff] }
 0x108   :  { %419 = vmatmul.mubr.f32.gmra.mrb[14].mxu0 %v9298_v20  ;;  %v7142_v36 = vpack.c.bf16 %v1285_v32, %v1283_v30  ;;  %v1308_v30 = vld [vmem:[#allocation2 + $0x588] sm:$0xff]  ;;  %v1310_v32 = vld [vmem:[#allocation2 + $0x598] sm:$0xff] }
 0x109   :  { %649 = vmatmul.mubr.f32.gmra.mrb[18].mxu1 %v9330_v38  ;;  %6318 = vmatprep.mubr.msk.f32.mxu0 %vm263_vm0, %v9303_v22  ;;  %v7164_v35 = vpack.c.bf16 %v1310_v32, %v1308_v30 }
 0x10a   :  { %6336 = vmatprep.mubr.msk.f32.mxu1 %vm263_vm0, %v9335_v40  ;;  %7091 = vmatpush1.bf16.msra.mxu1 %v7090_v39  ;;  %v1287_v39 = vld [vmem:[#allocation2 + $0x4e0] sm:$0xff] }
 0x10b   :  { %7093 = vmatprep.subr.bf16.mxu1 %v7092_v42  ;;  %v1289_v42 = vld [vmem:[#allocation2 + $0x4f0] sm:$0xff] }
 0x10c   :  { %425 = vmatmul.mubr.f32.gmra.mrb[16].mxu0 %v9314_v28  ;;  %v7146_v46 = vpack.c.bf16 %v1289_v42, %v1287_v39  ;;  %v1312_v39 = vld [vmem:[#allocation2 + $0x5a8] sm:$0xff]  ;;  %v1314_v42 = vld [vmem:[#allocation2 + $0x5b8] sm:$0xff] }
 0x10d   :  { %655 = vmatmul.mubr.f32.gmra.mrb[20].mxu1 %v9346_v48  ;;  %6319 = vmatprep.mubr.msk.f32.mxu0 %vm263_vm0, %v9319_v31  ;;  %v7168_v45 = vpack.c.bf16 %v1314_v42, %v1312_v39 }
 0x10e   :  { %6337 = vmatprep.mubr.msk.f32.mxu1 %vm263_vm0, %v9351_v52  ;;  %7095 = vmatpush1.bf16.msra.mxu1 %v7094_v50  ;;  %v1291_v50 = vld [vmem:[#allocation2 + $0x500] sm:$0xff] }
 0x10f   :  { %7097 = vmatprep.subr.bf16.mxu1 %v7096_v53  ;;  %v1293_v53 = vld [vmem:[#allocation2 + $0x510] sm:$0xff] }
 0x110   :  { %431 = vmatmul.mubr.f32.gmra.mrb[18].mxu0 %v9330_v38  ;;  %v7150_v56 = vpack.c.bf16 %v1293_v53, %v1291_v50  ;;  %v1316_v50 = vld [vmem:[#allocation2 + $0x5c8] sm:$0xff]  ;;  %v1318_v53 = vld [vmem:[#allocation2 + $0x5d8] sm:$0xff] }
 0x111   :  { %661 = vmatmul.mubr.f32.gmra.mrb[22].mxu1 %v9362_v60  ;;  %6320 = vmatprep.mubr.msk.f32.mxu0 %vm263_vm0, %v9335_v40  ;;  %v7172_v55 = vpack.c.bf16 %v1318_v53, %v1316_v50 }
 0x112   :  { %6338 = vmatprep.mubr.msk.f32.mxu1 %vm263_vm0, %v9367_v62  ;;  %7099 = vmatpush1.bf16.msra.mxu1 %v7098_v61  ;;  %v1295_v61 = vld [vmem:[#allocation2 + $0x520] sm:$0xff] }
 0x113   :  { %7133 = vmatprep.subr.bf16.mxu1 %v7132_v63  ;;  %v1297_v63 = vld [vmem:[#allocation2 + $0x530] sm:$0xff] }
 0x114   :  { %437 = vmatmul.mubr.f32.gmra.mrb[20].mxu0 %v9346_v48  ;;  %v7154_v15 = vpack.c.bf16 %v1297_v63, %v1295_v61  ;;  %v1320_v61 = vld [vmem:[#allocation2 + $0x5e8] sm:$0xff]  ;;  %v1322_v63 = vld [vmem:[#allocation2 + $0x5f8] sm:$0xff] }
 0x115   :  { %667 = vmatmul.mubr.f32.gmra.mrb[24].mxu1 %v9378_v1  ;;  %6321 = vmatprep.mubr.msk.f32.mxu0 %vm263_vm0, %v9351_v52  ;;  %v7176_v13 = vpack.c.bf16 %v1322_v63, %v1320_v61 }
 0x116   :  { %6339 = vmatprep.mubr.msk.f32.mxu1 %vm263_vm0, %v9383_v3 }
 0x118   :  { %443 = vmatmul.mubr.f32.gmra.mrb[22].mxu0 %v9362_v60 }
 0x119   :  { %673 = vmatmul.mubr.f32.gmra.mrb[26].mxu1 %v9394_v5  ;;  %6322 = vmatprep.mubr.msk.f32.mxu0 %vm263_vm0, %v9367_v62 }
 0x11a   :  { %6340 = vmatprep.mubr.msk.f32.mxu1 %vm263_vm0, %v9399_v6 }
 0x11c   :  { %449 = vmatmul.mubr.f32.gmra.mrb[24].mxu0 %v9378_v1 }
 0x11d   :  { %679 = vmatmul.mubr.f32.gmra.mrb[28].mxu1 %v9410_v7  ;;  %6323 = vmatprep.mubr.msk.f32.mxu0 %vm263_vm0, %v9383_v3 }
 0x11e   :  { %6341 = vmatprep.mubr.msk.f32.mxu1 %vm263_vm0, %v9415_v8 }
 0x120   :  { %455 = vmatmul.mubr.f32.gmra.mrb[26].mxu0 %v9394_v5 }
 0x121   :  { %685 = vmatmul.mubr.f32.gmra.mrb[30].mxu1 %v9426_v9  ;;  %6324 = vmatprep.mubr.msk.f32.mxu0 %vm263_vm0, %v9399_v6 }
 0x122   :  { %6350 = vmatprep.mubr.msk.f32.mxu1 %vm263_vm0, %v9186_v0 }
 0x124   :  { %461 = vmatmul.mubr.f32.gmra.mrb[28].mxu0 %v9410_v7 }
 0x125   :  { %1040 = vmatmul.mubr.f32.vlgmr.msra.gmra.mrb[32].mxu1 %v9195_v14  ;;  %6325 = vmatprep.mubr.msk.f32.mxu0 %vm263_vm0, %v9415_v8 }
 0x126   :  { %6351 = vmatprep.mubr.msk.f32.mxu1 %vm263_vm0, %v9200_v16  ;;  %7135 = vmatpush1.bf16.msra.mxu1 %v7134_v18  ;;  %v1299_v18 = vld [vmem:[#allocation2 + $0x540] sm:$0xff] }
 0x127   :  { %7137 = vmatprep.subr.bf16.mxu1 %v7136_v19  ;;  %v1301_v19 = vld [vmem:[#allocation2 + $0x550] sm:$0xff] }
 0x128   :  { %467 = vmatmul.mubr.f32.gmra.mrb[30].mxu0 %v9426_v9  ;;  %v7158_v24 = vpack.c.bf16 %v1301_v19, %v1299_v18 }
 0x129   :  { %1046 = vmatmul.mubr.f32.gmra.mrb[34].mxu1 %v9208_v29 }
 0x12a   :  { %6352 = vmatprep.mubr.msk.f32.mxu1 %vm263_vm0, %v9213_v33  ;;  %7139 = vmatpush1.bf16.msra.mxu1 %v7138_v26  ;;  %v1303_v26 = vld [vmem:[#allocation2 + $0x560] sm:$0xff] }
 0x12b   :  { %7141 = vmatprep.subr.bf16.mxu1 %v7140_v27  ;;  %v1305_v27 = vld [vmem:[#allocation2 + $0x570] sm:$0xff] }
 0x12c   :  { %v7162_v34 = vpack.c.bf16 %v1305_v27, %v1303_v26 }
 0x12d   :  { %1052 = vmatmul.mubr.f32.gmra.mrb[36].mxu1 %v9221_v41 }
 0x12e   :  { %6353 = vmatprep.mubr.msk.f32.mxu1 %vm263_vm0, %v9226_v43  ;;  %7143 = vmatpush1.bf16.msra.mxu1 %v7142_v36  ;;  %v1307_v36 = vld [vmem:[#allocation2 + $0x580] sm:$0xff] }
 0x12f   :  { %7145 = vmatprep.subr.bf16.mxu1 %v7144_v37  ;;  %v1309_v37 = vld [vmem:[#allocation2 + $0x590] sm:$0xff] }
 0x130   :  { %v7166_v44 = vpack.c.bf16 %v1309_v37, %v1307_v36 }
 0x131   :  { %1058 = vmatmul.mubr.f32.gmra.mrb[38].mxu1 %v9234_v49 }
 0x132   :  { %6354 = vmatprep.mubr.msk.f32.mxu1 %vm263_vm0, %v9239_v51  ;;  %7147 = vmatpush1.bf16.msra.mxu1 %v7146_v46  ;;  %v1311_v46 = vld [vmem:[#allocation2 + $0x5a0] sm:$0xff] }
 0x133   :  { %7149 = vmatprep.subr.bf16.mxu1 %v7148_v47  ;;  %v1313_v47 = vld [vmem:[#allocation2 + $0x5b0] sm:$0xff] }
 0x134   :  { %v7170_v54 = vpack.c.bf16 %v1313_v47, %v1311_v46 }
 0x135   :  { %1064 = vmatmul.mubr.f32.gmra.mrb[40].mxu1 %v9250_v57 }
 0x136   :  { %6355 = vmatprep.mubr.msk.f32.mxu1 %vm263_vm0, %v9255_v59  ;;  %7151 = vmatpush1.bf16.msra.mxu1 %v7150_v56  ;;  %v1315_v56 = vld [vmem:[#allocation2 + $0x5c0] sm:$0xff] }
 0x137   :  { %7153 = vmatprep.subr.bf16.mxu1 %v7152_v58  ;;  %v1317_v58 = vld [vmem:[#allocation2 + $0x5d0] sm:$0xff] }
 0x138   :  { %v7174_v11 = vpack.c.bf16 %v1317_v58, %v1315_v56 }
 0x139   :  { %1070 = vmatmul.mubr.f32.gmra.mrb[42].mxu1 %v9266_v2 }
 0x13a   :  { %6356 = vmatprep.mubr.msk.f32.mxu1 %vm263_vm0, %v9271_v4  ;;  %7155 = vmatpush1.bf16.msra.mxu1 %v7154_v15  ;;  %v1319_v15 = vld [vmem:[#allocation2 + $0x5e0] sm:$0xff] }
 0x13b   :  { %7157 = vmatprep.subr.bf16.mxu1 %v7156_v17  ;;  %v1321_v17 = vld [vmem:[#allocation2 + $0x5f0] sm:$0xff] }
 0x13c   :  { %v7178_v18 = vpack.c.bf16 %v1321_v17, %v1319_v15 }
 0x13d   :  { %1076 = vmatmul.mubr.f32.gmra.mrb[44].mxu1 %v9282_v10 }
 0x13e   :  { %6357 = vmatprep.mubr.msk.f32.mxu1 %vm263_vm0, %v9287_v12  ;;  %7159 = vmatpush1.bf16.msra.mxu1 %v7158_v24 }
 0x13f   :  { %7161 = vmatprep.subr.bf16.mxu1 %v7160_v25 }
 0x141   :  { %1082 = vmatmul.mubr.f32.gmra.mrb[46].mxu1 %v9298_v20 }
 0x142   :  { %6358 = vmatprep.mubr.msk.f32.mxu1 %vm263_vm0, %v9303_v22  ;;  %7163 = vmatpush1.bf16.msra.mxu1 %v7162_v34 }
 0x143   :  { %7165 = vmatprep.subr.bf16.mxu1 %v7164_v35 }
 0x145   :  { %1088 = vmatmul.mubr.f32.gmra.mrb[48].mxu1 %v9314_v28 }
 0x146   :  { %6359 = vmatprep.mubr.msk.f32.mxu1 %vm263_vm0, %v9319_v31  ;;  %7167 = vmatpush1.bf16.msra.mxu1 %v7166_v44 }
 0x147   :  { %7169 = vmatprep.subr.bf16.mxu1 %v7168_v45 }
 0x149   :  { %1094 = vmatmul.mubr.f32.gmra.mrb[50].mxu1 %v9330_v38 }
 0x14a   :  { %6360 = vmatprep.mubr.msk.f32.mxu1 %vm263_vm0, %v9335_v40  ;;  %7171 = vmatpush1.bf16.msra.mxu1 %v7170_v54 }
 0x14b   :  { %7173 = vmatprep.subr.bf16.mxu1 %v7172_v55 }
 0x14d   :  { %1100 = vmatmul.mubr.f32.gmra.mrb[52].mxu1 %v9346_v48 }
 0x14e   :  { %6361 = vmatprep.mubr.msk.f32.mxu1 %vm263_vm0, %v9351_v52  ;;  %7175 = vmatpush1.bf16.msra.mxu1 %v7174_v11 }
 0x14f   :  { %7177 = vmatprep.subr.bf16.mxu1 %v7176_v13 }
 0x151   :  { %1106 = vmatmul.mubr.f32.gmra.mrb[54].mxu1 %v9362_v60 }
 0x152   :  { %6362 = vmatprep.mubr.msk.f32.mxu1 %vm263_vm0, %v9367_v62  ;;  %7179 = vmatpush1.bf16.msra.mxu1 %v7178_v18 }
 0x155   :  { %1112 = vmatmul.mubr.f32.gmra.mrb[56].mxu1 %v9378_v1 }
 0x156   :  { %6363 = vmatprep.mubr.msk.f32.mxu1 %vm263_vm0, %v9383_v3 }
 0x159   :  { %1118 = vmatmul.mubr.f32.gmra.mrb[58].mxu1 %v9394_v5 }
 0x15a   :  { %6364 = vmatprep.mubr.msk.f32.mxu1 %vm263_vm0, %v9399_v6 }
 0x15d   :  { %1124 = vmatmul.mubr.f32.gmra.mrb[60].mxu1 %v9410_v7 }
 0x15e   :  { %6365 = vmatprep.mubr.msk.f32.mxu1 %vm263_vm0, %v9415_v8 }
 0x161   :  { %1130 = vmatmul.mubr.f32.gmra.mrb[62].mxu1 %v9426_v9 }
 0x162   :  { %6374 = vmatprep.mubr.msk.f32.mxu1 %vm263_vm0, %v9186_v0  ;;  %v11960_v0 = vmov 0.0  }
 0x163   :  { %764 = vmatprep.mubr.f32.mxu0 %v11960_v0 }
 0x165   :  { %1388 = vmatmul.mubr.f32.vlgmr.msra.gmra.mrb[64].mxu1 %v9195_v14 }
 0x166   :  { %6375 = vmatprep.mubr.msk.f32.mxu1 %vm263_vm0, %v9200_v16 }
 0x169   :  { %1394 = vmatmul.mubr.f32.gmra.mrb[66].mxu1 %v9208_v29 }
 0x16a   :  { %6376 = vmatprep.mubr.msk.f32.mxu1 %vm263_vm0, %v9213_v33 }
 0x16d   :  { %1400 = vmatmul.mubr.f32.gmra.mrb[68].mxu1 %v9221_v41 }
 0x16e   :  { %6377 = vmatprep.mubr.msk.f32.mxu1 %vm263_vm0, %v9226_v43 }
 0x171   :  { %1406 = vmatmul.mubr.f32.gmra.mrb[70].mxu1 %v9234_v49 }
 0x172   :  { %6378 = vmatprep.mubr.msk.f32.mxu1 %vm263_vm0, %v9239_v51 }
 0x175   :  { %1412 = vmatmul.mubr.f32.gmra.mrb[72].mxu1 %v9250_v57 }
 0x176   :  { %6379 = vmatprep.mubr.msk.f32.mxu1 %vm263_vm0, %v9255_v59 }
 0x179   :  { %1418 = vmatmul.mubr.f32.gmra.mrb[74].mxu1 %v9266_v2 }
 0x17a   :  { %6380 = vmatprep.mubr.msk.f32.mxu1 %vm263_vm0, %v9271_v4 }
 0x17d   :  { %1424 = vmatmul.mubr.f32.gmra.mrb[76].mxu1 %v9282_v10 }
 0x17e   :  { %6381 = vmatprep.mubr.msk.f32.mxu1 %vm263_vm0, %v9287_v12 }
 0x181   :  { %1430 = vmatmul.mubr.f32.gmra.mrb[78].mxu1 %v9298_v20 }
 0x182   :  { %6382 = vmatprep.mubr.msk.f32.mxu1 %vm263_vm0, %v9303_v22 }
 0x185   :  { %1436 = vmatmul.mubr.f32.gmra.mrb[80].mxu1 %v9314_v28 }
 0x186   :  { %6383 = vmatprep.mubr.msk.f32.mxu1 %vm263_vm0, %v9319_v31 }
 0x189   :  { %1442 = vmatmul.mubr.f32.gmra.mrb[82].mxu1 %v9330_v38 }
 0x18a   :  { %6384 = vmatprep.mubr.msk.f32.mxu1 %vm263_vm0, %v9335_v40 }
 0x18d   :  { %1448 = vmatmul.mubr.f32.gmra.mrb[84].mxu1 %v9346_v48 }
 0x18e   :  { %6385 = vmatprep.mubr.msk.f32.mxu1 %vm263_vm0, %v9351_v52 }
 0x191   :  { %1454 = vmatmul.mubr.f32.gmra.mrb[86].mxu1 %v9362_v60 }
 0x192   :  { %6386 = vmatprep.mubr.msk.f32.mxu1 %vm263_vm0, %v9367_v62 }
 0x195   :  { %1460 = vmatmul.mubr.f32.gmra.mrb[88].mxu1 %v9378_v1 }
 0x196   :  { %6387 = vmatprep.mubr.msk.f32.mxu1 %vm263_vm0, %v9383_v3 }
 0x199   :  { %1466 = vmatmul.mubr.f32.gmra.mrb[90].mxu1 %v9394_v5 }
 0x19a   :  { %6388 = vmatprep.mubr.msk.f32.mxu1 %vm263_vm0, %v9399_v6 }
 0x19d   :  { %1472 = vmatmul.mubr.f32.gmra.mrb[92].mxu1 %v9410_v7 }
 0x19e   :  { %6389 = vmatprep.mubr.msk.f32.mxu1 %vm263_vm0, %v9415_v8 }
 0x1a1   :  { %1478 = vmatmul.mubr.f32.gmra.mrb[94].mxu1 %v9426_v9 }
 0x1b8   :  { %v596_v14 = vpop.f32.mrb[0].mxu1 }
 0x1b9   :  { %v598_v16 = vpop.f32.mrb[1].mxu1 }
 0x1bc   :  { %v602_v29 = vpop.f32.mrb[2].mxu1 }
 0x1bd   :  { %v6990_v33 = vpack.c.bf16 %v602_v29, %v596_v14  ;;  %v604_v41 = vpop.f32.mrb[3].mxu1 }
 0x1be   :  { %v6988_v43 = vpack.c.bf16 %v604_v41, %v598_v16 }
 0x1bf   :  { %v9536_v57 = vpop.f32.mrb[0].mxu0 }
 0x1c0   :  { %v608_v49 = vpop.f32.mrb[4].mxu1  ;;  %6989 = vmatprep.subr.bf16.mxu0 %v6988_v43  ;;  %v9538_v2 = vpop.f32.mrb[1].mxu0 }
 0x1c1   :  { %v610_v51 = vpop.f32.mrb[5].mxu1  ;;  %6991 = vmatpush1.bf16.msra.mxu0 %v6990_v33 }
 0x1c3   :  { %v9540_v20 = vpop.f32.mrb[2].mxu0 }
 0x1c4   :  { %v614_v59 = vpop.f32.mrb[6].mxu1  ;;  %v7022_v28 = vpack.c.bf16 %v9540_v20, %v9536_v57  ;;  %v9544_v31 = vpop.f32.mrb[3].mxu0 }
 0x1c5   :  { %v6994_v4 = vpack.c.bf16 %v614_v59, %v608_v49  ;;  %v616_v10 = vpop.f32.mrb[7].mxu1  ;;  %v7020_v40 = vpack.c.bf16 %v9544_v31, %v9538_v2  ;;  %v6343_v2 = vld [vmem:[%s11973_s30 + $0x48] sm:$0xff] }
 0x1c6   :  { %v6992_v12 = vpack.c.bf16 %v616_v10, %v610_v51 }
 0x1c7   :  { %v9548_v48 = vpop.f32.mrb[4].mxu0 }
 0x1c8   :  { %v620_v22 = vpop.f32.mrb[8].mxu1  ;;  %6993 = vmatprep.subr.bf16.mxu0 %v6992_v12  ;;  %v9550_v60 = vpop.f32.mrb[5].mxu0 }
 0x1c9   :  { %v622_v38 = vpop.f32.mrb[9].mxu1  ;;  %6995 = vmatpush1.bf16.msra.mxu0 %v6994_v4 }
 0x1cb   :  { %v9552_v5 = vpop.f32.mrb[6].mxu0 }
 0x1cc   :  { %v626_v52 = vpop.f32.mrb[10].mxu1  ;;  %v7026_v7 = vpack.c.bf16 %v9552_v5, %v9548_v48  ;;  %v9556_v8 = vpop.f32.mrb[7].mxu0 }
 0x1cd   :  { %v6998_v62 = vpack.c.bf16 %v626_v52, %v620_v22  ;;  %v628_v1 = vpop.f32.mrb[11].mxu1  ;;  %v7024_v19 = vpack.c.bf16 %v9556_v8, %v9550_v60  ;;  %v6344_v60 = vld [vmem:[%s11973_s30 + $0x50] sm:$0xff] }
 0x1ce   :  { %v6996_v3 = vpack.c.bf16 %v628_v1, %v622_v38 }
 0x1cf   :  { %v9560_v21 = vpop.f32.mrb[8].mxu0 }
 0x1d0   :  { %v632_v6 = vpop.f32.mrb[12].mxu1  ;;  %6997 = vmatprep.subr.bf16.mxu0 %v6996_v3  ;;  %v9562_v24 = vpop.f32.mrb[9].mxu0 }
 0x1d1   :  { %v634_v9 = vpop.f32.mrb[13].mxu1  ;;  %6999 = vmatpush1.bf16.msra.mxu0 %v6998_v62 }
 0x1d3   :  { %v9564_v30 = vpop.f32.mrb[10].mxu0 }
 0x1d4   :  { %v638_v23 = vpop.f32.mrb[14].mxu1  ;;  %v7030_v34 = vpack.c.bf16 %v9564_v30, %v9560_v21  ;;  %v9568_v35 = vpop.f32.mrb[11].mxu0  ;;  %v6346_v30 = vld [vmem:[%s11973_s30 + $0x60] sm:$0xff] }
 0x1d5   :  { %v7002_v25 = vpack.c.bf16 %v638_v23, %v632_v6  ;;  %v640_v26 = vpop.f32.mrb[15].mxu1  ;;  %v7028_v37 = vpack.c.bf16 %v9568_v35, %v9562_v24 }
 0x1d6   :  { %v7000_v27 = vpack.c.bf16 %v640_v26, %v634_v9 }
 0x1d7   :  { %v9572_v39 = vpop.f32.mrb[12].mxu0 }
 0x1d8   :  { %v644_v32 = vpop.f32.mrb[16].mxu1  ;;  %7001 = vmatprep.subr.bf16.mxu0 %v7000_v27  ;;  %v9574_v44 = vpop.f32.mrb[13].mxu0 }
 0x1d9   :  { %v646_v36 = vpop.f32.mrb[17].mxu1  ;;  %7003 = vmatpush1.bf16.msra.mxu0 %v7002_v25 }
 0x1db   :  { %v9576_v50 = vpop.f32.mrb[14].mxu0 }
 0x1dc   :  { %v650_v42 = vpop.f32.mrb[18].mxu1  ;;  %v7034_v54 = vpack.c.bf16 %v9576_v50, %v9572_v39  ;;  %v9580_v55 = vpop.f32.mrb[15].mxu0 }
 0x1dd   :  { %v7006_v45 = vpack.c.bf16 %v650_v42, %v644_v32  ;;  %v652_v46 = vpop.f32.mrb[19].mxu1  ;;  %v7032_v58 = vpack.c.bf16 %v9580_v55, %v9574_v44  ;;  %v6347_v44 = vld [vmem:[%s11973_s30 + $0x68] sm:$0xff] }
 0x1de   :  { %v7004_v47 = vpack.c.bf16 %v652_v46, %v646_v36  ;;  %v6342_v46 = vld [vmem:[%s11973_s30 + $0x40] sm:$0xff] }
 0x1df   :  { %v9584_v61 = vpop.f32.mrb[16].mxu0 }
 0x1e0   :  { %v656_v53 = vpop.f32.mrb[20].mxu1  ;;  %7005 = vmatprep.subr.bf16.mxu0 %v7004_v47  ;;  %v9586_v11 = vpop.f32.mrb[17].mxu0 }
 0x1e1   :  { %v658_v56 = vpop.f32.mrb[21].mxu1  ;;  %7007 = vmatpush1.bf16.msra.mxu0 %v7006_v45 }
 0x1e3   :  { %v9588_v18 = vpop.f32.mrb[18].mxu0 }
 0x1e4   :  { %v662_v63 = vpop.f32.mrb[22].mxu1  ;;  %v7038_v16 = vpack.c.bf16 %v9588_v18, %v9584_v61  ;;  %v9592_v29 = vpop.f32.mrb[19].mxu0 }
 0x1e5   :  { %v7010_v13 = vpack.c.bf16 %v662_v63, %v656_v53  ;;  %v664_v15 = vpop.f32.mrb[23].mxu1  ;;  %v7036_v41 = vpack.c.bf16 %v9592_v29, %v9586_v11 }
 0x1e6   :  { %v7008_v17 = vpack.c.bf16 %v664_v15, %v658_v56 }
 0x1e7   :  { %v9596_v43 = vpop.f32.mrb[20].mxu0 }
 0x1e8   :  { %v668_v14 = vpop.f32.mrb[24].mxu1  ;;  %7009 = vmatprep.subr.bf16.mxu0 %v7008_v17  ;;  %v9598_v51 = vpop.f32.mrb[21].mxu0 }
 0x1e9   :  { %v670_v33 = vpop.f32.mrb[25].mxu1  ;;  %7011 = vmatpush1.bf16.msra.mxu0 %v7010_v13 }
 0x1eb   :  { %v9600_v12 = vpop.f32.mrb[22].mxu0 }
 0x1ec   :  { %v674_v49 = vpop.f32.mrb[26].mxu1  ;;  %v7042_v38 = vpack.c.bf16 %v9600_v12, %v9596_v43  ;;  %v9604_v52 = vpop.f32.mrb[23].mxu0  ;;  %v473_v43 = vld [vmem:[%s11973_s30] sm:$0xff]  ;;  %v1659_v12 = vld [vmem:[%s11974_s23 + $0x28] sm:$0xff] }
 0x1ed   :  { %v7014_v59 = vpack.c.bf16 %v674_v49, %v668_v14  ;;  %v676_v4 = vpop.f32.mrb[27].mxu1  ;;  %v7040_v1 = vpack.c.bf16 %v9604_v52, %v9598_v51  ;;  %v6349_v14 = vld [vmem:[%s11973_s30 + $0x78] sm:$0xff] }
 0x1ee   :  { %v7012_v10 = vpack.c.bf16 %v676_v4, %v670_v33  ;;  %v1655_v33 = vld [vmem:[%s11974_s23 + $0x8] sm:$0xff]  ;;  %v1657_v49 = vld [vmem:[%s11974_s23 + $0x18] sm:$0xff]  ;;  %v1656_v4 = vld [vmem:[%s11974_s23 + $0x10] sm:$0xff] }
 0x1ef   :  { %v9608_v3 = vpop.f32.mrb[24].mxu0  ;;  %v7212_v51 = vpack.c.bf16 %v1657_v49, %v1655_v33  ;;  %v1678_v33 = vld [vmem:[%s11974_s23 + $0xc0] sm:$0xff]  ;;  %v1685_v49 = vld [vmem:[%s11974_s23 + $0xf8] sm:$0xff] }
 0x1f0   :  { %v680_v22 = vpop.f32.mrb[28].mxu1  ;;  %7013 = vmatprep.subr.bf16.mxu0 %v7012_v10  ;;  %v9610_v9 = vpop.f32.mrb[25].mxu0 }
 0x1f1   :  { %v682_v62 = vpop.f32.mrb[29].mxu1  ;;  %7015 = vmatpush1.bf16.msra.mxu0 %v7014_v59  ;;  %v1654_v59 = vld [vmem:[%s11974_s23] sm:$0xff]  ;;  %7213 = vmatprep.subr.bf16.mxu1 %v7212_v51 }
 0x1f2   :  { %v7214_v10 = vpack.c.bf16 %v1656_v4, %v1654_v59  ;;  %v479_v59 = vld [vmem:[%s11973_s30 + $0x30] sm:$0xff] }
 0x1f3   :  { %v9612_v27 = vpop.f32.mrb[26].mxu0 }
 0x1f4   :  { %v686_v6 = vpop.f32.mrb[30].mxu1  ;;  %v7046_v36 = vpack.c.bf16 %v9612_v27, %v9608_v3  ;;  %v458_v42 = vpop.f32.mrb[27].mxu0  ;;  %7215 = vmatpush1.bf16.msra.mxu1 %v7214_v10  ;;  %v1665_v27 = vld [vmem:[%s11974_s23 + $0x58] sm:$0xff] }
 0x1f5   :  { %v7018_v23 = vpack.c.bf16 %v686_v6, %v680_v22  ;;  %v688_v25 = vpop.f32.mrb[31].mxu1  ;;  %v7044_v47 = vpack.c.bf16 %v458_v42, %v9610_v9  ;;  %v1661_v22 = vld [vmem:[%s11974_s23 + $0x38] sm:$0xff]  ;;  %v474_v6 = vld [vmem:[%s11973_s30 + $0x8] sm:$0xff]  ;;  %v1660_v9 = vld [vmem:[%s11974_s23 + $0x30] sm:$0xff] }
 0x1f6   :  { %v7016_v26 = vpack.c.bf16 %v688_v25, %v682_v62  ;;  %v7216_v52 = vpack.c.bf16 %v1661_v22, %v1659_v12  ;;  %v1658_v62 = vld [vmem:[%s11974_s23 + $0x20] sm:$0xff]  ;;  %v1664_v42 = vld [vmem:[%s11974_s23 + $0x50] sm:$0xff] }
 0x1f7   :  { %v9627_v53 = vpop.f32.mrb[28].mxu0  ;;  %v7218_v25 = vpack.c.bf16 %v1660_v9, %v1658_v62  ;;  %v1682_v12 = vld [vmem:[%s11974_s23 + $0xe0] sm:$0xff]  ;;  %v1684_v22 = vld [vmem:[%s11974_s23 + $0xf0] sm:$0xff]  ;;  %v1689_v62 = vld [vmem:[%s11974_s23 + $0x118] sm:$0xff] }
 0x1f8   :  { %7017 = vmatprep.subr.bf16.mxu0 %v7016_v26  ;;  %v9614_v32 = vpop.f32.mrb[32].mxu1  ;;  %v464_v63 = vpop.f32.mrb[29].mxu0  ;;  %v1663_v26 = vld [vmem:[%s11974_s23 + $0x48] sm:$0xff]  ;;  %7217 = vmatprep.subr.bf16.mxu1 %v7216_v52 }
 0x1f9   :  { %7019 = vmatpush1.bf16.msra.mxu0 %v7018_v23  ;;  %v9618_v45 = vpop.f32.mrb[33].mxu1  ;;  %7219 = vmatpush1.bf16.msra.mxu1 %v7218_v25  ;;  %v1687_v52 = vld [vmem:[%s11974_s23 + $0x108] sm:$0xff] }
 0x1fa   :  { %7021 = vmatprep.subr.bf16.mxu0 %v7020_v40  ;;  %v7244_v25 = vpack.c.bf16 %v1689_v62, %v1687_v52  ;;  %v6371_v62 = vld [vmem:[%s11973_s30 + $0xa8] sm:$0xff] }
 0x1fb   :  { %v468_v40 = vpop.f32.mrb[30].mxu0 }
 0x1fc   :  { %v9629_v56 = vpop.f32.mrb[34].mxu1  ;;  %765 = vmatmul.mubr.f32.vlgmr.msra.gmra.mrb[32].mxu0 %v6342_v46  ;;  %v7050_v57 = vpack.c.bf16 %v468_v40, %v9627_v53  ;;  %v470_v20 = vpop.f32.mrb[31].mxu0  ;;  %v1667_v46 = vld [vmem:[%s11974_s23 + $0x68] sm:$0xff]  ;;  %v475_v53 = vld [vmem:[%s11973_s30 + $0x10] sm:$0xff] }
 0x1fd   :  { %v7102_v13 = vpack.c.bf16 %v9629_v56, %v9614_v32  ;;  %7023 = vmatpush1.bf16.msra.mxu0 %v7022_v28  ;;  %v9636_v15 = vpop.f32.mrb[35].mxu1  ;;  %770 = vmatprep.mubr.f32.mxu0 %v11960_v0  ;;  %v7048_v8 = vpack.c.bf16 %v470_v20, %v464_v63  ;;  %v7220_v32 = vpack.c.bf16 %v1665_v27, %v1663_v26  ;;  %v1669_v56 = vld [vmem:[%s11974_s23 + $0x78] sm:$0xff]  ;;  %v1671_v40 = vld [vmem:[%s11974_s23 + $0x88] sm:$0xff]  ;;  %v1686_v26 = vld [vmem:[%s11974_s23 + $0x100] sm:$0xff] }
 0x1fe   :  { %v7100_v31 = vpack.c.bf16 %v9636_v15, %v9618_v45  ;;  %7025 = vmatprep.subr.bf16.mxu0 %v7024_v19  ;;  %v1666_v15 = vld [vmem:[%s11974_s23 + $0x60] sm:$0xff]  ;;  %v1688_v27 = vld [vmem:[%s11974_s23 + $0x110] sm:$0xff] }
 0x1ff   :  { %7221 = vmatprep.subr.bf16.mxu1 %v7220_v32 }
 0x200   :  { %v9647_v17 = vpop.f32.mrb[36].mxu1  ;;  %771 = vmatmul.mubr.f32.gmra.mrb[34].mxu0 %v6343_v2  ;;  %v1668_v2 = vld [vmem:[%s11974_s23 + $0x70] sm:$0xff] }
 0x201   :  { %7027 = vmatpush1.bf16.msra.mxu0 %v7026_v7  ;;  %v9653_v28 = vpop.f32.mrb[37].mxu1  ;;  %776 = vmatprep.mubr.f32.mxu0 %v11960_v0  ;;  %v6345_v7 = vld [vmem:[%s11973_s30 + $0x58] sm:$0xff] }
 0x202   :  { %7029 = vmatprep.subr.bf16.mxu0 %v7028_v37 }
 0x204   :  { %v9662_v19 = vpop.f32.mrb[38].mxu1  ;;  %777 = vmatmul.mubr.f32.gmra.mrb[36].mxu0 %v6344_v60 }
 0x205   :  { %v7106_v48 = vpack.c.bf16 %v9662_v19, %v9647_v17  ;;  %7031 = vmatpush1.bf16.msra.mxu0 %v7030_v34  ;;  %v9669_v5 = vpop.f32.mrb[39].mxu1  ;;  %782 = vmatprep.mubr.f32.mxu0 %v11960_v0  ;;  %v1673_v17 = vld [vmem:[%s11974_s23 + $0x98] sm:$0xff] }
 0x206   :  { %v7104_v24 = vpack.c.bf16 %v9669_v5, %v9653_v28  ;;  %7033 = vmatprep.subr.bf16.mxu0 %v7032_v58  ;;  %v6348_v58 = vld [vmem:[%s11973_s30 + $0x70] sm:$0xff]  ;;  %v476_v28 = vld [vmem:[%s11973_s30 + $0x18] sm:$0xff]  ;;  %v7228_v19 = vpack.c.bf16 %v1673_v17, %v1671_v40  ;;  %v6367_v17 = vld [vmem:[%s11973_s30 + $0x88] sm:$0xff] }
 0x207   :  { %v1672_v5 = vld [vmem:[%s11974_s23 + $0x90] sm:$0xff] }
 0x208   :  { %v9680_v35 = vpop.f32.mrb[40].mxu1  ;;  %783 = vmatmul.mubr.f32.gmra.mrb[38].mxu0 %v6345_v7 }
 0x209   :  { %7035 = vmatpush1.bf16.msra.mxu0 %v7034_v54  ;;  %v9685_v21 = vpop.f32.mrb[41].mxu1  ;;  %788 = vmatprep.mubr.f32.mxu0 %v11960_v0 }
 0x20a   :  { %7037 = vmatprep.subr.bf16.mxu0 %v7036_v41 }
 0x20c   :  { %v9694_v34 = vpop.f32.mrb[42].mxu1  ;;  %789 = vmatmul.mubr.f32.gmra.mrb[40].mxu0 %v6346_v30  ;;  %v477_v30 = vld [vmem:[%s11973_s30 + $0x20] sm:$0xff] }
 0x20d   :  { %v7110_v37 = vpack.c.bf16 %v9694_v34, %v9680_v35  ;;  %7039 = vmatpush1.bf16.msra.mxu0 %v7038_v16  ;;  %v9701_v39 = vpop.f32.mrb[43].mxu1  ;;  %794 = vmatprep.mubr.f32.mxu0 %v11960_v0  ;;  %v1677_v35 = vld [vmem:[%s11974_s23 + $0xb8] sm:$0xff] }
 0x20e   :  { %v7108_v50 = vpack.c.bf16 %v9701_v39, %v9685_v21  ;;  %7041 = vmatprep.subr.bf16.mxu0 %v7040_v1  ;;  %v1674_v39 = vld [vmem:[%s11974_s23 + $0xa0] sm:$0xff] }
 0x210   :  { %v9712_v54 = vpop.f32.mrb[44].mxu1  ;;  %795 = vmatmul.mubr.f32.gmra.mrb[42].mxu0 %v6347_v44  ;;  %v1676_v44 = vld [vmem:[%s11974_s23 + $0xb0] sm:$0xff] }
 0x211   :  { %7043 = vmatpush1.bf16.msra.mxu0 %v7042_v38  ;;  %v9717_v55 = vpop.f32.mrb[45].mxu1  ;;  %800 = vmatprep.mubr.f32.mxu0 %v11960_v0 }
 0x212   :  { %7045 = vmatprep.subr.bf16.mxu0 %v7044_v47 }
 0x214   :  { %v9723_v61 = vpop.f32.mrb[46].mxu1  ;;  %801 = vmatmul.mubr.f32.gmra.mrb[44].mxu0 %v6348_v58 }
 0x215   :  { %v7114_v11 = vpack.c.bf16 %v9723_v61, %v9712_v54  ;;  %7047 = vmatpush1.bf16.msra.mxu0 %v7046_v36  ;;  %v9730_v18 = vpop.f32.mrb[47].mxu1  ;;  %806 = vmatprep.mubr.f32.mxu0 %v11960_v0  ;;  %v1662_v36 = vld [vmem:[%s11974_s23 + $0x40] sm:$0xff]  ;;  %v1679_v54 = vld [vmem:[%s11974_s23 + $0xc8] sm:$0xff] }
 0x216   :  { %v7112_v16 = vpack.c.bf16 %v9730_v18, %v9717_v55  ;;  %7049 = vmatprep.subr.bf16.mxu0 %v7048_v8  ;;  %v7222_v63 = vpack.c.bf16 %v1664_v42, %v1662_v36  ;;  %v7226_v8 = vpack.c.bf16 %v1668_v2, %v1666_v15  ;;  %v1681_v55 = vld [vmem:[%s11974_s23 + $0xd8] sm:$0xff]  ;;  %v1691_v36 = vld [vmem:[%s11974_s23 + $0x128] sm:$0xff] }
 0x217   :  { %v1693_v42 = vld [vmem:[%s11974_s23 + $0x138] sm:$0xff]  ;;  %v1695_v15 = vld [vmem:[%s11974_s23 + $0x148] sm:$0xff] }
 0x218   :  { %v9738_v29 = vpop.f32.mrb[48].mxu1  ;;  %807 = vmatmul.mubr.f32.gmra.mrb[46].mxu0 %v6349_v14  ;;  %7223 = vmatpush1.bf16.msra.mxu1 %v7222_v63  ;;  %v7234_v14 = vpack.c.bf16 %v1676_v44, %v1674_v39  ;;  %v1692_v63 = vld [vmem:[%s11974_s23 + $0x130] sm:$0xff]  ;;  %v1697_v2 = vld [vmem:[%s11974_s23 + $0x158] sm:$0xff]  ;;  %v1703_v39 = vld [vmem:[%s11974_s23 + $0x188] sm:$0xff] }
 0x219   :  { %7051 = vmatpush1.bf16.msra.mxu0 %v7050_v57  ;;  %v9743_v41 = vpop.f32.mrb[49].mxu1  ;;  %877 = vmatprep.mubr.f32.mxu0 %v11960_v0  ;;  %v1705_v44 = vld [vmem:[%s11974_s23 + $0x198] sm:$0xff] }
 0x21a   :  { %7101 = vmatprep.subr.bf16.mxu0 %v7100_v31 }
 0x21c   :  { %v9764_v38 = vpop.f32.mrb[50].mxu1  ;;  %878 = vmatmul.mubr.f32.vlgmr.msra.gmra.mrb[32].mxu0 %v473_v43  ;;  %v1683_v43 = vld [vmem:[%s11974_s23 + $0xe8] sm:$0xff] }
 0x21d   :  { %v7118_v1 = vpack.c.bf16 %v9764_v38, %v9738_v29  ;;  %v1097_v3 = vpop.f32.mrb[51].mxu1  ;;  %7103 = vmatpush1.bf16.msra.mxu0 %v7102_v13  ;;  %883 = vmatprep.mubr.f32.mxu0 %v11960_v0  ;;  %v7224_v13 = vpack.c.bf16 %v1669_v56, %v1667_v46  ;;  %v1680_v29 = vld [vmem:[%s11974_s23 + $0xd0] sm:$0xff]  ;;  %v7240_v10 = vpack.c.bf16 %v1685_v49, %v1683_v43  ;;  %v6366_v46 = vld [vmem:[%s11973_s30 + $0x80] sm:$0xff] }
 0x21e   :  { %v7116_v23 = vpack.c.bf16 %v1097_v3, %v9743_v41  ;;  %7105 = vmatprep.subr.bf16.mxu0 %v7104_v24  ;;  %v1675_v24 = vld [vmem:[%s11974_s23 + $0xa8] sm:$0xff]  ;;  %v7238_v4 = vpack.c.bf16 %v1680_v29, %v1678_v33  ;;  %v1690_v56 = vld [vmem:[%s11974_s23 + $0x120] sm:$0xff]  ;;  %v1709_v29 = vld [vmem:[%s11974_s23 + $0x1b8] sm:$0xff] }
 0x21f   :  { %7225 = vmatprep.subr.bf16.mxu1 %v7224_v13  ;;  %v1707_v33 = vld [vmem:[%s11974_s23 + $0x1a8] sm:$0xff]  ;;  %v6370_v43 = vld [vmem:[%s11973_s30 + $0xa0] sm:$0xff] }
 0x220   :  { %v9794_v45 = vpop.f32.mrb[52].mxu1  ;;  %884 = vmatmul.mubr.f32.gmra.mrb[34].mxu0 %v474_v6  ;;  %7227 = vmatpush1.bf16.msra.mxu1 %v7226_v8  ;;  %v480_v6 = vld [vmem:[%s11973_s30 + $0x38] sm:$0xff]  ;;  %v1696_v8 = vld [vmem:[%s11974_s23 + $0x150] sm:$0xff] }
 0x221   :  { %v1103_v47 = vpop.f32.mrb[53].mxu1  ;;  %7107 = vmatpush1.bf16.msra.mxu0 %v7106_v48  ;;  %889 = vmatprep.mubr.f32.mxu0 %v11960_v0  ;;  %v1670_v48 = vld [vmem:[%s11974_s23 + $0x80] sm:$0xff] }
 0x222   :  { %7109 = vmatprep.subr.bf16.mxu0 %v7108_v50  ;;  %v7230_v34 = vpack.c.bf16 %v1672_v5, %v1670_v48  ;;  %7229 = vmatprep.subr.bf16.mxu1 %v7228_v19  ;;  %v1699_v48 = vld [vmem:[%s11974_s23 + $0x168] sm:$0xff]  ;;  %v1701_v5 = vld [vmem:[%s11974_s23 + $0x178] sm:$0xff] }
 0x224   :  { %v1107_v31 = vpop.f32.mrb[54].mxu1  ;;  %890 = vmatmul.mubr.f32.gmra.mrb[36].mxu0 %v475_v53  ;;  %7231 = vmatpush1.bf16.msra.mxu1 %v7230_v34  ;;  %v7248_v53 = vpack.c.bf16 %v1693_v42, %v1691_v36  ;;  %v1700_v34 = vld [vmem:[%s11974_s23 + $0x170] sm:$0xff]  ;;  %v6373_v36 = vld [vmem:[%s11973_s30 + $0xb8] sm:$0xff] }
 0x225   :  { %v7122_v57 = vpack.c.bf16 %v1107_v31, %v9794_v45  ;;  %v1109_v20 = vpop.f32.mrb[55].mxu1  ;;  %7111 = vmatpush1.bf16.msra.mxu0 %v7110_v37  ;;  %895 = vmatprep.mubr.f32.mxu0 %v11960_v0  ;;  %v7232_v37 = vpack.c.bf16 %v1677_v35, %v1675_v24  ;;  %v6368_v24 = vld [vmem:[%s11973_s30 + $0x90] sm:$0xff] }
 0x226   :  { %v7120_v60 = vpack.c.bf16 %v1109_v20, %v1103_v47  ;;  %7113 = vmatprep.subr.bf16.mxu0 %v7112_v16  ;;  %v7236_v16 = vpack.c.bf16 %v1681_v55, %v1679_v54  ;;  %v7246_v47 = vpack.c.bf16 %v1688_v27, %v1686_v26  ;;  %v7250_v20 = vpack.c.bf16 %v1692_v63, %v1690_v56  ;;  %v6369_v55 = vld [vmem:[%s11973_s30 + $0x98] sm:$0xff] }
 0x227   :  { %7233 = vmatprep.subr.bf16.mxu1 %v7232_v37 }
 0x228   :  { %v1113_v7 = vpop.f32.mrb[56].mxu1  ;;  %896 = vmatmul.mubr.f32.gmra.mrb[38].mxu0 %v476_v28  ;;  %7235 = vmatpush1.bf16.msra.mxu1 %v7234_v14  ;;  %v7252_v28 = vpack.c.bf16 %v1697_v2, %v1695_v15  ;;  %v1704_v14 = vld [vmem:[%s11974_s23 + $0x190] sm:$0xff] }
 0x229   :  { %v1115_v21 = vpop.f32.mrb[57].mxu1  ;;  %7115 = vmatpush1.bf16.msra.mxu0 %v7114_v11  ;;  %901 = vmatprep.mubr.f32.mxu0 %v11960_v0  ;;  %v478_v11 = vld [vmem:[%s11973_s30 + $0x28] sm:$0xff] }
 0x22a   :  { %7117 = vmatprep.subr.bf16.mxu0 %v7116_v23  ;;  %7237 = vmatprep.subr.bf16.mxu1 %v7236_v16  ;;  %v7242_v23 = vpack.c.bf16 %v1684_v22, %v1682_v12  ;;  %v1711_v12 = vld [vmem:[%s11974_s23 + $0x1c8] sm:$0xff]  ;;  %v1713_v22 = vld [vmem:[%s11974_s23 + $0x1d8] sm:$0xff] }
 0x22c   :  { %v1119_v50 = vpop.f32.mrb[58].mxu1  ;;  %902 = vmatmul.mubr.f32.gmra.mrb[40].mxu0 %v477_v30  ;;  %7239 = vmatpush1.bf16.msra.mxu1 %v7238_v4  ;;  %v1698_v30 = vld [vmem:[%s11974_s23 + $0x160] sm:$0xff]  ;;  %v1708_v4 = vld [vmem:[%s11974_s23 + $0x1b0] sm:$0xff] }
 0x22d   :  { %v7126_v58 = vpack.c.bf16 %v1119_v50, %v1113_v7  ;;  %v1121_v61 = vpop.f32.mrb[59].mxu1  ;;  %7119 = vmatpush1.bf16.msra.mxu0 %v7118_v1  ;;  %907 = vmatprep.mubr.f32.mxu0 %v11960_v0 }
 0x22e   :  { %v7124_v18 = vpack.c.bf16 %v1121_v61, %v1115_v21  ;;  %7121 = vmatprep.subr.bf16.mxu0 %v7120_v60  ;;  %7241 = vmatprep.subr.bf16.mxu1 %v7240_v10  ;;  %v1694_v60 = vld [vmem:[%s11974_s23 + $0x140] sm:$0xff]  ;;  %v7256_v21 = vpack.c.bf16 %v1701_v5, %v1699_v48  ;;  %v7258_v61 = vpack.c.bf16 %v1700_v34, %v1698_v30 }
 0x22f   :  { %v7254_v35 = vpack.c.bf16 %v1696_v8, %v1694_v60 }
 0x230   :  { %v1125_v41 = vpop.f32.mrb[60].mxu1  ;;  %908 = vmatmul.mubr.f32.gmra.mrb[42].mxu0 %v478_v11  ;;  %7243 = vmatpush1.bf16.msra.mxu1 %v7242_v23  ;;  %v7260_v11 = vpack.c.bf16 %v1705_v44, %v1703_v39  ;;  %v6398_v39 = vld [vmem:[%s11974_s23 + $0x200] sm:$0xff]  ;;  %v6400_v44 = vld [vmem:[%s11974_s23 + $0x210] sm:$0xff] }
 0x231   :  { %v1127_v51 = vpop.f32.mrb[61].mxu1  ;;  %7123 = vmatpush1.bf16.msra.mxu0 %v7122_v57  ;;  %913 = vmatprep.mubr.f32.mxu0 %v11960_v0 }
 0x232   :  { %7125 = vmatprep.subr.bf16.mxu0 %v7124_v18  ;;  %7245 = vmatprep.subr.bf16.mxu1 %v7244_v25  ;;  %v1702_v18 = vld [vmem:[%s11974_s23 + $0x180] sm:$0xff]  ;;  %v6372_v25 = vld [vmem:[%s11973_s30 + $0xb0] sm:$0xff] }
 0x233   :  { %v7262_v49 = vpack.c.bf16 %v1704_v14, %v1702_v18  ;;  %v6404_v18 = vld [vmem:[%s11974_s23 + $0x230] sm:$0xff]  ;;  %v6407_v14 = vld [vmem:[%s11974_s23 + $0x248] sm:$0xff] }
 0x234   :  { %v1131_v38 = vpop.f32.mrb[62].mxu1  ;;  %914 = vmatmul.mubr.f32.gmra.mrb[44].mxu0 %v479_v59  ;;  %7247 = vmatpush1.bf16.msra.mxu1 %v7246_v47  ;;  %v1706_v59 = vld [vmem:[%s11974_s23 + $0x1a0] sm:$0xff] }
 0x235   :  { %v7130_v1 = vpack.c.bf16 %v1131_v38, %v1125_v41  ;;  %v1133_v3 = vpop.f32.mrb[63].mxu1  ;;  %7127 = vmatpush1.bf16.msra.mxu0 %v7126_v58  ;;  %919 = vmatprep.mubr.f32.mxu0 %v11960_v0 }
 0x236   :  { %v7128_v9 = vpack.c.bf16 %v1133_v3, %v1127_v51  ;;  %7249 = vmatprep.subr.bf16.mxu1 %v7248_v53  ;;  %v7264_v51 = vpack.c.bf16 %v1709_v29, %v1707_v33  ;;  %v7266_v3 = vpack.c.bf16 %v1708_v4, %v1706_v59  ;;  %v6391_v33 = vld [vmem:[%s11973_s30 + $0xc8] sm:$0xff]  ;;  %v6413_v59 = vld [vmem:[%s11974_s23 + $0x278] sm:$0xff]  ;;  %v6392_v4 = vld [vmem:[%s11973_s30 + $0xd0] sm:$0xff] }
 0x238   :  { %7129 = vmatprep.subr.bf16.mxu0 %v7128_v9  ;;  %v1389_v32 = vpop.f32.mrb[64].mxu1  ;;  %920 = vmatmul.mubr.f32.gmra.mrb[46].mxu0 %v480_v6  ;;  %v7268_v6 = vpack.c.bf16 %v1713_v22, %v1711_v12  ;;  %v6410_v22 = vld [vmem:[%s11974_s23 + $0x260] sm:$0xff] }
 0x239   :  { %7131 = vmatpush1.bf16.msra.mxu0 %v7130_v1  ;;  %v1391_v45 = vpop.f32.mrb[65].mxu1  ;;  %1209 = vmatprep.mubr.f32.mxu0 %v11960_v0 }
 0x23a   :  { %7251 = vmatpush1.bf16.msra.mxu1 %v7250_v20 }
 0x23b   :  { %7253 = vmatprep.subr.bf16.mxu1 %v7252_v28 }
 0x23c   :  { %v1395_v13 = vpop.f32.mrb[66].mxu1  ;;  %1210 = vmatmul.mubr.f32.vlgmr.msra.gmra.mrb[32].mxu0 %v6366_v46 }
 0x23d   :  { %v7182_v31 = vpack.c.bf16 %v1395_v13, %v1389_v32  ;;  %v1397_v40 = vpop.f32.mrb[67].mxu1  ;;  %1215 = vmatprep.mubr.f32.mxu0 %v11960_v0 }
 0x23e   :  { %v7180_v57 = vpack.c.bf16 %v1397_v40, %v1391_v45  ;;  %7255 = vmatpush1.bf16.msra.mxu1 %v7254_v35 }
 0x23f   :  { %7257 = vmatprep.subr.bf16.mxu1 %v7256_v21 }
 0x240   :  { %v1401_v19 = vpop.f32.mrb[68].mxu1  ;;  %7181 = vmatprep.subr.bf16.mxu0 %v7180_v57  ;;  %1216 = vmatmul.mubr.f32.gmra.mrb[34].mxu0 %v6367_v17 }
 0x241   :  { %v1403_v7 = vpop.f32.mrb[69].mxu1  ;;  %7183 = vmatpush1.bf16.msra.mxu0 %v7182_v31  ;;  %1221 = vmatprep.mubr.f32.mxu0 %v11960_v0 }
 0x242   :  { %7259 = vmatpush1.bf16.msra.mxu1 %v7258_v61 }
 0x243   :  { %7261 = vmatprep.subr.bf16.mxu1 %v7260_v11  ;;  %v6402_v11 = vld [vmem:[%s11974_s23 + $0x220] sm:$0xff] }
 0x244   :  { %v1407_v37 = vpop.f32.mrb[70].mxu1  ;;  %1222 = vmatmul.mubr.f32.gmra.mrb[36].mxu0 %v6368_v24  ;;  %v6401_v24 = vld [vmem:[%s11974_s23 + $0x218] sm:$0xff]  ;;  %v7282_v29 = vpack.c.bf16 %v6404_v18, %v6402_v11  ;;  %v6443_v11 = vld [vmem:[%s11974_s23 + $0x368] sm:$0xff] }
 0x245   :  { %v7186_v50 = vpack.c.bf16 %v1407_v37, %v1401_v19  ;;  %v1409_v54 = vpop.f32.mrb[71].mxu1  ;;  %1227 = vmatprep.mubr.f32.mxu0 %v11960_v0  ;;  %v6445_v18 = vld [vmem:[%s11974_s23 + $0x378] sm:$0xff] }
 0x246   :  { %v7184_v58 = vpack.c.bf16 %v1409_v54, %v1403_v7  ;;  %7263 = vmatpush1.bf16.msra.mxu1 %v7262_v49  ;;  %v6399_v7 = vld [vmem:[%s11974_s23 + $0x208] sm:$0xff]  ;;  %v6405_v54 = vld [vmem:[%s11974_s23 + $0x238] sm:$0xff]  ;;  %v6408_v49 = vld [vmem:[%s11974_s23 + $0x250] sm:$0xff] }
 0x247   :  { %7265 = vmatprep.subr.bf16.mxu1 %v7264_v51  ;;  %v7276_v37 = vpack.c.bf16 %v6401_v24, %v6399_v7  ;;  %v6411_v51 = vld [vmem:[%s11974_s23 + $0x268] sm:$0xff]  ;;  %v6430_v7 = vld [vmem:[%s11974_s23 + $0x300] sm:$0xff]  ;;  %v6432_v24 = vld [vmem:[%s11974_s23 + $0x310] sm:$0xff] }
 0x248   :  { %v1413_v16 = vpop.f32.mrb[72].mxu1  ;;  %7185 = vmatprep.subr.bf16.mxu0 %v7184_v58  ;;  %1228 = vmatmul.mubr.f32.gmra.mrb[38].mxu0 %v6369_v55  ;;  %v6390_v55 = vld [vmem:[%s11973_s30 + $0xc0] sm:$0xff]  ;;  %v7278_v58 = vpack.c.bf16 %v6400_v44, %v6398_v39  ;;  %v7288_v12 = vpack.c.bf16 %v6413_v59, %v6411_v51  ;;  %v6436_v39 = vld [vmem:[%s11974_s23 + $0x330] sm:$0xff]  ;;  %v6439_v44 = vld [vmem:[%s11974_s23 + $0x348] sm:$0xff] }
 0x249   :  { %v1415_v41 = vpop.f32.mrb[73].mxu1  ;;  %7187 = vmatpush1.bf16.msra.mxu0 %v7186_v50  ;;  %1233 = vmatprep.mubr.f32.mxu0 %v11960_v0  ;;  %v6403_v50 = vld [vmem:[%s11974_s23 + $0x228] sm:$0xff]  ;;  %v6446_v59 = vld [vmem:[%s11974_s23 + $0x380] sm:$0xff] }
 0x24a   :  { %7267 = vmatpush1.bf16.msra.mxu1 %v7266_v3  ;;  %v7280_v61 = vpack.c.bf16 %v6405_v54, %v6403_v50  ;;  %v6441_v50 = vld [vmem:[%s11974_s23 + $0x358] sm:$0xff] }
 0x24b   :  { %7269 = vmatprep.subr.bf16.mxu1 %v7268_v6 }
 0x24c   :  { %v1419_v10 = vpop.f32.mrb[74].mxu1  ;;  %1234 = vmatmul.mubr.f32.gmra.mrb[40].mxu0 %v6370_v43  ;;  %v6406_v43 = vld [vmem:[%s11974_s23 + $0x240] sm:$0xff] }
 0x24d   :  { %v7190_v38 = vpack.c.bf16 %v1419_v10, %v1413_v16  ;;  %v1421_v52 = vpop.f32.mrb[75].mxu1  ;;  %1239 = vmatprep.mubr.f32.mxu0 %v11960_v0  ;;  %v6409_v16 = vld [vmem:[%s11974_s23 + $0x258] sm:$0xff]  ;;  %v7286_v10 = vpack.c.bf16 %v6408_v49, %v6406_v43 }
 0x24e   :  { %v7188_v1 = vpack.c.bf16 %v1421_v52, %v1415_v41  ;;  %v7284_v41 = vpack.c.bf16 %v6409_v16, %v6407_v14  ;;  %v6415_v52 = vld [vmem:[%s11974_s23 + $0x288] sm:$0xff]  ;;  %v7320_v16 = vpack.c.bf16 %v6445_v18, %v6443_v11  ;;  %v6449_v43 = vld [vmem:[%s11974_s23 + $0x398] sm:$0xff] }
 0x250   :  { %v1425_v9 = vpop.f32.mrb[76].mxu1  ;;  %7189 = vmatprep.subr.bf16.mxu0 %v7188_v1  ;;  %1240 = vmatmul.mubr.f32.gmra.mrb[42].mxu0 %v6371_v62  ;;  %v6417_v62 = vld [vmem:[%s11974_s23 + $0x298] sm:$0xff] }
 0x251   :  { %v1427_v23 = vpop.f32.mrb[77].mxu1  ;;  %7191 = vmatpush1.bf16.msra.mxu0 %v7190_v38  ;;  %1245 = vmatprep.mubr.f32.mxu0 %v11960_v0  ;;  %v6412_v38 = vld [vmem:[%s11974_s23 + $0x270] sm:$0xff]  ;;  %v6393_v1 = vld [vmem:[%s11973_s30 + $0xd8] sm:$0xff]  ;;  %v7292_v6 = vpack.c.bf16 %v6417_v62, %v6415_v52  ;;  %v6450_v52 = vld [vmem:[%s11974_s23 + $0x3a0] sm:$0xff] }
 0x252   :  { %v7290_v3 = vpack.c.bf16 %v6412_v38, %v6410_v22  ;;  %v6452_v62 = vld [vmem:[%s11974_s23 + $0x3b0] sm:$0xff] }
 0x254   :  { %v1431_v26 = vpop.f32.mrb[78].mxu1  ;;  %1246 = vmatmul.mubr.f32.gmra.mrb[44].mxu0 %v6372_v25  ;;  %v6419_v25 = vld [vmem:[%s11974_s23 + $0x2a8] sm:$0xff] }
 0x255   :  { %v7194_v27 = vpack.c.bf16 %v1431_v26, %v1425_v9  ;;  %v1433_v32 = vpop.f32.mrb[79].mxu1  ;;  %1251 = vmatprep.mubr.f32.mxu0 %v11960_v0  ;;  %v6414_v9 = vld [vmem:[%s11974_s23 + $0x280] sm:$0xff]  ;;  %v6421_v26 = vld [vmem:[%s11974_s23 + $0x2b8] sm:$0xff] }
 0x256   :  { %v7192_v42 = vpack.c.bf16 %v1433_v32, %v1427_v23  ;;  %v6416_v23 = vld [vmem:[%s11974_s23 + $0x290] sm:$0xff] }
 0x257   :  { %v7294_v32 = vpack.c.bf16 %v6416_v23, %v6414_v9  ;;  %v6454_v23 = vld [vmem:[%s11974_s23 + $0x3c0] sm:$0xff] }
 0x258   :  { %v1437_v45 = vpop.f32.mrb[80].mxu1  ;;  %7193 = vmatprep.subr.bf16.mxu0 %v7192_v42  ;;  %1252 = vmatmul.mubr.f32.gmra.mrb[46].mxu0 %v6373_v36  ;;  %v7296_v36 = vpack.c.bf16 %v6421_v26, %v6419_v25  ;;  %v6418_v42 = vld [vmem:[%s11974_s23 + $0x2a0] sm:$0xff]  ;;  %v6456_v25 = vld [vmem:[%s11974_s23 + $0x3d0] sm:$0xff] }
 0x259   :  { %v1439_v46 = vpop.f32.mrb[81].mxu1  ;;  %7195 = vmatpush1.bf16.msra.mxu0 %v7194_v27  ;;  %1557 = vmatprep.mubr.f32.mxu0 %v11960_v0  ;;  %v6394_v27 = vld [vmem:[%s11973_s30 + $0xe0] sm:$0xff]  ;;  %v7334_v26 = vpack.c.bf16 %v6456_v25, %v6454_v23  ;;  %v6487_v23 = vld [vmem:[%s11974_s23 + $0x488] sm:$0xff]  ;;  %v6489_v25 = vld [vmem:[%s11974_s23 + $0x498] sm:$0xff] }
 0x25c   :  { %v1443_v47 = vpop.f32.mrb[82].mxu1 }
 0x25d   :  { %v7198_v53 = vpack.c.bf16 %v1443_v47, %v1437_v45  ;;  %v1445_v56 = vpop.f32.mrb[83].mxu1  ;;  %v6420_v45 = vld [vmem:[%s11974_s23 + $0x2b0] sm:$0xff]  ;;  %v6425_v47 = vld [vmem:[%s11974_s23 + $0x2d8] sm:$0xff] }
 0x25e   :  { %v7196_v63 = vpack.c.bf16 %v1445_v56, %v1439_v46  ;;  %v6423_v46 = vld [vmem:[%s11974_s23 + $0x2c8] sm:$0xff]  ;;  %v7298_v56 = vpack.c.bf16 %v6420_v45, %v6418_v42  ;;  %v6461_v45 = vld [vmem:[%s11974_s23 + $0x3f8] sm:$0xff] }
 0x25f   :  { %v6459_v42 = vld [vmem:[%s11974_s23 + $0x3e8] sm:$0xff] }
 0x260   :  { %v1449_v13 = vpop.f32.mrb[84].mxu1  ;;  %7197 = vmatprep.subr.bf16.mxu0 %v7196_v63  ;;  %v7300_v63 = vpack.c.bf16 %v6425_v47, %v6423_v46  ;;  %v7336_v46 = vpack.c.bf16 %v6461_v45, %v6459_v42  ;;  %v1715_v47 = vld [vmem:[%s11974_s23 + $0x1e8] sm:$0xff] }
 0x261   :  { %v1451_v15 = vpop.f32.mrb[85].mxu1  ;;  %7199 = vmatpush1.bf16.msra.mxu0 %v7198_v53  ;;  %v6395_v53 = vld [vmem:[%s11973_s30 + $0xe8] sm:$0xff] }
 0x264   :  { %v1455_v2 = vpop.f32.mrb[86].mxu1 }
 0x265   :  { %v7202_v31 = vpack.c.bf16 %v1455_v2, %v1449_v13  ;;  %v1457_v40 = vpop.f32.mrb[87].mxu1  ;;  %v6422_v13 = vld [vmem:[%s11974_s23 + $0x2c0] sm:$0xff]  ;;  %v6427_v2 = vld [vmem:[%s11974_s23 + $0x2e8] sm:$0xff] }
 0x266   :  { %v7200_v17 = vpack.c.bf16 %v1457_v40, %v1451_v15  ;;  %v6424_v15 = vld [vmem:[%s11974_s23 + $0x2d0] sm:$0xff] }
 0x267   :  { %v6396_v40 = vld [vmem:[%s11973_s30 + $0xf0] sm:$0xff] }
 0x268   :  { %v1461_v57 = vpop.f32.mrb[88].mxu1  ;;  %7201 = vmatprep.subr.bf16.mxu0 %v7200_v17  ;;  %v7302_v17 = vpack.c.bf16 %v6424_v15, %v6422_v13  ;;  %v6460_v13 = vld [vmem:[%s11974_s23 + $0x3f0] sm:$0xff]  ;;  %v1714_v15 = vld [vmem:[%s11974_s23 + $0x1e0] sm:$0xff] }
 0x269   :  { %v1463_v20 = vpop.f32.mrb[89].mxu1  ;;  %7203 = vmatpush1.bf16.msra.mxu0 %v7202_v31  ;;  %v6429_v31 = vld [vmem:[%s11974_s23 + $0x2f8] sm:$0xff] }
 0x26c   :  { %v1467_v28 = vpop.f32.mrb[90].mxu1 }
 0x26d   :  { %v7206_v60 = vpack.c.bf16 %v1467_v28, %v1461_v57  ;;  %v1469_v8 = vpop.f32.mrb[91].mxu1  ;;  %v7304_v57 = vpack.c.bf16 %v6429_v31, %v6427_v2  ;;  %v6428_v28 = vld [vmem:[%s11974_s23 + $0x2f0] sm:$0xff] }
 0x26e   :  { %v7204_v19 = vpack.c.bf16 %v1469_v8, %v1463_v20  ;;  %v6426_v20 = vld [vmem:[%s11974_s23 + $0x2e0] sm:$0xff]  ;;  %v6433_v8 = vld [vmem:[%s11974_s23 + $0x318] sm:$0xff]  ;;  %v1716_v2 = vld [vmem:[%s11974_s23 + $0x1f0] sm:$0xff] }
 0x270   :  { %v1473_v48 = vpop.f32.mrb[92].mxu1  ;;  %7205 = vmatprep.subr.bf16.mxu0 %v7204_v19  ;;  %v6397_v19 = vld [vmem:[%s11973_s30 + $0xf8] sm:$0xff] }
 0x271   :  { %v1475_v5 = vpop.f32.mrb[93].mxu1  ;;  %7207 = vmatpush1.bf16.msra.mxu0 %v7206_v60  ;;  %v6431_v60 = vld [vmem:[%s11974_s23 + $0x308] sm:$0xff] }
 0x274   :  { %v1479_v35 = vpop.f32.mrb[94].mxu1 }
 0x275   :  { %v7210_v21 = vpack.c.bf16 %v1479_v35, %v1473_v48  ;;  %v1481_v30 = vpop.f32.mrb[95].mxu1  ;;  %v7306_v48 = vpack.c.bf16 %v6428_v28, %v6426_v20  ;;  %v6435_v35 = vld [vmem:[%s11974_s23 + $0x328] sm:$0xff] }
 0x276   :  { %v7208_v34 = vpack.c.bf16 %v1481_v30, %v1475_v5  ;;  %v7308_v5 = vpack.c.bf16 %v6433_v8, %v6431_v60  ;;  %v7310_v30 = vpack.c.bf16 %v6432_v24, %v6430_v7  ;;  %v6475_v7 = vld [vmem:[%s11974_s23 + $0x428] sm:$0xff]  ;;  %v6477_v24 = vld [vmem:[%s11974_s23 + $0x438] sm:$0xff] }
 0x278   :  { %7209 = vmatprep.subr.bf16.mxu0 %v7208_v34 }
 0x279   :  { %7211 = vmatpush1.bf16.msra.mxu0 %v7210_v21  ;;  %v6437_v21 = vld [vmem:[%s11974_s23 + $0x338] sm:$0xff] }
 0x27a   :  { %7277 = vmatprep.subr.bf16.mxu0 %v7276_v37  ;;  %v7312_v34 = vpack.c.bf16 %v6437_v21, %v6435_v35  ;;  %v6434_v37 = vld [vmem:[%s11974_s23 + $0x320] sm:$0xff] }
 0x27b   :  { %v7314_v54 = vpack.c.bf16 %v6436_v39, %v6434_v37 }
 0x27c   :  { %1558 = vmatmul.mubr.f32.vlgmr.msra.gmra.mrb[32].mxu0 %v6390_v55  ;;  %v7316_v55 = vpack.c.bf16 %v6441_v50, %v6439_v44  ;;  %v7376_v44 = vpack.c.bf16 %v6477_v24, %v6475_v7  ;;  %v6474_v50 = vld [vmem:[%s11974_s23 + $0x420] sm:$0xff] }
 0x27d   :  { %1563 = vmatprep.mubr.f32.mxu0 %v11960_v0  ;;  %7279 = vmatpush1.bf16.msra.mxu0 %v7278_v58  ;;  %v6438_v58 = vld [vmem:[%s11974_s23 + $0x340] sm:$0xff] }
 0x27e   :  { %7281 = vmatprep.subr.bf16.mxu0 %v7280_v61  ;;  %v6440_v61 = vld [vmem:[%s11974_s23 + $0x350] sm:$0xff] }
 0x27f   :  { %v7318_v14 = vpack.c.bf16 %v6440_v61, %v6438_v58  ;;  %v6479_v58 = vld [vmem:[%s11974_s23 + $0x448] sm:$0xff]  ;;  %v6481_v61 = vld [vmem:[%s11974_s23 + $0x458] sm:$0xff] }
 0x280   :  { %1564 = vmatmul.mubr.f32.gmra.mrb[34].mxu0 %v6391_v33  ;;  %v6442_v33 = vld [vmem:[%s11974_s23 + $0x360] sm:$0xff] }
 0x281   :  { %1569 = vmatprep.mubr.f32.mxu0 %v11960_v0  ;;  %7283 = vmatpush1.bf16.msra.mxu0 %v7282_v29  ;;  %v6444_v29 = vld [vmem:[%s11974_s23 + $0x370] sm:$0xff] }
 0x282   :  { %7285 = vmatprep.subr.bf16.mxu0 %v7284_v41  ;;  %v6447_v41 = vld [vmem:[%s11974_s23 + $0x388] sm:$0xff]  ;;  %v7322_v49 = vpack.c.bf16 %v6444_v29, %v6442_v33 }
 0x283   :  { %v7324_v51 = vpack.c.bf16 %v6449_v43, %v6447_v41  ;;  %v7380_v41 = vpack.c.bf16 %v6481_v61, %v6479_v58  ;;  %v6478_v43 = vld [vmem:[%s11974_s23 + $0x440] sm:$0xff]  ;;  %v6501_v58 = vld [vmem:[%s11974_s23 + $0x4f8] sm:$0xff] }
 0x284   :  { %1570 = vmatmul.mubr.f32.gmra.mrb[36].mxu0 %v6392_v4  ;;  %v6448_v4 = vld [vmem:[%s11974_s23 + $0x390] sm:$0xff] }
 0x285   :  { %1575 = vmatprep.mubr.f32.mxu0 %v11960_v0  ;;  %7287 = vmatpush1.bf16.msra.mxu0 %v7286_v10  ;;  %v6451_v10 = vld [vmem:[%s11974_s23 + $0x3a8] sm:$0xff]  ;;  %v7326_v22 = vpack.c.bf16 %v6448_v4, %v6446_v59  ;;  %v6485_v4 = vld [vmem:[%s11974_s23 + $0x478] sm:$0xff] }
 0x286   :  { %7289 = vmatprep.subr.bf16.mxu0 %v7288_v12  ;;  %v6453_v12 = vld [vmem:[%s11974_s23 + $0x3b8] sm:$0xff]  ;;  %v6483_v59 = vld [vmem:[%s11974_s23 + $0x468] sm:$0xff] }
 0x287   :  { %v7328_v38 = vpack.c.bf16 %v6453_v12, %v6451_v10 }
 0x288   :  { %1576 = vmatmul.mubr.f32.gmra.mrb[38].mxu0 %v6393_v1  ;;  %v6455_v1 = vld [vmem:[%s11974_s23 + $0x3c8] sm:$0xff] }
 0x289   :  { %1581 = vmatprep.mubr.f32.mxu0 %v11960_v0  ;;  %7291 = vmatpush1.bf16.msra.mxu0 %v7290_v3  ;;  %v6457_v3 = vld [vmem:[%s11974_s23 + $0x3d8] sm:$0xff] }
 0x28a   :  { %7293 = vmatprep.subr.bf16.mxu0 %v7292_v6  ;;  %v7330_v6 = vpack.c.bf16 %v6452_v62, %v6450_v52  ;;  %v7332_v9 = vpack.c.bf16 %v6457_v3, %v6455_v1  ;;  %v7384_v1 = vpack.c.bf16 %v6485_v4, %v6483_v59  ;;  %v6482_v3 = vld [vmem:[%s11974_s23 + $0x460] sm:$0xff]  ;;  %v6503_v4 = vld [vmem:[%s11974_s23 + $0x508] sm:$0xff] }
 0x28c   :  { %1582 = vmatmul.mubr.f32.gmra.mrb[40].mxu0 %v6394_v27  ;;  %v1710_v27 = vld [vmem:[%s11974_s23 + $0x1c0] sm:$0xff] }
 0x28d   :  { %1587 = vmatprep.mubr.f32.mxu0 %v11960_v0  ;;  %7295 = vmatpush1.bf16.msra.mxu0 %v7294_v32  ;;  %v1712_v32 = vld [vmem:[%s11974_s23 + $0x1d0] sm:$0xff] }
 0x28e   :  { %7297 = vmatprep.subr.bf16.mxu0 %v7296_v36  ;;  %v7270_v36 = vpack.c.bf16 %v1712_v32, %v1710_v27 }
 0x290   :  { %1588 = vmatmul.mubr.f32.gmra.mrb[42].mxu0 %v6395_v53  ;;  %7271 = vmatpush1.bf16.msra.mxu1 %v7270_v36  ;;  %v1717_v53 = vld [vmem:[%s11974_s23 + $0x1f8] sm:$0xff] }
 0x291   :  { %1593 = vmatprep.mubr.f32.mxu0 %v11960_v0  ;;  %7299 = vmatpush1.bf16.msra.mxu0 %v7298_v56  ;;  %v6458_v56 = vld [vmem:[%s11974_s23 + $0x3e0] sm:$0xff] }
 0x292   :  { %7301 = vmatprep.subr.bf16.mxu0 %v7300_v63  ;;  %v7272_v63 = vpack.c.bf16 %v1717_v53, %v1715_v47  ;;  %v7338_v31 = vpack.c.bf16 %v6460_v13, %v6458_v56  ;;  %v6486_v47 = vld [vmem:[%s11974_s23 + $0x480] sm:$0xff]  ;;  %v6488_v53 = vld [vmem:[%s11974_s23 + $0x490] sm:$0xff]  ;;  %v6493_v13 = vld [vmem:[%s11974_s23 + $0x4b8] sm:$0xff] }
 0x294   :  { %1594 = vmatmul.mubr.f32.gmra.mrb[44].mxu0 %v6396_v40  ;;  %v7274_v40 = vpack.c.bf16 %v1716_v2, %v1714_v15  ;;  %7273 = vmatprep.subr.bf16.mxu1 %v7272_v63  ;;  %v6491_v63 = vld [vmem:[%s11974_s23 + $0x4a8] sm:$0xff] }
 0x295   :  { %1599 = vmatprep.mubr.f32.mxu0 %v11960_v0  ;;  %7303 = vmatpush1.bf16.msra.mxu0 %v7302_v17  ;;  %v6471_v17 = vld [vmem:[%s11974_s23 + $0x408] sm:$0xff] }
 0x296   :  { %7305 = vmatprep.subr.bf16.mxu0 %v7304_v57  ;;  %v6473_v57 = vld [vmem:[%s11974_s23 + $0x418] sm:$0xff]  ;;  %7275 = vmatpush1.bf16.msra.mxu1 %v7274_v40 }
 0x297   :  { %v7372_v20 = vpack.c.bf16 %v6473_v57, %v6471_v17 }
 0x298   :  { %1600 = vmatmul.mubr.f32.gmra.mrb[46].mxu0 %v6397_v19  ;;  %v6470_v19 = vld [vmem:[%s11974_s23 + $0x400] sm:$0xff] }
 0x299   :  { %7307 = vmatpush1.bf16.msra.mxu0 %v7306_v48  ;;  %v6472_v48 = vld [vmem:[%s11974_s23 + $0x410] sm:$0xff] }
 0x29a   :  { %7309 = vmatprep.subr.bf16.mxu0 %v7308_v5 }
 0x29d   :  { %7311 = vmatpush1.bf16.msra.mxu0 %v7310_v30  ;;  %v7374_v30 = vpack.c.bf16 %v6472_v48, %v6470_v19  ;;  %v6495_v19 = vld [vmem:[%s11974_s23 + $0x4c8] sm:$0xff]  ;;  %v6497_v48 = vld [vmem:[%s11974_s23 + $0x4d8] sm:$0xff] }
 0x29e   :  { %7313 = vmatprep.subr.bf16.mxu0 %v7312_v34 }
 0x2a1   :  { %7315 = vmatpush1.bf16.msra.mxu0 %v7314_v54  ;;  %v6476_v54 = vld [vmem:[%s11974_s23 + $0x430] sm:$0xff] }
 0x2a2   :  { %7317 = vmatprep.subr.bf16.mxu0 %v7316_v55 }
 0x2a5   :  { %7319 = vmatpush1.bf16.msra.mxu0 %v7318_v14  ;;  %v7378_v14 = vpack.c.bf16 %v6476_v54, %v6474_v50  ;;  %v6496_v50 = vld [vmem:[%s11974_s23 + $0x4d0] sm:$0xff] }
 0x2a6   :  { %7321 = vmatprep.subr.bf16.mxu0 %v7320_v16 }
 0x2a9   :  { %7323 = vmatpush1.bf16.msra.mxu0 %v7322_v49  ;;  %v6480_v49 = vld [vmem:[%s11974_s23 + $0x450] sm:$0xff] }
 0x2aa   :  { %7325 = vmatprep.subr.bf16.mxu0 %v7324_v51 }
 0x2ad   :  { %7327 = vmatpush1.bf16.msra.mxu0 %v7326_v22  ;;  %v7382_v22 = vpack.c.bf16 %v6480_v49, %v6478_v43  ;;  %v6498_v49 = vld [vmem:[%s11974_s23 + $0x4e0] sm:$0xff] }
 0x2ae   :  { %7329 = vmatprep.subr.bf16.mxu0 %v7328_v38 }
 0x2b1   :  { %7331 = vmatpush1.bf16.msra.mxu0 %v7330_v6  ;;  %v6484_v6 = vld [vmem:[%s11974_s23 + $0x470] sm:$0xff] }
 0x2b2   :  { %7333 = vmatprep.subr.bf16.mxu0 %v7332_v9  ;;  %v7386_v32 = vpack.c.bf16 %v6484_v6, %v6482_v3  ;;  %v6502_v3 = vld [vmem:[%s11974_s23 + $0x500] sm:$0xff]  ;;  %v6504_v6 = vld [vmem:[%s11974_s23 + $0x510] sm:$0xff] }
 0x2b5   :  { %7335 = vmatpush1.bf16.msra.mxu0 %v7334_v26 }
 0x2b6   :  { %7337 = vmatprep.subr.bf16.mxu0 %v7336_v46  ;;  %v7388_v46 = vpack.c.bf16 %v6489_v25, %v6487_v23  ;;  %v6509_v23 = vld [vmem:[%s11974_s23 + $0x538] sm:$0xff]  ;;  %v7406_v25 = vpack.c.bf16 %v6504_v6, %v6502_v3 }
 0x2b9   :  { %7339 = vmatpush1.bf16.msra.mxu0 %v7338_v31  ;;  %v7390_v31 = vpack.c.bf16 %v6488_v53, %v6486_v47 }
 0x2ba   :  { %7373 = vmatprep.subr.bf16.mxu0 %v7372_v20  ;;  %v7392_v20 = vpack.c.bf16 %v6493_v13, %v6491_v63  ;;  %v6512_v63 = vld [vmem:[%s11974_s23 + $0x550] sm:$0xff]  ;;  %v6515_v13 = vld [vmem:[%s11974_s23 + $0x568] sm:$0xff] }
 0x34f   :  { %v1559_v28 = vpop.f32.mrb[32].mxu0 }
 0x350   :  { %v1622_v60 = vmul.f32 0.2, %v1559_v28  ;;  %v1561_v8 = vpop.f32.mrb[33].mxu0 }
 0x351   :  { %v1623_v5 = vmul.f32 0.2, %v1561_v8 }
 0x352   :  { %v10268_v34 = vmax.f32 %v1559_v28, %v1622_v60  ;;  %v6490_v28 = vld [vmem:[%s11974_s23 + $0x4a0] sm:$0xff]  ;;  %v6492_v60 = vld [vmem:[%s11974_s23 + $0x4b0] sm:$0xff] }
 0x353   :  { %v10266_v35 = vmax.f32 %v1561_v8, %v1623_v5  ;;  %v1565_v21 = vpop.f32.mrb[34].mxu0  ;;  %v7394_v24 = vpack.c.bf16 %v6492_v60, %v6490_v28  ;;  %v6519_v28 = vld [vmem:[%s11974_s23 + $0x588] sm:$0xff]  ;;  %v6521_v60 = vld [vmem:[%s11974_s23 + $0x598] sm:$0xff] }
 0x354   :  { %v1624_v37 = vmul.f32 0.2, %v1565_v21  ;;  %v1567_v39 = vpop.f32.mrb[35].mxu0 }
 0x355   :  { %v1625_v55 = vmul.f32 0.2, %v1567_v39  ;;  %1782 = vmatprep.mubr.f32.mxu1 %v10266_v35  ;;  %1964 = vmatprep.mubr.f32.mxu0 %v10266_v35 }
 0x356   :  { %1783 = vmatmul.mubr.f32.vlgmr.msra.gmra.mrb[96].mxu1 %v10268_v34  ;;  %1965 = vmatmul.mubr.f32.vlgmr.msra.gmra.mrb[48].mxu0 %v10268_v34  ;;  %v10288_v16 = vmax.f32 %v1565_v21, %v1624_v37 }
 0x357   :  { %v10286_v11 = vmax.f32 %v1567_v39, %v1625_v55  ;;  %7375 = vmatpush1.bf16.msra.mxu0 %v7374_v30  ;;  %v1571_v18 = vpop.f32.mrb[36].mxu0  ;;  %v7396_v39 = vpack.c.bf16 %v6497_v48, %v6495_v19  ;;  %v6499_v55 = vld [vmem:[%s11974_s23 + $0x4e8] sm:$0xff]  ;;  %v7420_v19 = vpack.c.bf16 %v6521_v60, %v6519_v28  ;;  %v6518_v48 = vld [vmem:[%s11974_s23 + $0x580] sm:$0xff] }
 0x358   :  { %v1626_v33 = vmul.f32 0.2, %v1571_v18  ;;  %v1573_v29 = vpop.f32.mrb[37].mxu0  ;;  %7377 = vmatprep.subr.bf16.mxu0 %v7376_v44  ;;  %v6494_v44 = vld [vmem:[%s11974_s23 + $0x4c0] sm:$0xff]  ;;  %v7400_v43 = vpack.c.bf16 %v6501_v58, %v6499_v55  ;;  %v6529_v55 = vld [vmem:[%s11974_s23 + $0x5d8] sm:$0xff] }
 0x359   :  { %v1627_v51 = vmul.f32 0.2, %v1573_v29  ;;  %1788 = vmatprep.mubr.f32.mxu1 %v10286_v11  ;;  %1970 = vmatprep.mubr.f32.mxu0 %v10286_v11 }
 0x35a   :  { %1789 = vmatmul.mubr.f32.gmra.mrb[98].mxu1 %v10288_v16  ;;  %1971 = vmatmul.mubr.f32.gmra.mrb[50].mxu0 %v10288_v16  ;;  %v10308_v38 = vmax.f32 %v1571_v18, %v1626_v33 }
 0x35b   :  { %v10306_v10 = vmax.f32 %v1573_v29, %v1627_v51  ;;  %7379 = vmatpush1.bf16.msra.mxu0 %v7378_v14  ;;  %v1577_v12 = vpop.f32.mrb[38].mxu0  ;;  %v7398_v14 = vpack.c.bf16 %v6496_v50, %v6494_v44  ;;  %v6500_v51 = vld [vmem:[%s11974_s23 + $0x4f0] sm:$0xff]  ;;  %v6522_v44 = vld [vmem:[%s11974_s23 + $0x5a0] sm:$0xff] }
 0x35c   :  { %v1628_v52 = vmul.f32 0.2, %v1577_v12  ;;  %v1579_v62 = vpop.f32.mrb[39].mxu0  ;;  %7381 = vmatprep.subr.bf16.mxu0 %v7380_v41  ;;  %v6524_v50 = vld [vmem:[%s11974_s23 + $0x5b0] sm:$0xff] }
 0x35d   :  { %v1629_v9 = vmul.f32 0.2, %v1579_v62  ;;  %1794 = vmatprep.mubr.f32.mxu1 %v10306_v10  ;;  %1976 = vmatprep.mubr.f32.mxu0 %v10306_v10  ;;  %v7426_v58 = vpack.c.bf16 %v6524_v50, %v6522_v44 }
 0x35e   :  { %1795 = vmatmul.mubr.f32.gmra.mrb[100].mxu1 %v10308_v38  ;;  %1977 = vmatmul.mubr.f32.gmra.mrb[52].mxu0 %v10308_v38  ;;  %v10328_v36 = vmax.f32 %v1577_v12, %v1628_v52  ;;  %v6505_v12 = vld [vmem:[%s11974_s23 + $0x518] sm:$0xff]  ;;  %v7402_v52 = vpack.c.bf16 %v6500_v51, %v6498_v49 }
 0x35f   :  { %v10326_v26 = vmax.f32 %v1579_v62, %v1629_v9  ;;  %7383 = vmatpush1.bf16.msra.mxu0 %v7382_v22  ;;  %v1583_v27 = vpop.f32.mrb[40].mxu0  ;;  %v6507_v9 = vld [vmem:[%s11974_s23 + $0x528] sm:$0xff] }
 0x360   :  { %v1630_v42 = vmul.f32 0.2, %v1583_v27  ;;  %v1585_v45 = vpop.f32.mrb[41].mxu0  ;;  %7385 = vmatprep.subr.bf16.mxu0 %v7384_v1  ;;  %v7404_v1 = vpack.c.bf16 %v6505_v12, %v6503_v4  ;;  %v6532_v4 = vld [vmem:[%s11974_s23 + $0x5f0] sm:$0xff] }
 0x361   :  { %v1631_v56 = vmul.f32 0.2, %v1585_v45  ;;  %1800 = vmatprep.mubr.f32.mxu1 %v10326_v26  ;;  %1982 = vmatprep.mubr.f32.mxu0 %v10326_v26 }
 0x362   :  { %1801 = vmatmul.mubr.f32.gmra.mrb[102].mxu1 %v10328_v36  ;;  %1983 = vmatmul.mubr.f32.gmra.mrb[54].mxu0 %v10328_v36  ;;  %v10348_v40 = vmax.f32 %v1583_v27, %v1630_v42  ;;  %v7408_v27 = vpack.c.bf16 %v6509_v23, %v6507_v9  ;;  %v6508_v42 = vld [vmem:[%s11974_s23 + $0x530] sm:$0xff] }
 0x363   :  { %v10346_v15 = vmax.f32 %v1585_v45, %v1631_v56  ;;  %7387 = vmatpush1.bf16.msra.mxu0 %v7386_v32  ;;  %v1589_v2 = vpop.f32.mrb[42].mxu0  ;;  %v6506_v32 = vld [vmem:[%s11974_s23 + $0x520] sm:$0xff]  ;;  %v6511_v45 = vld [vmem:[%s11974_s23 + $0x548] sm:$0xff] }
 0x364   :  { %v1632_v17 = vmul.f32 0.2, %v1589_v2  ;;  %v1591_v57 = vpop.f32.mrb[43].mxu0  ;;  %7389 = vmatprep.subr.bf16.mxu0 %v7388_v46  ;;  %v6513_v46 = vld [vmem:[%s11974_s23 + $0x558] sm:$0xff]  ;;  %v7410_v47 = vpack.c.bf16 %v6508_v42, %v6506_v32  ;;  %v6510_v56 = vld [vmem:[%s11974_s23 + $0x540] sm:$0xff] }
 0x365   :  { %v1633_v8 = vmul.f32 0.2, %v1591_v57  ;;  %1806 = vmatprep.mubr.f32.mxu1 %v10346_v15  ;;  %1988 = vmatprep.mubr.f32.mxu0 %v10346_v15  ;;  %v7412_v53 = vpack.c.bf16 %v6513_v46, %v6511_v45 }
 0x366   :  { %1807 = vmatmul.mubr.f32.gmra.mrb[104].mxu1 %v10348_v40  ;;  %1989 = vmatmul.mubr.f32.gmra.mrb[56].mxu0 %v10348_v40  ;;  %v10368_v21 = vmax.f32 %v1589_v2, %v1632_v17  ;;  %v6517_v2 = vld [vmem:[%s11974_s23 + $0x578] sm:$0xff] }
 0x367   :  { %v10366_v5 = vmax.f32 %v1591_v57, %v1633_v8  ;;  %7391 = vmatpush1.bf16.msra.mxu0 %v7390_v31  ;;  %v1595_v7 = vpop.f32.mrb[44].mxu0  ;;  %v7414_v31 = vpack.c.bf16 %v6512_v63, %v6510_v56  ;;  %v7416_v17 = vpack.c.bf16 %v6517_v2, %v6515_v13  ;;  %v6514_v57 = vld [vmem:[%s11974_s23 + $0x560] sm:$0xff] }
 0x368   :  { %v1634_v30 = vmul.f32 0.2, %v1595_v7  ;;  %v1597_v37 = vpop.f32.mrb[45].mxu0  ;;  %7393 = vmatprep.subr.bf16.mxu0 %v7392_v20  ;;  %v6516_v20 = vld [vmem:[%s11974_s23 + $0x570] sm:$0xff] }
 0x369   :  { %v1635_v54 = vmul.f32 0.2, %v1597_v37  ;;  %1812 = vmatprep.mubr.f32.mxu1 %v10366_v5  ;;  %1994 = vmatprep.mubr.f32.mxu0 %v10366_v5  ;;  %v7418_v8 = vpack.c.bf16 %v6516_v20, %v6514_v57 }
 0x36a   :  { %1813 = vmatmul.mubr.f32.gmra.mrb[106].mxu1 %v10368_v21  ;;  %1995 = vmatmul.mubr.f32.gmra.mrb[58].mxu0 %v10368_v21  ;;  %v10388_v33 = vmax.f32 %v1595_v7, %v1634_v30  ;;  %v6520_v7 = vld [vmem:[%s11974_s23 + $0x590] sm:$0xff]  ;;  %v6525_v30 = vld [vmem:[%s11974_s23 + $0x5b8] sm:$0xff] }
 0x36b   :  { %v10386_v61 = vmax.f32 %v1597_v37, %v1635_v54  ;;  %7395 = vmatpush1.bf16.msra.mxu0 %v7394_v24  ;;  %v1601_v18 = vpop.f32.mrb[46].mxu0  ;;  %v6523_v24 = vld [vmem:[%s11974_s23 + $0x5a8] sm:$0xff]  ;;  %v7422_v37 = vpack.c.bf16 %v6520_v7, %v6518_v48 }
 0x36c   :  { %v1636_v29 = vmul.f32 0.2, %v1601_v18  ;;  %v1603_v41 = vpop.f32.mrb[47].mxu0  ;;  %7397 = vmatprep.subr.bf16.mxu0 %v7396_v39  ;;  %v7424_v39 = vpack.c.bf16 %v6525_v30, %v6523_v24  ;;  %v6527_v54 = vld [vmem:[%s11974_s23 + $0x5c8] sm:$0xff] }
 0x36d   :  { %v1637_v59 = vmul.f32 0.2, %v1603_v41  ;;  %1818 = vmatprep.mubr.f32.mxu1 %v10386_v61  ;;  %2000 = vmatprep.mubr.f32.mxu0 %v10386_v61 }
 0x36e   :  { %1819 = vmatmul.mubr.f32.gmra.mrb[108].mxu1 %v10388_v33  ;;  %2001 = vmatmul.mubr.f32.gmra.mrb[60].mxu0 %v10388_v33  ;;  %v10408_v62 = vmax.f32 %v1601_v18, %v1636_v29  ;;  %v7428_v18 = vpack.c.bf16 %v6529_v55, %v6527_v54  ;;  %v6528_v29 = vld [vmem:[%s11974_s23 + $0x5d0] sm:$0xff] }
 0x36f   :  { %v10406_v22 = vmax.f32 %v1603_v41, %v1637_v59  ;;  %7399 = vmatpush1.bf16.msra.mxu0 %v7398_v14  ;;  %v6526_v14 = vld [vmem:[%s11974_s23 + $0x5c0] sm:$0xff]  ;;  %v6531_v41 = vld [vmem:[%s11974_s23 + $0x5e8] sm:$0xff] }
 0x370   :  { %7401 = vmatprep.subr.bf16.mxu0 %v7400_v43  ;;  %v6533_v43 = vld [vmem:[%s11974_s23 + $0x5f8] sm:$0xff]  ;;  %v7430_v49 = vpack.c.bf16 %v6528_v29, %v6526_v14  ;;  %v6530_v59 = vld [vmem:[%s11974_s23 + $0x5e0] sm:$0xff] }
 0x371   :  { %1824 = vmatprep.mubr.f32.mxu1 %v10406_v22  ;;  %2006 = vmatprep.mubr.f32.mxu0 %v10406_v22  ;;  %v7432_v51 = vpack.c.bf16 %v6533_v43, %v6531_v41  ;;  %v7434_v12 = vpack.c.bf16 %v6532_v4, %v6530_v59 }
 0x372   :  { %1825 = vmatmul.mubr.f32.gmra.mrb[110].mxu1 %v10408_v62  ;;  %2007 = vmatmul.mubr.f32.gmra.mrb[62].mxu0 %v10408_v62 }
 0x373   :  { %7403 = vmatpush1.bf16.msra.mxu0 %v7402_v52  ;;  %2349 = vmatprep.mubr.f32.mxu0 %v10266_v35 }
 0x374   :  { %7405 = vmatprep.subr.bf16.mxu0 %v7404_v1  ;;  %2094 = vmatprep.mubr.f32.mxu1 %v11960_v0 }
 0x377   :  { %7407 = vmatpush1.bf16.msra.mxu0 %v7406_v25 }
 0x378   :  { %7409 = vmatprep.subr.bf16.mxu0 %v7408_v27 }
 0x37b   :  { %7411 = vmatpush1.bf16.msra.mxu0 %v7410_v47 }
 0x37c   :  { %7413 = vmatprep.subr.bf16.mxu0 %v7412_v53 }
 0x37f   :  { %7415 = vmatpush1.bf16.msra.mxu0 %v7414_v31 }
 0x380   :  { %7417 = vmatprep.subr.bf16.mxu0 %v7416_v17 }
 0x383   :  { %7419 = vmatpush1.bf16.msra.mxu0 %v7418_v8 }
 0x384   :  { %7421 = vmatprep.subr.bf16.mxu0 %v7420_v19 }
 0x387   :  { %7423 = vmatpush1.bf16.msra.mxu0 %v7422_v37 }
 0x388   :  { %7425 = vmatprep.subr.bf16.mxu0 %v7424_v39 }
 0x38b   :  { %7427 = vmatpush1.bf16.msra.mxu0 %v7426_v58 }
 0x38c   :  { %7429 = vmatprep.subr.bf16.mxu0 %v7428_v18 }
 0x38f   :  { %7431 = vmatpush1.bf16.msra.mxu0 %v7430_v49 }
 0x390   :  { %7433 = vmatprep.subr.bf16.mxu0 %v7432_v51 }
 0x393   :  { %7435 = vmatpush1.bf16.msra.mxu0 %v7434_v12 }
 0x396   :  { %2350 = vmatmul.mubr.f32.vlgmr.msra.gmra.mrb[64].mxu0 %v10268_v34 }
 0x397   :  { %2355 = vmatprep.mubr.f32.mxu0 %v10286_v11 }
 0x39a   :  { %2356 = vmatmul.mubr.f32.gmra.mrb[66].mxu0 %v10288_v16 }
 0x39b   :  { %2361 = vmatprep.mubr.f32.mxu0 %v10306_v10 }
 0x39e   :  { %2362 = vmatmul.mubr.f32.gmra.mrb[68].mxu0 %v10308_v38 }
 0x39f   :  { %2367 = vmatprep.mubr.f32.mxu0 %v10326_v26 }
 0x3a2   :  { %2368 = vmatmul.mubr.f32.gmra.mrb[70].mxu0 %v10328_v36 }
 0x3a3   :  { %2373 = vmatprep.mubr.f32.mxu0 %v10346_v15 }
 0x3a6   :  { %2374 = vmatmul.mubr.f32.gmra.mrb[72].mxu0 %v10348_v40 }
 0x3a7   :  { %2379 = vmatprep.mubr.f32.mxu0 %v10366_v5 }
 0x3aa   :  { %2380 = vmatmul.mubr.f32.gmra.mrb[74].mxu0 %v10368_v21 }
 0x3ab   :  { %2385 = vmatprep.mubr.f32.mxu0 %v10386_v61 }
 0x3ae   :  { %2386 = vmatmul.mubr.f32.gmra.mrb[76].mxu0 %v10388_v33 }
 0x3af   :  { %2391 = vmatprep.mubr.f32.mxu0 %v10406_v22 }
 0x3b2   :  { %2392 = vmatmul.mubr.f32.gmra.mrb[78].mxu0 %v10408_v62 }
 0x429   :  { %v1784_v52 = vpop.f32.mrb[96].mxu1  ;;  %v1966_v1 = vpop.f32.mrb[48].mxu0 }
 0x42a   :  { %v1786_v3 = vpop.f32.mrb[97].mxu1  ;;  %v1968_v6 = vpop.f32.mrb[49].mxu0 }
 0x42d   :  { %v1790_v9 = vpop.f32.mrb[98].mxu1  ;;  %v1972_v23 = vpop.f32.mrb[50].mxu0 }
 0x42e   :  { %v7358_v25 = vpack.c.bf16 %v1790_v9, %v1784_v52  ;;  %v7342_v27 = vpack.c.bf16 %v1972_v23, %v1966_v1  ;;  %v1792_v32 = vpop.f32.mrb[99].mxu1  ;;  %v1974_v42 = vpop.f32.mrb[51].mxu0  ;;  %v2014_v1 = vld [vmem:[#allocation4 + $0x20] sm:$0xff]  ;;  %v2017_v9 = vld [vmem:[#allocation4 + $0x38] sm:$0xff] }
 0x42f   :  { %v7356_v45 = vpack.c.bf16 %v1792_v32, %v1786_v3  ;;  %v7340_v46 = vpack.c.bf16 %v1974_v42, %v1968_v6  ;;  %v2015_v3 = vld [vmem:[#allocation4 + $0x28] sm:$0xff]  ;;  %v2016_v6 = vld [vmem:[#allocation4 + $0x30] sm:$0xff]  ;;  %v1831_v23 = vld [vmem:[#allocation4] sm:$0xff] }
 0x430   :  { %v1834_v32 = vld [vmem:[#allocation4 + $0x18] sm:$0xff] }
 0x431   :  { %v1796_v47 = vpop.f32.mrb[100].mxu1  ;;  %v1978_v53 = vpop.f32.mrb[52].mxu0  ;;  %7341 = vmatprep.subr.bf16.mxu1 %v7340_v46 }
 0x432   :  { %v1798_v56 = vpop.f32.mrb[101].mxu1  ;;  %v1980_v63 = vpop.f32.mrb[53].mxu0  ;;  %7343 = vmatpush1.bf16.msra.mxu1 %v7342_v27  ;;  %v1833_v27 = vld [vmem:[#allocation4 + $0x10] sm:$0xff] }
 0x435   :  { %v1802_v13 = vpop.f32.mrb[102].mxu1  ;;  %v1984_v2 = vpop.f32.mrb[54].mxu0 }
 0x436   :  { %v7362_v31 = vpack.c.bf16 %v1802_v13, %v1796_v47  ;;  %v7346_v17 = vpack.c.bf16 %v1984_v2, %v1978_v53  ;;  %v1804_v57 = vpop.f32.mrb[103].mxu1  ;;  %v1986_v20 = vpop.f32.mrb[55].mxu0 }
 0x437   :  { %v7360_v28 = vpack.c.bf16 %v1804_v57, %v1798_v56  ;;  %v7344_v60 = vpack.c.bf16 %v1986_v20, %v1980_v63 }
 0x439   :  { %v1808_v8 = vpop.f32.mrb[104].mxu1  ;;  %v1990_v19 = vpop.f32.mrb[56].mxu0  ;;  %7345 = vmatprep.subr.bf16.mxu1 %v7344_v60 }
 0x43a   :  { %v1810_v48 = vpop.f32.mrb[105].mxu1  ;;  %v1992_v7 = vpop.f32.mrb[57].mxu0  ;;  %7347 = vmatpush1.bf16.msra.mxu1 %v7346_v17 }
 0x43d   :  { %v1814_v24 = vpop.f32.mrb[106].mxu1  ;;  %v1996_v30 = vpop.f32.mrb[58].mxu0 }
 0x43e   :  { %v7366_v37 = vpack.c.bf16 %v1814_v24, %v1808_v8  ;;  %v7350_v39 = vpack.c.bf16 %v1996_v30, %v1990_v19  ;;  %v1816_v44 = vpop.f32.mrb[107].mxu1  ;;  %v1998_v50 = vpop.f32.mrb[59].mxu0  ;;  %v6539_v30 = vld [vmem:[%s11974_s23 + $0x608] sm:$0xff] }
 0x43f   :  { %v7364_v54 = vpack.c.bf16 %v1816_v44, %v1810_v48  ;;  %v7348_v55 = vpack.c.bf16 %v1998_v50, %v1992_v7 }
 0x441   :  { %v1820_v58 = vpop.f32.mrb[108].mxu1  ;;  %v2002_v18 = vpop.f32.mrb[60].mxu0  ;;  %7349 = vmatprep.subr.bf16.mxu1 %v7348_v55 }
 0x442   :  { %v1822_v14 = vpop.f32.mrb[109].mxu1  ;;  %v2004_v29 = vpop.f32.mrb[61].mxu0  ;;  %7351 = vmatpush1.bf16.msra.mxu1 %v7350_v39 }
 0x445   :  { %v1826_v41 = vpop.f32.mrb[110].mxu1  ;;  %v2008_v43 = vpop.f32.mrb[62].mxu0 }
 0x446   :  { %v7370_v49 = vpack.c.bf16 %v1826_v41, %v1820_v58  ;;  %v7354_v51 = vpack.c.bf16 %v2008_v43, %v2002_v18  ;;  %v1828_v59 = vpop.f32.mrb[111].mxu1  ;;  %v2010_v4 = vpop.f32.mrb[63].mxu0  ;;  %v6538_v58 = vld [vmem:[%s11974_s23 + $0x600] sm:$0xff]  ;;  %v6540_v18 = vld [vmem:[%s11974_s23 + $0x610] sm:$0xff] }
 0x447   :  { %v7368_v12 = vpack.c.bf16 %v1828_v59, %v1822_v14  ;;  %v7352_v52 = vpack.c.bf16 %v2010_v4, %v2004_v29  ;;  %v6543_v14 = vld [vmem:[%s11974_s23 + $0x628] sm:$0xff]  ;;  %v6545_v29 = vld [vmem:[%s11974_s23 + $0x638] sm:$0xff]  ;;  %v2399_v41 = vld [vmem:[#allocation4 + $0x40] sm:$0xff]  ;;  %v7454_v43 = vpack.c.bf16 %v6540_v18, %v6538_v58 }
 0x448   :  { %v6544_v59 = vld [vmem:[%s11974_s23 + $0x630] sm:$0xff]  ;;  %v6547_v4 = vld [vmem:[%s11974_s23 + $0x648] sm:$0xff]  ;;  %v6573_v18 = vld [vmem:[%s11974_s23 + $0x718] sm:$0xff] }
 0x449   :  { %7353 = vmatprep.subr.bf16.mxu1 %v7352_v52  ;;  %v2400_v52 = vld [vmem:[#allocation4 + $0x48] sm:$0xff] }
 0x44a   :  { %7355 = vmatpush1.bf16.msra.mxu1 %v7354_v51  ;;  %v6542_v51 = vld [vmem:[%s11974_s23 + $0x620] sm:$0xff]  ;;  %v6571_v58 = vld [vmem:[%s11974_s23 + $0x708] sm:$0xff] }
 0x44b   :  { %7357 = vmatprep.subr.bf16.mxu1 %v7356_v45 }
 0x44d   :  { %6462 = vmatmul.mubr.msk.f32.vlgmr.msra.gmra.mrb[112].mxu1 %vm263_vm0, %v2014_v1  ;;  %v7458_v1 = vpack.c.bf16 %v6544_v59, %v6542_v51  ;;  %v6577_v51 = vld [vmem:[%s11974_s23 + $0x738] sm:$0xff] }
 0x44e   :  { %7359 = vmatpush1.bf16.msra.mxu1 %v7358_v25  ;;  %2100 = vmatprep.mubr.f32.mxu1 %v11960_v0  ;;  %v1832_v25 = vld [vmem:[#allocation4 + $0x8] sm:$0xff] }
 0x44f   :  { %7361 = vmatprep.subr.bf16.mxu1 %v7360_v28 }
 0x451   :  { %6463 = vmatmul.mubr.msk.f32.gmra.mrb[114].mxu1 %vm263_vm0, %v2015_v3 }
 0x452   :  { %7363 = vmatpush1.bf16.msra.mxu1 %v7362_v31  ;;  %2106 = vmatprep.mubr.f32.mxu1 %v11960_v0 }
 0x453   :  { %7365 = vmatprep.subr.bf16.mxu1 %v7364_v54 }
 0x455   :  { %6464 = vmatmul.mubr.msk.f32.gmra.mrb[116].mxu1 %vm263_vm0, %v2016_v6  ;;  %v6546_v6 = vld [vmem:[%s11974_s23 + $0x640] sm:$0xff] }
 0x456   :  { %7367 = vmatpush1.bf16.msra.mxu1 %v7366_v37  ;;  %2112 = vmatprep.mubr.f32.mxu1 %v11960_v0  ;;  %v6541_v37 = vld [vmem:[%s11974_s23 + $0x618] sm:$0xff] }
 0x457   :  { %7369 = vmatprep.subr.bf16.mxu1 %v7368_v12  ;;  %v7452_v55 = vpack.c.bf16 %v6541_v37, %v6539_v30  ;;  %v6549_v12 = vld [vmem:[%s11974_s23 + $0x658] sm:$0xff]  ;;  %v6564_v30 = vld [vmem:[%s11974_s23 + $0x6d0] sm:$0xff]  ;;  %v6567_v37 = vld [vmem:[%s11974_s23 + $0x6e8] sm:$0xff] }
 0x458   :  { %v7460_v3 = vpack.c.bf16 %v6549_v12, %v6547_v4  ;;  %v6574_v12 = vld [vmem:[%s11974_s23 + $0x720] sm:$0xff] }
 0x459   :  { %6465 = vmatmul.mubr.msk.f32.gmra.mrb[118].mxu1 %vm263_vm0, %v2017_v9  ;;  %v6548_v9 = vld [vmem:[%s11974_s23 + $0x650] sm:$0xff] }
 0x45a   :  { %7371 = vmatpush1.bf16.msra.mxu1 %v7370_v49  ;;  %2195 = vmatprep.mubr.f32.mxu1 %v11960_v0  ;;  %v7456_v49 = vpack.c.bf16 %v6545_v29, %v6543_v14  ;;  %v7484_v29 = vpack.c.bf16 %v6573_v18, %v6571_v58  ;;  %v2856_v18 = vld [vmem:[%s11938_s5 + $0x40] sm:$0xff] }
 0x45d   :  { %6466 = vmatmul.mubr.msk.f32.vlgmr.msra.gmra.mrb[112].mxu1 %vm263_vm0, %v1831_v23  ;;  %v6551_v23 = vld [vmem:[%s11974_s23 + $0x668] sm:$0xff] }
 0x45e   :  { %2201 = vmatprep.mubr.f32.mxu1 %v11960_v0 }
 0x461   :  { %6467 = vmatmul.mubr.msk.f32.gmra.mrb[114].mxu1 %vm263_vm0, %v1832_v25  ;;  %v6553_v25 = vld [vmem:[%s11974_s23 + $0x678] sm:$0xff] }
 0x462   :  { %2207 = vmatprep.mubr.f32.mxu1 %v11960_v0 }
 0x465   :  { %6468 = vmatmul.mubr.msk.f32.gmra.mrb[116].mxu1 %vm263_vm0, %v1833_v27  ;;  %v2401_v27 = vld [vmem:[#allocation4 + $0x50] sm:$0xff] }
 0x466   :  { %2213 = vmatprep.mubr.f32.mxu1 %v11960_v0 }
 0x469   :  { %v2351_v42 = vpop.f32.mrb[64].mxu0  ;;  %6469 = vmatmul.mubr.msk.f32.gmra.mrb[118].mxu1 %vm263_vm0, %v1834_v32  ;;  %v7462_v32 = vpack.c.bf16 %v6548_v9, %v6546_v6 }
 0x46a   :  { %v2353_v45 = vpop.f32.mrb[65].mxu0  ;;  %2479 = vmatprep.mubr.f32.mxu1 %v11960_v0 }
 0x46d   :  { %v2357_v46 = vpop.f32.mrb[66].mxu0 }
 0x46e   :  { %v7438_v47 = vpack.c.bf16 %v2357_v46, %v2351_v42  ;;  %v2359_v53 = vpop.f32.mrb[67].mxu0  ;;  %v7464_v42 = vpack.c.bf16 %v6553_v25, %v6551_v23  ;;  %v6552_v46 = vld [vmem:[%s11974_s23 + $0x670] sm:$0xff]  ;;  %v6578_v23 = vld [vmem:[%s11974_s23 + $0x740] sm:$0xff] }
 0x46f   :  { %v7436_v56 = vpack.c.bf16 %v2359_v53, %v2353_v45  ;;  %v6550_v45 = vld [vmem:[%s11974_s23 + $0x660] sm:$0xff]  ;;  %v6557_v53 = vld [vmem:[%s11974_s23 + $0x698] sm:$0xff]  ;;  %v6580_v25 = vld [vmem:[%s11974_s23 + $0x750] sm:$0xff] }
 0x471   :  { %v2363_v63 = vpop.f32.mrb[68].mxu0  ;;  %7437 = vmatprep.subr.bf16.mxu1 %v7436_v56  ;;  %v2402_v56 = vld [vmem:[#allocation4 + $0x58] sm:$0xff] }
 0x472   :  { %v2365_v13 = vpop.f32.mrb[69].mxu0  ;;  %7439 = vmatpush1.bf16.msra.mxu1 %v7438_v47  ;;  %v6555_v47 = vld [vmem:[%s11974_s23 + $0x688] sm:$0xff] }
 0x475   :  { %v2369_v2 = vpop.f32.mrb[70].mxu0 }
 0x476   :  { %v7442_v31 = vpack.c.bf16 %v2369_v2, %v2363_v63  ;;  %v2371_v17 = vpop.f32.mrb[71].mxu0  ;;  %v7466_v63 = vpack.c.bf16 %v6552_v46, %v6550_v45  ;;  %v6554_v2 = vld [vmem:[%s11974_s23 + $0x680] sm:$0xff] }
 0x477   :  { %v7440_v57 = vpack.c.bf16 %v2371_v17, %v2365_v13  ;;  %v7468_v13 = vpack.c.bf16 %v6557_v53, %v6555_v47  ;;  %v6559_v17 = vld [vmem:[%s11974_s23 + $0x6a8] sm:$0xff]  ;;  %v6582_v46 = vld [vmem:[%s11974_s23 + $0x760] sm:$0xff]  ;;  %v6584_v47 = vld [vmem:[%s11974_s23 + $0x770] sm:$0xff] }
 0x478   :  { %v6587_v53 = vld [vmem:[%s11974_s23 + $0x788] sm:$0xff] }
 0x479   :  { %v2375_v20 = vpop.f32.mrb[72].mxu0  ;;  %7441 = vmatprep.subr.bf16.mxu1 %v7440_v57  ;;  %v6561_v57 = vld [vmem:[%s11974_s23 + $0x6b8] sm:$0xff] }
 0x47a   :  { %v2377_v28 = vpop.f32.mrb[73].mxu0  ;;  %7443 = vmatpush1.bf16.msra.mxu1 %v7442_v31  ;;  %v6556_v31 = vld [vmem:[%s11974_s23 + $0x690] sm:$0xff] }
 0x47d   :  { %v2381_v60 = vpop.f32.mrb[74].mxu0 }
 0x47e   :  { %v7446_v8 = vpack.c.bf16 %v2381_v60, %v2375_v20  ;;  %v2383_v19 = vpop.f32.mrb[75].mxu0  ;;  %v7470_v20 = vpack.c.bf16 %v6556_v31, %v6554_v2  ;;  %v6558_v60 = vld [vmem:[%s11974_s23 + $0x6a0] sm:$0xff]  ;;  %v6588_v31 = vld [vmem:[%s11974_s23 + $0x790] sm:$0xff] }
 0x47f   :  { %v7444_v48 = vpack.c.bf16 %v2383_v19, %v2377_v28  ;;  %v7472_v28 = vpack.c.bf16 %v6561_v57, %v6559_v17  ;;  %v6563_v19 = vld [vmem:[%s11974_s23 + $0x6c8] sm:$0xff]  ;;  %v6586_v2 = vld [vmem:[%s11974_s23 + $0x780] sm:$0xff]  ;;  %v6593_v57 = vld [vmem:[%s11974_s23 + $0x7b8] sm:$0xff] }
 0x480   :  { %v6591_v17 = vld [vmem:[%s11974_s23 + $0x7a8] sm:$0xff] }
 0x481   :  { %v2387_v7 = vpop.f32.mrb[76].mxu0  ;;  %7445 = vmatprep.subr.bf16.mxu1 %v7444_v48  ;;  %v6565_v48 = vld [vmem:[%s11974_s23 + $0x6d8] sm:$0xff] }
 0x482   :  { %v2389_v24 = vpop.f32.mrb[77].mxu0  ;;  %7447 = vmatpush1.bf16.msra.mxu1 %v7446_v8  ;;  %v6560_v8 = vld [vmem:[%s11974_s23 + $0x6b0] sm:$0xff] }
 0x485   :  { %v2393_v39 = vpop.f32.mrb[78].mxu0 }
 0x486   :  { %v7450_v44 = vpack.c.bf16 %v2393_v39, %v2387_v7  ;;  %v2395_v50 = vpop.f32.mrb[79].mxu0  ;;  %v7476_v7 = vpack.c.bf16 %v6565_v48, %v6563_v19  ;;  %v6569_v39 = vld [vmem:[%s11974_s23 + $0x6f8] sm:$0xff]  ;;  %v6595_v19 = vld [vmem:[%s11974_s23 + $0x7c8] sm:$0xff] }
 0x487   :  { %v7448_v54 = vpack.c.bf16 %v2395_v50, %v2389_v24  ;;  %v6562_v24 = vld [vmem:[%s11974_s23 + $0x6c0] sm:$0xff]  ;;  %v7480_v50 = vpack.c.bf16 %v6569_v39, %v6567_v37  ;;  %v6597_v48 = vld [vmem:[%s11974_s23 + $0x7d8] sm:$0xff]  ;;  %v6599_v37 = vld [vmem:[%s11974_s23 + $0x7e8] sm:$0xff] }
 0x488   :  { %v6601_v39 = vld [vmem:[%s11974_s23 + $0x7f8] sm:$0xff] }
 0x489   :  { %7449 = vmatprep.subr.bf16.mxu1 %v7448_v54  ;;  %v6566_v54 = vld [vmem:[%s11974_s23 + $0x6e0] sm:$0xff] }
 0x48a   :  { %7451 = vmatpush1.bf16.msra.mxu1 %v7450_v44  ;;  %v7478_v44 = vpack.c.bf16 %v6564_v30, %v6562_v24  ;;  %v6594_v24 = vld [vmem:[%s11974_s23 + $0x7c0] sm:$0xff]  ;;  %v6596_v30 = vld [vmem:[%s11974_s23 + $0x7d0] sm:$0xff] }
 0x48b   :  { %7453 = vmatprep.subr.bf16.mxu1 %v7452_v55  ;;  %v6568_v55 = vld [vmem:[%s11974_s23 + $0x6f0] sm:$0xff] }
 0x48c   :  { %v7482_v14 = vpack.c.bf16 %v6568_v55, %v6566_v54  ;;  %v6598_v54 = vld [vmem:[%s11974_s23 + $0x7e0] sm:$0xff]  ;;  %v6600_v55 = vld [vmem:[%s11974_s23 + $0x7f0] sm:$0xff] }
 0x48d   :  { %6534 = vmatmul.mubr.msk.f32.vlgmr.msra.gmra.mrb[112].mxu1 %vm263_vm0, %v2399_v41  ;;  %v6570_v41 = vld [vmem:[%s11974_s23 + $0x700] sm:$0xff]  ;;  %v7514_v58 = vpack.c.bf16 %v6600_v55, %v6598_v54 }
 0x48e   :  { %7455 = vmatpush1.bf16.msra.mxu1 %v7454_v43  ;;  %2485 = vmatprep.mubr.f32.mxu1 %v11960_v0  ;;  %v6572_v43 = vld [vmem:[%s11974_s23 + $0x710] sm:$0xff] }
 0x48f   :  { %7457 = vmatprep.subr.bf16.mxu1 %v7456_v49  ;;  %v6575_v49 = vld [vmem:[%s11974_s23 + $0x728] sm:$0xff]  ;;  %v7486_v59 = vpack.c.bf16 %v6572_v43, %v6570_v41  ;;  %v2863_v41 = vld [vmem:[%s11938_s5 + $0x78] sm:$0xff] }
 0x490   :  { %v7488_v4 = vpack.c.bf16 %v6577_v51, %v6575_v49  ;;  %v2860_v51 = vld [vmem:[%s11938_s5 + $0x60] sm:$0xff] }
 0x491   :  { %6535 = vmatmul.mubr.msk.f32.gmra.mrb[114].mxu1 %vm263_vm0, %v2400_v52  ;;  %v6576_v52 = vld [vmem:[%s11974_s23 + $0x730] sm:$0xff] }
 0x492   :  { %7459 = vmatpush1.bf16.msra.mxu1 %v7458_v1  ;;  %2491 = vmatprep.mubr.f32.mxu1 %v11960_v0  ;;  %v6579_v1 = vld [vmem:[%s11974_s23 + $0x748] sm:$0xff]  ;;  %v7490_v6 = vpack.c.bf16 %v6576_v52, %v6574_v12  ;;  %v2867_v12 = vld [vmem:[%s11938_s5 + $0x98] sm:$0xff] }
 0x493   :  { %7461 = vmatprep.subr.bf16.mxu1 %v7460_v3  ;;  %v6581_v3 = vld [vmem:[%s11974_s23 + $0x758] sm:$0xff] }
 0x494   :  { %v7492_v9 = vpack.c.bf16 %v6581_v3, %v6579_v1  ;;  %v2864_v3 = vld [vmem:[%s11938_s5 + $0x80] sm:$0xff] }
 0x495   :  { %6536 = vmatmul.mubr.msk.f32.gmra.mrb[116].mxu1 %vm263_vm0, %v2401_v27  ;;  %v6583_v27 = vld [vmem:[%s11974_s23 + $0x768] sm:$0xff] }
 0x496   :  { %7463 = vmatpush1.bf16.msra.mxu1 %v7462_v32  ;;  %2497 = vmatprep.mubr.f32.mxu1 %v11960_v0  ;;  %v6585_v32 = vld [vmem:[%s11974_s23 + $0x778] sm:$0xff] }
 0x497   :  { %7465 = vmatprep.subr.bf16.mxu1 %v7464_v42  ;;  %v7494_v42 = vpack.c.bf16 %v6580_v25, %v6578_v23  ;;  %v7496_v45 = vpack.c.bf16 %v6585_v32, %v6583_v27  ;;  %v2871_v23 = vld [vmem:[%s11938_s5 + $0xb8] sm:$0xff]  ;;  %v2868_v32 = vld [vmem:[%s11938_s5 + $0xa0] sm:$0xff] }
 0x499   :  { %6537 = vmatmul.mubr.msk.f32.gmra.mrb[118].mxu1 %vm263_vm0, %v2402_v56  ;;  %v6589_v56 = vld [vmem:[%s11974_s23 + $0x798] sm:$0xff] }
 0x49a   :  { %7467 = vmatpush1.bf16.msra.mxu1 %v7466_v63  ;;  %2641 = vmatprep.mubr.f32.mxu1 %v10266_v35  ;;  %v7474_v35 = vpack.c.bf16 %v6560_v8, %v6558_v60  ;;  %v7498_v63 = vpack.c.bf16 %v6584_v47, %v6582_v46  ;;  %v6590_v60 = vld [vmem:[%s11974_s23 + $0x7a0] sm:$0xff]  ;;  %v6592_v8 = vld [vmem:[%s11974_s23 + $0x7b0] sm:$0xff]  ;;  %v2875_v46 = vld [vmem:[%s11938_s5 + $0xd8] sm:$0xff] }
 0x49b   :  { %7469 = vmatprep.subr.bf16.mxu1 %v7468_v13  ;;  %v7500_v13 = vpack.c.bf16 %v6589_v56, %v6587_v53  ;;  %v2872_v56 = vld [vmem:[%s11938_s5 + $0xc0] sm:$0xff] }
 0x49e   :  { %7471 = vmatpush1.bf16.msra.mxu1 %v7470_v20  ;;  %v7502_v20 = vpack.c.bf16 %v6588_v31, %v6586_v2  ;;  %v2879_v2 = vld [vmem:[%s11938_s5 + $0xf8] sm:$0xff] }
 0x49f   :  { %7473 = vmatprep.subr.bf16.mxu1 %v7472_v28  ;;  %v7504_v28 = vpack.c.bf16 %v6593_v57, %v6591_v17  ;;  %v2876_v57 = vld [vmem:[%s11938_s5 + $0xe0] sm:$0xff] }
 0x4a2   :  { %7475 = vmatpush1.bf16.msra.mxu1 %v7474_v35  ;;  %v7506_v35 = vpack.c.bf16 %v6592_v8, %v6590_v60  ;;  %v2883_v60 = vld [vmem:[%s11938_s5 + $0x118] sm:$0xff] }
 0x4a3   :  { %7477 = vmatprep.subr.bf16.mxu1 %v7476_v7  ;;  %v7508_v7 = vpack.c.bf16 %v6597_v48, %v6595_v19  ;;  %v2880_v48 = vld [vmem:[%s11938_s5 + $0x100] sm:$0xff] }
 0x4a6   :  { %7479 = vmatpush1.bf16.msra.mxu1 %v7478_v44  ;;  %v7510_v44 = vpack.c.bf16 %v6596_v30, %v6594_v24 }
 0x4a7   :  { %7481 = vmatprep.subr.bf16.mxu1 %v7480_v50  ;;  %v7512_v50 = vpack.c.bf16 %v6601_v39, %v6599_v37 }
 0x4aa   :  { %7483 = vmatpush1.bf16.msra.mxu1 %v7482_v14  ;;  %v2858_v14 = vld [vmem:[%s11938_s5 + $0x50] sm:$0xff] }
 0x4ab   :  { %7485 = vmatprep.subr.bf16.mxu1 %v7484_v29  ;;  %v2861_v29 = vld [vmem:[%s11938_s5 + $0x68] sm:$0xff]  ;;  %v10809_v43 = vpack.c.bf16 %v2858_v14, %v2856_v18 }
 0x4ac   :  { %v10812_v49 = vpack.c.bf16 %v2863_v41, %v2861_v29 }
 0x4ae   :  { %7487 = vmatpush1.bf16.msra.mxu1 %v7486_v59  ;;  %v2862_v59 = vld [vmem:[%s11938_s5 + $0x70] sm:$0xff] }
 0x4af   :  { %7489 = vmatprep.subr.bf16.mxu1 %v7488_v4  ;;  %v2865_v4 = vld [vmem:[%s11938_s5 + $0x88] sm:$0xff]  ;;  %v10827_v52 = vpack.c.bf16 %v2862_v59, %v2860_v51  ;;  %v2691_v59 = vld [vmem:[#allocation4 + $0x60] sm:$0xff] }
 0x4b0   :  { %v10830_v1 = vpack.c.bf16 %v2867_v12, %v2865_v4  ;;  %v2692_v4 = vld [vmem:[#allocation4 + $0x68] sm:$0xff]  ;;  %v2693_v12 = vld [vmem:[#allocation4 + $0x70] sm:$0xff] }
 0x4b2   :  { %7491 = vmatpush1.bf16.msra.mxu1 %v7490_v6  ;;  %v2866_v6 = vld [vmem:[%s11938_s5 + $0x90] sm:$0xff] }
 0x4b3   :  { %7493 = vmatprep.subr.bf16.mxu1 %v7492_v9  ;;  %v2869_v9 = vld [vmem:[%s11938_s5 + $0xa8] sm:$0xff]  ;;  %v10845_v25 = vpack.c.bf16 %v2866_v6, %v2864_v3  ;;  %v2694_v3 = vld [vmem:[#allocation4 + $0x78] sm:$0xff] }
 0x4b4   :  { %v10848_v27 = vpack.c.bf16 %v2871_v23, %v2869_v9  ;;  %v2885_v6 = vld [vmem:[%s11938_s5 + $0x128] sm:$0xff]  ;;  %v2887_v9 = vld [vmem:[%s11938_s5 + $0x138] sm:$0xff] }
 0x4b5   :  { %v10928_v23 = vpack.c.bf16 %v2887_v9, %v2885_v6 }
 0x4b6   :  { %7495 = vmatpush1.bf16.msra.mxu1 %v7494_v42  ;;  %v2870_v42 = vld [vmem:[%s11938_s5 + $0xb0] sm:$0xff] }
 0x4b7   :  { %7497 = vmatprep.subr.bf16.mxu1 %v7496_v45  ;;  %v2873_v45 = vld [vmem:[%s11938_s5 + $0xc8] sm:$0xff]  ;;  %v10863_v47 = vpack.c.bf16 %v2870_v42, %v2868_v32  ;;  %v2884_v32 = vld [vmem:[%s11938_s5 + $0x120] sm:$0xff]  ;;  %v2886_v42 = vld [vmem:[%s11938_s5 + $0x130] sm:$0xff] }
 0x4b8   :  { %v10866_v53 = vpack.c.bf16 %v2875_v46, %v2873_v45  ;;  %v10936_v45 = vpack.c.bf16 %v2886_v42, %v2884_v32  ;;  %v2889_v46 = vld [vmem:[%s11938_s5 + $0x148] sm:$0xff] }
 0x4ba   :  { %7499 = vmatpush1.bf16.msra.mxu1 %v7498_v63  ;;  %v2874_v63 = vld [vmem:[%s11938_s5 + $0xd0] sm:$0xff] }
 0x4bb   :  { %7501 = vmatprep.subr.bf16.mxu1 %v7500_v13  ;;  %v2877_v13 = vld [vmem:[%s11938_s5 + $0xe8] sm:$0xff]  ;;  %v10881_v31 = vpack.c.bf16 %v2874_v63, %v2872_v56  ;;  %v2891_v56 = vld [vmem:[%s11938_s5 + $0x158] sm:$0xff] }
 0x4bc   :  { %v10884_v17 = vpack.c.bf16 %v2879_v2, %v2877_v13  ;;  %v10946_v63 = vpack.c.bf16 %v2891_v56, %v2889_v46  ;;  %v2888_v13 = vld [vmem:[%s11938_s5 + $0x140] sm:$0xff]  ;;  %v2890_v2 = vld [vmem:[%s11938_s5 + $0x150] sm:$0xff] }
 0x4be   :  { %7503 = vmatpush1.bf16.msra.mxu1 %v7502_v20  ;;  %v2878_v20 = vld [vmem:[%s11938_s5 + $0xf0] sm:$0xff] }
 0x4bf   :  { %7505 = vmatprep.subr.bf16.mxu1 %v7504_v28  ;;  %v2881_v28 = vld [vmem:[%s11938_s5 + $0x108] sm:$0xff]  ;;  %v10899_v8 = vpack.c.bf16 %v2878_v20, %v2876_v57  ;;  %v10954_v57 = vpack.c.bf16 %v2890_v2, %v2888_v13 }
 0x4c0   :  { %v10902_v19 = vpack.c.bf16 %v2883_v60, %v2881_v28  ;;  %v2893_v20 = vld [vmem:[%s11938_s5 + $0x168] sm:$0xff]  ;;  %v2895_v28 = vld [vmem:[%s11938_s5 + $0x178] sm:$0xff] }
 0x4c1   :  { %v10964_v60 = vpack.c.bf16 %v2895_v28, %v2893_v20 }
 0x4c2   :  { %7507 = vmatpush1.bf16.msra.mxu1 %v7506_v35  ;;  %v2882_v35 = vld [vmem:[%s11938_s5 + $0x110] sm:$0xff] }
 0x4c3   :  { %7509 = vmatprep.subr.bf16.mxu1 %v7508_v7  ;;  %v10911_v7 = vpack.c.bf16 %v2882_v35, %v2880_v48  ;;  %v2892_v48 = vld [vmem:[%s11938_s5 + $0x160] sm:$0xff]  ;;  %v2894_v35 = vld [vmem:[%s11938_s5 + $0x170] sm:$0xff] }
 0x4c6   :  { %7511 = vmatpush1.bf16.msra.mxu1 %v7510_v44 }
 0x4c7   :  { %7513 = vmatprep.subr.bf16.mxu1 %v7512_v50 }
 0x4ca   :  { %7515 = vmatpush1.bf16.msra.mxu1 %v7514_v58 }
 0x4cd   :  { %2642 = vmatmul.mubr.f32.vlgmr.msra.gmra.mrb[120].mxu1 %v10268_v34  ;;  %v2849_v34 = vld [vmem:[%s11938_s5 + $0x8] sm:$0xff] }
 0x4ce   :  { %2647 = vmatprep.mubr.f32.mxu1 %v10286_v11  ;;  %v2851_v11 = vld [vmem:[%s11938_s5 + $0x18] sm:$0xff] }
 0x4d1   :  { %2648 = vmatmul.mubr.f32.gmra.mrb[122].mxu1 %v10288_v16  ;;  %v2848_v16 = vld [vmem:[%s11938_s5] sm:$0xff] }
 0x4d2   :  { %2653 = vmatprep.mubr.f32.mxu1 %v10306_v10  ;;  %v10762_v10 = vpack.c.bf16 %v2851_v11, %v2849_v34 }
 0x4d4   :  { %7533 = vmatprep.subr.bf16.mxu0 %v10762_v10 }
 0x4d5   :  { %2654 = vmatmul.mubr.f32.gmra.mrb[124].mxu1 %v10308_v38  ;;  %v2850_v38 = vld [vmem:[%s11938_s5 + $0x10] sm:$0xff] }
 0x4d6   :  { %2659 = vmatprep.mubr.f32.mxu1 %v10326_v26  ;;  %v2853_v26 = vld [vmem:[%s11938_s5 + $0x28] sm:$0xff] }
 0x4d9   :  { %2660 = vmatmul.mubr.f32.gmra.mrb[126].mxu1 %v10328_v36  ;;  %v2855_v36 = vld [vmem:[%s11938_s5 + $0x38] sm:$0xff] }
 0x4da   :  { %2665 = vmatprep.mubr.f32.mxu1 %v10346_v15  ;;  %v10773_v15 = vpack.c.bf16 %v2850_v38, %v2848_v16 }
 0x4dc   :  { %7535 = vmatpush1.bf16.msra.mxu0 %v10773_v15 }
 0x4dd   :  { %2666 = vmatmul.mubr.f32.gmra.mrb[128].mxu1 %v10348_v40  ;;  %v10775_v40 = vpack.c.bf16 %v2855_v36, %v2853_v26 }
 0x4de   :  { %2671 = vmatprep.mubr.f32.mxu1 %v10366_v5  ;;  %v2852_v5 = vld [vmem:[%s11938_s5 + $0x20] sm:$0xff] }
 0x4df   :  { %7537 = vmatprep.subr.bf16.mxu0 %v10775_v40 }
 0x4e1   :  { %2672 = vmatmul.mubr.f32.gmra.mrb[130].mxu1 %v10368_v21  ;;  %v2854_v21 = vld [vmem:[%s11938_s5 + $0x30] sm:$0xff] }
 0x4e2   :  { %2677 = vmatprep.mubr.f32.mxu1 %v10386_v61  ;;  %v2857_v61 = vld [vmem:[%s11938_s5 + $0x48] sm:$0xff] }
 0x4e5   :  { %2678 = vmatmul.mubr.f32.gmra.mrb[132].mxu1 %v10388_v33  ;;  %v2859_v33 = vld [vmem:[%s11938_s5 + $0x58] sm:$0xff] }
 0x4e6   :  { %2683 = vmatprep.mubr.f32.mxu1 %v10406_v22  ;;  %v10791_v22 = vpack.c.bf16 %v2854_v21, %v2852_v5 }
 0x4e8   :  { %7539 = vmatpush1.bf16.msra.mxu0 %v10791_v22 }
 0x4e9   :  { %2684 = vmatmul.mubr.f32.gmra.mrb[134].mxu1 %v10408_v62  ;;  %v10794_v62 = vpack.c.bf16 %v2859_v33, %v2857_v61 }
 0x4ea   :  { %2771 = vmatprep.mubr.f32.mxu1 %v11960_v0 }
 0x4eb   :  { %7541 = vmatprep.subr.bf16.mxu0 %v10794_v62 }
 0x4ec   :  { %7543 = vmatpush1.bf16.msra.mxu0 %v10809_v43 }
 0x4ed   :  { %7545 = vmatprep.subr.bf16.mxu0 %v10812_v49 }
 0x4f0   :  { %7547 = vmatpush1.bf16.msra.mxu0 %v10827_v52 }
 0x4f1   :  { %7549 = vmatprep.subr.bf16.mxu0 %v10830_v1 }
 0x4f4   :  { %7551 = vmatpush1.bf16.msra.mxu0 %v10845_v25 }
 0x4f5   :  { %7553 = vmatprep.subr.bf16.mxu0 %v10848_v27 }
 0x4f8   :  { %7555 = vmatpush1.bf16.msra.mxu0 %v10863_v47 }
 0x4f9   :  { %7557 = vmatprep.subr.bf16.mxu0 %v10866_v53 }
 0x4fc   :  { %7559 = vmatpush1.bf16.msra.mxu0 %v10881_v31 }
 0x4fd   :  { %7561 = vmatprep.subr.bf16.mxu0 %v10884_v17 }
 0x500   :  { %7563 = vmatpush1.bf16.msra.mxu0 %v10899_v8 }
 0x501   :  { %7565 = vmatprep.subr.bf16.mxu0 %v10902_v19 }
 0x504   :  { %7567 = vmatpush1.bf16.msra.mxu0 %v10911_v7 }
 0x505   :  { %7569 = vmatprep.subr.bf16.mxu0 %v10928_v23 }
 0x508   :  { %7571 = vmatpush1.bf16.msra.mxu0 %v10936_v45 }
 0x509   :  { %7573 = vmatprep.subr.bf16.mxu0 %v10946_v63 }
 0x50c   :  { %7575 = vmatpush1.bf16.msra.mxu0 %v10954_v57 }
 0x50d   :  { %7577 = vmatprep.subr.bf16.mxu0 %v10964_v60 }
 0x5a0   :  { %v2643_v24 = vpop.f32.mrb[120].mxu1 }
 0x5a1   :  { %v2645_v30 = vpop.f32.mrb[121].mxu1 }
 0x5a4   :  { %v2649_v37 = vpop.f32.mrb[122].mxu1 }
 0x5a5   :  { %v7518_v39 = vpack.c.bf16 %v2649_v37, %v2643_v24  ;;  %v2651_v44 = vpop.f32.mrb[123].mxu1  ;;  %v10972_v24 = vpack.c.bf16 %v2894_v35, %v2892_v48  ;;  %v2899_v37 = vld [vmem:[%s11938_s5 + $0x198] sm:$0xff] }
 0x5a6   :  { %v7516_v50 = vpack.c.bf16 %v2651_v44, %v2645_v30  ;;  %v2897_v30 = vld [vmem:[%s11938_s5 + $0x188] sm:$0xff]  ;;  %v2896_v44 = vld [vmem:[%s11938_s5 + $0x180] sm:$0xff] }
 0x5a7   :  { %7579 = vmatpush1.bf16.msra.mxu0 %v10972_v24 }
 0x5a8   :  { %v2655_v54 = vpop.f32.mrb[124].mxu1  ;;  %7517 = vmatprep.subr.bf16.mxu1 %v7516_v50  ;;  %v2898_v50 = vld [vmem:[%s11938_s5 + $0x190] sm:$0xff] }
 0x5a9   :  { %v2657_v55 = vpop.f32.mrb[125].mxu1  ;;  %7519 = vmatpush1.bf16.msra.mxu1 %v7518_v39  ;;  %v10982_v39 = vpack.c.bf16 %v2899_v37, %v2897_v30 }
 0x5ab   :  { %7581 = vmatprep.subr.bf16.mxu0 %v10982_v39 }
 0x5ac   :  { %v2661_v58 = vpop.f32.mrb[126].mxu1 }
 0x5ad   :  { %v7522_v34 = vpack.c.bf16 %v2661_v58, %v2655_v54  ;;  %v2663_v11 = vpop.f32.mrb[127].mxu1  ;;  %v10990_v54 = vpack.c.bf16 %v2898_v50, %v2896_v44  ;;  %v2903_v58 = vld [vmem:[%s11938_s5 + $0x1b8] sm:$0xff] }
 0x5ae   :  { %v7520_v16 = vpack.c.bf16 %v2663_v11, %v2657_v55  ;;  %v2901_v55 = vld [vmem:[%s11938_s5 + $0x1a8] sm:$0xff]  ;;  %v2900_v11 = vld [vmem:[%s11938_s5 + $0x1a0] sm:$0xff] }
 0x5af   :  { %7583 = vmatpush1.bf16.msra.mxu0 %v10990_v54 }
 0x5b0   :  { %v2667_v38 = vpop.f32.mrb[128].mxu1  ;;  %7521 = vmatprep.subr.bf16.mxu1 %v7520_v16  ;;  %v2902_v16 = vld [vmem:[%s11938_s5 + $0x1b0] sm:$0xff] }
 0x5b1   :  { %v2669_v26 = vpop.f32.mrb[129].mxu1  ;;  %7523 = vmatpush1.bf16.msra.mxu1 %v7522_v34  ;;  %v11000_v34 = vpack.c.bf16 %v2903_v58, %v2901_v55 }
 0x5b3   :  { %7585 = vmatprep.subr.bf16.mxu0 %v11000_v34 }
 0x5b4   :  { %v2673_v36 = vpop.f32.mrb[130].mxu1 }
 0x5b5   :  { %v7526_v5 = vpack.c.bf16 %v2673_v36, %v2667_v38  ;;  %v2675_v21 = vpop.f32.mrb[131].mxu1  ;;  %v11008_v38 = vpack.c.bf16 %v2902_v16, %v2900_v11  ;;  %v2907_v36 = vld [vmem:[%s11938_s5 + $0x1d8] sm:$0xff] }
 0x5b6   :  { %v7524_v61 = vpack.c.bf16 %v2675_v21, %v2669_v26  ;;  %v2905_v26 = vld [vmem:[%s11938_s5 + $0x1c8] sm:$0xff]  ;;  %v2904_v21 = vld [vmem:[%s11938_s5 + $0x1c0] sm:$0xff] }
 0x5b7   :  { %7587 = vmatpush1.bf16.msra.mxu0 %v11008_v38 }
 0x5b8   :  { %v2679_v33 = vpop.f32.mrb[132].mxu1  ;;  %7525 = vmatprep.subr.bf16.mxu1 %v7524_v61  ;;  %v2906_v61 = vld [vmem:[%s11938_s5 + $0x1d0] sm:$0xff] }
 0x5b9   :  { %v2681_v18 = vpop.f32.mrb[133].mxu1  ;;  %7527 = vmatpush1.bf16.msra.mxu1 %v7526_v5  ;;  %v11018_v5 = vpack.c.bf16 %v2907_v36, %v2905_v26 }
 0x5bb   :  { %7589 = vmatprep.subr.bf16.mxu0 %v11018_v5 }
 0x5bc   :  { %v2685_v14 = vpop.f32.mrb[134].mxu1 }
 0x5bd   :  { %v7530_v29 = vpack.c.bf16 %v2685_v14, %v2679_v33  ;;  %v2687_v41 = vpop.f32.mrb[135].mxu1  ;;  %v11026_v33 = vpack.c.bf16 %v2906_v61, %v2904_v21  ;;  %v2911_v14 = vld [vmem:[%s11938_s5 + $0x1f8] sm:$0xff] }
 0x5be   :  { %v7528_v51 = vpack.c.bf16 %v2687_v41, %v2681_v18  ;;  %v2909_v18 = vld [vmem:[%s11938_s5 + $0x1e8] sm:$0xff]  ;;  %v2908_v41 = vld [vmem:[%s11938_s5 + $0x1e0] sm:$0xff] }
 0x5bf   :  { %7591 = vmatpush1.bf16.msra.mxu0 %v11026_v33 }
 0x5c0   :  { %7529 = vmatprep.subr.bf16.mxu1 %v7528_v51  ;;  %v2910_v51 = vld [vmem:[%s11938_s5 + $0x1f0] sm:$0xff] }
 0x5c1   :  { %7531 = vmatpush1.bf16.msra.mxu1 %v7530_v29  ;;  %v11036_v29 = vpack.c.bf16 %v2911_v14, %v2909_v18 }
 0x5c3   :  { %7593 = vmatprep.subr.bf16.mxu0 %v11036_v29 }
 0x5c4   :  { %6602 = vmatmul.mubr.msk.f32.vlgmr.msra.gmra.mrb[112].mxu1 %vm263_vm0, %v2691_v59  ;;  %v11044_v59 = vpack.c.bf16 %v2910_v51, %v2908_v41 }
 0x5c5   :  { %2777 = vmatprep.mubr.f32.mxu1 %v11960_v0 }
 0x5c6   :  { %7595 = vmatpush1.bf16.msra.mxu0 %v11044_v59 }
 0x5c7   :  { %7597 = vmatprep.subr.bf16.mxu0 %v10762_v10 }
 0x5c8   :  { %6603 = vmatmul.mubr.msk.f32.gmra.mrb[114].mxu1 %vm263_vm0, %v2692_v4 }
 0x5c9   :  { %2783 = vmatprep.mubr.f32.mxu1 %v11960_v0 }
 0x5cc   :  { %6604 = vmatmul.mubr.msk.f32.gmra.mrb[116].mxu1 %vm263_vm0, %v2693_v12 }
 0x5cd   :  { %2789 = vmatprep.mubr.f32.mxu1 %v11960_v0 }
 0x5d0   :  { %6605 = vmatmul.mubr.msk.f32.gmra.mrb[118].mxu1 %vm263_vm0, %v2694_v3 }
 0x697   :  { %v11049_v4 = vpop.f32.mrb[112].mxu1 }
 0x698   :  { %v11051_v12 = vpop.f32.mrb[113].mxu1  ;;  %v2822_v6 = vmul.f32 %v11049_v4, %v11049_v4 }
 0x699   :  { %v2823_v10 = vmul.f32 %v11051_v12, %v11051_v12 }
 0x69b   :  { %v11053_v3 = vpop.f32.mrb[114].mxu1 }
 0x69c   :  { %v2804_v9 = vadd.f32 %v11053_v3, %v11049_v4  ;;  %v2824_v32 = vmul.f32 %v11053_v3, %v11053_v3  ;;  %v11061_v42 = vpop.f32.mrb[115].mxu1 }
 0x69d   :  { %v2813_v46 = vadd.f32 %v11061_v42, %v11051_v12  ;;  %v2825_v56 = vmul.f32 %v11061_v42, %v11061_v42 }
 0x69e   :  { %v2830_v13 = vadd.f32 %v2824_v32, %v2822_v6 }
 0x69f   :  { %v2839_v2 = vadd.f32 %v2825_v56, %v2823_v10  ;;  %v11069_v20 = vpop.f32.mrb[116].mxu1 }
 0x6a0   :  { %v2805_v28 = vadd.f32 %v2804_v9, %v11069_v20  ;;  %v2826_v48 = vmul.f32 %v11069_v20, %v11069_v20  ;;  %v11074_v35 = vpop.f32.mrb[117].mxu1 }
 0x6a1   :  { %v2814_v30 = vadd.f32 %v2813_v46, %v11074_v35  ;;  %v2827_v37 = vmul.f32 %v11074_v35, %v11074_v35 }
 0x6a2   :  { %v2831_v44 = vadd.f32 %v2830_v13, %v2826_v48 }
 0x6a3   :  { %v2840_v50 = vadd.f32 %v2839_v2, %v2827_v37  ;;  %v11079_v55 = vpop.f32.mrb[118].mxu1 }
 0x6a4   :  { %v2806_v58 = vadd.f32 %v2805_v28, %v11079_v55  ;;  %v2828_v11 = vmul.f32 %v11079_v55, %v11079_v55  ;;  %v11084_v16 = vpop.f32.mrb[119].mxu1 }
 0x6a5   :  { %11975 = vst [vmem:[#allocation21_spill] sm:$0xff] %v11084_v16  ;;  %v2815_v26 = vadd.f32 %v2814_v30, %v11084_v16  ;;  %v2829_v36 = vmul.f32 %v11084_v16, %v11084_v16 }
 0x6a6   :  { %v2807_v21 = vrot.slane %v2806_v58, 4  ;;  %v2832_v61 = vadd.f32 %v2831_v44, %v2828_v11  ;;  %v3308_v11 = vld [vmem:[#allocation7 + $0x240] sm:$0xff] }
 0x6a7   :  { %v2816_v18 = vrot.slane %v2815_v26, 4  ;;  %v2841_v14 = vadd.f32 %v2840_v50, %v2829_v36  ;;  %v3153_v50 = vld [vmem:[#allocation7 + $0x48] sm:$0xff]  ;;  %v3152_v36 = vld [vmem:[#allocation7 + $0x40] sm:$0xff] }
 0x6a8   :  { %v2808_v41 = vadd.f32 %v2807_v21, %v2806_v58  ;;  %v3155_v58 = vld [vmem:[#allocation7 + $0x58] sm:$0xff]  ;;  %v3154_v21 = vld [vmem:[#allocation7 + $0x50] sm:$0xff] }
 0x6a9   :  { %v2817_v51 = vadd.f32 %v2816_v18, %v2815_v26  ;;  %v2842_v6 = vrot.slane %v2841_v14, 4  ;;  %v3310_v26 = vld [vmem:[#allocation7 + $0x250] sm:$0xff]  ;;  %v3313_v18 = vld [vmem:[#allocation7 + $0x268] sm:$0xff] }
 0x6aa   :  { %v2809_v9 = vrot.slane %v2808_v41, 2 }
 0x6ab   :  { %v2818_v32 = vrot.slane %v2817_v51, 2  ;;  %v2843_v10 = vadd.f32 %v2842_v6, %v2841_v14  ;;  %v3315_v14 = vld [vmem:[#allocation7 + $0x278] sm:$0xff] }
 0x6ac   :  { %v2810_v46 = vadd.f32 %v2809_v9, %v2808_v41  ;;  %v3157_v41 = vld [vmem:[#allocation7 + $0x68] sm:$0xff]  ;;  %v7736_v6 = vpack.c.bf16 %v3315_v14, %v3313_v18  ;;  %v3159_v9 = vld [vmem:[#allocation7 + $0x78] sm:$0xff]  ;;  %v3174_v14 = vld [vmem:[#allocation7 + $0xf0] sm:$0xff] }
 0x6ad   :  { %v2819_v56 = vadd.f32 %v2818_v32, %v2817_v51  ;;  %v2844_v13 = vrot.slane %v2843_v10, 2  ;;  %v7670_v51 = vpack.c.bf16 %v3154_v21, %v3152_v36  ;;  %v3312_v32 = vld [vmem:[#allocation7 + $0x260] sm:$0xff]  ;;  %v3330_v21 = vld [vmem:[#allocation7 + $0x2f0] sm:$0xff] }
 0x6ae   :  { %v2811_v2 = vrot.slane %v2810_v46, 1  ;;  %v3328_v36 = vld [vmem:[#allocation7 + $0x2e0] sm:$0xff] }
 0x6af   :  { %v2820_v28 = vrot.slane %v2819_v56, 1  ;;  %v2845_v48 = vadd.f32 %v2844_v13, %v2843_v10  ;;  %v3314_v10 = vld [vmem:[#allocation7 + $0x270] sm:$0xff] }
 0x6b0   :  { %v2812_v0 = vadd.f32 %v2811_v2, %v2810_v46  ;;  %v7672_v46 = vpack.c.bf16 %v3159_v9, %v3157_v41  ;;  %v3158_v13 = vld [vmem:[#allocation7 + $0x70] sm:$0xff]  ;;  %v3317_v2 = vld [vmem:[#allocation7 + $0x288] sm:$0xff]  ;;  %v3179_v9 = vld [vmem:[#allocation7 + $0x118] sm:$0xff] }
 0x6b1   :  { %v2821_v30 = vadd.f32 %v2820_v28, %v2819_v56  ;;  %v2846_v37 = vrot.slane %v2845_v48, 1  ;;  %v3156_v56 = vld [vmem:[#allocation7 + $0x60] sm:$0xff]  ;;  %v3319_v28 = vld [vmem:[#allocation7 + $0x298] sm:$0xff]  ;;  %v3333_v41 = vld [vmem:[#allocation7 + $0x308] sm:$0xff] }
 0x6b3   :  { %2976 = vmatprep.mubr.f32.mxu0 %v2821_v30  ;;  %v2847_v16 = vadd.f32 %v2846_v37, %v2845_v48  ;;  %v3161_v48 = vld [vmem:[#allocation7 + $0x88] sm:$0xff]  ;;  %v3163_v30 = vld [vmem:[#allocation7 + $0x98] sm:$0xff]  ;;  %v7738_v37 = vpack.c.bf16 %v3314_v10, %v3312_v32  ;;  %v7754_v32 = vpack.c.bf16 %v3330_v21, %v3328_v36 }
 0x6b4   :  { %2977 = vmatmul.mubr.f32.vlgmr.msra.gmra.mrb[80].mxu0 %v2812_v0  ;;  %v2833_v0 = vrot.slane %v2832_v61, 4  ;;  %v3193_v21 = vld [vmem:[#allocation7 + $0x188] sm:$0xff] }
 0x6b5   :  { %7599 = vmatpush1.bf16.msra.mxu0 %v10773_v15  ;;  %3047 = vmatprep.mubr.f32.mxu0 %v2847_v16  ;;  %v7668_v16 = vpack.c.bf16 %v3155_v58, %v3153_v50  ;;  %v3173_v50 = vld [vmem:[#allocation7 + $0xe8] sm:$0xff]  ;;  %v3175_v58 = vld [vmem:[#allocation7 + $0xf8] sm:$0xff] }
 0x6b6   :  { %7601 = vmatprep.subr.bf16.mxu0 %v10775_v40  ;;  %v2834_v15 = vadd.f32 %v2833_v0, %v2832_v61  ;;  %v7734_v61 = vpack.c.bf16 %v3310_v26, %v3308_v11  ;;  %v7674_v0 = vpack.c.bf16 %v3158_v13, %v3156_v56  ;;  %v7688_v18 = vpack.c.bf16 %v3175_v58, %v3173_v50  ;;  %v3332_v56 = vld [vmem:[#allocation7 + $0x300] sm:$0xff]  ;;  %v3334_v13 = vld [vmem:[#allocation7 + $0x310] sm:$0xff] }
 0x6b7   :  { %v3190_v50 = vld [vmem:[#allocation7 + $0x170] sm:$0xff] }
 0x6b8   :  { %v2835_v40 = vrot.slane %v2834_v15, 2 }
 0x6b9   :  { %7603 = vmatpush1.bf16.msra.mxu0 %v10791_v22 }
 0x6ba   :  { %7605 = vmatprep.subr.bf16.mxu0 %v10794_v62  ;;  %v2836_v22 = vadd.f32 %v2835_v40, %v2834_v15  ;;  %v7740_v15 = vpack.c.bf16 %v3319_v28, %v3317_v2  ;;  %v3316_v40 = vld [vmem:[#allocation7 + $0x280] sm:$0xff] }
 0x6bb   :  { %v3176_v28 = vld [vmem:[#allocation7 + $0x100] sm:$0xff] }
 0x6bc   :  { %v2837_v62 = vrot.slane %v2836_v22, 1 }
 0x6bd   :  { %7607 = vmatpush1.bf16.msra.mxu0 %v10809_v43 }
 0x6be   :  { %7609 = vmatprep.subr.bf16.mxu0 %v10812_v49  ;;  %v2838_v43 = vadd.f32 %v2837_v62, %v2836_v22  ;;  %v3301_v49 = vld [vmem:[#allocation7 + $0x208] sm:$0xff]  ;;  %v3318_v22 = vld [vmem:[#allocation7 + $0x290] sm:$0xff]  ;;  %v3160_v62 = vld [vmem:[#allocation7 + $0x80] sm:$0xff] }
 0x6c1   :  { %7611 = vmatpush1.bf16.msra.mxu0 %v10827_v52  ;;  %v3303_v52 = vld [vmem:[#allocation7 + $0x218] sm:$0xff] }
 0x6c2   :  { %7613 = vmatprep.subr.bf16.mxu0 %v10830_v1  ;;  %v3145_v1 = vld [vmem:[#allocation7 + $0x8] sm:$0xff] }
 0x6c5   :  { %7615 = vmatpush1.bf16.msra.mxu0 %v10845_v25  ;;  %v7724_v25 = vpack.c.bf16 %v3303_v52, %v3301_v49  ;;  %v3162_v49 = vld [vmem:[#allocation7 + $0x90] sm:$0xff]  ;;  %v3321_v52 = vld [vmem:[#allocation7 + $0x2a8] sm:$0xff] }
 0x6c6   :  { %7617 = vmatprep.subr.bf16.mxu0 %v10848_v27  ;;  %v3147_v27 = vld [vmem:[#allocation7 + $0x18] sm:$0xff] }
 0x6c9   :  { %7619 = vmatpush1.bf16.msra.mxu0 %v10863_v47  ;;  %v3300_v47 = vld [vmem:[#allocation7 + $0x200] sm:$0xff] }
 0x6ca   :  { %7621 = vmatprep.subr.bf16.mxu0 %v10866_v53  ;;  %v3302_v53 = vld [vmem:[#allocation7 + $0x210] sm:$0xff] }
 0x6cd   :  { %7623 = vmatpush1.bf16.msra.mxu0 %v10881_v31  ;;  %v7660_v31 = vpack.c.bf16 %v3147_v27, %v3145_v1  ;;  %v3323_v1 = vld [vmem:[#allocation7 + $0x2b8] sm:$0xff] }
 0x6ce   :  { %7625 = vmatprep.subr.bf16.mxu0 %v10884_v17  ;;  %v7726_v17 = vpack.c.bf16 %v3302_v53, %v3300_v47  ;;  %v3167_v27 = vld [vmem:[#allocation7 + $0xb8] sm:$0xff]  ;;  %v7742_v47 = vpack.c.bf16 %v3318_v22, %v3316_v40  ;;  %v7678_v53 = vpack.c.bf16 %v3162_v49, %v3160_v62  ;;  %v3181_v22 = vld [vmem:[#allocation7 + $0x128] sm:$0xff] }
 0x6cf   :  { %7661 = vmatprep.subr.bf16.mxu1 %v7660_v31  ;;  %v7744_v31 = vpack.c.bf16 %v3323_v1, %v3321_v52  ;;  %v3183_v62 = vld [vmem:[#allocation7 + $0x138] sm:$0xff]  ;;  %v3338_v52 = vld [vmem:[#allocation7 + $0x330] sm:$0xff]  ;;  %v3180_v1 = vld [vmem:[#allocation7 + $0x120] sm:$0xff] }
 0x6d0   :  { %v7696_v49 = vpack.c.bf16 %v3183_v62, %v3181_v22  ;;  %v3357_v22 = vld [vmem:[#allocation7 + $0x3c8] sm:$0xff]  ;;  %v3359_v62 = vld [vmem:[#allocation7 + $0x3d8] sm:$0xff] }
 0x6d1   :  { %7627 = vmatpush1.bf16.msra.mxu0 %v10899_v8  ;;  %v3144_v8 = vld [vmem:[#allocation7] sm:$0xff] }
 0x6d2   :  { %7629 = vmatprep.subr.bf16.mxu0 %v10902_v19  ;;  %v3146_v19 = vld [vmem:[#allocation7 + $0x10] sm:$0xff] }
 0x6d5   :  { %7631 = vmatpush1.bf16.msra.mxu0 %v10911_v7  ;;  %v3305_v7 = vld [vmem:[#allocation7 + $0x228] sm:$0xff] }
 0x6d6   :  { %7633 = vmatprep.subr.bf16.mxu0 %v10928_v23  ;;  %v7662_v23 = vpack.c.bf16 %v3146_v19, %v3144_v8  ;;  %v3322_v8 = vld [vmem:[#allocation7 + $0x2b0] sm:$0xff]  ;;  %v3164_v19 = vld [vmem:[#allocation7 + $0xa0] sm:$0xff] }
 0x6d8   :  { %7663 = vmatpush1.bf16.msra.mxu1 %v7662_v23  ;;  %v3166_v23 = vld [vmem:[#allocation7 + $0xb0] sm:$0xff] }
 0x6d9   :  { %7635 = vmatpush1.bf16.msra.mxu0 %v10936_v45  ;;  %v3307_v45 = vld [vmem:[#allocation7 + $0x238] sm:$0xff] }
 0x6da   :  { %7637 = vmatprep.subr.bf16.mxu0 %v10946_v63  ;;  %v3149_v63 = vld [vmem:[#allocation7 + $0x28] sm:$0xff] }
 0x6dd   :  { %7639 = vmatpush1.bf16.msra.mxu0 %v10954_v57  ;;  %v3151_v57 = vld [vmem:[#allocation7 + $0x38] sm:$0xff] }
 0x6de   :  { %7641 = vmatprep.subr.bf16.mxu0 %v10964_v60  ;;  %v7728_v60 = vpack.c.bf16 %v3307_v45, %v3305_v7  ;;  %v3325_v45 = vld [vmem:[#allocation7 + $0x2c8] sm:$0xff] }
 0x6e1   :  { %7643 = vmatpush1.bf16.msra.mxu0 %v10972_v24  ;;  %v7664_v24 = vpack.c.bf16 %v3151_v57, %v3149_v63  ;;  %v3327_v63 = vld [vmem:[#allocation7 + $0x2d8] sm:$0xff]  ;;  %v3169_v57 = vld [vmem:[#allocation7 + $0xc8] sm:$0xff] }
 0x6e2   :  { %7645 = vmatprep.subr.bf16.mxu0 %v10982_v39  ;;  %v3304_v39 = vld [vmem:[#allocation7 + $0x220] sm:$0xff] }
 0x6e3   :  { %7665 = vmatprep.subr.bf16.mxu1 %v7664_v24 }
 0x6e5   :  { %7647 = vmatpush1.bf16.msra.mxu0 %v10990_v54  ;;  %v3306_v54 = vld [vmem:[#allocation7 + $0x230] sm:$0xff] }
 0x6e6   :  { %7649 = vmatprep.subr.bf16.mxu0 %v11000_v34  ;;  %v3148_v34 = vld [vmem:[#allocation7 + $0x20] sm:$0xff] }
 0x6e9   :  { %7651 = vmatpush1.bf16.msra.mxu0 %v11008_v38  ;;  %v7730_v38 = vpack.c.bf16 %v3306_v54, %v3304_v39  ;;  %v7682_v39 = vpack.c.bf16 %v3166_v23, %v3164_v19  ;;  %v7748_v54 = vpack.c.bf16 %v3327_v63, %v3325_v45  ;;  %v3187_v19 = vld [vmem:[#allocation7 + $0x158] sm:$0xff]  ;;  %v3342_v45 = vld [vmem:[#allocation7 + $0x350] sm:$0xff]  ;;  %v3184_v63 = vld [vmem:[#allocation7 + $0x140] sm:$0xff] }
 0x6ea   :  { %7653 = vmatprep.subr.bf16.mxu0 %v11018_v5  ;;  %v3150_v5 = vld [vmem:[#allocation7 + $0x30] sm:$0xff] }
 0x6ed   :  { %7655 = vmatpush1.bf16.msra.mxu0 %v11026_v33  ;;  %v3309_v33 = vld [vmem:[#allocation7 + $0x248] sm:$0xff] }
 0x6ee   :  { %7657 = vmatprep.subr.bf16.mxu0 %v11036_v29  ;;  %v3311_v29 = vld [vmem:[#allocation7 + $0x258] sm:$0xff] }
 0x6ef   :  { %v7732_v44 = vpack.c.bf16 %v3311_v29, %v3309_v33  ;;  %v3170_v29 = vld [vmem:[#allocation7 + $0xd0] sm:$0xff] }
 0x6f1   :  { %7659 = vmatpush1.bf16.msra.mxu0 %v11044_v59  ;;  %v7666_v59 = vpack.c.bf16 %v3150_v5, %v3148_v34  ;;  %v3324_v34 = vld [vmem:[#allocation7 + $0x2c0] sm:$0xff] }
 0x6f2   :  { %7725 = vmatprep.subr.bf16.mxu0 %v7724_v25  ;;  %v3165_v25 = vld [vmem:[#allocation7 + $0xa8] sm:$0xff]  ;;  %v3168_v5 = vld [vmem:[#allocation7 + $0xc0] sm:$0xff] }
 0x6f3   :  { %7667 = vmatpush1.bf16.msra.mxu1 %v7666_v59  ;;  %v7680_v7 = vpack.c.bf16 %v3167_v27, %v3165_v25  ;;  %v3329_v59 = vld [vmem:[#allocation7 + $0x2e8] sm:$0xff]  ;;  %v3182_v25 = vld [vmem:[#allocation7 + $0x130] sm:$0xff] }
 0x6f4   :  { %3048 = vmatmul.mubr.f32.vlgmr.msra.gmra.mrb[82].mxu0 %v2838_v43  ;;  %7669 = vmatprep.subr.bf16.mxu1 %v7668_v16  ;;  %v7676_v43 = vpack.c.bf16 %v3163_v30, %v3161_v48  ;;  %v7686_v16 = vpack.c.bf16 %v3170_v29, %v3168_v5  ;;  %v3178_v48 = vld [vmem:[#allocation7 + $0x110] sm:$0xff]  ;;  %v7758_v30 = vpack.c.bf16 %v3334_v13, %v3332_v56  ;;  %v3191_v5 = vld [vmem:[#allocation7 + $0x178] sm:$0xff]  ;;  %v3197_v13 = vld [vmem:[#allocation7 + $0x1a8] sm:$0xff] }
 0x6f5   :  { %7727 = vmatpush1.bf16.msra.mxu0 %v7726_v17  ;;  %v3320_v17 = vld [vmem:[#allocation7 + $0x2a0] sm:$0xff] }
 0x6f6   :  { %7729 = vmatprep.subr.bf16.mxu0 %v7728_v60  ;;  %v3171_v60 = vld [vmem:[#allocation7 + $0xd8] sm:$0xff]  ;;  %v7746_v24 = vpack.c.bf16 %v3322_v8, %v3320_v17  ;;  %v3185_v8 = vld [vmem:[#allocation7 + $0x148] sm:$0xff] }
 0x6f7   :  { %7671 = vmatpush1.bf16.msra.mxu1 %v7670_v51  ;;  %v7684_v33 = vpack.c.bf16 %v3171_v60, %v3169_v57  ;;  %v3335_v51 = vld [vmem:[#allocation7 + $0x318] sm:$0xff]  ;;  %v7700_v23 = vpack.c.bf16 %v3187_v19, %v3185_v8  ;;  %v3186_v57 = vld [vmem:[#allocation7 + $0x150] sm:$0xff]  ;;  %v3361_v8 = vld [vmem:[#allocation7 + $0x3e8] sm:$0xff] }
 0x6f8   :  { %7673 = vmatprep.subr.bf16.mxu1 %v7672_v46  ;;  %v7756_v46 = vpack.c.bf16 %v3335_v51, %v3333_v41  ;;  %v3350_v41 = vld [vmem:[#allocation7 + $0x390] sm:$0xff]  ;;  %v3192_v51 = vld [vmem:[#allocation7 + $0x180] sm:$0xff]  ;;  %v3363_v19 = vld [vmem:[#allocation7 + $0x3f8] sm:$0xff] }
 0x6f9   :  { %7731 = vmatpush1.bf16.msra.mxu0 %v7730_v38  ;;  %v3326_v38 = vld [vmem:[#allocation7 + $0x2d0] sm:$0xff] }
 0x6fa   :  { %7733 = vmatprep.subr.bf16.mxu0 %v7732_v44  ;;  %v3331_v44 = vld [vmem:[#allocation7 + $0x2f8] sm:$0xff]  ;;  %v7750_v11 = vpack.c.bf16 %v3326_v38, %v3324_v34  ;;  %v3189_v38 = vld [vmem:[#allocation7 + $0x168] sm:$0xff] }
 0x6fb   :  { %7675 = vmatpush1.bf16.msra.mxu1 %v7674_v0  ;;  %v7752_v26 = vpack.c.bf16 %v3331_v44, %v3329_v59  ;;  %v3337_v0 = vld [vmem:[#allocation7 + $0x328] sm:$0xff]  ;;  %v7704_v29 = vpack.c.bf16 %v3191_v5, %v3189_v38  ;;  %v3346_v59 = vld [vmem:[#allocation7 + $0x370] sm:$0xff]  ;;  %v3188_v44 = vld [vmem:[#allocation7 + $0x160] sm:$0xff] }
 0x6fc   :  { %7677 = vmatprep.subr.bf16.mxu1 %v7676_v43  ;;  %v3336_v43 = vld [vmem:[#allocation7 + $0x320] sm:$0xff]  ;;  %v3869_v38 = vld [vmem:[#allocation7 + $0x608] sm:$0xff]  ;;  %v3871_v5 = vld [vmem:[#allocation7 + $0x618] sm:$0xff] }
 0x6fd   :  { %7735 = vmatpush1.bf16.msra.mxu0 %v7734_v61  ;;  %v3172_v61 = vld [vmem:[#allocation7 + $0xe0] sm:$0xff]  ;;  %v7762_v27 = vpack.c.bf16 %v3338_v52, %v3336_v43  ;;  %v7780_v43 = vpack.c.bf16 %v3359_v62, %v3357_v22  ;;  %v3203_v52 = vld [vmem:[#allocation7 + $0x1d8] sm:$0xff] }
 0x6fe   :  { %7737 = vmatprep.subr.bf16.mxu0 %v7736_v6  ;;  %v3177_v6 = vld [vmem:[#allocation7 + $0x108] sm:$0xff]  ;;  %v7690_v10 = vpack.c.bf16 %v3174_v14, %v3172_v61  ;;  %v3195_v61 = vld [vmem:[#allocation7 + $0x198] sm:$0xff] }
 0x6ff   :  { %7679 = vmatpush1.bf16.msra.mxu1 %v7678_v53  ;;  %v7692_v2 = vpack.c.bf16 %v3179_v9, %v3177_v6  ;;  %v3341_v53 = vld [vmem:[#allocation7 + $0x348] sm:$0xff]  ;;  %v7708_v14 = vpack.c.bf16 %v3195_v61, %v3193_v21  ;;  %v3194_v6 = vld [vmem:[#allocation7 + $0x190] sm:$0xff] }
 0x700   :  { %7681 = vmatprep.subr.bf16.mxu1 %v7680_v7  ;;  %v3340_v7 = vld [vmem:[#allocation7 + $0x340] sm:$0xff] }
 0x701   :  { %7739 = vmatpush1.bf16.msra.mxu0 %v7738_v37  ;;  %v7694_v37 = vpack.c.bf16 %v3178_v48, %v3176_v28  ;;  %v7766_v60 = vpack.c.bf16 %v3342_v45, %v3340_v7  ;;  %v3352_v28 = vld [vmem:[#allocation7 + $0x3a0] sm:$0xff]  ;;  %v3205_v7 = vld [vmem:[#allocation7 + $0x1e8] sm:$0xff]  ;;  %v3207_v45 = vld [vmem:[#allocation7 + $0x1f8] sm:$0xff] }
 0x702   :  { %7741 = vmatprep.subr.bf16.mxu0 %v7740_v15  ;;  %v3339_v15 = vld [vmem:[#allocation7 + $0x338] sm:$0xff] }
 0x703   :  { %7683 = vmatpush1.bf16.msra.mxu1 %v7682_v39  ;;  %v7760_v40 = vpack.c.bf16 %v3339_v15, %v3337_v0  ;;  %v3345_v39 = vld [vmem:[#allocation7 + $0x368] sm:$0xff]  ;;  %v3198_v0 = vld [vmem:[#allocation7 + $0x1b0] sm:$0xff] }
 0x704   :  { %7685 = vmatprep.subr.bf16.mxu1 %v7684_v33  ;;  %v3344_v33 = vld [vmem:[#allocation7 + $0x360] sm:$0xff] }
 0x705   :  { %7743 = vmatpush1.bf16.msra.mxu0 %v7742_v47  ;;  %v7698_v47 = vpack.c.bf16 %v3182_v25, %v3180_v1  ;;  %v7770_v58 = vpack.c.bf16 %v3346_v59, %v3344_v33  ;;  %v3356_v1 = vld [vmem:[#allocation7 + $0x3c0] sm:$0xff]  ;;  %v7876_v33 = vpack.c.bf16 %v3871_v5, %v3869_v38 }
 0x706   :  { %7745 = vmatprep.subr.bf16.mxu0 %v7744_v31  ;;  %v3343_v31 = vld [vmem:[#allocation7 + $0x358] sm:$0xff]  ;;  %v3872_v5 = vld [vmem:[#allocation7 + $0x620] sm:$0xff] }
 0x707   :  { %7687 = vmatpush1.bf16.msra.mxu1 %v7686_v16  ;;  %v7764_v17 = vpack.c.bf16 %v3343_v31, %v3341_v53  ;;  %v3349_v16 = vld [vmem:[#allocation7 + $0x388] sm:$0xff]  ;;  %v3202_v53 = vld [vmem:[#allocation7 + $0x1d0] sm:$0xff] }
 0x708   :  { %7689 = vmatprep.subr.bf16.mxu1 %v7688_v18  ;;  %v3348_v18 = vld [vmem:[#allocation7 + $0x380] sm:$0xff] }
 0x709   :  { %7747 = vmatpush1.bf16.msra.mxu0 %v7746_v24  ;;  %v7702_v24 = vpack.c.bf16 %v3186_v57, %v3184_v63  ;;  %v7774_v9 = vpack.c.bf16 %v3350_v41, %v3348_v18  ;;  %v3360_v63 = vld [vmem:[#allocation7 + $0x3e0] sm:$0xff]  ;;  %v3362_v57 = vld [vmem:[#allocation7 + $0x3f0] sm:$0xff] }
 0x70a   :  { %7749 = vmatprep.subr.bf16.mxu0 %v7748_v54  ;;  %v3347_v54 = vld [vmem:[#allocation7 + $0x378] sm:$0xff] }
 0x70b   :  { %7691 = vmatpush1.bf16.msra.mxu1 %v7690_v10  ;;  %v7768_v34 = vpack.c.bf16 %v3347_v54, %v3345_v39  ;;  %v3353_v10 = vld [vmem:[#allocation7 + $0x3a8] sm:$0xff]  ;;  %v3204_v39 = vld [vmem:[#allocation7 + $0x1e0] sm:$0xff]  ;;  %v3206_v54 = vld [vmem:[#allocation7 + $0x1f0] sm:$0xff] }
 0x70c   :  { %7693 = vmatprep.subr.bf16.mxu1 %v7692_v2  ;;  %v3199_v2 = vld [vmem:[#allocation7 + $0x1b8] sm:$0xff] }
 0x70d   :  { %7751 = vmatpush1.bf16.msra.mxu0 %v7750_v11  ;;  %v7706_v11 = vpack.c.bf16 %v3190_v50, %v3188_v44  ;;  %v7712_v48 = vpack.c.bf16 %v3199_v2, %v3197_v13  ;;  %v3108_v2 = vld [vmem:[%s11940_s7] sm:$0x3] }
 0x70e   :  { %7753 = vmatprep.subr.bf16.mxu0 %v7752_v26  ;;  %v3351_v26 = vld [vmem:[#allocation7 + $0x398] sm:$0xff] }
 0x70f   :  { %7695 = vmatpush1.bf16.msra.mxu1 %v7694_v37  ;;  %v7772_v36 = vpack.c.bf16 %v3351_v26, %v3349_v16  ;;  %v3196_v37 = vld [vmem:[#allocation7 + $0x1a0] sm:$0xff] }
 0x710   :  { %7697 = vmatprep.subr.bf16.mxu1 %v7696_v49  ;;  %v3201_v49 = vld [vmem:[#allocation7 + $0x1c8] sm:$0xff] }
 0x711   :  { %7755 = vmatpush1.bf16.msra.mxu0 %v7754_v32  ;;  %v7710_v32 = vpack.c.bf16 %v3194_v6, %v3192_v51  ;;  %v7716_v25 = vpack.c.bf16 %v3203_v52, %v3201_v49  ;;  %v11976_v51 = vld [vmem:[#allocation21_spill] sm:$0xff] }
 0x712   :  { %7757 = vmatprep.subr.bf16.mxu0 %v7756_v46  ;;  %v3355_v46 = vld [vmem:[#allocation7 + $0x3b8] sm:$0xff] }
 0x713   :  { %7699 = vmatpush1.bf16.msra.mxu1 %v7698_v47  ;;  %v7776_v56 = vpack.c.bf16 %v3355_v46, %v3353_v10  ;;  %v3200_v47 = vld [vmem:[#allocation7 + $0x1c0] sm:$0xff] }
 0x714   :  { %7701 = vmatprep.subr.bf16.mxu1 %v7700_v23  ;;  %v7784_v23 = vpack.c.bf16 %v3363_v19, %v3361_v8  ;;  %v3868_v8 = vld [vmem:[#allocation7 + $0x600] sm:$0xff]  ;;  %v3870_v19 = vld [vmem:[#allocation7 + $0x610] sm:$0xff] }
 0x715   :  { %7759 = vmatpush1.bf16.msra.mxu0 %v7758_v30  ;;  %v3354_v30 = vld [vmem:[#allocation7 + $0x3b0] sm:$0xff] }
 0x716   :  { %7761 = vmatprep.subr.bf16.mxu0 %v7760_v40  ;;  %v7778_v15 = vpack.c.bf16 %v3354_v30, %v3352_v28  ;;  %v7714_v40 = vpack.c.bf16 %v3198_v0, %v3196_v37 }
 0x717   :  { %7703 = vmatpush1.bf16.msra.mxu1 %v7702_v24  ;;  %v7786_v24 = vpack.c.bf16 %v3362_v57, %v3360_v63  ;;  %v3873_v63 = vld [vmem:[#allocation7 + $0x628] sm:$0xff]  ;;  %v3875_v57 = vld [vmem:[#allocation7 + $0x638] sm:$0xff] }
 0x718   :  { %7705 = vmatprep.subr.bf16.mxu1 %v7704_v29  ;;  %v3062_v29 = vlaneseq }
 0x719   :  { %7763 = vmatpush1.bf16.msra.mxu0 %v7762_v27  ;;  %v3358_v27 = vld [vmem:[#allocation7 + $0x3d0] sm:$0xff] }
 0x71a   :  { %7765 = vmatprep.subr.bf16.mxu0 %v7764_v17  ;;  %v7782_v31 = vpack.c.bf16 %v3358_v27, %v3356_v1  ;;  %v7718_v17 = vpack.c.bf16 %v3202_v53, %v3200_v47  ;;  %v3063_v59 = vshrl.u32 %v3062_v29, 7 }
 0x71b   :  { %7707 = vmatpush1.bf16.msra.mxu1 %v7706_v11 }
 0x71c   :  { %7709 = vmatprep.subr.bf16.mxu1 %v7708_v14  ;;  %v11120_v44 = vsub.s32 0, %v3063_v59 }
 0x71d   :  { %7767 = vmatpush1.bf16.msra.mxu0 %v7766_v60  ;;  %v7720_v60 = vpack.c.bf16 %v3207_v45, %v3205_v7 }
 0x71e   :  { %7769 = vmatprep.subr.bf16.mxu0 %v7768_v34  ;;  %v7722_v34 = vpack.c.bf16 %v3206_v54, %v3204_v39  ;;  %v3113_v0 = vrot.slane %v3108_v2, %v11120_v44  ;;  %v7878_v39 = vpack.c.bf16 %v3870_v19, %v3868_v8  ;;  %v3896_v19 = vld [vmem:[#allocation7 + $0x6e0] sm:$0xff] }
 0x71f   :  { %7711 = vmatpush1.bf16.msra.mxu1 %v7710_v32 }
 0x720   :  { %7713 = vmatprep.subr.bf16.mxu1 %v7712_v48 }
 0x721   :  { %7771 = vmatpush1.bf16.msra.mxu0 %v7770_v58 }
 0x722   :  { %7773 = vmatprep.subr.bf16.mxu0 %v7772_v36 }
 0x723   :  { %7715 = vmatpush1.bf16.msra.mxu1 %v7714_v40 }
 0x724   :  { %7717 = vmatprep.subr.bf16.mxu1 %v7716_v25 }
 0x725   :  { %7775 = vmatpush1.bf16.msra.mxu0 %v7774_v9 }
 0x726   :  { %7777 = vmatprep.subr.bf16.mxu0 %v7776_v56 }
 0x727   :  { %7719 = vmatpush1.bf16.msra.mxu1 %v7718_v17 }
 0x728   :  { %7721 = vmatprep.subr.bf16.mxu1 %v7720_v60 }
 0x729   :  { %7779 = vmatpush1.bf16.msra.mxu0 %v7778_v15 }
 0x72a   :  { %7781 = vmatprep.subr.bf16.mxu0 %v7780_v43 }
 0x72b   :  { %7723 = vmatpush1.bf16.msra.mxu1 %v7722_v34  ;;  %v7880_v34 = vpack.c.bf16 %v3875_v57, %v3873_v63 }
 0x72d   :  { %7783 = vmatpush1.bf16.msra.mxu0 %v7782_v31 }
 0x72e   :  { %7785 = vmatprep.subr.bf16.mxu0 %v7784_v23 }
 0x731   :  { %7787 = vmatpush1.bf16.msra.mxu0 %v7786_v24 }
 0x732   :  { %7877 = vmatprep.subr.bf16.mxu0 %v7876_v33  ;;  %v3874_v33 = vld [vmem:[#allocation7 + $0x630] sm:$0xff] }
 0x787   :  { %v2978_v50 = vpop.f32.mrb[80].mxu0 }
 0x788   :  { %v3065_v58 = vrot.slane %v2978_v50, %v11120_v44  ;;  %v2980_v11 = vpop.f32.mrb[81].mxu0  ;;  %v3054_v9 = vmul.f32 %v2978_v50, %v2978_v50 }
 0x789   :  { %v3069_v16 = vrot.slane %v2980_v11, %v11120_v44  ;;  %v3055_v32 = vmul.f32 %v2980_v11, %v2980_v11  ;;  %v3879_v11 = vld [vmem:[#allocation7 + $0x658] sm:$0xff] }
 0x78a   :  { %v3070_v26 = vsub.f32 %v11049_v4, %v3065_v58  ;;  %v3072_v36 = vsub.f32 %v11053_v3, %v3065_v58  ;;  %v3074_v21 = vsub.f32 %v11069_v20, %v3065_v58  ;;  %v3076_v61 = vsub.f32 %v11079_v55, %v3065_v58  ;;  %v3877_v58 = vld [vmem:[#allocation7 + $0x648] sm:$0xff] }
 0x78b   :  { %v3071_v18 = vsub.f32 %v11051_v12, %v3069_v16  ;;  %v3073_v14 = vsub.f32 %v11061_v42, %v3069_v16  ;;  %v3075_v41 = vsub.f32 %v11074_v35, %v3069_v16  ;;  %v3077_v6 = vsub.f32 %v11976_v51, %v3069_v16  ;;  %v3078_v12 = vld [vmem:[%s11939_s6] sm:$0x3] }
 0x78c   :  { %v11135_v20 = vsub.s32 1, %v3063_v59  ;;  %v3083_v42 = vrot.slane %v3078_v12, %v11120_v44 }
 0x78e   :  { %v3087_v35 = vrot.slane %v3078_v12, %v11135_v20  ;;  %v3117_v40 = vrot.slane %v3108_v2, %v11135_v20 }
 0x7c7   :  { %v3049_v10 = vpop.f32.mrb[82].mxu0 }
 0x7c8   :  { %v3056_v46 = vsub.f32 %v3049_v10, %v3054_v9  ;;  %v3051_v56 = vpop.f32.mrb[83].mxu0  ;;  %v3881_v9 = vld [vmem:[#allocation7 + $0x668] sm:$0xff] }
 0x7c9   :  { %v3057_v4 = vsub.f32 %v3051_v56, %v3055_v32  ;;  %v3883_v32 = vld [vmem:[#allocation7 + $0x678] sm:$0xff] }
 0x7ca   :  { %v3058_v13 = vadd.f32 1e-05, %v3056_v46  ;;  %v7888_v56 = vpack.c.bf16 %v3883_v32, %v3881_v9  ;;  %v3912_v9 = vld [vmem:[#allocation7 + $0x760] sm:$0xff]  ;;  %v3914_v32 = vld [vmem:[#allocation7 + $0x770] sm:$0xff] }
 0x7cb   :  { %v3059_v3 = vadd.f32 1e-05, %v3057_v4 }
 0x7cc   :  { %8714 = vrsqrt.f32 %v3058_v13  ;;  %v3880_v13 = vld [vmem:[#allocation7 + $0x660] sm:$0xff] }
 0x7cd   :  { %8716 = vrsqrt.f32 %v3059_v3  ;;  %v3882_v3 = vld [vmem:[#allocation7 + $0x670] sm:$0xff] }
 0x7d6   :  { %v8715_v55 = vpop.eup %8714 }
 0x7d7   :  { %v8717_v28 = vpop.eup %8716  ;;  %v3090_v48 = vmul.f32 %v8715_v55, %v3083_v42  ;;  %v3885_v42 = vld [vmem:[#allocation7 + $0x688] sm:$0xff]  ;;  %v7890_v55 = vpack.c.bf16 %v3882_v3, %v3880_v13  ;;  %v3916_v3 = vld [vmem:[#allocation7 + $0x780] sm:$0xff] }
 0x7d8   :  { %v3091_v30 = vmul.f32 %v8717_v28, %v3087_v35  ;;  %v3887_v35 = vld [vmem:[#allocation7 + $0x698] sm:$0xff] }
 0x7d9   :  { %v3095_v37 = vrot.slane %v3090_v48, %v11120_v44  ;;  %v7892_v28 = vpack.c.bf16 %v3887_v35, %v3885_v42  ;;  %v3884_v48 = vld [vmem:[#allocation7 + $0x680] sm:$0xff]  ;;  %v3918_v42 = vld [vmem:[#allocation7 + $0x790] sm:$0xff]  ;;  %v3921_v35 = vld [vmem:[#allocation7 + $0x7a8] sm:$0xff] }
 0x7da   :  { %v3099_v15 = vrot.slane %v3091_v30, %v11120_v44  ;;  %v3886_v30 = vld [vmem:[#allocation7 + $0x690] sm:$0xff] }
 0x7db   :  { %v3100_v22 = vmul.f32 %v3095_v37, %v3070_v26  ;;  %v3102_v62 = vmul.f32 %v3095_v37, %v3072_v36  ;;  %v3104_v43 = vmul.f32 %v3095_v37, %v3074_v21  ;;  %v3106_v49 = vmul.f32 %v3095_v37, %v3076_v61  ;;  %v3889_v37 = vld [vmem:[#allocation7 + $0x6a8] sm:$0xff] }
 0x7dc   :  { %v3101_v52 = vmul.f32 %v3099_v15, %v3071_v18  ;;  %v3103_v1 = vmul.f32 %v3099_v15, %v3073_v14  ;;  %v3105_v25 = vmul.f32 %v3099_v15, %v3075_v41  ;;  %v3107_v27 = vmul.f32 %v3099_v15, %v3077_v6  ;;  %v3876_v18 = vld [vmem:[#allocation7 + $0x640] sm:$0xff]  ;;  %v3878_v14 = vld [vmem:[#allocation7 + $0x650] sm:$0xff] }
 0x7dd   :  { %v3120_v47 = vadd.f32 %v3113_v0, %v3100_v22  ;;  %v3122_v7 = vadd.f32 %v3113_v0, %v3102_v62  ;;  %v3124_v29 = vadd.f32 %v3113_v0, %v3104_v43  ;;  %v7882_v26 = vpack.c.bf16 %v3874_v33, %v3872_v5  ;;  %v3888_v22 = vld [vmem:[#allocation7 + $0x6a0] sm:$0xff]  ;;  %v3890_v62 = vld [vmem:[#allocation7 + $0x6b0] sm:$0xff] }
 0x7de   :  { %v3121_v53 = vadd.f32 %v3117_v40, %v3101_v52  ;;  %v3123_v31 = vadd.f32 %v3117_v40, %v3103_v1  ;;  %v3125_v60 = vadd.f32 %v3117_v40, %v3105_v25  ;;  %v3127_v16 = vadd.f32 %v3117_v40, %v3107_v27  ;;  %v3895_v52 = vld [vmem:[#allocation7 + $0x6d8] sm:$0xff]  ;;  %v3892_v27 = vld [vmem:[#allocation7 + $0x6c0] sm:$0xff] }
 0x7df   :  { %v3128_v17 = vmul.f32 0.2, %v3120_v47  ;;  %v3130_v38 = vmul.f32 0.2, %v3122_v7  ;;  %v7884_v21 = vpack.c.bf16 %v3879_v11, %v3877_v58  ;;  %v3132_v61 = vmul.f32 0.2, %v3124_v29 }
 0x7e0   :  { %v3129_v23 = vmul.f32 0.2, %v3121_v53  ;;  %v3131_v45 = vmul.f32 0.2, %v3123_v31  ;;  %v3133_v50 = vmul.f32 0.2, %v3125_v60  ;;  %v3126_v41 = vadd.f32 %v3113_v0, %v3106_v49 }
 0x7e1   :  { %v11148_v54 = vmax.f32 %v3120_v47, %v3128_v17  ;;  %v11158_v36 = vmax.f32 %v3122_v7, %v3130_v38  ;;  %v3135_v6 = vmul.f32 0.2, %v3127_v16  ;;  %v7886_v10 = vpack.c.bf16 %v3878_v14, %v3876_v18  ;;  %v3891_v0 = vld [vmem:[#allocation7 + $0x6b8] sm:$0xff]  ;;  %v3893_v49 = vld [vmem:[#allocation7 + $0x6c8] sm:$0xff]  ;;  %v3894_v47 = vld [vmem:[#allocation7 + $0x6d0] sm:$0xff] }
 0x7e2   :  { %v11146_v24 = vmax.f32 %v3121_v53, %v3129_v23  ;;  %v11152_v59 = vmax.f32 %v3123_v31, %v3131_v45  ;;  %v11160_v51 = vmax.f32 %v3125_v60, %v3133_v50  ;;  %v11166_v46 = vmax.f32 %v3124_v29, %v3132_v61  ;;  %v3897_v53 = vld [vmem:[#allocation7 + $0x6e8] sm:$0xff]  ;;  %v3899_v31 = vld [vmem:[#allocation7 + $0x6f8] sm:$0xff]  ;;  %v3898_v7 = vld [vmem:[#allocation7 + $0x6f0] sm:$0xff] }
 0x7e3   :  { %v3134_v4 = vmul.f32 0.2, %v3126_v41  ;;  %v11168_v12 = vmax.f32 %v3127_v16, %v3135_v6  ;;  %v7894_v15 = vpack.c.bf16 %v3886_v30, %v3884_v48  ;;  %v7896_v40 = vpack.c.bf16 %v3891_v0, %v3889_v37  ;;  %v3901_v23 = vld [vmem:[#allocation7 + $0x708] sm:$0xff]  ;;  %v3903_v45 = vld [vmem:[#allocation7 + $0x718] sm:$0xff]  ;;  %v3900_v60 = vld [vmem:[#allocation7 + $0x700] sm:$0xff] }
 0x7e4   :  { %3272 = vmatprep.mubr.f32.mxu1 %v11146_v24  ;;  %3428 = vmatprep.mubr.f32.mxu0 %v11146_v24  ;;  %v11977_v43 = vmov 0.0   ;;  %v7898_v1 = vpack.c.bf16 %v3890_v62, %v3888_v22  ;;  %v7900_v25 = vpack.c.bf16 %v3895_v52, %v3893_v49  ;;  %v7902_v17 = vpack.c.bf16 %v3894_v47, %v3892_v27  ;;  %v3907_v38 = vld [vmem:[#allocation7 + $0x738] sm:$0xff]  ;;  %v3904_v29 = vld [vmem:[#allocation7 + $0x720] sm:$0xff]  ;;  %v3906_v50 = vld [vmem:[#allocation7 + $0x730] sm:$0xff] }
 0x7e5   :  { %3273 = vmatmul.mubr.f32.vlgmr.msra.gmra.mrb[136].mxu1 %v11148_v54  ;;  %3429 = vmatmul.mubr.f32.vlgmr.msra.gmra.mrb[84].mxu0 %v11148_v54  ;;  %v11174_v2 = vmax.f32 %v3126_v41, %v3134_v4  ;;  %v7904_v8 = vpack.c.bf16 %v3899_v31, %v3897_v53  ;;  %v7906_v63 = vpack.c.bf16 %v3898_v7, %v3896_v19  ;;  %v3909_v58 = vld [vmem:[#allocation7 + $0x748] sm:$0xff]  ;;  %v3911_v11 = vld [vmem:[#allocation7 + $0x758] sm:$0xff]  ;;  %v3910_v61 = vld [vmem:[#allocation7 + $0x750] sm:$0xff] }
 0x7e6   :  { %7879 = vmatpush1.bf16.msra.mxu0 %v7878_v39  ;;  %3278 = vmatprep.mubr.f32.mxu1 %v11152_v59  ;;  %v7908_v57 = vpack.c.bf16 %v3903_v45, %v3901_v23  ;;  %v3902_v39 = vld [vmem:[#allocation7 + $0x710] sm:$0xff]  ;;  %v7914_v16 = vpack.c.bf16 %v3906_v50, %v3904_v29  ;;  %v3913_v18 = vld [vmem:[#allocation7 + $0x768] sm:$0xff]  ;;  %v3915_v14 = vld [vmem:[#allocation7 + $0x778] sm:$0xff]  ;;  %v7922_v4 = vpack.c.bf16 %v3914_v32, %v3912_v9 }
 0x7e7   :  { %3434 = vmatprep.mubr.f32.mxu0 %v11152_v59  ;;  %7881 = vmatprep.subr.bf16.mxu0 %v7880_v34  ;;  %v3905_v34 = vld [vmem:[#allocation7 + $0x728] sm:$0xff]  ;;  %v7910_v5 = vpack.c.bf16 %v3902_v39, %v3900_v60  ;;  %v7920_v6 = vpack.c.bf16 %v3915_v14, %v3913_v18  ;;  %v3920_v30 = vld [vmem:[#allocation7 + $0x7a0] sm:$0xff]  ;;  %v3922_v37 = vld [vmem:[#allocation7 + $0x7b0] sm:$0xff] }
 0x7e8   :  { %v7912_v33 = vpack.c.bf16 %v3907_v38, %v3905_v34  ;;  %v3925_v0 = vld [vmem:[#allocation7 + $0x7c8] sm:$0xff]  ;;  %v3924_v62 = vld [vmem:[#allocation7 + $0x7c0] sm:$0xff]  ;;  %v3926_v49 = vld [vmem:[#allocation7 + $0x7d0] sm:$0xff] }
 0x7e9   :  { %3279 = vmatmul.mubr.f32.gmra.mrb[138].mxu1 %v11158_v36  ;;  %3435 = vmatmul.mubr.f32.gmra.mrb[86].mxu0 %v11158_v36  ;;  %v3929_v52 = vld [vmem:[#allocation7 + $0x7e8] sm:$0xff]  ;;  %v3928_v47 = vld [vmem:[#allocation7 + $0x7e0] sm:$0xff]  ;;  %v3930_v53 = vld [vmem:[#allocation7 + $0x7f0] sm:$0xff] }
 0x7ea   :  { %7883 = vmatpush1.bf16.msra.mxu0 %v7882_v26  ;;  %3284 = vmatprep.mubr.f32.mxu1 %v11160_v51  ;;  %v7916_v26 = vpack.c.bf16 %v3911_v11, %v3909_v58  ;;  %v7938_v31 = vpack.c.bf16 %v3930_v53, %v3928_v47  ;;  %v3627_v9 = vld [vmem:[#allocation7 + $0x418] sm:$0xff]  ;;  %v3638_v47 = vld [vmem:[#allocation7 + $0x470] sm:$0xff]  ;;  %v3641_v53 = vld [vmem:[#allocation7 + $0x488] sm:$0xff] }
 0x7eb   :  { %3440 = vmatprep.mubr.f32.mxu0 %v11160_v51  ;;  %7885 = vmatprep.subr.bf16.mxu0 %v7884_v21  ;;  %v3908_v21 = vld [vmem:[#allocation7 + $0x740] sm:$0xff]  ;;  %v3455_v32 = vld [vmem:[#allocation6 + $0x18] sm:$0xff] }
 0x7ec   :  { %v7918_v41 = vpack.c.bf16 %v3910_v61, %v3908_v21 }
 0x7ed   :  { %3285 = vmatmul.mubr.f32.gmra.mrb[140].mxu1 %v11166_v46  ;;  %3441 = vmatmul.mubr.f32.gmra.mrb[88].mxu0 %v11166_v46 }
 0x7ee   :  { %7887 = vmatpush1.bf16.msra.mxu0 %v7886_v10  ;;  %3290 = vmatprep.mubr.f32.mxu1 %v11168_v12  ;;  %v3917_v10 = vld [vmem:[#allocation7 + $0x788] sm:$0xff] }
 0x7ef   :  { %3446 = vmatprep.mubr.f32.mxu0 %v11168_v12  ;;  %7889 = vmatprep.subr.bf16.mxu0 %v7888_v56  ;;  %v3919_v56 = vld [vmem:[#allocation7 + $0x798] sm:$0xff] }
 0x7f0   :  { %v7924_v13 = vpack.c.bf16 %v3919_v56, %v3917_v10  ;;  %v3624_v56 = vld [vmem:[#allocation7 + $0x400] sm:$0xff] }
 0x7f1   :  { %3291 = vmatmul.mubr.f32.gmra.mrb[142].mxu1 %v11174_v2  ;;  %3447 = vmatmul.mubr.f32.gmra.mrb[90].mxu0 %v11174_v2 }
 0x7f2   :  { %7891 = vmatpush1.bf16.msra.mxu0 %v7890_v55  ;;  %3996 = vmatprep.mubr.f32.mxu0 %v11146_v24  ;;  %v3923_v55 = vld [vmem:[#allocation7 + $0x7b8] sm:$0xff] }
 0x7f3   :  { %7893 = vmatprep.subr.bf16.mxu0 %v7892_v28  ;;  %3527 = vmatprep.mubr.f32.mxu1 %v11977_v43  ;;  %v7926_v28 = vpack.c.bf16 %v3918_v42, %v3916_v3  ;;  %v7928_v48 = vpack.c.bf16 %v3923_v55, %v3921_v35  ;;  %v3631_v3 = vld [vmem:[#allocation7 + $0x438] sm:$0xff]  ;;  %v3297_v42 = vld [vmem:[#allocation6] sm:$0xff] }
 0x7f6   :  { %7895 = vmatpush1.bf16.msra.mxu0 %v7894_v15  ;;  %v3927_v15 = vld [vmem:[#allocation7 + $0x7d8] sm:$0xff] }
 0x7f7   :  { %7897 = vmatprep.subr.bf16.mxu0 %v7896_v40  ;;  %v7930_v40 = vpack.c.bf16 %v3922_v37, %v3920_v30  ;;  %v7932_v22 = vpack.c.bf16 %v3927_v15, %v3925_v0  ;;  %v3633_v30 = vld [vmem:[#allocation7 + $0x448] sm:$0xff]  ;;  %v3635_v37 = vld [vmem:[#allocation7 + $0x458] sm:$0xff] }
 0x7f8   :  { %v3298_v0 = vld [vmem:[#allocation6 + $0x8] sm:$0xff] }
 0x7fa   :  { %7899 = vmatpush1.bf16.msra.mxu0 %v7898_v1  ;;  %v3931_v1 = vld [vmem:[#allocation7 + $0x7f8] sm:$0xff] }
 0x7fb   :  { %7901 = vmatprep.subr.bf16.mxu0 %v7900_v25  ;;  %v7934_v25 = vpack.c.bf16 %v3926_v49, %v3924_v62  ;;  %v7936_v27 = vpack.c.bf16 %v3931_v1, %v3929_v52  ;;  %v3634_v62 = vld [vmem:[#allocation7 + $0x450] sm:$0xff]  ;;  %v3637_v49 = vld [vmem:[#allocation7 + $0x468] sm:$0xff]  ;;  %v3639_v52 = vld [vmem:[#allocation7 + $0x478] sm:$0xff] }
 0x7fe   :  { %7903 = vmatpush1.bf16.msra.mxu0 %v7902_v17 }
 0x7ff   :  { %7905 = vmatprep.subr.bf16.mxu0 %v7904_v8 }
 0x802   :  { %7907 = vmatpush1.bf16.msra.mxu0 %v7906_v63 }
 0x803   :  { %7909 = vmatprep.subr.bf16.mxu0 %v7908_v57 }
 0x806   :  { %7911 = vmatpush1.bf16.msra.mxu0 %v7910_v5 }
 0x807   :  { %7913 = vmatprep.subr.bf16.mxu0 %v7912_v33 }
 0x80a   :  { %7915 = vmatpush1.bf16.msra.mxu0 %v7914_v16 }
 0x80b   :  { %7917 = vmatprep.subr.bf16.mxu0 %v7916_v26 }
 0x80e   :  { %7919 = vmatpush1.bf16.msra.mxu0 %v7918_v41  ;;  %v3454_v41 = vld [vmem:[#allocation6 + $0x10] sm:$0xff] }
 0x80f   :  { %7921 = vmatprep.subr.bf16.mxu0 %v7920_v6  ;;  %v3625_v6 = vld [vmem:[#allocation7 + $0x408] sm:$0xff] }
 0x810   :  { %v7804_v10 = vpack.c.bf16 %v3627_v9, %v3625_v6  ;;  %v3656_v6 = vld [vmem:[#allocation7 + $0x500] sm:$0xff]  ;;  %v3658_v9 = vld [vmem:[#allocation7 + $0x510] sm:$0xff] }
 0x812   :  { %7923 = vmatpush1.bf16.msra.mxu0 %v7922_v4  ;;  %v3626_v4 = vld [vmem:[#allocation7 + $0x410] sm:$0xff] }
 0x813   :  { %7925 = vmatprep.subr.bf16.mxu0 %v7924_v13  ;;  %v3629_v13 = vld [vmem:[#allocation7 + $0x428] sm:$0xff]  ;;  %v7806_v35 = vpack.c.bf16 %v3626_v4, %v3624_v56  ;;  %v7838_v56 = vpack.c.bf16 %v3658_v9, %v3656_v6  ;;  %v3684_v6 = vld [vmem:[#allocation7 + $0x5e0] sm:$0xff]  ;;  %v3686_v9 = vld [vmem:[#allocation7 + $0x5f0] sm:$0xff] }
 0x814   :  { %v7808_v55 = vpack.c.bf16 %v3631_v3, %v3629_v13  ;;  %v3660_v13 = vld [vmem:[#allocation7 + $0x520] sm:$0xff]  ;;  %v3662_v3 = vld [vmem:[#allocation7 + $0x530] sm:$0xff] }
 0x816   :  { %7927 = vmatpush1.bf16.msra.mxu0 %v7926_v28  ;;  %v3628_v28 = vld [vmem:[#allocation7 + $0x420] sm:$0xff] }
 0x817   :  { %7929 = vmatprep.subr.bf16.mxu0 %v7928_v48  ;;  %v3630_v48 = vld [vmem:[#allocation7 + $0x430] sm:$0xff] }
 0x818   :  { %v7810_v15 = vpack.c.bf16 %v3630_v48, %v3628_v28  ;;  %v3664_v48 = vld [vmem:[#allocation7 + $0x540] sm:$0xff] }
 0x81a   :  { %7931 = vmatpush1.bf16.msra.mxu0 %v7930_v40  ;;  %v7812_v40 = vpack.c.bf16 %v3635_v37, %v3633_v30  ;;  %v3666_v30 = vld [vmem:[#allocation7 + $0x550] sm:$0xff]  ;;  %v3669_v37 = vld [vmem:[#allocation7 + $0x568] sm:$0xff] }
 0x81b   :  { %7933 = vmatprep.subr.bf16.mxu0 %v7932_v22  ;;  %v3632_v22 = vld [vmem:[#allocation7 + $0x440] sm:$0xff] }
 0x81c   :  { %v7814_v1 = vpack.c.bf16 %v3634_v62, %v3632_v22  ;;  %v7846_v22 = vpack.c.bf16 %v3666_v30, %v3664_v48  ;;  %v4153_v48 = vld [vmem:[#allocation9 + $0x50] sm:$0xff]  ;;  %v4156_v30 = vld [vmem:[#allocation9 + $0x68] sm:$0xff] }
 0x81e   :  { %7935 = vmatpush1.bf16.msra.mxu0 %v7934_v25  ;;  %v7816_v25 = vpack.c.bf16 %v3639_v52, %v3637_v49  ;;  %v3668_v49 = vld [vmem:[#allocation7 + $0x560] sm:$0xff]  ;;  %v3670_v52 = vld [vmem:[#allocation7 + $0x570] sm:$0xff] }
 0x81f   :  { %7937 = vmatprep.subr.bf16.mxu0 %v7936_v27  ;;  %v3636_v27 = vld [vmem:[#allocation7 + $0x460] sm:$0xff] }
 0x822   :  { %7939 = vmatpush1.bf16.msra.mxu0 %v7938_v31  ;;  %v3643_v31 = vld [vmem:[#allocation7 + $0x498] sm:$0xff] }
 0x825   :  { %3997 = vmatmul.mubr.f32.vlgmr.msra.gmra.mrb[92].mxu0 %v11148_v54 }
 0x826   :  { %4002 = vmatprep.mubr.f32.mxu0 %v11152_v59 }
 0x829   :  { %4003 = vmatmul.mubr.f32.gmra.mrb[94].mxu0 %v11158_v36 }
 0x82a   :  { %4008 = vmatprep.mubr.f32.mxu0 %v11160_v51 }
 0x82d   :  { %4009 = vmatmul.mubr.f32.gmra.mrb[96].mxu0 %v11166_v46 }
 0x82e   :  { %4014 = vmatprep.mubr.f32.mxu0 %v11168_v12 }
 0x831   :  { %4015 = vmatmul.mubr.f32.gmra.mrb[98].mxu0 %v11174_v2 }
 0x8b8   :  { %v3274_v17 = vpop.f32.mrb[136].mxu1  ;;  %v3430_v8 = vpop.f32.mrb[84].mxu0 }
 0x8b9   :  { %v3276_v19 = vpop.f32.mrb[137].mxu1  ;;  %v3432_v7 = vpop.f32.mrb[85].mxu0 }
 0x8bc   :  { %v3280_v23 = vpop.f32.mrb[138].mxu1  ;;  %v3436_v45 = vpop.f32.mrb[86].mxu0 }
 0x8bd   :  { %v7798_v63 = vpack.c.bf16 %v3280_v23, %v3274_v17  ;;  %v7790_v57 = vpack.c.bf16 %v3436_v45, %v3430_v8  ;;  %v3282_v60 = vpop.f32.mrb[139].mxu1  ;;  %v3438_v39 = vpop.f32.mrb[87].mxu0  ;;  %v7818_v17 = vpack.c.bf16 %v3638_v47, %v3636_v27  ;;  %v7820_v8 = vpack.c.bf16 %v3643_v31, %v3641_v53  ;;  %v3645_v23 = vld [vmem:[#allocation7 + $0x4a8] sm:$0xff]  ;;  %v3647_v45 = vld [vmem:[#allocation7 + $0x4b8] sm:$0xff] }
 0x8be   :  { %v7796_v34 = vpack.c.bf16 %v3282_v60, %v3276_v19  ;;  %v7788_v38 = vpack.c.bf16 %v3438_v39, %v3432_v7  ;;  %v3640_v19 = vld [vmem:[#allocation7 + $0x480] sm:$0xff]  ;;  %v3642_v7 = vld [vmem:[#allocation7 + $0x490] sm:$0xff]  ;;  %v3649_v39 = vld [vmem:[#allocation7 + $0x4c8] sm:$0xff]  ;;  %v7850_v31 = vpack.c.bf16 %v3670_v52, %v3668_v49 }
 0x8bf   :  { %v3646_v60 = vld [vmem:[#allocation7 + $0x4b0] sm:$0xff]  ;;  %v4160_v52 = vld [vmem:[#allocation9 + $0x88] sm:$0xff] }
 0x8c0   :  { %v3286_v5 = vpop.f32.mrb[140].mxu1  ;;  %v3442_v33 = vpop.f32.mrb[88].mxu0  ;;  %7789 = vmatprep.subr.bf16.mxu1 %v7788_v38  ;;  %v4157_v49 = vld [vmem:[#allocation9 + $0x70] sm:$0xff] }
 0x8c1   :  { %v3288_v29 = vpop.f32.mrb[141].mxu1  ;;  %v3444_v50 = vpop.f32.mrb[89].mxu0  ;;  %7791 = vmatpush1.bf16.msra.mxu1 %v7790_v57  ;;  %v7824_v57 = vpack.c.bf16 %v3647_v45, %v3645_v23  ;;  %v3677_v23 = vld [vmem:[#allocation7 + $0x5a8] sm:$0xff]  ;;  %v3679_v45 = vld [vmem:[#allocation7 + $0x5b8] sm:$0xff] }
 0x8c4   :  { %v3292_v58 = vpop.f32.mrb[142].mxu1  ;;  %v3448_v11 = vpop.f32.mrb[90].mxu0 }
 0x8c5   :  { %v7802_v16 = vpack.c.bf16 %v3292_v58, %v3286_v5  ;;  %v7794_v26 = vpack.c.bf16 %v3448_v11, %v3442_v33  ;;  %v3294_v21 = vpop.f32.mrb[143].mxu1  ;;  %v3450_v61 = vpop.f32.mrb[91].mxu0  ;;  %v3648_v33 = vld [vmem:[#allocation7 + $0x4c0] sm:$0xff]  ;;  %v3655_v58 = vld [vmem:[#allocation7 + $0x4f8] sm:$0xff] }
 0x8c6   :  { %v7800_v18 = vpack.c.bf16 %v3294_v21, %v3288_v29  ;;  %v7792_v14 = vpack.c.bf16 %v3450_v61, %v3444_v50  ;;  %v3650_v29 = vld [vmem:[#allocation7 + $0x4d0] sm:$0xff]  ;;  %v3653_v50 = vld [vmem:[#allocation7 + $0x4e8] sm:$0xff] }
 0x8c7   :  { %v7830_v11 = vpack.c.bf16 %v3650_v29, %v3648_v33  ;;  %v3654_v21 = vld [vmem:[#allocation7 + $0x4f0] sm:$0xff]  ;;  %v3657_v61 = vld [vmem:[#allocation7 + $0x508] sm:$0xff] }
 0x8c8   :  { %7793 = vmatprep.subr.bf16.mxu1 %v7792_v14 }
 0x8c9   :  { %7795 = vmatpush1.bf16.msra.mxu1 %v7794_v26  ;;  %v3652_v26 = vld [vmem:[#allocation7 + $0x4e0] sm:$0xff] }
 0x8ca   :  { %7797 = vmatprep.subr.bf16.mxu1 %v7796_v34  ;;  %v3651_v34 = vld [vmem:[#allocation7 + $0x4d8] sm:$0xff]  ;;  %v7834_v14 = vpack.c.bf16 %v3654_v21, %v3652_v26  ;;  %v3680_v26 = vld [vmem:[#allocation7 + $0x5c0] sm:$0xff]  ;;  %v3682_v21 = vld [vmem:[#allocation7 + $0x5d0] sm:$0xff] }
 0x8cb   :  { %v7828_v5 = vpack.c.bf16 %v3651_v34, %v3649_v39  ;;  %v3676_v39 = vld [vmem:[#allocation7 + $0x5a0] sm:$0xff]  ;;  %v3678_v34 = vld [vmem:[#allocation7 + $0x5b0] sm:$0xff] }
 0x8cc   :  { %6606 = vmatmul.mubr.msk.f32.vlgmr.msra.gmra.mrb[144].mxu1 %vm3456_vm1, %v3454_v41 }
 0x8cd   :  { %7799 = vmatpush1.bf16.msra.mxu1 %v7798_v63  ;;  %3533 = vmatprep.mubr.f32.mxu1 %v11977_v43  ;;  %v7822_v63 = vpack.c.bf16 %v3642_v7, %v3640_v19  ;;  %v3672_v19 = vld [vmem:[#allocation7 + $0x580] sm:$0xff]  ;;  %v3674_v7 = vld [vmem:[#allocation7 + $0x590] sm:$0xff] }
 0x8ce   :  { %7801 = vmatprep.subr.bf16.mxu1 %v7800_v18  ;;  %v3659_v18 = vld [vmem:[#allocation7 + $0x518] sm:$0xff] }
 0x8cf   :  { %v7836_v41 = vpack.c.bf16 %v3659_v18, %v3657_v61  ;;  %v3685_v61 = vld [vmem:[#allocation7 + $0x5e8] sm:$0xff]  ;;  %v3687_v18 = vld [vmem:[#allocation7 + $0x5f8] sm:$0xff] }
 0x8d0   :  { %6607 = vmatmul.mubr.msk.f32.gmra.mrb[146].mxu1 %vm3456_vm1, %v3455_v32  ;;  %v3661_v32 = vld [vmem:[#allocation7 + $0x528] sm:$0xff] }
 0x8d1   :  { %7803 = vmatpush1.bf16.msra.mxu1 %v7802_v16  ;;  %3610 = vmatprep.mubr.f32.mxu1 %v11977_v43  ;;  %v7832_v16 = vpack.c.bf16 %v3655_v58, %v3653_v50  ;;  %v7858_v58 = vpack.c.bf16 %v3678_v34, %v3676_v39  ;;  %v4165_v39 = vld [vmem:[#allocation9 + $0xb0] sm:$0xff]  ;;  %v4168_v34 = vld [vmem:[#allocation9 + $0xc8] sm:$0xff] }
 0x8d2   :  { %7805 = vmatprep.subr.bf16.mxu1 %v7804_v10  ;;  %v3663_v10 = vld [vmem:[#allocation7 + $0x538] sm:$0xff] }
 0x8d3   :  { %v7840_v4 = vpack.c.bf16 %v3663_v10, %v3661_v32  ;;  %v7866_v32 = vpack.c.bf16 %v3686_v9, %v3684_v6  ;;  %v4144_v10 = vld [vmem:[#allocation9 + $0x8] sm:$0xff]  ;;  %v4173_v6 = vld [vmem:[#allocation9 + $0xf0] sm:$0xff] }
 0x8d4   :  { %6608 = vmatmul.mubr.msk.f32.vlgmr.msra.gmra.mrb[144].mxu1 %vm3456_vm1, %v3297_v42  ;;  %v3665_v42 = vld [vmem:[#allocation7 + $0x548] sm:$0xff] }
 0x8d5   :  { %7807 = vmatpush1.bf16.msra.mxu1 %v7806_v35  ;;  %3616 = vmatprep.mubr.f32.mxu1 %v11977_v43  ;;  %v3667_v35 = vld [vmem:[#allocation7 + $0x558] sm:$0xff]  ;;  %v4176_v9 = vld [vmem:[#allocation9 + $0x108] sm:$0xff] }
 0x8d6   :  { %7809 = vmatprep.subr.bf16.mxu1 %v7808_v55  ;;  %v7842_v55 = vpack.c.bf16 %v3662_v3, %v3660_v13  ;;  %v7844_v28 = vpack.c.bf16 %v3667_v35, %v3665_v42  ;;  %v4148_v3 = vld [vmem:[#allocation9 + $0x28] sm:$0xff] }
 0x8d8   :  { %6609 = vmatmul.mubr.msk.f32.gmra.mrb[146].mxu1 %vm3456_vm1, %v3298_v0  ;;  %v3671_v0 = vld [vmem:[#allocation7 + $0x578] sm:$0xff] }
 0x8d9   :  { %7811 = vmatpush1.bf16.msra.mxu1 %v7810_v15  ;;  %3752 = vmatprep.mubr.f32.mxu1 %v11146_v24  ;;  %v3644_v24 = vld [vmem:[#allocation7 + $0x4a0] sm:$0xff]  ;;  %v7848_v62 = vpack.c.bf16 %v3671_v0, %v3669_v37  ;;  %v4158_v37 = vld [vmem:[#allocation9 + $0x78] sm:$0xff] }
 0x8da   :  { %7813 = vmatprep.subr.bf16.mxu1 %v7812_v40  ;;  %v7826_v38 = vpack.c.bf16 %v3646_v60, %v3644_v24  ;;  %v7854_v24 = vpack.c.bf16 %v3674_v7, %v3672_v19  ;;  %v7856_v60 = vpack.c.bf16 %v3679_v45, %v3677_v23  ;;  %v4161_v19 = vld [vmem:[#allocation9 + $0x90] sm:$0xff]  ;;  %v4164_v7 = vld [vmem:[#allocation9 + $0xa8] sm:$0xff]  ;;  %v4166_v23 = vld [vmem:[#allocation9 + $0xb8] sm:$0xff] }
 0x8dd   :  { %7815 = vmatpush1.bf16.msra.mxu1 %v7814_v1  ;;  %v3673_v1 = vld [vmem:[#allocation7 + $0x588] sm:$0xff] }
 0x8de   :  { %7817 = vmatprep.subr.bf16.mxu1 %v7816_v25  ;;  %v3675_v25 = vld [vmem:[#allocation7 + $0x598] sm:$0xff] }
 0x8e1   :  { %7819 = vmatpush1.bf16.msra.mxu1 %v7818_v17 }
 0x8e2   :  { %7821 = vmatprep.subr.bf16.mxu1 %v7820_v8  ;;  %v7852_v8 = vpack.c.bf16 %v3675_v25, %v3673_v1  ;;  %v4162_v1 = vld [vmem:[#allocation9 + $0x98] sm:$0xff] }
 0x8e5   :  { %7823 = vmatpush1.bf16.msra.mxu1 %v7822_v63 }
 0x8e6   :  { %7825 = vmatprep.subr.bf16.mxu1 %v7824_v57 }
 0x8e9   :  { %7827 = vmatpush1.bf16.msra.mxu1 %v7826_v38  ;;  %v3681_v38 = vld [vmem:[#allocation7 + $0x5c8] sm:$0xff] }
 0x8ea   :  { %7829 = vmatprep.subr.bf16.mxu1 %v7828_v5  ;;  %v3683_v5 = vld [vmem:[#allocation7 + $0x5d8] sm:$0xff] }
 0x8ed   :  { %7831 = vmatpush1.bf16.msra.mxu1 %v7830_v11 }
 0x8ee   :  { %7833 = vmatprep.subr.bf16.mxu1 %v7832_v16  ;;  %v7860_v16 = vpack.c.bf16 %v3683_v5, %v3681_v38  ;;  %v4170_v38 = vld [vmem:[#allocation9 + $0xd8] sm:$0xff] }
 0x8f1   :  { %7835 = vmatpush1.bf16.msra.mxu1 %v7834_v14  ;;  %v7862_v14 = vpack.c.bf16 %v3682_v21, %v3680_v26  ;;  %v4169_v26 = vld [vmem:[#allocation9 + $0xd0] sm:$0xff]  ;;  %v4172_v21 = vld [vmem:[#allocation9 + $0xe8] sm:$0xff] }
 0x8f2   :  { %7837 = vmatprep.subr.bf16.mxu1 %v7836_v41  ;;  %v7864_v41 = vpack.c.bf16 %v3687_v18, %v3685_v61  ;;  %v4174_v61 = vld [vmem:[#allocation9 + $0xf8] sm:$0xff] }
 0x8f5   :  { %7839 = vmatpush1.bf16.msra.mxu1 %v7838_v56  ;;  %v4146_v56 = vld [vmem:[#allocation9 + $0x18] sm:$0xff] }
 0x8f6   :  { %7841 = vmatprep.subr.bf16.mxu1 %v7840_v4  ;;  %v4143_v4 = vld [vmem:[#allocation9] sm:$0xff]  ;;  %v11227_v13 = vpack.c.bf16 %v4146_v56, %v4144_v10 }
 0x8f8   :  { %v11195_v15 = vpop.f32.mrb[92].mxu0  ;;  %8013 = vmatprep.subr.bf16.mxu0 %v11227_v13 }
 0x8f9   :  { %v11197_v40 = vpop.f32.mrb[93].mxu0  ;;  %7843 = vmatpush1.bf16.msra.mxu1 %v7842_v55 }
 0x8fa   :  { %7845 = vmatprep.subr.bf16.mxu1 %v7844_v28  ;;  %v4151_v28 = vld [vmem:[#allocation9 + $0x40] sm:$0xff] }
 0x8fb   :  { %v11242_v0 = vpack.c.bf16 %v4153_v48, %v4151_v28  ;;  %v4184_v28 = vld [vmem:[#allocation9 + $0x148] sm:$0xff]  ;;  %v4186_v48 = vld [vmem:[#allocation9 + $0x158] sm:$0xff] }
 0x8fc   :  { %v11199_v27 = vpop.f32.mrb[94].mxu0 }
 0x8fd   :  { %v7942_v47 = vpack.c.bf16 %v11199_v27, %v11195_v15  ;;  %v11203_v53 = vpop.f32.mrb[95].mxu0  ;;  %7847 = vmatpush1.bf16.msra.mxu1 %v7846_v22  ;;  %v11244_v22 = vpack.c.bf16 %v4158_v37, %v4156_v30  ;;  %v7988_v37 = vpack.c.bf16 %v4186_v48, %v4184_v28  ;;  %v4023_v15 = vld [vmem:[#allocation6 + $0x38] sm:$0xff]  ;;  %v4188_v27 = vld [vmem:[#allocation9 + $0x168] sm:$0xff] }
 0x8fe   :  { %v7940_v17 = vpack.c.bf16 %v11203_v53, %v11197_v40  ;;  %7849 = vmatprep.subr.bf16.mxu1 %v7848_v62  ;;  %v4155_v62 = vld [vmem:[#allocation9 + $0x60] sm:$0xff]  ;;  %v4022_v40 = vld [vmem:[#allocation6 + $0x30] sm:$0xff] }
 0x8ff   :  { %v11248_v25 = vpack.c.bf16 %v4157_v49, %v4155_v62  ;;  %v4183_v62 = vld [vmem:[#allocation9 + $0x140] sm:$0xff]  ;;  %v4185_v49 = vld [vmem:[#allocation9 + $0x150] sm:$0xff] }
 0x900   :  { %v11207_v63 = vpop.f32.mrb[96].mxu0 }
 0x901   :  { %v11209_v57 = vpop.f32.mrb[97].mxu0  ;;  %7851 = vmatpush1.bf16.msra.mxu1 %v7850_v31  ;;  %v11250_v31 = vpack.c.bf16 %v4162_v1, %v4160_v52  ;;  %v7990_v52 = vpack.c.bf16 %v4185_v49, %v4183_v62 }
 0x902   :  { %7853 = vmatprep.subr.bf16.mxu1 %v7852_v8  ;;  %v4159_v8 = vld [vmem:[#allocation9 + $0x80] sm:$0xff] }
 0x903   :  { %v11254_v45 = vpack.c.bf16 %v4161_v19, %v4159_v8 }
 0x904   :  { %v11211_v33 = vpop.f32.mrb[98].mxu0 }
 0x905   :  { %v7946_v29 = vpack.c.bf16 %v11211_v33, %v11207_v63  ;;  %v11215_v50 = vpop.f32.mrb[99].mxu0  ;;  %7855 = vmatpush1.bf16.msra.mxu1 %v7854_v24  ;;  %v11256_v24 = vpack.c.bf16 %v4166_v23, %v4164_v7  ;;  %v4189_v63 = vld [vmem:[#allocation9 + $0x170] sm:$0xff]  ;;  %v4192_v33 = vld [vmem:[#allocation9 + $0x188] sm:$0xff] }
 0x906   :  { %v7944_v11 = vpack.c.bf16 %v11215_v50, %v11209_v57  ;;  %7857 = vmatprep.subr.bf16.mxu1 %v7856_v60  ;;  %v4163_v60 = vld [vmem:[#allocation9 + $0xa0] sm:$0xff] }
 0x907   :  { %v11260_v5 = vpack.c.bf16 %v4165_v39, %v4163_v60 }
 0x909   :  { %7859 = vmatpush1.bf16.msra.mxu1 %v7858_v58  ;;  %v11262_v58 = vpack.c.bf16 %v4170_v38, %v4168_v34 }
 0x90a   :  { %7861 = vmatprep.subr.bf16.mxu1 %v7860_v16  ;;  %v4167_v16 = vld [vmem:[#allocation9 + $0xc0] sm:$0xff] }
 0x90b   :  { %v11266_v18 = vpack.c.bf16 %v4169_v26, %v4167_v16 }
 0x90d   :  { %7863 = vmatpush1.bf16.msra.mxu1 %v7862_v14  ;;  %v11268_v14 = vpack.c.bf16 %v4174_v61, %v4172_v21  ;;  %v3778_v61 = vld [vmem:[#allocation6 + $0x20] sm:$0xff] }
 0x90e   :  { %7865 = vmatprep.subr.bf16.mxu1 %v7864_v41  ;;  %v4171_v41 = vld [vmem:[#allocation9 + $0xe0] sm:$0xff] }
 0x90f   :  { %v11272_v10 = vpack.c.bf16 %v4173_v6, %v4171_v41  ;;  %v3779_v41 = vld [vmem:[#allocation6 + $0x28] sm:$0xff]  ;;  %v4206_v6 = vld [vmem:[#allocation9 + $0x1f8] sm:$0xff] }
 0x911   :  { %7867 = vmatpush1.bf16.msra.mxu1 %v7866_v32  ;;  %v4178_v32 = vld [vmem:[#allocation9 + $0x118] sm:$0xff] }
 0x912   :  { %v11274_v56 = vpack.c.bf16 %v4178_v32, %v4176_v9  ;;  %v4203_v32 = vld [vmem:[#allocation9 + $0x1e0] sm:$0xff] }
 0x914   :  { %3753 = vmatmul.mubr.f32.vlgmr.msra.gmra.mrb[148].mxu1 %v11148_v54  ;;  %v4145_v54 = vld [vmem:[#allocation9 + $0x10] sm:$0xff] }
 0x915   :  { %3758 = vmatprep.mubr.f32.mxu1 %v11152_v59  ;;  %v4150_v59 = vld [vmem:[#allocation9 + $0x38] sm:$0xff]  ;;  %v11229_v42 = vpack.c.bf16 %v4145_v54, %v4143_v4  ;;  %v4175_v4 = vld [vmem:[#allocation9 + $0x100] sm:$0xff]  ;;  %v4177_v54 = vld [vmem:[#allocation9 + $0x110] sm:$0xff] }
 0x917   :  { %8015 = vmatpush1.bf16.msra.mxu0 %v11229_v42 }
 0x918   :  { %3759 = vmatmul.mubr.f32.gmra.mrb[150].mxu1 %v11158_v36  ;;  %v11232_v36 = vpack.c.bf16 %v4150_v59, %v4148_v3  ;;  %v4180_v3 = vld [vmem:[#allocation9 + $0x128] sm:$0xff]  ;;  %v4182_v59 = vld [vmem:[#allocation9 + $0x138] sm:$0xff] }
 0x919   :  { %3764 = vmatprep.mubr.f32.mxu1 %v11160_v51  ;;  %v4147_v51 = vld [vmem:[#allocation9 + $0x20] sm:$0xff] }
 0x91a   :  { %8017 = vmatprep.subr.bf16.mxu0 %v11232_v36 }
 0x91c   :  { %3765 = vmatmul.mubr.f32.gmra.mrb[152].mxu1 %v11166_v46  ;;  %v4149_v46 = vld [vmem:[#allocation9 + $0x30] sm:$0xff] }
 0x91d   :  { %3770 = vmatprep.mubr.f32.mxu1 %v11168_v12  ;;  %v4152_v12 = vld [vmem:[#allocation9 + $0x48] sm:$0xff]  ;;  %v11236_v35 = vpack.c.bf16 %v4149_v46, %v4147_v51  ;;  %v11278_v51 = vpack.c.bf16 %v4177_v54, %v4175_v4  ;;  %v11280_v46 = vpack.c.bf16 %v4182_v59, %v4180_v3  ;;  %v4565_v54 = vld [vmem:[#allocation13 + $0x218] sm:$0xff] }
 0x91e   :  { %v4563_v4 = vld [vmem:[#allocation13 + $0x208] sm:$0xff] }
 0x91f   :  { %8019 = vmatpush1.bf16.msra.mxu0 %v11236_v35  ;;  %v4420_v3 = vld [vmem:[#allocation13 + $0x8] sm:$0xff]  ;;  %v8140_v59 = vpack.c.bf16 %v4565_v54, %v4563_v4  ;;  %v4573_v54 = vld [vmem:[#allocation13 + $0x258] sm:$0xff] }
 0x920   :  { %3771 = vmatmul.mubr.f32.gmra.mrb[154].mxu1 %v11174_v2  ;;  %v4154_v2 = vld [vmem:[#allocation9 + $0x58] sm:$0xff]  ;;  %v4571_v4 = vld [vmem:[#allocation13 + $0x248] sm:$0xff] }
 0x921   :  { %3850 = vmatprep.mubr.f32.mxu1 %v11977_v43  ;;  %v11238_v55 = vpack.c.bf16 %v4154_v2, %v4152_v12  ;;  %v4179_v12 = vld [vmem:[#allocation9 + $0x120] sm:$0xff]  ;;  %v4181_v2 = vld [vmem:[#allocation9 + $0x130] sm:$0xff] }
 0x922   :  { %v7986_v30 = vpack.c.bf16 %v4181_v2, %v4179_v12 }
 0x923   :  { %8021 = vmatprep.subr.bf16.mxu0 %v11238_v55 }
 0x924   :  { %8023 = vmatpush1.bf16.msra.mxu0 %v11242_v0 }
 0x925   :  { %8025 = vmatprep.subr.bf16.mxu0 %v11244_v22 }
 0x928   :  { %8027 = vmatpush1.bf16.msra.mxu0 %v11248_v25 }
 0x929   :  { %8029 = vmatprep.subr.bf16.mxu0 %v11250_v31 }
 0x92c   :  { %8031 = vmatpush1.bf16.msra.mxu0 %v11254_v45 }
 0x92d   :  { %8033 = vmatprep.subr.bf16.mxu0 %v11256_v24 }
 0x930   :  { %8035 = vmatpush1.bf16.msra.mxu0 %v11260_v5 }
 0x931   :  { %8037 = vmatprep.subr.bf16.mxu0 %v11262_v58 }
 0x934   :  { %8039 = vmatpush1.bf16.msra.mxu0 %v11266_v18 }
 0x935   :  { %8041 = vmatprep.subr.bf16.mxu0 %v11268_v14 }
 0x938   :  { %8043 = vmatpush1.bf16.msra.mxu0 %v11272_v10 }
 0x939   :  { %8045 = vmatprep.subr.bf16.mxu0 %v11274_v56 }
 0x93c   :  { %8047 = vmatpush1.bf16.msra.mxu0 %v11278_v51 }
 0x93d   :  { %8049 = vmatprep.subr.bf16.mxu0 %v11280_v46 }
 0x940   :  { %8051 = vmatpush1.bf16.msra.mxu0 %v7986_v30 }
 0x941   :  { %8053 = vmatprep.subr.bf16.mxu0 %v7988_v37 }
 0x944   :  { %8055 = vmatpush1.bf16.msra.mxu0 %v7990_v52 }
 0x9e7   :  { %v3754_v1 = vpop.f32.mrb[148].mxu1 }
 0x9e8   :  { %v3756_v8 = vpop.f32.mrb[149].mxu1 }
 0x9eb   :  { %v3760_v19 = vpop.f32.mrb[150].mxu1 }
 0x9ec   :  { %v7870_v7 = vpack.c.bf16 %v3760_v19, %v3754_v1  ;;  %v3762_v23 = vpop.f32.mrb[151].mxu1 }
 0x9ed   :  { %v7868_v60 = vpack.c.bf16 %v3762_v23, %v3756_v8 }
 0x9ef   :  { %v3766_v39 = vpop.f32.mrb[152].mxu1  ;;  %7869 = vmatprep.subr.bf16.mxu1 %v7868_v60 }
 0x9f0   :  { %v3768_v34 = vpop.f32.mrb[153].mxu1  ;;  %7871 = vmatpush1.bf16.msra.mxu1 %v7870_v7 }
 0x9f3   :  { %v3772_v38 = vpop.f32.mrb[154].mxu1 }
 0x9f4   :  { %v7874_v16 = vpack.c.bf16 %v3772_v38, %v3766_v39  ;;  %v3774_v26 = vpop.f32.mrb[155].mxu1 }
 0x9f5   :  { %v7872_v21 = vpack.c.bf16 %v3774_v26, %v3768_v34 }
 0x9f7   :  { %7873 = vmatprep.subr.bf16.mxu1 %v7872_v21 }
 0x9f8   :  { %7875 = vmatpush1.bf16.msra.mxu1 %v7874_v16 }
 0x9f9   :  { %7941 = vmatprep.subr.bf16.mxu1 %v7940_v17  ;;  %v4187_v17 = vld [vmem:[#allocation9 + $0x160] sm:$0xff] }
 0x9fa   :  { %v7994_v57 = vpack.c.bf16 %v4189_v63, %v4187_v17  ;;  %v4419_v17 = vld [vmem:[#allocation13] sm:$0xff]  ;;  %v4421_v63 = vld [vmem:[#allocation13 + $0x10] sm:$0xff] }
 0x9fb   :  { %6610 = vmatmul.mubr.msk.f32.vlgmr.msra.gmra.mrb[144].mxu1 %vm3456_vm1, %v3778_v61 }
 0x9fc   :  { %7943 = vmatpush1.bf16.msra.mxu1 %v7942_v47  ;;  %3856 = vmatprep.mubr.f32.mxu1 %v11977_v43  ;;  %v4190_v47 = vld [vmem:[#allocation9 + $0x178] sm:$0xff] }
 0x9fd   :  { %7945 = vmatprep.subr.bf16.mxu1 %v7944_v11  ;;  %v7992_v53 = vpack.c.bf16 %v4190_v47, %v4188_v27  ;;  %v4191_v11 = vld [vmem:[#allocation9 + $0x180] sm:$0xff] }
 0x9ff   :  { %6611 = vmatmul.mubr.msk.f32.gmra.mrb[146].mxu1 %vm3456_vm1, %v3779_v41  ;;  %8057 = vmatprep.subr.bf16.mxu0 %v7992_v53 }
 0xa00   :  { %7947 = vmatpush1.bf16.msra.mxu1 %v7946_v29  ;;  %4094 = vmatprep.mubr.f32.mxu1 %v11977_v43  ;;  %v4194_v29 = vld [vmem:[#allocation9 + $0x198] sm:$0xff] }
 0xa01   :  { %7949 = vmatprep.subr.bf16.mxu1 %v11227_v13  ;;  %8059 = vmatpush1.bf16.msra.mxu0 %v7994_v57  ;;  %v7996_v50 = vpack.c.bf16 %v4194_v29, %v4192_v33  ;;  %v4193_v13 = vld [vmem:[#allocation9 + $0x190] sm:$0xff] }
 0xa02   :  { %v4424_v29 = vld [vmem:[#allocation13 + $0x28] sm:$0xff] }
 0xa03   :  { %6612 = vmatmul.mubr.msk.f32.vlgmr.msra.gmra.mrb[144].mxu1 %vm3456_vm1, %v4022_v40  ;;  %8061 = vmatprep.subr.bf16.mxu0 %v7996_v50 }
 0xa04   :  { %4100 = vmatprep.mubr.f32.mxu1 %v11977_v43  ;;  %7951 = vmatpush1.bf16.msra.mxu1 %v11229_v42  ;;  %v7998_v42 = vpack.c.bf16 %v4193_v13, %v4191_v11  ;;  %v4562_v13 = vld [vmem:[#allocation13 + $0x200] sm:$0xff] }
 0xa05   :  { %7953 = vmatprep.subr.bf16.mxu1 %v11232_v36  ;;  %v4196_v36 = vld [vmem:[#allocation9 + $0x1a8] sm:$0xff] }
 0xa06   :  { %8063 = vmatpush1.bf16.msra.mxu0 %v7998_v42 }
 0xa07   :  { %6613 = vmatmul.mubr.msk.f32.gmra.mrb[146].mxu1 %vm3456_vm1, %v4023_v15 }
 0xa08   :  { %7955 = vmatpush1.bf16.msra.mxu1 %v11236_v35  ;;  %v4198_v35 = vld [vmem:[#allocation9 + $0x1b8] sm:$0xff] }
 0xa09   :  { %7957 = vmatprep.subr.bf16.mxu1 %v11238_v55  ;;  %v8000_v55 = vpack.c.bf16 %v4198_v35, %v4196_v36 }
 0xa0b   :  { %8065 = vmatprep.subr.bf16.mxu0 %v8000_v55 }
 0xa0c   :  { %7959 = vmatpush1.bf16.msra.mxu1 %v11242_v0  ;;  %v4195_v0 = vld [vmem:[#allocation9 + $0x1a0] sm:$0xff] }
 0xa0d   :  { %7961 = vmatprep.subr.bf16.mxu1 %v11244_v22  ;;  %v4197_v22 = vld [vmem:[#allocation9 + $0x1b0] sm:$0xff] }
 0xa10   :  { %7963 = vmatpush1.bf16.msra.mxu1 %v11248_v25  ;;  %v8002_v25 = vpack.c.bf16 %v4197_v22, %v4195_v0  ;;  %v4567_v0 = vld [vmem:[#allocation13 + $0x228] sm:$0xff]  ;;  %v4569_v22 = vld [vmem:[#allocation13 + $0x238] sm:$0xff] }
 0xa11   :  { %7965 = vmatprep.subr.bf16.mxu1 %v11250_v31  ;;  %v4200_v31 = vld [vmem:[#allocation9 + $0x1c8] sm:$0xff] }
 0xa12   :  { %8067 = vmatpush1.bf16.msra.mxu0 %v8002_v25 }
 0xa14   :  { %7967 = vmatpush1.bf16.msra.mxu1 %v11254_v45  ;;  %v4202_v45 = vld [vmem:[#allocation9 + $0x1d8] sm:$0xff] }
 0xa15   :  { %7969 = vmatprep.subr.bf16.mxu1 %v11256_v24  ;;  %v8004_v24 = vpack.c.bf16 %v4202_v45, %v4200_v31  ;;  %v4423_v45 = vld [vmem:[#allocation13 + $0x20] sm:$0xff] }
 0xa17   :  { %8069 = vmatprep.subr.bf16.mxu0 %v8004_v24 }
 0xa18   :  { %7971 = vmatpush1.bf16.msra.mxu1 %v11260_v5  ;;  %v4199_v5 = vld [vmem:[#allocation9 + $0x1c0] sm:$0xff] }
 0xa19   :  { %7973 = vmatprep.subr.bf16.mxu1 %v11262_v58  ;;  %v4201_v58 = vld [vmem:[#allocation9 + $0x1d0] sm:$0xff] }
 0xa1c   :  { %7975 = vmatpush1.bf16.msra.mxu1 %v11266_v18  ;;  %v8006_v18 = vpack.c.bf16 %v4201_v58, %v4199_v5 }
 0xa1d   :  { %7977 = vmatprep.subr.bf16.mxu1 %v11268_v14  ;;  %v4204_v14 = vld [vmem:[#allocation9 + $0x1e8] sm:$0xff] }
 0xa1e   :  { %8071 = vmatpush1.bf16.msra.mxu0 %v8006_v18  ;;  %v8008_v9 = vpack.c.bf16 %v4206_v6, %v4204_v14  ;;  %v4430_v14 = vld [vmem:[#allocation13 + $0x58] sm:$0xff] }
 0xa20   :  { %7979 = vmatpush1.bf16.msra.mxu1 %v11272_v10  ;;  %v4205_v10 = vld [vmem:[#allocation9 + $0x1f0] sm:$0xff]  ;;  %8073 = vmatprep.subr.bf16.mxu0 %v8008_v9 }
 0xa21   :  { %7981 = vmatprep.subr.bf16.mxu1 %v11274_v56  ;;  %v8010_v56 = vpack.c.bf16 %v4205_v10, %v4203_v32  ;;  %v4566_v32 = vld [vmem:[#allocation13 + $0x220] sm:$0xff]  ;;  %v4568_v10 = vld [vmem:[#allocation13 + $0x230] sm:$0xff] }
 0xa23   :  { %8075 = vmatpush1.bf16.msra.mxu0 %v8010_v56 }
 0xa24   :  { %7983 = vmatpush1.bf16.msra.mxu1 %v11278_v51  ;;  %v4422_v51 = vld [vmem:[#allocation13 + $0x18] sm:$0xff]  ;;  %8141 = vmatprep.subr.bf16.mxu0 %v8140_v59  ;;  %v4427_v59 = vld [vmem:[#allocation13 + $0x40] sm:$0xff] }
 0xa25   :  { %7985 = vmatprep.subr.bf16.mxu1 %v11280_v46  ;;  %v8076_v46 = vpack.c.bf16 %v4422_v51, %v4420_v3  ;;  %v4429_v51 = vld [vmem:[#allocation13 + $0x50] sm:$0xff] }
 0xa28   :  { %7987 = vmatpush1.bf16.msra.mxu1 %v7986_v30 }
 0xa29   :  { %7989 = vmatprep.subr.bf16.mxu1 %v7988_v37 }
 0xa2c   :  { %7991 = vmatpush1.bf16.msra.mxu1 %v7990_v52 }
 0xa2d   :  { %7993 = vmatprep.subr.bf16.mxu1 %v7992_v53 }
 0xa30   :  { %7995 = vmatpush1.bf16.msra.mxu1 %v7994_v57 }
 0xa31   :  { %7997 = vmatprep.subr.bf16.mxu1 %v7996_v50  ;;  %v4426_v50 = vld [vmem:[#allocation13 + $0x38] sm:$0xff] }
 0xa32   :  { %v8080_v31 = vpack.c.bf16 %v4426_v50, %v4424_v29  ;;  %v4580_v29 = vld [vmem:[#allocation13 + $0x290] sm:$0xff] }
 0xa34   :  { %7999 = vmatpush1.bf16.msra.mxu1 %v7998_v42  ;;  %v4564_v42 = vld [vmem:[#allocation13 + $0x210] sm:$0xff] }
 0xa35   :  { %8001 = vmatprep.subr.bf16.mxu1 %v8000_v55  ;;  %v8078_v55 = vpack.c.bf16 %v4421_v63, %v4419_v17  ;;  %v8142_v58 = vpack.c.bf16 %v4564_v42, %v4562_v13  ;;  %v4440_v17 = vld [vmem:[#allocation13 + $0xa8] sm:$0xff]  ;;  %v4442_v63 = vld [vmem:[#allocation13 + $0xb8] sm:$0xff] }
 0xa36   :  { %v4585_v13 = vld [vmem:[#allocation13 + $0x2b8] sm:$0xff]  ;;  %v8096_v42 = vpack.c.bf16 %v4442_v63, %v4440_v17  ;;  %v4598_v63 = vld [vmem:[#allocation13 + $0x320] sm:$0xff] }
 0xa37   :  { %v4458_v17 = vld [vmem:[#allocation13 + $0x138] sm:$0xff] }
 0xa38   :  { %8003 = vmatpush1.bf16.msra.mxu1 %v8002_v25 }
 0xa39   :  { %8005 = vmatprep.subr.bf16.mxu1 %v8004_v24  ;;  %v4425_v24 = vld [vmem:[#allocation13 + $0x30] sm:$0xff] }
 0xa3c   :  { %8007 = vmatpush1.bf16.msra.mxu1 %v8006_v18  ;;  %v4428_v18 = vld [vmem:[#allocation13 + $0x48] sm:$0xff] }
 0xa3d   :  { %8009 = vmatprep.subr.bf16.mxu1 %v8008_v9  ;;  %v8144_v9 = vpack.c.bf16 %v4569_v22, %v4567_v0  ;;  %v8084_v3 = vpack.c.bf16 %v4430_v14, %v4428_v18  ;;  %v4444_v0 = vld [vmem:[#allocation13 + $0xc8] sm:$0xff]  ;;  %v4446_v22 = vld [vmem:[#allocation13 + $0xd8] sm:$0xff]  ;;  %v4443_v14 = vld [vmem:[#allocation13 + $0xc0] sm:$0xff] }
 0xa3e   :  { %v8100_v18 = vpack.c.bf16 %v4446_v22, %v4444_v0  ;;  %v4462_v0 = vld [vmem:[#allocation13 + $0x158] sm:$0xff]  ;;  %v4602_v22 = vld [vmem:[#allocation13 + $0x340] sm:$0xff] }
 0xa40   :  { %8011 = vmatpush1.bf16.msra.mxu1 %v8010_v56  ;;  %v8082_v56 = vpack.c.bf16 %v4425_v24, %v4423_v45  ;;  %v4584_v45 = vld [vmem:[#allocation13 + $0x2b0] sm:$0xff] }
 0xa41   :  { %8077 = vmatprep.subr.bf16.mxu1 %v8076_v46  ;;  %v8146_v46 = vpack.c.bf16 %v4568_v10, %v4566_v32  ;;  %v4448_v32 = vld [vmem:[#allocation13 + $0xe8] sm:$0xff]  ;;  %v4450_v10 = vld [vmem:[#allocation13 + $0xf8] sm:$0xff] }
 0xad6   :  { %v11322_v12 = vpop.f32.mrb[144].mxu1 }
 0xad7   :  { %v11324_v2 = vpop.f32.mrb[145].mxu1  ;;  %v4125_v48 = vmul.f32 %v11322_v12, %v11322_v12 }
 0xad8   :  { %v4126_v49 = vmul.f32 %v11324_v2, %v11324_v2 }
 0xada   :  { %v11326_v28 = vpop.f32.mrb[146].mxu1 }
 0xadb   :  { %v4111_v30 = vadd.f32 %v11326_v28, %v11322_v12  ;;  %v4127_v37 = vmul.f32 %v11326_v28, %v11326_v28  ;;  %v11334_v62 = vpop.f32.mrb[147].mxu1 }
 0xadc   :  { %v4118_v52 = vadd.f32 %v11334_v62, %v11324_v2  ;;  %v4128_v1 = vmul.f32 %v11334_v62, %v11334_v62 }
 0xadd   :  { %v4112_v8 = vrot.slane %v4111_v30, 4  ;;  %v4129_v19 = vadd.f32 %v4127_v37, %v4125_v48  ;;  %v4432_v48 = vld [vmem:[#allocation13 + $0x68] sm:$0xff]  ;;  %v8148_v37 = vpack.c.bf16 %v4573_v54, %v4571_v4  ;;  %v4586_v4 = vld [vmem:[#allocation13 + $0x2c0] sm:$0xff]  ;;  %v4588_v54 = vld [vmem:[#allocation13 + $0x2d0] sm:$0xff] }
 0xade   :  { %v4119_v7 = vrot.slane %v4118_v52, 4  ;;  %v4136_v23 = vadd.f32 %v4128_v1, %v4126_v49  ;;  %v4570_v49 = vld [vmem:[#allocation13 + $0x240] sm:$0xff]  ;;  %v8086_v1 = vpack.c.bf16 %v4429_v51, %v4427_v59  ;;  %v4591_v59 = vld [vmem:[#allocation13 + $0x2e8] sm:$0xff]  ;;  %v4593_v51 = vld [vmem:[#allocation13 + $0x2f8] sm:$0xff] }
 0xadf   :  { %v4113_v60 = vadd.f32 %v4112_v8, %v4111_v30  ;;  %v4130_v39 = vrot.slane %v4129_v19, 4  ;;  %v4434_v30 = vld [vmem:[#allocation13 + $0x78] sm:$0xff]  ;;  %v4575_v8 = vld [vmem:[#allocation13 + $0x268] sm:$0xff] }
 0xae0   :  { %v4120_v34 = vadd.f32 %v4119_v7, %v4118_v52  ;;  %v4137_v38 = vrot.slane %v4136_v23, 4  ;;  %v4572_v52 = vld [vmem:[#allocation13 + $0x250] sm:$0xff]  ;;  %v8088_v7 = vpack.c.bf16 %v4434_v30, %v4432_v48  ;;  %v4447_v48 = vld [vmem:[#allocation13 + $0xe0] sm:$0xff] }
 0xae1   :  { %v4114_v16 = vrot.slane %v4113_v60, 2  ;;  %v4131_v26 = vadd.f32 %v4130_v39, %v4129_v19  ;;  %v4577_v19 = vld [vmem:[#allocation13 + $0x278] sm:$0xff]  ;;  %v8150_v39 = vpack.c.bf16 %v4572_v52, %v4570_v49  ;;  %v4449_v30 = vld [vmem:[#allocation13 + $0xf0] sm:$0xff]  ;;  %v8168_v49 = vpack.c.bf16 %v4593_v51, %v4591_v59  ;;  %v4590_v52 = vld [vmem:[#allocation13 + $0x2e0] sm:$0xff] }
 0xae2   :  { %v4121_v21 = vrot.slane %v4120_v34, 2  ;;  %v4138_v61 = vadd.f32 %v4137_v38, %v4136_v23  ;;  %v4431_v23 = vld [vmem:[#allocation13 + $0x60] sm:$0xff]  ;;  %v4438_v38 = vld [vmem:[#allocation13 + $0x98] sm:$0xff] }
 0xae3   :  { %v4115_v41 = vadd.f32 %v4114_v16, %v4113_v60  ;;  %v4132_v40 = vrot.slane %v4131_v26, 2  ;;  %v4433_v60 = vld [vmem:[#allocation13 + $0x70] sm:$0xff]  ;;  %v8152_v16 = vpack.c.bf16 %v4577_v19, %v4575_v8  ;;  %v8106_v8 = vpack.c.bf16 %v4449_v30, %v4447_v48  ;;  %v4595_v19 = vld [vmem:[#allocation13 + $0x308] sm:$0xff]  ;;  %v4613_v48 = vld [vmem:[#allocation13 + $0x398] sm:$0xff] }
 0xae4   :  { %v4122_v15 = vadd.f32 %v4121_v21, %v4120_v34  ;;  %v4139_v27 = vrot.slane %v4138_v61, 2  ;;  %v4436_v34 = vld [vmem:[#allocation13 + $0x88] sm:$0xff]  ;;  %v4576_v21 = vld [vmem:[#allocation13 + $0x270] sm:$0xff] }
 0xae5   :  { %v4116_v47 = vrot.slane %v4115_v41, 1  ;;  %v4133_v53 = vadd.f32 %v4132_v40, %v4131_v26  ;;  %v4574_v26 = vld [vmem:[#allocation13 + $0x260] sm:$0xff]  ;;  %v4581_v40 = vld [vmem:[#allocation13 + $0x298] sm:$0xff] }
 0xae6   :  { %v4123_v57 = vrot.slane %v4122_v15, 1  ;;  %v4140_v33 = vadd.f32 %v4139_v27, %v4138_v61  ;;  %v8090_v61 = vpack.c.bf16 %v4433_v60, %v4431_v23  ;;  %v4435_v27 = vld [vmem:[#allocation13 + $0x80] sm:$0xff] }
 0xae7   :  { %v4134_v11 = vrot.slane %v4133_v53, 1  ;;  %v4117_v25 = vadd.f32 %v4116_v47, %v4115_v41  ;;  %v4579_v41 = vld [vmem:[#allocation13 + $0x288] sm:$0xff]  ;;  %v4437_v47 = vld [vmem:[#allocation13 + $0x90] sm:$0xff] }
 0xae8   :  { %v4124_v36 = vadd.f32 %v4123_v57, %v4122_v15  ;;  %v4141_v35 = vrot.slane %v4140_v33, 1  ;;  %v8092_v15 = vpack.c.bf16 %v4438_v38, %v4436_v34  ;;  %v8156_v57 = vpack.c.bf16 %v4581_v40, %v4579_v41  ;;  %v4454_v34 = vld [vmem:[#allocation13 + $0x118] sm:$0xff]  ;;  %v4594_v38 = vld [vmem:[#allocation13 + $0x300] sm:$0xff] }
 0xae9   :  { %v4135_v6 = vadd.f32 %v4134_v11, %v4133_v53  ;;  %v8154_v53 = vpack.c.bf16 %v4576_v21, %v4574_v26  ;;  %v8094_v50 = vpack.c.bf16 %v4437_v47, %v4435_v27  ;;  %v4583_v11 = vld [vmem:[#allocation13 + $0x2a8] sm:$0xff]  ;;  %v4596_v26 = vld [vmem:[#allocation13 + $0x310] sm:$0xff]  ;;  %v4451_v21 = vld [vmem:[#allocation13 + $0x100] sm:$0xff] }
 0xaea   :  { %4271 = vmatprep.mubr.f32.mxu1 %v4124_v36  ;;  %v4142_v5 = vadd.f32 %v4141_v35, %v4140_v33  ;;  %v4578_v33 = vld [vmem:[#allocation13 + $0x280] sm:$0xff]  ;;  %v4441_v35 = vld [vmem:[#allocation13 + $0xb0] sm:$0xff]  ;;  %v8174_v41 = vpack.c.bf16 %v4596_v26, %v4594_v38  ;;  %v4601_v27 = vld [vmem:[#allocation13 + $0x338] sm:$0xff] }
 0xaeb   :  { %4272 = vmatmul.mubr.f32.vlgmr.msra.gmra.mrb[156].mxu1 %v4117_v25  ;;  %v4439_v36 = vld [vmem:[#allocation13 + $0xa0] sm:$0xff]  ;;  %v8160_v25 = vpack.c.bf16 %v4585_v13, %v4583_v11  ;;  %v4472_v38 = vld [vmem:[#allocation13 + $0x1a8] sm:$0xff]  ;;  %v4474_v26 = vld [vmem:[#allocation13 + $0x1b8] sm:$0xff] }
 0xaec   :  { %4342 = vmatprep.mubr.f32.mxu0 %v4142_v5  ;;  %8079 = vmatpush1.bf16.msra.mxu1 %v8078_v55  ;;  %v8158_v55 = vpack.c.bf16 %v4580_v29, %v4578_v33  ;;  %v8098_v24 = vpack.c.bf16 %v4441_v35, %v4439_v36  ;;  %v4587_v5 = vld [vmem:[#allocation13 + $0x2c8] sm:$0xff]  ;;  %v4600_v33 = vld [vmem:[#allocation13 + $0x330] sm:$0xff]  ;;  %v4455_v29 = vld [vmem:[#allocation13 + $0x120] sm:$0xff] }
 0xaed   :  { %4343 = vmatmul.mubr.f32.vlgmr.msra.gmra.mrb[100].mxu0 %v4135_v6  ;;  %8081 = vmatprep.subr.bf16.mxu1 %v8080_v31  ;;  %v4582_v31 = vld [vmem:[#allocation13 + $0x2a0] sm:$0xff]  ;;  %v4445_v6 = vld [vmem:[#allocation13 + $0xd0] sm:$0xff]  ;;  %v8178_v11 = vpack.c.bf16 %v4600_v33, %v4598_v63  ;;  %v4605_v36 = vld [vmem:[#allocation13 + $0x358] sm:$0xff] }
 0xaee   :  { %8143 = vmatpush1.bf16.msra.mxu0 %v8142_v58  ;;  %v4589_v58 = vld [vmem:[#allocation13 + $0x2d8] sm:$0xff]  ;;  %v4476_v63 = vld [vmem:[#allocation13 + $0x1c8] sm:$0xff] }
 0xaef   :  { %8145 = vmatprep.subr.bf16.mxu0 %v8144_v9  ;;  %v8162_v9 = vpack.c.bf16 %v4584_v45, %v4582_v31  ;;  %v4604_v31 = vld [vmem:[#allocation13 + $0x350] sm:$0xff]  ;;  %v4459_v45 = vld [vmem:[#allocation13 + $0x140] sm:$0xff] }
 0xaf0   :  { %8083 = vmatpush1.bf16.msra.mxu1 %v8082_v56  ;;  %v8164_v56 = vpack.c.bf16 %v4589_v58, %v4587_v5  ;;  %v8182_v5 = vpack.c.bf16 %v4604_v31, %v4602_v22  ;;  %v4482_v31 = vld [vmem:[#allocation13 + $0x1f8] sm:$0xff] }
 0xaf1   :  { %8085 = vmatprep.subr.bf16.mxu1 %v8084_v3  ;;  %v8102_v3 = vpack.c.bf16 %v4445_v6, %v4443_v14  ;;  %v4609_v14 = vld [vmem:[#allocation13 + $0x378] sm:$0xff] }
 0xaf2   :  { %8147 = vmatpush1.bf16.msra.mxu0 %v8146_v46  ;;  %v8104_v46 = vpack.c.bf16 %v4450_v10, %v4448_v32  ;;  %v4466_v32 = vld [vmem:[#allocation13 + $0x178] sm:$0xff]  ;;  %v4606_v10 = vld [vmem:[#allocation13 + $0x360] sm:$0xff] }
 0xaf3   :  { %8149 = vmatprep.subr.bf16.mxu0 %v8148_v37  ;;  %v8166_v37 = vpack.c.bf16 %v4588_v54, %v4586_v4  ;;  %v4608_v4 = vld [vmem:[#allocation13 + $0x370] sm:$0xff]  ;;  %v4463_v54 = vld [vmem:[#allocation13 + $0x160] sm:$0xff] }
 0xaf4   :  { %8087 = vmatpush1.bf16.msra.mxu1 %v8086_v1  ;;  %v4592_v1 = vld [vmem:[#allocation13 + $0x2f0] sm:$0xff]  ;;  %v8186_v59 = vpack.c.bf16 %v4608_v4, %v4606_v10 }
 0xaf5   :  { %8089 = vmatprep.subr.bf16.mxu1 %v8088_v7  ;;  %v4597_v7 = vld [vmem:[#allocation13 + $0x318] sm:$0xff]  ;;  %v8170_v23 = vpack.c.bf16 %v4592_v1, %v4590_v52  ;;  %v4610_v52 = vld [vmem:[#allocation13 + $0x380] sm:$0xff] }
 0xaf6   :  { %8151 = vmatpush1.bf16.msra.mxu0 %v8150_v39  ;;  %v8172_v60 = vpack.c.bf16 %v4597_v7, %v4595_v19  ;;  %v4452_v39 = vld [vmem:[#allocation13 + $0x108] sm:$0xff]  ;;  %v4467_v19 = vld [vmem:[#allocation13 + $0x180] sm:$0xff]  ;;  %v4469_v7 = vld [vmem:[#allocation13 + $0x190] sm:$0xff] }
 0xaf7   :  { %8153 = vmatprep.subr.bf16.mxu0 %v8152_v16  ;;  %v8108_v16 = vpack.c.bf16 %v4454_v34, %v4452_v39  ;;  %v4615_v39 = vld [vmem:[#allocation13 + $0x3a8] sm:$0xff]  ;;  %v4617_v34 = vld [vmem:[#allocation13 + $0x3b8] sm:$0xff] }
 0xaf8   :  { %8091 = vmatpush1.bf16.msra.mxu1 %v8090_v61  ;;  %v4453_v61 = vld [vmem:[#allocation13 + $0x110] sm:$0xff] }
 0xaf9   :  { %8093 = vmatprep.subr.bf16.mxu1 %v8092_v15  ;;  %v8110_v40 = vpack.c.bf16 %v4453_v61, %v4451_v21  ;;  %v4599_v15 = vld [vmem:[#allocation13 + $0x328] sm:$0xff]  ;;  %v4614_v21 = vld [vmem:[#allocation13 + $0x3a0] sm:$0xff]  ;;  %v4616_v61 = vld [vmem:[#allocation13 + $0x3b0] sm:$0xff] }
 0xafa   :  { %8155 = vmatpush1.bf16.msra.mxu0 %v8154_v53  ;;  %v8176_v47 = vpack.c.bf16 %v4601_v27, %v4599_v15  ;;  %v4456_v53 = vld [vmem:[#allocation13 + $0x128] sm:$0xff]  ;;  %v4471_v15 = vld [vmem:[#allocation13 + $0x1a0] sm:$0xff]  ;;  %v4473_v27 = vld [vmem:[#allocation13 + $0x1b0] sm:$0xff] }
 0xafb   :  { %8157 = vmatprep.subr.bf16.mxu0 %v8156_v57  ;;  %v8112_v57 = vpack.c.bf16 %v4458_v17, %v4456_v53  ;;  %v8130_v53 = vpack.c.bf16 %v4473_v27, %v4471_v15  ;;  %v4621_v17 = vld [vmem:[#allocation13 + $0x3d8] sm:$0xff] }
 0xafc   :  { %8095 = vmatpush1.bf16.msra.mxu1 %v8094_v50  ;;  %v4457_v50 = vld [vmem:[#allocation13 + $0x130] sm:$0xff] }
 0xafd   :  { %8097 = vmatprep.subr.bf16.mxu1 %v8096_v42  ;;  %v8114_v13 = vpack.c.bf16 %v4457_v50, %v4455_v29  ;;  %v4603_v42 = vld [vmem:[#allocation13 + $0x348] sm:$0xff]  ;;  %v4618_v50 = vld [vmem:[#allocation13 + $0x3c0] sm:$0xff] }
 0xafe   :  { %8159 = vmatpush1.bf16.msra.mxu0 %v8158_v55  ;;  %v8180_v35 = vpack.c.bf16 %v4605_v36, %v4603_v42  ;;  %v4460_v55 = vld [vmem:[#allocation13 + $0x148] sm:$0xff]  ;;  %v4477_v36 = vld [vmem:[#allocation13 + $0x1d0] sm:$0xff] }
 0xaff   :  { %8161 = vmatprep.subr.bf16.mxu0 %v8160_v25  ;;  %v8116_v25 = vpack.c.bf16 %v4462_v0, %v4460_v55  ;;  %v4625_v55 = vld [vmem:[#allocation13 + $0x3f8] sm:$0xff] }
 0xb00   :  { %8099 = vmatpush1.bf16.msra.mxu1 %v8098_v24  ;;  %v4461_v24 = vld [vmem:[#allocation13 + $0x150] sm:$0xff] }
 0xb01   :  { %8101 = vmatprep.subr.bf16.mxu1 %v8100_v18  ;;  %v8118_v58 = vpack.c.bf16 %v4461_v24, %v4459_v45  ;;  %v4607_v18 = vld [vmem:[#allocation13 + $0x368] sm:$0xff]  ;;  %v4622_v45 = vld [vmem:[#allocation13 + $0x3e0] sm:$0xff] }
 0xb02   :  { %8163 = vmatpush1.bf16.msra.mxu0 %v8162_v9  ;;  %v8184_v6 = vpack.c.bf16 %v4609_v14, %v4607_v18  ;;  %v4464_v9 = vld [vmem:[#allocation13 + $0x168] sm:$0xff]  ;;  %v4481_v18 = vld [vmem:[#allocation13 + $0x1f0] sm:$0xff] }
 0xb03   :  { %8165 = vmatprep.subr.bf16.mxu0 %v8164_v56  ;;  %v8120_v56 = vpack.c.bf16 %v4466_v32, %v4464_v9  ;;  %v5076_v9 = vld [vmem:[#allocation13 + $0x608] sm:$0xff]  ;;  %v5078_v32 = vld [vmem:[#allocation13 + $0x618] sm:$0xff] }
 0xb04   :  { %8103 = vmatpush1.bf16.msra.mxu1 %v8102_v3  ;;  %v4465_v3 = vld [vmem:[#allocation13 + $0x170] sm:$0xff]  ;;  %v8280_v10 = vpack.c.bf16 %v5078_v32, %v5076_v9  ;;  %v5088_v9 = vld [vmem:[#allocation13 + $0x668] sm:$0xff]  ;;  %v5090_v32 = vld [vmem:[#allocation13 + $0x678] sm:$0xff] }
 0xb05   :  { %8105 = vmatprep.subr.bf16.mxu1 %v8104_v46  ;;  %v8122_v51 = vpack.c.bf16 %v4465_v3, %v4463_v54  ;;  %v4611_v46 = vld [vmem:[#allocation13 + $0x388] sm:$0xff] }
 0xb06   :  { %8167 = vmatpush1.bf16.msra.mxu0 %v8166_v37  ;;  %v8188_v30 = vpack.c.bf16 %v4613_v48, %v4611_v46  ;;  %v4468_v37 = vld [vmem:[#allocation13 + $0x188] sm:$0xff] }
 0xb07   :  { %8169 = vmatprep.subr.bf16.mxu0 %v8168_v49  ;;  %v4470_v49 = vld [vmem:[#allocation13 + $0x198] sm:$0xff] }
 0xb08   :  { %8107 = vmatpush1.bf16.msra.mxu1 %v8106_v8  ;;  %v8124_v1 = vpack.c.bf16 %v4470_v49, %v4468_v37  ;;  %v4612_v8 = vld [vmem:[#allocation13 + $0x390] sm:$0xff] }
 0xb09   :  { %8109 = vmatprep.subr.bf16.mxu1 %v8108_v16  ;;  %v8192_v16 = vpack.c.bf16 %v4617_v34, %v4615_v39 }
 0xb0a   :  { %8171 = vmatpush1.bf16.msra.mxu0 %v8170_v23  ;;  %v8190_v23 = vpack.c.bf16 %v4612_v8, %v4610_v52 }
 0xb0b   :  { %8173 = vmatprep.subr.bf16.mxu0 %v8172_v60  ;;  %v8126_v60 = vpack.c.bf16 %v4469_v7, %v4467_v19 }
 0xb0c   :  { %8111 = vmatpush1.bf16.msra.mxu1 %v8110_v40  ;;  %v8194_v40 = vpack.c.bf16 %v4616_v61, %v4614_v21 }
 0xb0d   :  { %8113 = vmatprep.subr.bf16.mxu1 %v8112_v57  ;;  %v4478_v57 = vld [vmem:[#allocation13 + $0x1d8] sm:$0xff] }
 0xb0e   :  { %8175 = vmatpush1.bf16.msra.mxu0 %v8174_v41  ;;  %v8128_v41 = vpack.c.bf16 %v4474_v26, %v4472_v38  ;;  %v8132_v29 = vpack.c.bf16 %v4478_v57, %v4476_v63  ;;  %v5075_v63 = vld [vmem:[#allocation13 + $0x600] sm:$0xff]  ;;  %v5077_v57 = vld [vmem:[#allocation13 + $0x610] sm:$0xff] }
 0xb0f   :  { %8177 = vmatprep.subr.bf16.mxu0 %v8176_v47  ;;  %v4619_v47 = vld [vmem:[#allocation13 + $0x3c8] sm:$0xff] }
 0xb10   :  { %8115 = vmatpush1.bf16.msra.mxu1 %v8114_v13  ;;  %v8196_v33 = vpack.c.bf16 %v4621_v17, %v4619_v47  ;;  %v4475_v13 = vld [vmem:[#allocation13 + $0x1c0] sm:$0xff] }
 0xb11   :  { %8117 = vmatprep.subr.bf16.mxu1 %v8116_v25  ;;  %v8134_v0 = vpack.c.bf16 %v4477_v36, %v4475_v13  ;;  %v4480_v25 = vld [vmem:[#allocation13 + $0x1e8] sm:$0xff]  ;;  %v5082_v13 = vld [vmem:[#allocation13 + $0x638] sm:$0xff]  ;;  %v8282_v36 = vpack.c.bf16 %v5077_v57, %v5075_v63  ;;  %v5111_v57 = vld [vmem:[#allocation13 + $0x720] sm:$0xff] }
 0xb12   :  { %8179 = vmatpush1.bf16.msra.mxu0 %v8178_v11  ;;  %v4620_v11 = vld [vmem:[#allocation13 + $0x3d0] sm:$0xff]  ;;  %v8136_v24 = vpack.c.bf16 %v4482_v31, %v4480_v25 }
 0xb13   :  { %8181 = vmatprep.subr.bf16.mxu0 %v8180_v35  ;;  %v8198_v42 = vpack.c.bf16 %v4620_v11, %v4618_v50  ;;  %v4623_v35 = vld [vmem:[#allocation13 + $0x3e8] sm:$0xff]  ;;  %v5081_v25 = vld [vmem:[#allocation13 + $0x630] sm:$0xff] }
 0xb14   :  { %8119 = vmatpush1.bf16.msra.mxu1 %v8118_v58  ;;  %v8200_v22 = vpack.c.bf16 %v4625_v55, %v4623_v35  ;;  %v4479_v58 = vld [vmem:[#allocation13 + $0x1e0] sm:$0xff]  ;;  %v5080_v11 = vld [vmem:[#allocation13 + $0x628] sm:$0xff] }
 0xb15   :  { %8121 = vmatprep.subr.bf16.mxu1 %v8120_v56  ;;  %v8284_v55 = vpack.c.bf16 %v5082_v13, %v5080_v11 }
 0xb16   :  { %8183 = vmatpush1.bf16.msra.mxu0 %v8182_v5  ;;  %v4624_v5 = vld [vmem:[#allocation13 + $0x3f0] sm:$0xff] }
 0xb17   :  { %8185 = vmatprep.subr.bf16.mxu0 %v8184_v6  ;;  %v8202_v14 = vpack.c.bf16 %v4624_v5, %v4622_v45  ;;  %v8138_v6 = vpack.c.bf16 %v4481_v18, %v4479_v58  ;;  %v5084_v45 = vld [vmem:[#allocation13 + $0x648] sm:$0xff] }
 0xb18   :  { %8123 = vmatpush1.bf16.msra.mxu1 %v8122_v51 }
 0xb19   :  { %8125 = vmatprep.subr.bf16.mxu1 %v8124_v1 }
 0xb1a   :  { %8187 = vmatpush1.bf16.msra.mxu0 %v8186_v59 }
 0xb1b   :  { %8189 = vmatprep.subr.bf16.mxu0 %v8188_v30 }
 0xb1c   :  { %8127 = vmatpush1.bf16.msra.mxu1 %v8126_v60 }
 0xb1d   :  { %8129 = vmatprep.subr.bf16.mxu1 %v8128_v41 }
 0xb1e   :  { %8191 = vmatpush1.bf16.msra.mxu0 %v8190_v23  ;;  %v4369_v23 = vld [vmem:[#allocation10] sm:$0x3] }
 0xb1f   :  { %8193 = vmatprep.subr.bf16.mxu0 %v8192_v16  ;;  %v4374_v60 = vrot.slane %v4369_v23, %v11120_v44  ;;  %v4378_v39 = vrot.slane %v4369_v23, %v11135_v20  ;;  %v5102_v23 = vld [vmem:[#allocation13 + $0x6d8] sm:$0xff] }
 0xb20   :  { %8131 = vmatpush1.bf16.msra.mxu1 %v8130_v53 }
 0xb21   :  { %8133 = vmatprep.subr.bf16.mxu1 %v8132_v29 }
 0xb22   :  { %8195 = vmatpush1.bf16.msra.mxu0 %v8194_v40 }
 0xb23   :  { %8197 = vmatprep.subr.bf16.mxu0 %v8196_v33 }
 0xb24   :  { %8135 = vmatpush1.bf16.msra.mxu1 %v8134_v0 }
 0xb25   :  { %8137 = vmatprep.subr.bf16.mxu1 %v8136_v24  ;;  %v5086_v24 = vld [vmem:[#allocation13 + $0x658] sm:$0xff] }
 0xb26   :  { %8199 = vmatpush1.bf16.msra.mxu0 %v8198_v42  ;;  %v8288_v18 = vpack.c.bf16 %v5086_v24, %v5084_v45  ;;  %v5119_v24 = vld [vmem:[#allocation13 + $0x760] sm:$0xff] }
 0xb27   :  { %8201 = vmatprep.subr.bf16.mxu0 %v8200_v22  ;;  %v5079_v22 = vld [vmem:[#allocation13 + $0x620] sm:$0xff] }
 0xb28   :  { %8139 = vmatpush1.bf16.msra.mxu1 %v8138_v6  ;;  %v8286_v5 = vpack.c.bf16 %v5081_v25, %v5079_v22  ;;  %v5085_v6 = vld [vmem:[#allocation13 + $0x650] sm:$0xff]  ;;  %v5122_v22 = vld [vmem:[#allocation13 + $0x778] sm:$0xff] }
 0xb2a   :  { %8203 = vmatpush1.bf16.msra.mxu0 %v8202_v14  ;;  %v5083_v14 = vld [vmem:[#allocation13 + $0x640] sm:$0xff] }
 0xb2b   :  { %8281 = vmatprep.subr.bf16.mxu0 %v8280_v10  ;;  %v8290_v10 = vpack.c.bf16 %v5085_v6, %v5083_v14  ;;  %v5126_v14 = vld [vmem:[#allocation13 + $0x798] sm:$0xff] }
 0xbbe   :  { %v4273_v56 = vpop.f32.mrb[156].mxu1 }
 0xbbf   :  { %v4349_v4 = vmul.f32 %v4273_v56, %v4273_v56  ;;  %v4360_v54 = vrot.slane %v4273_v56, %v11120_v44  ;;  %v4275_v3 = vpop.f32.mrb[157].mxu1  ;;  %v8292_v56 = vpack.c.bf16 %v5090_v32, %v5088_v9  ;;  %v5123_v32 = vld [vmem:[#allocation13 + $0x780] sm:$0xff] }
 0xbc0   :  { %v4350_v59 = vmul.f32 %v4275_v3, %v4275_v3  ;;  %v4364_v51 = vrot.slane %v4275_v3, %v11120_v44  ;;  %v4344_v46 = vpop.f32.mrb[100].mxu0  ;;  %v5092_v3 = vld [vmem:[#allocation13 + $0x688] sm:$0xff] }
 0xbc1   :  { %v4365_v48 = vsub.f32 %v11322_v12, %v4360_v54  ;;  %v4367_v30 = vsub.f32 %v11326_v28, %v4360_v54  ;;  %v4351_v37 = vsub.f32 %v4344_v46, %v4349_v4  ;;  %v4346_v49 = vpop.f32.mrb[101].mxu0  ;;  %v4395_v12 = vld [vmem:[#allocation12] sm:$0x3]  ;;  %v5087_v4 = vld [vmem:[#allocation13 + $0x660] sm:$0xff]  ;;  %v5089_v54 = vld [vmem:[#allocation13 + $0x670] sm:$0xff] }
 0xbc2   :  { %v4366_v52 = vsub.f32 %v11324_v2, %v4364_v51  ;;  %v4368_v1 = vsub.f32 %v11334_v62, %v4364_v51  ;;  %v4352_v8 = vsub.f32 %v4346_v49, %v4350_v59  ;;  %v4400_v2 = vrot.slane %v4395_v12, %v11120_v44  ;;  %v5094_v59 = vld [vmem:[#allocation13 + $0x698] sm:$0xff] }
 0xbc3   :  { %v4353_v19 = vadd.f32 1e-05, %v4351_v37  ;;  %v4404_v21 = vrot.slane %v4395_v12, %v11135_v20  ;;  %v8294_v51 = vpack.c.bf16 %v5089_v54, %v5087_v4  ;;  %v8296_v46 = vpack.c.bf16 %v5094_v59, %v5092_v3  ;;  %v5096_v37 = vld [vmem:[#allocation13 + $0x6a8] sm:$0xff]  ;;  %v5098_v49 = vld [vmem:[#allocation13 + $0x6b8] sm:$0xff]  ;;  %v5101_v12 = vld [vmem:[#allocation13 + $0x6d0] sm:$0xff] }
 0xbc4   :  { %v4354_v7 = vadd.f32 1e-05, %v4352_v8  ;;  %v5095_v8 = vld [vmem:[#allocation13 + $0x6a0] sm:$0xff]  ;;  %v5130_v4 = vld [vmem:[#allocation13 + $0x7b8] sm:$0xff] }
 0xbc5   :  { %8718 = vrsqrt.f32 %v4353_v19  ;;  %v5097_v19 = vld [vmem:[#allocation13 + $0x6b0] sm:$0xff]  ;;  %v5127_v59 = vld [vmem:[#allocation13 + $0x7a0] sm:$0xff] }
 0xbc6   :  { %8720 = vrsqrt.f32 %v4354_v7  ;;  %v5100_v7 = vld [vmem:[#allocation13 + $0x6c8] sm:$0xff] }
 0xbcf   :  { %v8719_v34 = vpop.eup %8718 }
 0xbd0   :  { %v8721_v38 = vpop.eup %8720  ;;  %v4381_v28 = vmul.f32 %v8719_v34, %v4374_v60  ;;  %v8302_v60 = vpack.c.bf16 %v5097_v19, %v5095_v8  ;;  %v5099_v34 = vld [vmem:[#allocation13 + $0x6c0] sm:$0xff]  ;;  %v5138_v8 = vld [vmem:[#allocation13 + $0x7f8] sm:$0xff] }
 0xbd1   :  { %v4382_v16 = vmul.f32 %v8721_v38, %v4378_v39  ;;  %v8304_v39 = vpack.c.bf16 %v5102_v23, %v5100_v7  ;;  %v5104_v38 = vld [vmem:[#allocation13 + $0x6e8] sm:$0xff]  ;;  %v5135_v23 = vld [vmem:[#allocation13 + $0x7e0] sm:$0xff] }
 0xbd2   :  { %v4386_v26 = vrot.slane %v4381_v28, %v11120_v44  ;;  %v5106_v28 = vld [vmem:[#allocation13 + $0x6f8] sm:$0xff] }
 0xbd3   :  { %v4390_v62 = vrot.slane %v4382_v16, %v11120_v44  ;;  %v8306_v16 = vpack.c.bf16 %v5101_v12, %v5099_v34 }
 0xbd4   :  { %v4391_v61 = vmul.f32 %v4386_v26, %v4365_v48  ;;  %v4393_v41 = vmul.f32 %v4386_v26, %v4367_v30  ;;  %v5091_v48 = vld [vmem:[#allocation13 + $0x680] sm:$0xff]  ;;  %v5093_v30 = vld [vmem:[#allocation13 + $0x690] sm:$0xff]  ;;  %v8308_v26 = vpack.c.bf16 %v5106_v28, %v5104_v38 }
 0xbd5   :  { %v4392_v40 = vmul.f32 %v4390_v62, %v4366_v52  ;;  %v4394_v15 = vmul.f32 %v4390_v62, %v4368_v1  ;;  %v8298_v52 = vpack.c.bf16 %v5093_v30, %v5091_v48  ;;  %v8300_v1 = vpack.c.bf16 %v5098_v49, %v5096_v37  ;;  %v5105_v62 = vld [vmem:[#allocation13 + $0x6f0] sm:$0xff]  ;;  %v5134_v48 = vld [vmem:[#allocation13 + $0x7d8] sm:$0xff]  ;;  %v5131_v49 = vld [vmem:[#allocation13 + $0x7c0] sm:$0xff] }
 0xbd6   :  { %v4407_v27 = vadd.f32 %v4400_v2, %v4391_v61  ;;  %v4409_v33 = vadd.f32 %v4400_v2, %v4393_v41  ;;  %v5103_v2 = vld [vmem:[#allocation13 + $0x6e0] sm:$0xff]  ;;  %v5110_v61 = vld [vmem:[#allocation13 + $0x718] sm:$0xff] }
 0xbd7   :  { %v4408_v47 = vadd.f32 %v4404_v21, %v4392_v40  ;;  %v4410_v53 = vadd.f32 %v4404_v21, %v4394_v15  ;;  %v5108_v21 = vld [vmem:[#allocation13 + $0x708] sm:$0xff]  ;;  %v8310_v41 = vpack.c.bf16 %v5105_v62, %v5103_v2  ;;  %v5107_v15 = vld [vmem:[#allocation13 + $0x700] sm:$0xff] }
 0xbd8   :  { %v4411_v17 = vmul.f32 0.2, %v4407_v27  ;;  %v4413_v0 = vmul.f32 0.2, %v4409_v33  ;;  %v8312_v40 = vpack.c.bf16 %v5110_v61, %v5108_v21 }
 0xbd9   :  { %v4412_v29 = vmul.f32 0.2, %v4408_v47  ;;  %v4414_v50 = vmul.f32 0.2, %v4410_v53 }
 0xbda   :  { %v11356_v35 = vmax.f32 %v4407_v27, %v4411_v17  ;;  %v11366_v58 = vmax.f32 %v4409_v33, %v4413_v0  ;;  %v5109_v27 = vld [vmem:[#allocation13 + $0x710] sm:$0xff]  ;;  %v5120_v0 = vld [vmem:[#allocation13 + $0x768] sm:$0xff] }
 0xbdb   :  { %v11354_v42 = vmax.f32 %v4408_v47, %v4412_v29  ;;  %v11360_v31 = vmax.f32 %v4410_v53, %v4414_v50  ;;  %v5112_v47 = vld [vmem:[#allocation13 + $0x728] sm:$0xff]  ;;  %v5114_v53 = vld [vmem:[#allocation13 + $0x738] sm:$0xff]  ;;  %v8314_v17 = vpack.c.bf16 %v5109_v27, %v5107_v15  ;;  %v5113_v33 = vld [vmem:[#allocation13 + $0x730] sm:$0xff]  ;;  %v8324_v45 = vpack.c.bf16 %v5122_v22, %v5120_v0 }
 0xbdc   :  { %v8316_v63 = vpack.c.bf16 %v5114_v53, %v5112_v47  ;;  %v5116_v29 = vld [vmem:[#allocation13 + $0x748] sm:$0xff]  ;;  %v5118_v50 = vld [vmem:[#allocation13 + $0x758] sm:$0xff]  ;;  %v8318_v11 = vpack.c.bf16 %v5113_v33, %v5111_v57 }
 0xbdd   :  { %4547 = vmatprep.mubr.f32.mxu1 %v11354_v42  ;;  %4690 = vmatprep.mubr.f32.mxu0 %v11354_v42  ;;  %v8320_v13 = vpack.c.bf16 %v5118_v50, %v5116_v29  ;;  %v4856_v15 = vld [vmem:[#allocation13 + $0x408] sm:$0xff]  ;;  %v4858_v27 = vld [vmem:[#allocation13 + $0x418] sm:$0xff] }
 0xbde   :  { %4548 = vmatmul.mubr.f32.vlgmr.msra.gmra.mrb[158].mxu1 %v11356_v35  ;;  %4691 = vmatmul.mubr.f32.vlgmr.msra.gmra.mrb[102].mxu0 %v11356_v35  ;;  %v6614_v47 = vld [vmem:[%s11946_s13 + $0x8] sm:$0xff]  ;;  %v8212_v53 = vpack.c.bf16 %v4858_v27, %v4856_v15  ;;  %v4862_v33 = vld [vmem:[#allocation13 + $0x438] sm:$0xff] }
 0xbdf   :  { %8283 = vmatpush1.bf16.msra.mxu0 %v8282_v36  ;;  %4553 = vmatprep.mubr.f32.mxu1 %v11360_v31  ;;  %v5115_v36 = vld [vmem:[#allocation13 + $0x740] sm:$0xff]  ;;  %v4860_v57 = vld [vmem:[#allocation13 + $0x428] sm:$0xff]  ;;  %v4866_v0 = vld [vmem:[#allocation13 + $0x458] sm:$0xff] }
 0xbe0   :  { %4696 = vmatprep.mubr.f32.mxu0 %v11360_v31  ;;  %8285 = vmatprep.subr.bf16.mxu0 %v8284_v55  ;;  %v5117_v55 = vld [vmem:[#allocation13 + $0x750] sm:$0xff]  ;;  %v4560_v29 = vld [vmem:[%s11946_s13] sm:$0xff] }
 0xbe1   :  { %v8322_v25 = vpack.c.bf16 %v5117_v55, %v5115_v36  ;;  %v4861_v36 = vld [vmem:[#allocation13 + $0x430] sm:$0xff]  ;;  %v4864_v55 = vld [vmem:[#allocation13 + $0x448] sm:$0xff]  ;;  %v4891_v27 = vld [vmem:[#allocation13 + $0x520] sm:$0xff] }
 0xbe2   :  { %4554 = vmatmul.mubr.f32.gmra.mrb[160].mxu1 %v11366_v58  ;;  %4697 = vmatmul.mubr.f32.gmra.mrb[104].mxu0 %v11366_v58 }
 0xbe3   :  { %8287 = vmatpush1.bf16.msra.mxu0 %v8286_v5  ;;  %5203 = vmatprep.mubr.f32.mxu0 %v11354_v42  ;;  %v5121_v5 = vld [vmem:[#allocation13 + $0x770] sm:$0xff] }
 0xbe4   :  { %8289 = vmatprep.subr.bf16.mxu0 %v8288_v18  ;;  %4773 = vmatprep.mubr.f32.mxu1 %v11977_v43  ;;  %v5124_v18 = vld [vmem:[#allocation13 + $0x788] sm:$0xff]  ;;  %v8326_v6 = vpack.c.bf16 %v5121_v5, %v5119_v24  ;;  %v4865_v24 = vld [vmem:[#allocation13 + $0x450] sm:$0xff] }
 0xbe5   :  { %v8328_v9 = vpack.c.bf16 %v5126_v14, %v5124_v18  ;;  %v4868_v5 = vld [vmem:[#allocation13 + $0x468] sm:$0xff]  ;;  %v4870_v18 = vld [vmem:[#allocation13 + $0x478] sm:$0xff] }
 0xbe7   :  { %8291 = vmatpush1.bf16.msra.mxu0 %v8290_v10  ;;  %v5125_v10 = vld [vmem:[#allocation13 + $0x790] sm:$0xff] }
 0xbe8   :  { %8293 = vmatprep.subr.bf16.mxu0 %v8292_v56  ;;  %v5128_v56 = vld [vmem:[#allocation13 + $0x7a8] sm:$0xff]  ;;  %v8330_v54 = vpack.c.bf16 %v5125_v10, %v5123_v32  ;;  %v4869_v32 = vld [vmem:[#allocation13 + $0x470] sm:$0xff] }
 0xbe9   :  { %v8332_v3 = vpack.c.bf16 %v5130_v4, %v5128_v56  ;;  %v4872_v10 = vld [vmem:[#allocation13 + $0x488] sm:$0xff]  ;;  %v4874_v56 = vld [vmem:[#allocation13 + $0x498] sm:$0xff] }
 0xbeb   :  { %8295 = vmatpush1.bf16.msra.mxu0 %v8294_v51  ;;  %v5129_v51 = vld [vmem:[#allocation13 + $0x7b0] sm:$0xff] }
 0xbec   :  { %8297 = vmatprep.subr.bf16.mxu0 %v8296_v46  ;;  %v5132_v46 = vld [vmem:[#allocation13 + $0x7c8] sm:$0xff]  ;;  %v8334_v30 = vpack.c.bf16 %v5129_v51, %v5127_v59  ;;  %v4878_v51 = vld [vmem:[#allocation13 + $0x4b8] sm:$0xff] }
 0xbed   :  { %v8336_v37 = vpack.c.bf16 %v5134_v48, %v5132_v46  ;;  %v4876_v59 = vld [vmem:[#allocation13 + $0x4a8] sm:$0xff] }
 0xbee   :  { %v8232_v48 = vpack.c.bf16 %v4878_v51, %v4876_v59 }
 0xbef   :  { %8299 = vmatpush1.bf16.msra.mxu0 %v8298_v52  ;;  %v5133_v52 = vld [vmem:[#allocation13 + $0x7d0] sm:$0xff] }
 0xbf0   :  { %8301 = vmatprep.subr.bf16.mxu0 %v8300_v1  ;;  %v5136_v1 = vld [vmem:[#allocation13 + $0x7e8] sm:$0xff]  ;;  %v8338_v19 = vpack.c.bf16 %v5133_v52, %v5131_v49  ;;  %v4882_v52 = vld [vmem:[#allocation13 + $0x4d8] sm:$0xff] }
 0xbf1   :  { %v8340_v7 = vpack.c.bf16 %v5138_v8, %v5136_v1  ;;  %v4880_v49 = vld [vmem:[#allocation13 + $0x4c8] sm:$0xff] }
 0xbf2   :  { %v8236_v8 = vpack.c.bf16 %v4882_v52, %v4880_v49  ;;  %v4911_v49 = vld [vmem:[#allocation13 + $0x5c0] sm:$0xff]  ;;  %v4913_v52 = vld [vmem:[#allocation13 + $0x5d0] sm:$0xff] }
 0xbf3   :  { %8303 = vmatpush1.bf16.msra.mxu0 %v8302_v60  ;;  %v5137_v60 = vld [vmem:[#allocation13 + $0x7f0] sm:$0xff] }
 0xbf4   :  { %8305 = vmatprep.subr.bf16.mxu0 %v8304_v39  ;;  %v8342_v39 = vpack.c.bf16 %v5137_v60, %v5135_v23  ;;  %v4884_v23 = vld [vmem:[#allocation13 + $0x4e8] sm:$0xff]  ;;  %v4886_v60 = vld [vmem:[#allocation13 + $0x4f8] sm:$0xff] }
 0xbf7   :  { %8307 = vmatpush1.bf16.msra.mxu0 %v8306_v16 }
 0xbf8   :  { %8309 = vmatprep.subr.bf16.mxu0 %v8308_v26 }
 0xbfb   :  { %8311 = vmatpush1.bf16.msra.mxu0 %v8310_v41 }
 0xbfc   :  { %8313 = vmatprep.subr.bf16.mxu0 %v8312_v40 }
 0xbff   :  { %8315 = vmatpush1.bf16.msra.mxu0 %v8314_v17  ;;  %v4855_v17 = vld [vmem:[#allocation13 + $0x400] sm:$0xff] }
 0xc00   :  { %8317 = vmatprep.subr.bf16.mxu0 %v8316_v63  ;;  %v4857_v63 = vld [vmem:[#allocation13 + $0x410] sm:$0xff] }
 0xc01   :  { %v8214_v50 = vpack.c.bf16 %v4857_v63, %v4855_v17  ;;  %v4898_v17 = vld [vmem:[#allocation13 + $0x558] sm:$0xff] }
 0xc03   :  { %8319 = vmatpush1.bf16.msra.mxu0 %v8318_v11  ;;  %v8216_v11 = vpack.c.bf16 %v4862_v33, %v4860_v57  ;;  %v4895_v33 = vld [vmem:[#allocation13 + $0x540] sm:$0xff] }
 0xc04   :  { %8321 = vmatprep.subr.bf16.mxu0 %v8320_v13  ;;  %v4859_v13 = vld [vmem:[#allocation13 + $0x420] sm:$0xff] }
 0xc05   :  { %v8218_v22 = vpack.c.bf16 %v4861_v36, %v4859_v13 }
 0xc07   :  { %8323 = vmatpush1.bf16.msra.mxu0 %v8322_v25  ;;  %v8220_v25 = vpack.c.bf16 %v4866_v0, %v4864_v55  ;;  %v4899_v55 = vld [vmem:[#allocation13 + $0x560] sm:$0xff]  ;;  %v4901_v0 = vld [vmem:[#allocation13 + $0x570] sm:$0xff] }
 0xc08   :  { %8325 = vmatprep.subr.bf16.mxu0 %v8324_v45  ;;  %v4863_v45 = vld [vmem:[#allocation13 + $0x440] sm:$0xff] }
 0xc09   :  { %v8222_v14 = vpack.c.bf16 %v4865_v24, %v4863_v45  ;;  %v8258_v45 = vpack.c.bf16 %v4901_v0, %v4899_v55  ;;  %v5338_v55 = vld [vmem:[#allocation15 + $0x90] sm:$0xff] }
 0xc0b   :  { %8327 = vmatpush1.bf16.msra.mxu0 %v8326_v6  ;;  %v8224_v6 = vpack.c.bf16 %v4870_v18, %v4868_v5  ;;  %v4903_v5 = vld [vmem:[#allocation13 + $0x580] sm:$0xff]  ;;  %v4905_v18 = vld [vmem:[#allocation13 + $0x590] sm:$0xff] }
 0xc0c   :  { %8329 = vmatprep.subr.bf16.mxu0 %v8328_v9  ;;  %v4867_v9 = vld [vmem:[#allocation13 + $0x460] sm:$0xff] }
 0xc0d   :  { %v8226_v4 = vpack.c.bf16 %v4869_v32, %v4867_v9 }
 0xc0f   :  { %8331 = vmatpush1.bf16.msra.mxu0 %v8330_v54  ;;  %v8228_v54 = vpack.c.bf16 %v4874_v56, %v4872_v10  ;;  %v8262_v10 = vpack.c.bf16 %v4905_v18, %v4903_v5  ;;  %v5342_v5 = vld [vmem:[#allocation15 + $0xb0] sm:$0xff] }
 0xc10   :  { %8333 = vmatprep.subr.bf16.mxu0 %v8332_v3  ;;  %v4873_v3 = vld [vmem:[#allocation13 + $0x490] sm:$0xff] }
 0xc13   :  { %8335 = vmatpush1.bf16.msra.mxu0 %v8334_v30  ;;  %v4875_v30 = vld [vmem:[#allocation13 + $0x4a0] sm:$0xff] }
 0xc14   :  { %8337 = vmatprep.subr.bf16.mxu0 %v8336_v37  ;;  %v4877_v37 = vld [vmem:[#allocation13 + $0x4b0] sm:$0xff] }
 0xc15   :  { %v8234_v1 = vpack.c.bf16 %v4877_v37, %v4875_v30 }
 0xc17   :  { %8339 = vmatpush1.bf16.msra.mxu0 %v8338_v19  ;;  %v4879_v19 = vld [vmem:[#allocation13 + $0x4c0] sm:$0xff] }
 0xc18   :  { %8341 = vmatprep.subr.bf16.mxu0 %v8340_v7  ;;  %v4881_v7 = vld [vmem:[#allocation13 + $0x4d0] sm:$0xff] }
 0xc1b   :  { %8343 = vmatpush1.bf16.msra.mxu0 %v8342_v39  ;;  %v8238_v39 = vpack.c.bf16 %v4881_v7, %v4879_v19  ;;  %v8270_v19 = vpack.c.bf16 %v4913_v52, %v4911_v49  ;;  %v5350_v49 = vld [vmem:[#allocation15 + $0xf0] sm:$0xff] }
 0xc1e   :  { %5204 = vmatmul.mubr.f32.vlgmr.msra.gmra.mrb[106].mxu0 %v11356_v35 }
 0xc1f   :  { %5209 = vmatprep.mubr.f32.mxu0 %v11360_v31 }
 0xc22   :  { %5210 = vmatmul.mubr.f32.gmra.mrb[108].mxu0 %v11366_v58 }
 0xcb1   :  { %v4549_v34 = vpop.f32.mrb[158].mxu1  ;;  %v4692_v12 = vpop.f32.mrb[102].mxu0 }
 0xcb2   :  { %v4551_v38 = vpop.f32.mrb[159].mxu1  ;;  %v4694_v28 = vpop.f32.mrb[103].mxu0 }
 0xcb5   :  { %v4555_v16 = vpop.f32.mrb[160].mxu1  ;;  %v4698_v26 = vpop.f32.mrb[104].mxu0 }
 0xcb6   :  { %v8210_v2 = vpack.c.bf16 %v4555_v16, %v4549_v34  ;;  %v8206_v62 = vpack.c.bf16 %v4698_v26, %v4692_v12  ;;  %v4557_v21 = vpop.f32.mrb[161].mxu1  ;;  %v4700_v61 = vpop.f32.mrb[105].mxu0  ;;  %v8240_v34 = vpack.c.bf16 %v4886_v60, %v4884_v23  ;;  %v4883_v12 = vld [vmem:[#allocation13 + $0x4e0] sm:$0xff]  ;;  %v4890_v16 = vld [vmem:[#allocation13 + $0x518] sm:$0xff]  ;;  %v4917_v60 = vld [vmem:[#allocation13 + $0x5f0] sm:$0xff] }
 0xcb7   :  { %v8208_v41 = vpack.c.bf16 %v4557_v21, %v4551_v38  ;;  %v8204_v40 = vpack.c.bf16 %v4700_v61, %v4694_v28  ;;  %v4885_v38 = vld [vmem:[#allocation13 + $0x4f0] sm:$0xff]  ;;  %v4888_v28 = vld [vmem:[#allocation13 + $0x508] sm:$0xff]  ;;  %v4915_v23 = vld [vmem:[#allocation13 + $0x5e0] sm:$0xff] }
 0xcb8   :  { %v8242_v26 = vpack.c.bf16 %v4885_v38, %v4883_v12  ;;  %v4889_v21 = vld [vmem:[#allocation13 + $0x510] sm:$0xff]  ;;  %v4892_v61 = vld [vmem:[#allocation13 + $0x528] sm:$0xff]  ;;  %v5323_v12 = vld [vmem:[#allocation15 + $0x18] sm:$0xff] }
 0xcb9   :  { %8205 = vmatprep.subr.bf16.mxu1 %v8204_v40  ;;  %v5320_v38 = vld [vmem:[#allocation15] sm:$0xff] }
 0xcba   :  { %8207 = vmatpush1.bf16.msra.mxu1 %v8206_v62  ;;  %v4887_v62 = vld [vmem:[#allocation13 + $0x500] sm:$0xff] }
 0xcbb   :  { %8209 = vmatprep.subr.bf16.mxu1 %v8208_v41  ;;  %v4894_v41 = vld [vmem:[#allocation13 + $0x538] sm:$0xff]  ;;  %v8246_v40 = vpack.c.bf16 %v4889_v21, %v4887_v62 }
 0xcbc   :  { %v8248_v15 = vpack.c.bf16 %v4894_v41, %v4892_v61  ;;  %v5324_v61 = vld [vmem:[#allocation15 + $0x20] sm:$0xff]  ;;  %v5331_v41 = vld [vmem:[#allocation15 + $0x58] sm:$0xff] }
 0xcbd   :  { %6615 = vmatmul.mubr.msk.f32.vlgmr.msra.gmra.mrb[162].mxu1 %vm4705_vm2, %v6614_v47  ;;  %v4893_v47 = vld [vmem:[#allocation13 + $0x530] sm:$0xff] }
 0xcbe   :  { %8211 = vmatpush1.bf16.msra.mxu1 %v8210_v2  ;;  %4847 = vmatprep.mubr.f32.mxu1 %v11977_v43  ;;  %v8244_v2 = vpack.c.bf16 %v4890_v16, %v4888_v28  ;;  %v8250_v63 = vpack.c.bf16 %v4893_v47, %v4891_v27  ;;  %v5322_v16 = vld [vmem:[#allocation15 + $0x10] sm:$0xff] }
 0xcbf   :  { %8213 = vmatprep.subr.bf16.mxu1 %v8212_v53  ;;  %v4896_v53 = vld [vmem:[#allocation13 + $0x548] sm:$0xff]  ;;  %v11403_v62 = vpack.c.bf16 %v5322_v16, %v5320_v38  ;;  %v5330_v27 = vld [vmem:[#allocation15 + $0x50] sm:$0xff] }
 0xcc0   :  { %v8252_v57 = vpack.c.bf16 %v4898_v17, %v4896_v53  ;;  %v5333_v53 = vld [vmem:[#allocation15 + $0x68] sm:$0xff]  ;;  %v5335_v17 = vld [vmem:[#allocation15 + $0x78] sm:$0xff]  ;;  %v5358_v16 = vld [vmem:[#allocation15 + $0x130] sm:$0xff] }
 0xcc5   :  { %6616 = vmatmul.mubr.msk.f32.vlgmr.msra.gmra.mrb[162].mxu1 %vm4705_vm2, %v4560_v29  ;;  %v4897_v29 = vld [vmem:[#allocation13 + $0x550] sm:$0xff] }
 0xcc6   :  { %8215 = vmatpush1.bf16.msra.mxu1 %v8214_v50  ;;  %4983 = vmatprep.mubr.f32.mxu1 %v11354_v42  ;;  %v4871_v42 = vld [vmem:[#allocation13 + $0x480] sm:$0xff]  ;;  %v4900_v50 = vld [vmem:[#allocation13 + $0x568] sm:$0xff]  ;;  %v8254_v13 = vpack.c.bf16 %v4897_v29, %v4895_v33  ;;  %v5334_v33 = vld [vmem:[#allocation15 + $0x70] sm:$0xff] }
 0xcc7   :  { %8217 = vmatprep.subr.bf16.mxu1 %v8216_v11  ;;  %v8230_v46 = vpack.c.bf16 %v4873_v3, %v4871_v42  ;;  %v4902_v11 = vld [vmem:[#allocation13 + $0x578] sm:$0xff]  ;;  %v4912_v42 = vld [vmem:[#allocation13 + $0x5c8] sm:$0xff] }
 0xcc8   :  { %v8256_v36 = vpack.c.bf16 %v4902_v11, %v4900_v50  ;;  %v4914_v3 = vld [vmem:[#allocation13 + $0x5d8] sm:$0xff]  ;;  %v5337_v50 = vld [vmem:[#allocation15 + $0x88] sm:$0xff] }
 0xcc9   :  { %v8268_v37 = vpack.c.bf16 %v4914_v3, %v4912_v42  ;;  %v5339_v11 = vld [vmem:[#allocation15 + $0x98] sm:$0xff]  ;;  %v5349_v42 = vld [vmem:[#allocation15 + $0xe8] sm:$0xff] }
 0xcca   :  { %8219 = vmatpush1.bf16.msra.mxu1 %v8218_v22  ;;  %v4904_v22 = vld [vmem:[#allocation13 + $0x588] sm:$0xff]  ;;  %v5351_v3 = vld [vmem:[#allocation15 + $0xf8] sm:$0xff] }
 0xccb   :  { %8221 = vmatprep.subr.bf16.mxu1 %v8220_v25  ;;  %v4906_v25 = vld [vmem:[#allocation13 + $0x598] sm:$0xff] }
 0xccc   :  { %v8260_v24 = vpack.c.bf16 %v4906_v25, %v4904_v22  ;;  %v5341_v22 = vld [vmem:[#allocation15 + $0xa8] sm:$0xff]  ;;  %v5343_v25 = vld [vmem:[#allocation15 + $0xb8] sm:$0xff] }
 0xcce   :  { %8223 = vmatpush1.bf16.msra.mxu1 %v8222_v14  ;;  %v4908_v14 = vld [vmem:[#allocation13 + $0x5a8] sm:$0xff] }
 0xccf   :  { %8225 = vmatprep.subr.bf16.mxu1 %v8224_v6  ;;  %v4910_v6 = vld [vmem:[#allocation13 + $0x5b8] sm:$0xff] }
 0xcd0   :  { %v8264_v56 = vpack.c.bf16 %v4910_v6, %v4908_v14  ;;  %v5345_v14 = vld [vmem:[#allocation15 + $0xc8] sm:$0xff]  ;;  %v5347_v6 = vld [vmem:[#allocation15 + $0xd8] sm:$0xff] }
 0xcd2   :  { %8227 = vmatpush1.bf16.msra.mxu1 %v8226_v4  ;;  %v4907_v4 = vld [vmem:[#allocation13 + $0x5a0] sm:$0xff] }
 0xcd3   :  { %8229 = vmatprep.subr.bf16.mxu1 %v8228_v54  ;;  %v4909_v54 = vld [vmem:[#allocation13 + $0x5b0] sm:$0xff] }
 0xcd6   :  { %8231 = vmatpush1.bf16.msra.mxu1 %v8230_v46 }
 0xcd7   :  { %8233 = vmatprep.subr.bf16.mxu1 %v8232_v48  ;;  %v8266_v48 = vpack.c.bf16 %v4909_v54, %v4907_v4  ;;  %v5346_v4 = vld [vmem:[#allocation15 + $0xd0] sm:$0xff] }
 0xcda   :  { %8235 = vmatpush1.bf16.msra.mxu1 %v8234_v1  ;;  %v4916_v1 = vld [vmem:[#allocation13 + $0x5e8] sm:$0xff] }
 0xcdb   :  { %8237 = vmatprep.subr.bf16.mxu1 %v8236_v8  ;;  %v4918_v8 = vld [vmem:[#allocation13 + $0x5f8] sm:$0xff] }
 0xcdc   :  { %v8272_v7 = vpack.c.bf16 %v4918_v8, %v4916_v1  ;;  %v5353_v1 = vld [vmem:[#allocation15 + $0x108] sm:$0xff]  ;;  %v5355_v8 = vld [vmem:[#allocation15 + $0x118] sm:$0xff] }
 0xcde   :  { %8239 = vmatpush1.bf16.msra.mxu1 %v8238_v39  ;;  %v8274_v39 = vpack.c.bf16 %v4917_v60, %v4915_v23  ;;  %v5354_v23 = vld [vmem:[#allocation15 + $0x110] sm:$0xff] }
 0xcdf   :  { %8241 = vmatprep.subr.bf16.mxu1 %v8240_v34  ;;  %v5321_v34 = vld [vmem:[#allocation15 + $0x8] sm:$0xff] }
 0xce0   :  { %v11401_v28 = vpack.c.bf16 %v5323_v12, %v5321_v34  ;;  %v5359_v34 = vld [vmem:[#allocation15 + $0x138] sm:$0xff]  ;;  %v5356_v12 = vld [vmem:[#allocation15 + $0x120] sm:$0xff] }
 0xce2   :  { %8243 = vmatpush1.bf16.msra.mxu1 %v8242_v26  ;;  %v5325_v26 = vld [vmem:[#allocation15 + $0x28] sm:$0xff]  ;;  %8349 = vmatprep.subr.bf16.mxu0 %v11401_v28 }
 0xce3   :  { %8245 = vmatprep.subr.bf16.mxu1 %v8244_v2  ;;  %v5327_v2 = vld [vmem:[#allocation15 + $0x38] sm:$0xff]  ;;  %8351 = vmatpush1.bf16.msra.mxu0 %v11403_v62 }
 0xce4   :  { %v11405_v21 = vpack.c.bf16 %v5327_v2, %v5325_v26  ;;  %v8386_v26 = vpack.c.bf16 %v5358_v16, %v5356_v12  ;;  %v5361_v2 = vld [vmem:[#allocation15 + $0x148] sm:$0xff] }
 0xce6   :  { %8247 = vmatpush1.bf16.msra.mxu1 %v8246_v40  ;;  %8353 = vmatprep.subr.bf16.mxu0 %v11405_v21  ;;  %v5328_v40 = vld [vmem:[#allocation15 + $0x40] sm:$0xff] }
 0xce7   :  { %8249 = vmatprep.subr.bf16.mxu1 %v8248_v15  ;;  %v11415_v47 = vpack.c.bf16 %v5330_v27, %v5328_v40  ;;  %v5365_v27 = vld [vmem:[#allocation15 + $0x168] sm:$0xff] }
 0xcea   :  { %8251 = vmatpush1.bf16.msra.mxu1 %v8250_v63  ;;  %v5332_v63 = vld [vmem:[#allocation15 + $0x60] sm:$0xff] }
 0xceb   :  { %8253 = vmatprep.subr.bf16.mxu1 %v8252_v57  ;;  %v11418_v57 = vpack.c.bf16 %v5335_v17, %v5333_v53  ;;  %v11421_v29 = vpack.c.bf16 %v5334_v33, %v5332_v63  ;;  %v5367_v53 = vld [vmem:[#allocation15 + $0x178] sm:$0xff]  ;;  %v5364_v17 = vld [vmem:[#allocation15 + $0x160] sm:$0xff]  ;;  %v5366_v33 = vld [vmem:[#allocation15 + $0x170] sm:$0xff] }
 0xcec   :  { %v8392_v63 = vpack.c.bf16 %v5367_v53, %v5365_v27 }
 0xcee   :  { %8255 = vmatpush1.bf16.msra.mxu1 %v8254_v13  ;;  %v5336_v13 = vld [vmem:[#allocation15 + $0x80] sm:$0xff] }
 0xcef   :  { %8257 = vmatprep.subr.bf16.mxu1 %v8256_v36  ;;  %v11424_v36 = vpack.c.bf16 %v5339_v11, %v5337_v50  ;;  %v11427_v0 = vpack.c.bf16 %v5338_v55, %v5336_v13  ;;  %v8394_v50 = vpack.c.bf16 %v5366_v33, %v5364_v17  ;;  %v5369_v11 = vld [vmem:[#allocation15 + $0x188] sm:$0xff]  ;;  %v5371_v13 = vld [vmem:[#allocation15 + $0x198] sm:$0xff] }
 0xcf0   :  { %v8396_v55 = vpack.c.bf16 %v5371_v13, %v5369_v11  ;;  %v5603_v11 = vld [vmem:[%s11952_s19 + $0x88] sm:$0xff]  ;;  %v6637_v13 = vld [vmem:[%s11952_s19 + $0x180] sm:$0xff] }
 0xcf1   :  { %v11385_v9 = vpop.f32.mrb[106].mxu0 }
 0xcf2   :  { %8259 = vmatpush1.bf16.msra.mxu1 %v8258_v45  ;;  %v11387_v32 = vpop.f32.mrb[107].mxu0  ;;  %v5340_v45 = vld [vmem:[#allocation15 + $0xa0] sm:$0xff] }
 0xcf3   :  { %8261 = vmatprep.subr.bf16.mxu1 %v8260_v24  ;;  %v11430_v24 = vpack.c.bf16 %v5343_v25, %v5341_v22  ;;  %v11433_v18 = vpack.c.bf16 %v5342_v5, %v5340_v45 }
 0xcf5   :  { %v11389_v59 = vpop.f32.mrb[108].mxu0 }
 0xcf6   :  { %v8346_v51 = vpack.c.bf16 %v11389_v59, %v11385_v9  ;;  %8263 = vmatpush1.bf16.msra.mxu1 %v8262_v10  ;;  %v11393_v46 = vpop.f32.mrb[109].mxu0  ;;  %v5344_v10 = vld [vmem:[#allocation15 + $0xc0] sm:$0xff] }
 0xcf7   :  { %v8344_v30 = vpack.c.bf16 %v11393_v46, %v11387_v32  ;;  %8265 = vmatprep.subr.bf16.mxu1 %v8264_v56  ;;  %v11436_v56 = vpack.c.bf16 %v5347_v6, %v5345_v14  ;;  %v11439_v54 = vpack.c.bf16 %v5346_v4, %v5344_v10  ;;  %v6617_v10 = vld [vmem:[%s11946_s13 + $0x10] sm:$0xff]  ;;  %v6619_v4 = vld [vmem:[%s11946_s13 + $0x18] sm:$0xff]  ;;  %v5368_v9 = vld [vmem:[#allocation15 + $0x180] sm:$0xff]  ;;  %s11978_s13 = sld [smem:[#allocation27_spill]] }
 0xcf8   :  { %v5370_v32 = vld [vmem:[#allocation15 + $0x190] sm:$0xff]  ;;  %v5375_v46 = vld [vmem:[#allocation15 + $0x1b8] sm:$0xff] }
 0xcf9   :  { %v8398_v59 = vpack.c.bf16 %v5370_v32, %v5368_v9  ;;  %v5604_v9 = vld [vmem:[%s11952_s19 + $0x90] sm:$0xff]  ;;  %v5605_v32 = vld [vmem:[%s11952_s19 + $0x98] sm:$0xff] }
 0xcfa   :  { %8267 = vmatpush1.bf16.msra.mxu1 %v8266_v48  ;;  %v5348_v48 = vld [vmem:[#allocation15 + $0xe0] sm:$0xff] }
 0xcfb   :  { %8269 = vmatprep.subr.bf16.mxu1 %v8268_v37  ;;  %v11442_v37 = vpack.c.bf16 %v5351_v3, %v5349_v42  ;;  %v11445_v52 = vpack.c.bf16 %v5350_v49, %v5348_v48 }
 0xcfe   :  { %8271 = vmatpush1.bf16.msra.mxu1 %v8270_v19  ;;  %v5352_v19 = vld [vmem:[#allocation15 + $0x100] sm:$0xff] }
 0xcff   :  { %8273 = vmatprep.subr.bf16.mxu1 %v8272_v7  ;;  %v11448_v7 = vpack.c.bf16 %v5355_v8, %v5353_v1  ;;  %v8382_v60 = vpack.c.bf16 %v5354_v23, %v5352_v19 }
 0xd02   :  { %8275 = vmatpush1.bf16.msra.mxu1 %v8274_v39  ;;  %v5357_v39 = vld [vmem:[#allocation15 + $0x128] sm:$0xff] }
 0xd03   :  { %v8384_v38 = vpack.c.bf16 %v5359_v34, %v5357_v39 }
 0xd05   :  { %4984 = vmatmul.mubr.f32.vlgmr.msra.gmra.mrb[164].mxu1 %v11356_v35  ;;  %v5326_v35 = vld [vmem:[#allocation15 + $0x30] sm:$0xff] }
 0xd06   :  { %4989 = vmatprep.mubr.f32.mxu1 %v11360_v31  ;;  %v11409_v31 = vpack.c.bf16 %v5326_v35, %v5324_v61  ;;  %v5363_v61 = vld [vmem:[#allocation15 + $0x158] sm:$0xff]  ;;  %v5360_v35 = vld [vmem:[#allocation15 + $0x140] sm:$0xff] }
 0xd08   :  { %8355 = vmatpush1.bf16.msra.mxu0 %v11409_v31 }
 0xd09   :  { %4990 = vmatmul.mubr.f32.gmra.mrb[166].mxu1 %v11366_v58  ;;  %v5329_v58 = vld [vmem:[#allocation15 + $0x48] sm:$0xff] }
 0xd0a   :  { %5065 = vmatprep.mubr.f32.mxu1 %v11977_v43  ;;  %v11412_v15 = vpack.c.bf16 %v5331_v41, %v5329_v58  ;;  %v8388_v58 = vpack.c.bf16 %v5363_v61, %v5361_v2  ;;  %v5362_v41 = vld [vmem:[#allocation15 + $0x150] sm:$0xff] }
 0xd0b   :  { %v8390_v40 = vpack.c.bf16 %v5362_v41, %v5360_v35 }
 0xd0c   :  { %8357 = vmatprep.subr.bf16.mxu0 %v11412_v15 }
 0xd0d   :  { %8359 = vmatpush1.bf16.msra.mxu0 %v11415_v47 }
 0xd0e   :  { %8361 = vmatprep.subr.bf16.mxu0 %v11418_v57 }
 0xd11   :  { %8363 = vmatpush1.bf16.msra.mxu0 %v11421_v29 }
 0xd12   :  { %8365 = vmatprep.subr.bf16.mxu0 %v11424_v36 }
 0xd15   :  { %8367 = vmatpush1.bf16.msra.mxu0 %v11427_v0 }
 0xd16   :  { %8369 = vmatprep.subr.bf16.mxu0 %v11430_v24 }
 0xd19   :  { %8371 = vmatpush1.bf16.msra.mxu0 %v11433_v18 }
 0xd1a   :  { %8373 = vmatprep.subr.bf16.mxu0 %v11436_v56 }
 0xd1d   :  { %8375 = vmatpush1.bf16.msra.mxu0 %v11439_v54 }
 0xd1e   :  { %8377 = vmatprep.subr.bf16.mxu0 %v11442_v37 }
 0xd21   :  { %8379 = vmatpush1.bf16.msra.mxu0 %v11445_v52 }
 0xd22   :  { %8381 = vmatprep.subr.bf16.mxu0 %v11448_v7 }
 0xd25   :  { %8383 = vmatpush1.bf16.msra.mxu0 %v8382_v60 }
 0xd26   :  { %8385 = vmatprep.subr.bf16.mxu0 %v8384_v38 }
 0xd29   :  { %8387 = vmatpush1.bf16.msra.mxu0 %v8386_v26 }
 0xd2a   :  { %8389 = vmatprep.subr.bf16.mxu0 %v8388_v58 }
 0xd2d   :  { %8391 = vmatpush1.bf16.msra.mxu0 %v8390_v40 }
 0xd2e   :  { %8393 = vmatprep.subr.bf16.mxu0 %v8392_v63 }
 0xd31   :  { %8395 = vmatpush1.bf16.msra.mxu0 %v8394_v50 }
 0xd32   :  { %8397 = vmatprep.subr.bf16.mxu0 %v8396_v55 }
 0xd35   :  { %8399 = vmatpush1.bf16.msra.mxu0 %v8398_v59 }
 0xdd8   :  { %v4985_v22 = vpop.f32.mrb[164].mxu1 }
 0xdd9   :  { %v4987_v25 = vpop.f32.mrb[165].mxu1 }
 0xddc   :  { %v4991_v45 = vpop.f32.mrb[166].mxu1 }
 0xddd   :  { %v8278_v5 = vpack.c.bf16 %v4991_v45, %v4985_v22  ;;  %v4993_v14 = vpop.f32.mrb[167].mxu1  ;;  %v6638_v22 = vld [vmem:[%s11952_s19 + $0x188] sm:$0xff] }
 0xdde   :  { %v8276_v6 = vpack.c.bf16 %v4993_v14, %v4987_v25  ;;  %v5586_v25 = vld [vmem:[%s11952_s19] sm:$0xff]  ;;  %v5587_v45 = vld [vmem:[%s11952_s19 + $0x8] sm:$0xff] }
 0xddf   :  { %v8478_v14 = vpack.c.bf16 %v5587_v45, %v5586_v25  ;;  %v6648_v25 = vld [vmem:[%s11952_s19 + $0x1d8] sm:$0xff]  ;;  %v5596_v45 = vld [vmem:[%s11952_s19 + $0x50] sm:$0xff] }
 0xde0   :  { %8277 = vmatprep.subr.bf16.mxu1 %v8276_v6  ;;  %v6621_v6 = vld [vmem:[%s11952_s19 + $0x100] sm:$0xff] }
 0xde1   :  { %8279 = vmatpush1.bf16.msra.mxu1 %v8278_v5  ;;  %v8508_v5 = vpack.c.bf16 %v6638_v22, %v6637_v13  ;;  %v5613_v13 = vld [vmem:[%s11952_s19 + $0xd8] sm:$0xff] }
 0xde2   :  { %8345 = vmatprep.subr.bf16.mxu1 %v8344_v30 }
 0xde4   :  { %6618 = vmatmul.mubr.msk.f32.vlgmr.msra.gmra.mrb[162].mxu1 %vm4705_vm2, %v6617_v10  ;;  %v6622_v10 = vld [vmem:[%s11952_s19 + $0x108] sm:$0xff] }
 0xde5   :  { %8347 = vmatpush1.bf16.msra.mxu1 %v8346_v51  ;;  %5285 = vmatprep.mubr.f32.mxu1 %v11977_v43  ;;  %v5373_v51 = vld [vmem:[#allocation15 + $0x1a8] sm:$0xff] }
 0xde6   :  { %8413 = vmatprep.subr.bf16.mxu1 %v11401_v28  ;;  %v8400_v30 = vpack.c.bf16 %v5375_v46, %v5373_v51  ;;  %v5372_v28 = vld [vmem:[#allocation15 + $0x1a0] sm:$0xff]  ;;  %v8480_v51 = vpack.c.bf16 %v5605_v32, %v5604_v9  ;;  %v6640_v46 = vld [vmem:[%s11952_s19 + $0x198] sm:$0xff] }
 0xde7   :  { %v5614_v9 = vld [vmem:[%s11952_s19 + $0xe0] sm:$0xff] }
 0xde8   :  { %8401 = vmatprep.subr.bf16.mxu0 %v8400_v30 }
 0xdec   :  { %6620 = vmatmul.mubr.msk.f32.vlgmr.msra.gmra.mrb[162].mxu1 %vm4705_vm2, %v6619_v4  ;;  %v8510_v4 = vpack.c.bf16 %v6622_v10, %v6621_v6  ;;  %v6631_v10 = vld [vmem:[%s11952_s19 + $0x150] sm:$0xff] }
 0xded   :  { %8415 = vmatpush1.bf16.msra.mxu1 %v11403_v62  ;;  %v5374_v62 = vld [vmem:[#allocation15 + $0x1b0] sm:$0xff] }
 0xdee   :  { %8417 = vmatprep.subr.bf16.mxu1 %v11405_v21  ;;  %v8402_v21 = vpack.c.bf16 %v5374_v62, %v5372_v28  ;;  %v5589_v28 = vld [vmem:[%s11952_s19 + $0x18] sm:$0xff] }
 0xdf0   :  { %8403 = vmatpush1.bf16.msra.mxu0 %v8402_v21 }
 0xdf1   :  { %8419 = vmatpush1.bf16.msra.mxu1 %v11409_v31  ;;  %v5377_v31 = vld [vmem:[#allocation15 + $0x1c8] sm:$0xff] }
 0xdf2   :  { %8421 = vmatprep.subr.bf16.mxu1 %v11412_v15  ;;  %v5379_v15 = vld [vmem:[#allocation15 + $0x1d8] sm:$0xff] }
 0xdf5   :  { %8423 = vmatpush1.bf16.msra.mxu1 %v11415_v47  ;;  %v8404_v47 = vpack.c.bf16 %v5379_v15, %v5377_v31  ;;  %v6623_v31 = vld [vmem:[%s11952_s19 + $0x110] sm:$0xff]  ;;  %v6624_v15 = vld [vmem:[%s11952_s19 + $0x118] sm:$0xff] }
 0xdf6   :  { %8425 = vmatprep.subr.bf16.mxu1 %v11418_v57  ;;  %v5376_v57 = vld [vmem:[#allocation15 + $0x1c0] sm:$0xff] }
 0xdf7   :  { %8405 = vmatprep.subr.bf16.mxu0 %v8404_v47 }
 0xdf9   :  { %8427 = vmatpush1.bf16.msra.mxu1 %v11421_v29  ;;  %v5378_v29 = vld [vmem:[#allocation15 + $0x1d0] sm:$0xff] }
 0xdfa   :  { %8429 = vmatprep.subr.bf16.mxu1 %v11424_v36  ;;  %v8406_v36 = vpack.c.bf16 %v5378_v29, %v5376_v57  ;;  %v5606_v57 = vld [vmem:[%s11952_s19 + $0xa0] sm:$0xff]  ;;  %v5607_v29 = vld [vmem:[%s11952_s19 + $0xa8] sm:$0xff] }
 0xdfc   :  { %8407 = vmatpush1.bf16.msra.mxu0 %v8406_v36 }
 0xdfd   :  { %8431 = vmatpush1.bf16.msra.mxu1 %v11427_v0  ;;  %v5381_v0 = vld [vmem:[#allocation15 + $0x1e8] sm:$0xff] }
 0xdfe   :  { %8433 = vmatprep.subr.bf16.mxu1 %v11430_v24  ;;  %v5383_v24 = vld [vmem:[#allocation15 + $0x1f8] sm:$0xff] }
 0xe01   :  { %8435 = vmatpush1.bf16.msra.mxu1 %v11433_v18  ;;  %v8408_v18 = vpack.c.bf16 %v5383_v24, %v5381_v0  ;;  %v6641_v0 = vld [vmem:[%s11952_s19 + $0x1a0] sm:$0xff]  ;;  %v6642_v24 = vld [vmem:[%s11952_s19 + $0x1a8] sm:$0xff] }
 0xe02   :  { %8437 = vmatprep.subr.bf16.mxu1 %v11436_v56  ;;  %v5380_v56 = vld [vmem:[#allocation15 + $0x1e0] sm:$0xff] }
 0xe03   :  { %8409 = vmatprep.subr.bf16.mxu0 %v8408_v18 }
 0xe05   :  { %8439 = vmatpush1.bf16.msra.mxu1 %v11439_v54  ;;  %v5382_v54 = vld [vmem:[#allocation15 + $0x1f0] sm:$0xff] }
 0xe06   :  { %8441 = vmatprep.subr.bf16.mxu1 %v11442_v37  ;;  %v8410_v42 = vpack.c.bf16 %v5382_v54, %v5380_v56  ;;  %v8516_v56 = vpack.c.bf16 %v6642_v24, %v6641_v0  ;;  %v5591_v54 = vld [vmem:[%s11952_s19 + $0x28] sm:$0xff]  ;;  %v6651_v24 = vld [vmem:[%s11952_s19 + $0x1f0] sm:$0xff] }
 0xe08   :  { %8411 = vmatpush1.bf16.msra.mxu0 %v8410_v42 }
 0xe09   :  { %8443 = vmatpush1.bf16.msra.mxu1 %v11445_v52 }
 0xe0a   :  { %8445 = vmatprep.subr.bf16.mxu1 %v11448_v7 }
 0xe0d   :  { %8447 = vmatpush1.bf16.msra.mxu1 %v8382_v60 }
 0xe0e   :  { %8449 = vmatprep.subr.bf16.mxu1 %v8384_v38 }
 0xe11   :  { %8451 = vmatpush1.bf16.msra.mxu1 %v8386_v26 }
 0xe12   :  { %8453 = vmatprep.subr.bf16.mxu1 %v8388_v58 }
 0xe15   :  { %8455 = vmatpush1.bf16.msra.mxu1 %v8390_v40 }
 0xe16   :  { %8457 = vmatprep.subr.bf16.mxu1 %v8392_v63 }
 0xe19   :  { %8459 = vmatpush1.bf16.msra.mxu1 %v8394_v50  ;;  %v5602_v50 = vld [vmem:[%s11952_s19 + $0x80] sm:$0xff] }
 0xe1a   :  { %8461 = vmatprep.subr.bf16.mxu1 %v8396_v55  ;;  %v8476_v55 = vpack.c.bf16 %v5603_v11, %v5602_v50  ;;  %v5612_v11 = vld [vmem:[%s11952_s19 + $0xd0] sm:$0xff] }
 0xe1b   :  { %v8496_v22 = vpack.c.bf16 %v5613_v13, %v5612_v11 }
 0xe1c   :  { %8477 = vmatprep.subr.bf16.mxu0 %v8476_v55  ;;  %v6647_v55 = vld [vmem:[%s11952_s19 + $0x1d0] sm:$0xff] }
 0xe1d   :  { %8463 = vmatpush1.bf16.msra.mxu1 %v8398_v59  ;;  %v6639_v59 = vld [vmem:[%s11952_s19 + $0x190] sm:$0xff] }
 0xe1e   :  { %8465 = vmatprep.subr.bf16.mxu1 %v8400_v30  ;;  %v5588_v30 = vld [vmem:[%s11952_s19 + $0x10] sm:$0xff]  ;;  %v8512_v62 = vpack.c.bf16 %v6640_v46, %v6639_v59  ;;  %v5615_v59 = vld [vmem:[%s11952_s19 + $0xe8] sm:$0xff] }
 0xe1f   :  { %v6650_v46 = vld [vmem:[%s11952_s19 + $0x1e8] sm:$0xff] }
 0xe21   :  { %8467 = vmatpush1.bf16.msra.mxu1 %v8402_v21  ;;  %v8482_v21 = vpack.c.bf16 %v5589_v28, %v5588_v30  ;;  %v8500_v30 = vpack.c.bf16 %v5615_v59, %v5614_v9  ;;  %v6653_v59 = vld [vmem:[%s11978_s13 + $0x2] sm:$0x3] }
 0xe22   :  { %8469 = vmatprep.subr.bf16.mxu1 %v8404_v47  ;;  %v8514_v47 = vpack.c.bf16 %v6624_v15, %v6623_v31  ;;  %v6633_v31 = vld [vmem:[%s11952_s19 + $0x160] sm:$0xff] }
 0xe25   :  { %8471 = vmatpush1.bf16.msra.mxu1 %v8406_v36  ;;  %v8484_v36 = vpack.c.bf16 %v5607_v29, %v5606_v57  ;;  %v5616_v57 = vld [vmem:[%s11952_s19 + $0xf0] sm:$0xff]  ;;  %v5617_v29 = vld [vmem:[%s11952_s19 + $0xf8] sm:$0xff] }
 0xe26   :  { %8473 = vmatprep.subr.bf16.mxu1 %v8408_v18  ;;  %v5590_v18 = vld [vmem:[%s11952_s19 + $0x20] sm:$0xff]  ;;  %v8504_v0 = vpack.c.bf16 %v5617_v29, %v5616_v57 }
 0xe29   :  { %8475 = vmatpush1.bf16.msra.mxu1 %v8410_v42  ;;  %v6625_v42 = vld [vmem:[%s11952_s19 + $0x120] sm:$0xff] }
 0xe2a   :  { %8509 = vmatprep.subr.bf16.mxu1 %v8508_v5  ;;  %v5597_v5 = vld [vmem:[%s11952_s19 + $0x58] sm:$0xff] }
 0xe2b   :  { %v8498_v6 = vpack.c.bf16 %v5597_v5, %v5596_v45 }
 0xebf   :  { %v11484_v3 = vpop.f32.mrb[162].mxu1 }
 0xec0   :  { %v5294_v48 = vrot.slane %v11484_v3, 4  ;;  %v5306_v37 = vmul.f32 %v11484_v3, %v11484_v3  ;;  %v11489_v49 = vpop.f32.mrb[163].mxu1 }
 0xec1   :  { %v5300_v52 = vrot.slane %v11489_v49, 4  ;;  %v5307_v1 = vmul.f32 %v11489_v49, %v11489_v49 }
 0xec2   :  { %v5295_v8 = vadd.f32 %v5294_v48, %v11484_v3  ;;  %v5308_v19 = vrot.slane %v5306_v37, 4  ;;  %v6626_v48 = vld [vmem:[%s11952_s19 + $0x128] sm:$0xff] }
 0xec3   :  { %v5301_v7 = vadd.f32 %v5300_v52, %v11489_v49  ;;  %v5314_v23 = vrot.slane %v5307_v1, 4  ;;  %v8518_v52 = vpack.c.bf16 %v6626_v48, %v6625_v42  ;;  %v5601_v42 = vld [vmem:[%s11952_s19 + $0x78] sm:$0xff]  ;;  %v6635_v48 = vld [vmem:[%s11952_s19 + $0x170] sm:$0xff] }
 0xec4   :  { %v5296_v60 = vrot.slane %v5295_v8, 2  ;;  %v5309_v39 = vadd.f32 %v5308_v19, %v5306_v37  ;;  %v8486_v37 = vpack.c.bf16 %v5591_v54, %v5590_v18  ;;  %v6643_v19 = vld [vmem:[%s11952_s19 + $0x1b0] sm:$0xff]  ;;  %v6652_v18 = vld [vmem:[%s11952_s19 + $0x1f8] sm:$0xff] }
 0xec5   :  { %v5302_v34 = vrot.slane %v5301_v7, 2  ;;  %v5315_v12 = vadd.f32 %v5314_v23, %v5307_v1  ;;  %v5608_v1 = vld [vmem:[%s11952_s19 + $0xb0] sm:$0xff]  ;;  %v6644_v23 = vld [vmem:[%s11952_s19 + $0x1b8] sm:$0xff]  ;;  %v8536_v54 = vpack.c.bf16 %v6652_v18, %v6651_v24 }
 0xec6   :  { %v5297_v38 = vadd.f32 %v5296_v60, %v5295_v8  ;;  %v5310_v16 = vrot.slane %v5309_v39, 2  ;;  %v5609_v8 = vld [vmem:[%s11952_s19 + $0xb8] sm:$0xff]  ;;  %v5592_v60 = vld [vmem:[%s11952_s19 + $0x30] sm:$0xff] }
 0xec7   :  { %v5303_v26 = vadd.f32 %v5302_v34, %v5301_v7  ;;  %v5316_v2 = vrot.slane %v5315_v12, 2  ;;  %v8488_v7 = vpack.c.bf16 %v5609_v8, %v5608_v1  ;;  %v8520_v34 = vpack.c.bf16 %v6644_v23, %v6643_v19  ;;  %v6708_v24 = vld [vmem:[%s11952_s19 + $0x390] sm:$0xff]  ;;  %v6709_v18 = vld [vmem:[%s11952_s19 + $0x398] sm:$0xff] }
 0xec8   :  { %v5298_v61 = vrot.slane %v5297_v38, 1  ;;  %v5311_v35 = vadd.f32 %v5310_v16, %v5309_v39  ;;  %v5593_v39 = vld [vmem:[%s11952_s19 + $0x38] sm:$0xff] }
 0xec9   :  { %v5304_v58 = vrot.slane %v5303_v26, 1  ;;  %v5317_v41 = vadd.f32 %v5316_v2, %v5315_v12  ;;  %v8490_v12 = vpack.c.bf16 %v5593_v39, %v5592_v60  ;;  %v6628_v16 = vld [vmem:[%s11952_s19 + $0x138] sm:$0xff]  ;;  %v5610_v2 = vld [vmem:[%s11952_s19 + $0xc0] sm:$0xff] }
 0xeca   :  { %v5312_v40 = vrot.slane %v5311_v35, 1  ;;  %v5299_v17 = vadd.f32 %v5298_v61, %v5297_v38  ;;  %v6627_v38 = vld [vmem:[%s11952_s19 + $0x130] sm:$0xff]  ;;  %v5611_v61 = vld [vmem:[%s11952_s19 + $0xc8] sm:$0xff] }
 0xecb   :  { %v5305_v27 = vadd.f32 %v5304_v58, %v5303_v26  ;;  %v5318_v53 = vrot.slane %v5317_v41, 1  ;;  %v8522_v26 = vpack.c.bf16 %v6628_v16, %v6627_v38  ;;  %v8492_v58 = vpack.c.bf16 %v5611_v61, %v5610_v2 }
 0xecc   :  { %v5313_v33 = vadd.f32 %v5312_v40, %v5311_v35  ;;  %v6645_v35 = vld [vmem:[%s11952_s19 + $0x1c0] sm:$0xff] }
 0xecd   :  { %5448 = vmatprep.mubr.f32.mxu0 %v5305_v27  ;;  %v5319_v63 = vadd.f32 %v5318_v53, %v5317_v41  ;;  %v6646_v41 = vld [vmem:[%s11952_s19 + $0x1c8] sm:$0xff]  ;;  %v5594_v40 = vld [vmem:[%s11952_s19 + $0x40] sm:$0xff] }
 0xece   :  { %5449 = vmatmul.mubr.f32.vlgmr.msra.gmra.mrb[110].mxu0 %v5299_v17  ;;  %v5595_v27 = vld [vmem:[%s11952_s19 + $0x48] sm:$0xff]  ;;  %v8524_v53 = vpack.c.bf16 %v6646_v41, %v6645_v35 }
 0xecf   :  { %5519 = vmatprep.mubr.f32.mxu1 %v5319_v63  ;;  %8479 = vmatpush3.bf16.msra.mxu0 %v8478_v14  ;;  %v8494_v17 = vpack.c.bf16 %v5595_v27, %v5594_v40  ;;  %v6629_v63 = vld [vmem:[%s11952_s19 + $0x140] sm:$0xff]  ;;  %v8528_v14 = vpack.c.bf16 %v6648_v25, %v6647_v55 }
 0xed0   :  { %5520 = vmatmul.mubr.f32.vlgmr.msra.gmra.mrb[168].mxu1 %v5313_v33  ;;  %8481 = vmatprep.subr.bf16.mxu0 %v8480_v51  ;;  %v6630_v33 = vld [vmem:[%s11952_s19 + $0x148] sm:$0xff]  ;;  %v6649_v51 = vld [vmem:[%s11952_s19 + $0x1e0] sm:$0xff] }
 0xed1   :  { %8511 = vmatpush3.bf16.msra.mxu1 %v8510_v4  ;;  %v8526_v50 = vpack.c.bf16 %v6630_v33, %v6629_v63  ;;  %v6632_v4 = vld [vmem:[%s11952_s19 + $0x158] sm:$0xff]  ;;  %v8532_v28 = vpack.c.bf16 %v6650_v46, %v6649_v51  ;;  %v5688_v51 = vld [vmem:[%s11978_s13] sm:$0x3] }
 0xed2   :  { %8513 = vmatprep.subr.bf16.mxu1 %v8512_v62  ;;  %v8530_v32 = vpack.c.bf16 %v6632_v4, %v6631_v10  ;;  %v5598_v62 = vld [vmem:[%s11952_s19 + $0x60] sm:$0xff]  ;;  %v6707_v4 = vld [vmem:[%s11952_s19 + $0x388] sm:$0xff] }
 0xed3   :  { %8483 = vmatpush3.bf16.msra.mxu0 %v8482_v21  ;;  %v5599_v21 = vld [vmem:[%s11952_s19 + $0x68] sm:$0xff]  ;;  %v6706_v10 = vld [vmem:[%s11952_s19 + $0x380] sm:$0xff] }
 0xed4   :  { %8485 = vmatprep.subr.bf16.mxu0 %v8484_v36  ;;  %v8502_v15 = vpack.c.bf16 %v5599_v21, %v5598_v62  ;;  %v6656_v46 = vld [vmem:[%s11952_s19 + $0x200] sm:$0xff] }
 0xed5   :  { %8515 = vmatpush3.bf16.msra.mxu1 %v8514_v47  ;;  %v6634_v47 = vld [vmem:[%s11952_s19 + $0x168] sm:$0xff]  ;;  %v6690_v21 = vld [vmem:[%s11952_s19 + $0x300] sm:$0xff] }
 0xed6   :  { %8517 = vmatprep.subr.bf16.mxu1 %v8516_v56  ;;  %v8534_v36 = vpack.c.bf16 %v6634_v47, %v6633_v31  ;;  %v5600_v56 = vld [vmem:[%s11952_s19 + $0x70] sm:$0xff]  ;;  %v6691_v31 = vld [vmem:[%s11952_s19 + $0x308] sm:$0xff] }
 0xed7   :  { %8487 = vmatpush3.bf16.msra.mxu0 %v8486_v37  ;;  %v6636_v37 = vld [vmem:[%s11952_s19 + $0x178] sm:$0xff] }
 0xed8   :  { %8489 = vmatprep.subr.bf16.mxu0 %v8488_v7  ;;  %v8538_v1 = vpack.c.bf16 %v6636_v37, %v6635_v48  ;;  %v6659_v48 = vld [vmem:[%s11952_s19 + $0x218] sm:$0xff]  ;;  %v6692_v37 = vld [vmem:[%s11952_s19 + $0x310] sm:$0xff] }
 0xed9   :  { %8519 = vmatpush3.bf16.msra.mxu1 %v8518_v52  ;;  %v8506_v52 = vpack.c.bf16 %v5601_v42, %v5600_v56  ;;  %v6658_v42 = vld [vmem:[%s11952_s19 + $0x210] sm:$0xff] }
 0xeda   :  { %8521 = vmatprep.subr.bf16.mxu1 %v8520_v34 }
 0xedb   :  { %8491 = vmatpush3.bf16.msra.mxu0 %v8490_v12 }
 0xedc   :  { %8493 = vmatprep.subr.bf16.mxu0 %v8492_v58  ;;  %v5544_v58 = vld [vmem:[%s11949_s16] sm:$0x3] }
 0xedd   :  { %8523 = vmatpush3.bf16.msra.mxu1 %v8522_v26  ;;  %v5549_v41 = vrot.slane %v5544_v58, %v11120_v44  ;;  %v5553_v40 = vrot.slane %v5544_v58, %v11135_v20  ;;  %v6679_v58 = vld [vmem:[%s11952_s19 + $0x2b8] sm:$0xff] }
 0xede   :  { %8525 = vmatprep.subr.bf16.mxu1 %v8524_v53 }
 0xedf   :  { %8495 = vmatpush3.bf16.msra.mxu0 %v8494_v17 }
 0xee0   :  { %8497 = vmatprep.subr.bf16.mxu0 %v8496_v22 }
 0xee1   :  { %8527 = vmatpush3.bf16.msra.mxu1 %v8526_v50 }
 0xee2   :  { %8529 = vmatprep.subr.bf16.mxu1 %v8528_v14 }
 0xee3   :  { %8499 = vmatpush3.bf16.msra.mxu0 %v8498_v6 }
 0xee4   :  { %8501 = vmatprep.subr.bf16.mxu0 %v8500_v30  ;;  %v6657_v30 = vld [vmem:[%s11952_s19 + $0x208] sm:$0xff] }
 0xee5   :  { %8531 = vmatpush3.bf16.msra.mxu1 %v8530_v32  ;;  %v8542_v56 = vpack.c.bf16 %v6657_v30, %v6656_v46 }
 0xee6   :  { %8533 = vmatprep.subr.bf16.mxu1 %v8532_v28 }
 0xee7   :  { %8503 = vmatpush3.bf16.msra.mxu0 %v8502_v15  ;;  %v6674_v15 = vld [vmem:[%s11952_s19 + $0x290] sm:$0xff] }
 0xee8   :  { %8505 = vmatprep.subr.bf16.mxu0 %v8504_v0  ;;  %v6675_v0 = vld [vmem:[%s11952_s19 + $0x298] sm:$0xff] }
 0xee9   :  { %8535 = vmatpush3.bf16.msra.mxu1 %v8534_v36  ;;  %v8572_v36 = vpack.c.bf16 %v6707_v4, %v6706_v10  ;;  %v6699_v4 = vld [vmem:[%s11952_s19 + $0x348] sm:$0xff] }
 0xeea   :  { %8537 = vmatprep.subr.bf16.mxu1 %v8536_v54  ;;  %v8574_v54 = vpack.c.bf16 %v6691_v31, %v6690_v21  ;;  %v6667_v21 = vld [vmem:[%s11952_s19 + $0x258] sm:$0xff]  ;;  %v6700_v31 = vld [vmem:[%s11952_s19 + $0x350] sm:$0xff] }
 0xeeb   :  { %8507 = vmatpush3.bf16.msra.mxu0 %v8506_v52  ;;  %v8544_v52 = vpack.c.bf16 %v6675_v0, %v6674_v15  ;;  %v6719_v0 = vld [vmem:[%s11952_s19 + $0x3e8] sm:$0xff] }
 0xeec   :  { %6877 = vmatprep.subr.mxu0 %v11977_v43 }
 0xeed   :  { %8539 = vmatpush3.bf16.msra.mxu1 %v8538_v1  ;;  %v8576_v1 = vpack.c.bf16 %v6709_v18, %v6708_v24 }
 0xeee   :  { %6872 = vmatprep.subr.mxu1 %v11977_v43 }
 0xfa1   :  { %v5450_v8 = vpop.f32.mrb[110].mxu0 }
 0xfa2   :  { %v5526_v19 = vmul.f32 %v5450_v8, %v5450_v8  ;;  %v5537_v7 = vrot.slane %v5450_v8, %v11120_v44  ;;  %v5452_v23 = vpop.f32.mrb[111].mxu0  ;;  %v6693_v8 = vld [vmem:[%s11952_s19 + $0x318] sm:$0xff] }
 0xfa3   :  { %v5527_v60 = vmul.f32 %v5452_v23, %v5452_v23  ;;  %v5541_v39 = vrot.slane %v5452_v23, %v11120_v44  ;;  %v5521_v34 = vpop.f32.mrb[168].mxu1  ;;  %v6710_v23 = vld [vmem:[%s11952_s19 + $0x3a0] sm:$0xff] }
 0xfa4   :  { %v5542_v12 = vsub.f32 %v11484_v3, %v5537_v7  ;;  %v5528_v38 = vsub.f32 %v5521_v34, %v5526_v19  ;;  %v5523_v16 = vpop.f32.mrb[169].mxu1  ;;  %v5568_v3 = vld [vmem:[%s11950_s17] sm:$0x3]  ;;  %v6677_v7 = vld [vmem:[%s11952_s19 + $0x2a8] sm:$0xff]  ;;  %v8578_v34 = vpack.c.bf16 %v6693_v8, %v6692_v37  ;;  %v6687_v8 = vld [vmem:[%s11952_s19 + $0x2f8] sm:$0xff] }
 0xfa5   :  { %v5543_v26 = vsub.f32 %v11489_v49, %v5541_v39  ;;  %v5529_v2 = vsub.f32 %v5523_v16, %v5527_v60  ;;  %v5573_v33 = vrot.slane %v5568_v3, %v11120_v44  ;;  %v5577_v11 = vrot.slane %v5568_v3, %v11135_v20  ;;  %v6673_v20 = vld [vmem:[%s11952_s19 + $0x288] sm:$0xff]  ;;  %v6676_v19 = vld [vmem:[%s11952_s19 + $0x2a0] sm:$0xff] }
 0xfa6   :  { %v5530_v61 = vadd.f32 1e-05, %v5528_v38  ;;  %v6711_v60 = vld [vmem:[%s11952_s19 + $0x3a8] sm:$0xff]  ;;  %v8546_v39 = vpack.c.bf16 %v6659_v48, %v6658_v42  ;;  %v6660_v38 = vld [vmem:[%s11952_s19 + $0x220] sm:$0xff] }
 0xfa7   :  { %v5531_v35 = vadd.f32 1e-05, %v5529_v2  ;;  %v6661_v16 = vld [vmem:[%s11952_s19 + $0x228] sm:$0xff]  ;;  %v8580_v2 = vpack.c.bf16 %v6711_v60, %v6710_v23  ;;  %v6702_v48 = vld [vmem:[%s11952_s19 + $0x360] sm:$0xff] }
 0xfa8   :  { %8722 = vrsqrt.f32 %v5530_v61  ;;  %v6695_v61 = vld [vmem:[%s11952_s19 + $0x328] sm:$0xff] }
 0xfa9   :  { %8724 = vrsqrt.f32 %v5531_v35  ;;  %v6678_v35 = vld [vmem:[%s11952_s19 + $0x2b0] sm:$0xff]  ;;  %v6669_v42 = vld [vmem:[%s11952_s19 + $0x268] sm:$0xff] }
 0xfb2   :  { %v8723_v27 = vpop.eup %8722 }
 0xfb3   :  { %v8725_v53 = vpop.eup %8724  ;;  %v5556_v49 = vmul.f32 %v8723_v27, %v5549_v41  ;;  %v6712_v41 = vld [vmem:[%s11952_s19 + $0x3b0] sm:$0xff]  ;;  %v8550_v27 = vpack.c.bf16 %v6661_v16, %v6660_v38 }
 0xfb4   :  { %v5557_v17 = vmul.f32 %v8725_v53, %v5553_v40  ;;  %v6713_v40 = vld [vmem:[%s11952_s19 + $0x3b8] sm:$0xff]  ;;  %v8552_v53 = vpack.c.bf16 %v6679_v58, %v6678_v35  ;;  %v6704_v16 = vld [vmem:[%s11952_s19 + $0x370] sm:$0xff] }
 0xfb5   :  { %v5561_v63 = vrot.slane %v5556_v49, %v11120_v44  ;;  %v6662_v49 = vld [vmem:[%s11952_s19 + $0x230] sm:$0xff] }
 0xfb6   :  { %v5565_v50 = vrot.slane %v5557_v17, %v11120_v44  ;;  %v6672_v44 = vld [vmem:[%s11952_s19 + $0x280] sm:$0xff]  ;;  %v6663_v17 = vld [vmem:[%s11952_s19 + $0x238] sm:$0xff] }
 0xfb7   :  { %v5566_v13 = vmul.f32 %v5561_v63, %v5542_v12  ;;  %v8540_v29 = vpack.c.bf16 %v6673_v20, %v6672_v44  ;;  %v8548_v12 = vpack.c.bf16 %v6677_v7, %v6676_v19  ;;  %v6696_v63 = vld [vmem:[%s11952_s19 + $0x330] sm:$0xff]  ;;  %v6665_v44 = vld [vmem:[%s11952_s19 + $0x248] sm:$0xff]  ;;  %v6698_v20 = vld [vmem:[%s11952_s19 + $0x340] sm:$0xff] }
 0xfb8   :  { %v5567_v55 = vmul.f32 %v5565_v50, %v5543_v26  ;;  %v6694_v26 = vld [vmem:[%s11952_s19 + $0x320] sm:$0xff]  ;;  %v6697_v50 = vld [vmem:[%s11952_s19 + $0x338] sm:$0xff]  ;;  %v8590_v30 = vpack.c.bf16 %v6699_v4, %v6698_v20  ;;  %v6720_v19 = vld [vmem:[%s11952_s19 + $0x3f0] sm:$0xff] }
 0xfb9   :  { %v5580_v22 = vadd.f32 %v5573_v33, %v5566_v13  ;;  %v8582_v3 = vpack.c.bf16 %v6695_v61, %v6694_v26  ;;  %v8584_v33 = vpack.c.bf16 %v6713_v40, %v6712_v41  ;;  %v6681_v13 = vld [vmem:[%s11952_s19 + $0x2c8] sm:$0xff]  ;;  %v6721_v7 = vld [vmem:[%s11952_s19 + $0x3f8] sm:$0xff] }
 0xfba   :  { %v5581_v25 = vadd.f32 %v5577_v11, %v5567_v55  ;;  %v6680_v11 = vld [vmem:[%s11952_s19 + $0x2c0] sm:$0xff]  ;;  %v8600_v38 = vpack.c.bf16 %v6721_v7, %v6720_v19  ;;  %v6705_v26 = vld [vmem:[%s11952_s19 + $0x378] sm:$0xff] }
 0xfbb   :  { %v5582_v45 = vmul.f32 0.2, %v5580_v22  ;;  %v6714_v55 = vld [vmem:[%s11952_s19 + $0x3c0] sm:$0xff]  ;;  %v8602_v61 = vpack.c.bf16 %v6705_v26, %v6704_v16 }
 0xfbc   :  { %v5583_v5 = vmul.f32 0.2, %v5581_v25 }
 0xfbd   :  { %v11706_v6 = vmax.f32 %v5580_v22, %v5582_v45  ;;  %v6715_v22 = vld [vmem:[%s11952_s19 + $0x3c8] sm:$0xff]  ;;  %v8586_v45 = vpack.c.bf16 %v6697_v50, %v6696_v63 }
 0xfbe   :  { %v5585_v14 = vmax.f32 %v5581_v25, %v5583_v5  ;;  %v8554_v25 = vpack.c.bf16 %v6663_v17, %v6662_v49  ;;  %v8556_v5 = vpack.c.bf16 %v6681_v13, %v6680_v11  ;;  %v8588_v10 = vpack.c.bf16 %v6715_v22, %v6714_v55  ;;  %v6688_v49 = vld [vmem:[%s11978_s13 + $0x4] sm:$0x3] }
 0xfc0   :  { %5682 = vmatprep.mubr.f32.mxu0 %v5585_v14  ;;  %5786 = vmatprep.mubr.f32.mxu1 %v5585_v14 }
 0xfc1   :  { %5683 = vmatmul.mubr.f32.vlgmr.msra.gmra.mrb[112].mxu0 %v11706_v6  ;;  %5787 = vmatmul.mubr.f32.vlgmr.msra.gmra.mrb[170].mxu1 %v11706_v6 }
 0xfc2   :  { %6874 = vmatprep.mubr.msk.f32.mxu1 %vm8948_vm3, %v11977_v43  ;;  %6879 = vmatprep.mubr.msk.f32.mxu0 %vm8948_vm3, %v11977_v43 }
0x1094   :  { %v6756_v9 = vpop.f32.mrb[112].mxu0  ;;  %v6791_v32 = vpop.f32.mrb[170].mxu1 }
0x1095   :  { %v6757_v28 = vpop.f32.mrb[113].mxu0  ;;  %v6792_v62 = vpop.f32.mrb[171].mxu1 }
0x1096   :  { %v6758_v47 = vadd.f32 %v6757_v28, %v6756_v9  ;;  %v6793_v57 = vadd.f32 %v6792_v62, %v6791_v32  ;;  %v6682_v9 = vld [vmem:[%s11952_s19 + $0x2d0] sm:$0xff]  ;;  %v6683_v32 = vld [vmem:[%s11952_s19 + $0x2d8] sm:$0xff] }
0x1097   :  { %v8560_v28 = vpack.c.bf16 %v6683_v32, %v6682_v9  ;;  %v6666_v62 = vld [vmem:[%s11952_s19 + $0x250] sm:$0xff] }
0x1098   :  { %6873 = vmatpush3.msra.mxu1 %v6793_v57  ;;  %6878 = vmatpush3.msra.mxu0 %v6758_v47  ;;  %v6701_v47 = vld [vmem:[%s11952_s19 + $0x358] sm:$0xff]  ;;  %v6684_v57 = vld [vmem:[%s11952_s19 + $0x2e0] sm:$0xff]  ;;  %v8562_v24 = vpack.c.bf16 %v6667_v21, %v6666_v62 }
0x1099   :  { %6875 = vmatmul.mubr.msk.f32.vlgmr.msra.gmra.mrb[172].mxu1 %vm5794_vm4, %v6653_v59  ;;  %6880 = vmatmul.mubr.msk.f32.vlgmr.msra.gmra.mrb[114].mxu0 %vm5794_vm4, %v5688_v51  ;;  %v6716_v59 = vld [vmem:[%s11952_s19 + $0x3d0] sm:$0xff]  ;;  %v6717_v51 = vld [vmem:[%s11952_s19 + $0x3d8] sm:$0xff]  ;;  %v8594_v18 = vpack.c.bf16 %v6701_v47, %v6700_v31 }
0x109a   :  { %8541 = vmatprep.subr.bf16.mxu0 %v8540_v29  ;;  %8573 = vmatprep.subr.bf16.mxu1 %v8572_v36  ;;  %v8592_v15 = vpack.c.bf16 %v6717_v51, %v6716_v59  ;;  %v6685_v29 = vld [vmem:[%s11952_s19 + $0x2e8] sm:$0xff]  ;;  %v6718_v36 = vld [vmem:[%s11952_s19 + $0x3e0] sm:$0xff] }
0x109b   :  { %8543 = vmatpush3.bf16.msra.mxu0 %v8542_v56  ;;  %6038 = vmatprep.mubr.f32.mxu0 %v5585_v14  ;;  %v8564_v56 = vpack.c.bf16 %v6685_v29, %v6684_v57  ;;  %v8596_v37 = vpack.c.bf16 %v6719_v0, %v6718_v36 }
0x109c   :  { %8575 = vmatpush3.bf16.msra.mxu1 %v8574_v54  ;;  %6217 = vmatprep.mubr.f32.mxu1 %v5585_v14  ;;  %v6664_v14 = vld [vmem:[%s11952_s19 + $0x240] sm:$0xff] }
0x109d   :  { %8545 = vmatprep.subr.bf16.mxu0 %v8544_v52  ;;  %8577 = vmatprep.subr.bf16.mxu1 %v8576_v1  ;;  %v8558_v46 = vpack.c.bf16 %v6665_v44, %v6664_v14  ;;  %v6668_v54 = vld [vmem:[%s11952_s19 + $0x260] sm:$0xff]  ;;  %v6703_v52 = vld [vmem:[%s11952_s19 + $0x368] sm:$0xff]  ;;  %v6686_v1 = vld [vmem:[%s11952_s19 + $0x2f0] sm:$0xff] }
0x109e   :  { %v8566_v23 = vpack.c.bf16 %v6669_v42, %v6668_v54  ;;  %v8598_v60 = vpack.c.bf16 %v6703_v52, %v6702_v48 }
0x109f   :  { %8547 = vmatpush3.bf16.msra.mxu0 %v8546_v39  ;;  %v8568_v39 = vpack.c.bf16 %v6687_v8, %v6686_v1 }
0x10a0   :  { %8579 = vmatpush3.bf16.msra.mxu1 %v8578_v34  ;;  %8549 = vmatprep.subr.bf16.mxu0 %v8548_v12  ;;  %v6670_v34 = vld [vmem:[%s11952_s19 + $0x270] sm:$0xff]  ;;  %v6671_v12 = vld [vmem:[%s11952_s19 + $0x278] sm:$0xff] }
0x10a1   :  { %8581 = vmatprep.subr.bf16.mxu1 %v8580_v2  ;;  %v8570_v2 = vpack.c.bf16 %v6671_v12, %v6670_v34 }
0x10a3   :  { %8551 = vmatpush3.bf16.msra.mxu0 %v8550_v27 }
0x10a4   :  { %8583 = vmatpush3.bf16.msra.mxu1 %v8582_v3  ;;  %8553 = vmatprep.subr.bf16.mxu0 %v8552_v53 }
0x10a5   :  { %8585 = vmatprep.subr.bf16.mxu1 %v8584_v33 }
0x10a7   :  { %8555 = vmatpush3.bf16.msra.mxu0 %v8554_v25 }
0x10a8   :  { %8587 = vmatpush3.bf16.msra.mxu1 %v8586_v45  ;;  %8557 = vmatprep.subr.bf16.mxu0 %v8556_v5 }
0x10a9   :  { %8589 = vmatprep.subr.bf16.mxu1 %v8588_v10 }
0x10ab   :  { %8559 = vmatpush3.bf16.msra.mxu0 %v8558_v46 }
0x10ac   :  { %8591 = vmatpush3.bf16.msra.mxu1 %v8590_v30  ;;  %8561 = vmatprep.subr.bf16.mxu0 %v8560_v28 }
0x10ad   :  { %8593 = vmatprep.subr.bf16.mxu1 %v8592_v15 }
0x10af   :  { %8563 = vmatpush3.bf16.msra.mxu0 %v8562_v24 }
0x10b0   :  { %8595 = vmatpush3.bf16.msra.mxu1 %v8594_v18  ;;  %8565 = vmatprep.subr.bf16.mxu0 %v8564_v56 }
0x10b1   :  { %8597 = vmatprep.subr.bf16.mxu1 %v8596_v37 }
0x10b3   :  { %8567 = vmatpush3.bf16.msra.mxu0 %v8566_v23 }
0x10b4   :  { %8599 = vmatpush3.bf16.msra.mxu1 %v8598_v60  ;;  %8569 = vmatprep.subr.bf16.mxu0 %v8568_v39 }
0x10b5   :  { %8601 = vmatprep.subr.bf16.mxu1 %v8600_v38 }
0x10b7   :  { %8571 = vmatpush3.bf16.msra.mxu0 %v8570_v2 }
0x10b8   :  { %8603 = vmatpush3.bf16.msra.mxu1 %v8602_v61  ;;  %6882 = vmatprep.subr.mxu0 %v11977_v43 }
0x10ba   :  { %6039 = vmatmul.mubr.f32.vlgmr.msra.gmra.mrb[116].mxu0 %v11706_v6 }
0x10bb   :  { %6218 = vmatmul.mubr.f32.vlgmr.msra.gmra.mrb[174].mxu1 %v11706_v6  ;;  %6884 = vmatprep.mubr.msk.f32.mxu0 %vm8948_vm3, %v11977_v43  ;;  %v6722_v6 = vld [vmem:[%s11978_s13 + $0x6] sm:$0x3] }
0x116c   :  { %v5864_v35 = vpop.f32.mrb[172].mxu1 }
0x116d   :  { %v6876_v58 = vpop.f32.mrb[173].mxu1 }
0x118d   :  { %v6830_v41 = vpop.f32.mrb[116].mxu0 }
0x118e   :  { %v6867_v40 = vpop.f32.mrb[174].mxu1  ;;  %v6831_v27 = vpop.f32.mrb[117].mxu0 }
0x118f   :  { %v6832_v3 = vadd.f32 %v6831_v27, %v6830_v41  ;;  %v6868_v53 = vpop.f32.mrb[175].mxu1 }
0x1190   :  { %v6869_v17 = vadd.f32 %v6868_v53, %v6867_v40 }
0x1191   :  { %6883 = vmatpush3.msra.mxu0 %v6832_v3 }
0x1192   :  { %6885 = vmatmul.mubr.msk.f32.vlgmr.msra.gmra.mrb[114].mxu0 %vm5794_vm4, %v6688_v49  ;;  %6887 = vmatprep.subr.mxu0 %v11977_v43 }
0x1193   :  { %6888 = vmatpush3.msra.mxu0 %v6869_v17  ;;  %6889 = vmatprep.mubr.msk.f32.mxu0 %vm8948_vm3, %v11977_v43 }
0x119a   :  { %6890 = vmatmul.mubr.msk.f32.vlgmr.msra.gmra.mrb[114].mxu0 %vm5794_vm4, %v6722_v6 }
0x126d   :  { %v6294_v63 = vpop.f32.mrb[114].mxu0 }
0x126e   :  { %v8604_v33 = vadd.f32 %v6294_v63, %v5864_v35  ;;  %v6891_v50 = vpop.f32.mrb[115].mxu0 }
0x1270   :  { %6300 = vst.msk [vmem:[%s11979_s4] sm:$0x3] %vm6299_vm5, %v8604_v33 }
0x1271   :  { %6305 = vsyncpa [#allocation3], 1 }
0x1272   :  { %6306 = vsyncpa [#allocation5], 1 }
0x1273   :  { %6307 = vsyncpa [#allocation8], 1 }
0x1274   :  { %6308 = vsyncpa [#allocation11], 1 }
0x1275   :  { %6309 = vsyncpa [#allocation14], 1 }

</bundles_post_ra>
